<compile_context>
chip_gen: v7x
topology: tpu7x:2x2x1
jax: 0.10.0
libtpu: 0.0.40
codegen_flags: <defaults>
</compile_context>

<pallas_src>
import numpy as np
import jax
import jax.numpy as jnp
from jax import lax
from jax.experimental import pallas as pl
from jax.experimental.pallas import tpu as pltpu

# Static network geometry (PNet applied to a 16x16 input).
H_IN, W_IN = 16, 16
C_IN = 3
C1, C2, C3 = 10, 16, 32
H1, W1_ = H_IN - 2, W_IN - 2          # 14, 14 after conv1 (3x3 valid)
HP, WP = H1 // 2, W1_ // 2            # 7, 7   after 2x2/2 max-pool
H2, W2_ = HP - 2, WP - 2              # 5, 5   after conv2
H3, W3_ = H2 - 2, W2_ - 2             # 3, 3   after conv3
N_PROB, N_REG = 2, 4

QUAD = HP * WP * C1                   # 490 valid lanes per pooling quadrant
QUAD_PAD = 512                        # 128-aligned quadrant stride
N1_LANES = 4 * QUAD_PAD               # 2048 conv1 output lanes (quadrant layout)
N2_LANES = H2 * W2_ * C2              # 400 conv2 output lanes
N3_LANES = H3 * W3_ * C3              # 288 conv3 output lanes
OUT_LANES = (N_PROB + N_REG) * H3 * W3_   # 54 packed output lanes per image
OUT_PAD = 128                         # lane-dense output width
X_LANES = C_IN * H_IN * W_IN          # 768 NCHW-flat input lanes


# --------------------------------------------------------------------------
# Kernel: 4 whole-layer matmuls + elementwise PReLU / pool / softmax
# --------------------------------------------------------------------------
def pnet_kernel(x_ref,
                w1_ref, b1_ref, a1_ref,
                w2_ref, b2_ref, a2_ref,
                w3_ref, b3_ref, a3_ref,
                wh_ref, bh_ref,
                out_ref):
    f32 = jnp.float32
    x = x_ref[...]                                                 # (B, 768)

    # ---- conv1 (3x3, 3->10) + PReLU: one matmul, quadrant output layout ----
    z = jnp.dot(x, w1_ref[...], preferred_element_type=f32) + b1_ref[...]
    h1 = jnp.where(z >= 0, z, a1_ref[...] * z)                     # (B, 2048)

    # ---- 2x2 / stride-2 max-pool: max over the four (h%2, w%2) quadrants ---
    q = QUAD_PAD
    pooled = jnp.maximum(
        jnp.maximum(h1[:, 0 * q:1 * q], h1[:, 1 * q:2 * q]),
        jnp.maximum(h1[:, 2 * q:3 * q], h1[:, 3 * q:4 * q]))       # (B, 512)

    # ---- conv2 (3x3, 10->16) + PReLU ---------------------------------------
    z = jnp.dot(pooled, w2_ref[...], preferred_element_type=f32) + b2_ref[...]
    h2 = jnp.where(z >= 0, z, a2_ref[...] * z)                     # (B, 400)

    # ---- conv3 (3x3, 16->32) + PReLU ---------------------------------------
    z = jnp.dot(h2, w3_ref[...], preferred_element_type=f32) + b3_ref[...]
    h3 = jnp.where(z >= 0, z, a3_ref[...] * z)                     # (B, 288)

    # ---- fused 1x1 heads: packed [prob(2,3,3), reg(4,3,3), pad] ------------
    head = jnp.dot(h3, wh_ref[...], preferred_element_type=f32) + bh_ref[...]  # (B, 128)

    # Softmax over the two face-class logits (lanes [0:9] vs [9:18]).
    hw = H3 * W3_
    l0 = head[:, 0:hw]
    l1 = head[:, hw:2 * hw]
    m = jnp.maximum(l0, l1)
    e0 = jnp.exp(l0 - m)
    e1 = jnp.exp(l1 - m)
    d = e0 + e1
    inv = pl.reciprocal(d, approx=True)        # EUP
    inv = inv * (2.0 - d * inv)                # one Newton step -> f32 accuracy

    out_ref[...] = head                        # single unmasked 128-lane store
    out_ref[:, 0:hw] = e0 * inv
    out_ref[:, hw:2 * hw] = e1 * inv


# --------------------------------------------------------------------------
# Wrapper-side constant construction (conv-as-matmul weights, tiled biases /
# PReLU alphas, fused heads)
# --------------------------------------------------------------------------
def _round_up(v, m):
    return ((v + m - 1) // m) * m


def _conv1_matrix(w1):
    """Whole-layer conv1 as a matmul.

    Input rows: NCHW-flat lanes  c*256 + h*16 + w.
    Output cols: grouped by pooling quadrant (h%2, w%2); within a quadrant
    lane = p*70 + q*10 + cout (p = h//2, q = w//2), padded to 512 lanes."""
    W = np.zeros((X_LANES, N1_LANES), np.float32)
    ho = np.arange(H1)[:, None, None]
    wo = np.arange(W1_)[None, :, None]
    co = np.arange(C1)[None, None, :]
    quad = (ho % 2) * 2 + (wo % 2)
    cols = quad * QUAD_PAD + (ho // 2) * (WP * C1) + (wo // 2) * C1 + co
    cols = np.broadcast_to(cols, (H1, W1_, C1)).ravel()
    for kh in range(3):
        for kw in range(3):
            for ci in range(C_IN):
                rows = ci * (H_IN * W_IN) + (ho + kh) * W_IN + (wo + kw)
                rows = np.broadcast_to(rows, (H1, W1_, C1)).ravel()
                vals = np.broadcast_to(w1[kh, kw, ci, :], (H1, W1_, C1)).ravel()
                W[rows, cols] = vals
    return W


def _conv2_matrix(w2):
    """Pooled map (lane p*70 + q*10 + cin, 512-padded) -> conv2 out
    (lane h2*80 + w2*16 + cout)."""
    W = np.zeros((QUAD_PAD, N2_LANES), np.float32)
    ho = np.arange(H2)[:, None, None]
    wo = np.arange(W2_)[None, :, None]
    co = np.arange(C2)[None, None, :]
    cols = np.broadcast_to(ho * (W2_ * C2) + wo * C2 + co, (H2, W2_, C2)).ravel()
    for kh in range(3):
        for kw in range(3):
            for ci in range(C1):
                rows = (ho + kh) * (WP * C1) + (wo + kw) * C1 + ci
                rows = np.broadcast_to(rows, (H2, W2_, C2)).ravel()
                vals = np.broadcast_to(w2[kh, kw, ci, :], (H2, W2_, C2)).ravel()
                W[rows, cols] = vals
    return W


def _conv3_matrix(w3):
    """conv2 out (lane h2*80 + w2*16 + cin) -> conv3 out (lane h3*96 + w3*32 + cout)."""
    W = np.zeros((N2_LANES, N3_LANES), np.float32)
    ho = np.arange(H3)[:, None, None]
    wo = np.arange(W3_)[None, :, None]
    co = np.arange(C3)[None, None, :]
    cols = np.broadcast_to(ho * (W3_ * C3) + wo * C3 + co, (H3, W3_, C3)).ravel()
    for kh in range(3):
        for kw in range(3):
            for ci in range(C2):
                rows = (ho + kh) * (W2_ * C2) + (wo + kw) * C2 + ci
                rows = np.broadcast_to(rows, (H3, W3_, C3)).ravel()
                vals = np.broadcast_to(w3[kh, kw, ci, :], (H3, W3_, C3)).ravel()
                W[rows, cols] = vals
    return W


def _head_matrix(w41, b41, w42, b42):
    """1x1 heads fused into one (288, 128) weight producing the packed
    NCHW-flat [prob(2,3,3), reg(4,3,3), zero-pad] output slab."""
    hw = H3 * W3_
    Wh = np.zeros((N3_LANES, OUT_PAD), np.float32)
    bh = np.zeros((1, OUT_PAD), np.float32)
    ho = np.arange(H3)[:, None, None]
    wo = np.arange(W3_)[None, :, None]
    ci = np.arange(C3)[None, None, :]
    rows = np.broadcast_to(ho * (W3_ * C3) + wo * C3 + ci, (H3, W3_, C3)).ravel()
    pos = np.broadcast_to(ho * W3_ + wo, (H3, W3_, C3)).ravel()
    for k in range(N_PROB):
        Wh[rows, k * hw + pos] = np.broadcast_to(w41[:, k], (H3, W3_, C3)).ravel()
    for k in range(N_REG):
        Wh[rows, N_PROB * hw + k * hw + pos] = \
            np.broadcast_to(w42[:, k], (H3, W3_, C3)).ravel()
    bh[0, :N_PROB * hw] = np.repeat(b41, hw)
    bh[0, N_PROB * hw:OUT_LANES] = np.repeat(b42, hw)
    return Wh, bh


def _tile_quadrants(v):
    """Per-channel vector -> conv1 quadrant-layout (1, 2048) tile (pad = 0)."""
    one = np.pad(np.tile(v, HP * WP), (0, QUAD_PAD - QUAD))
    return np.tile(one, 4).reshape(1, -1)


def prepare_kernel_params(params):
    (w1, b1, al1, w2, b2, al2, w3, b3, al3, w41, b41, w42, b42) = [
        np.asarray(p, np.float32) for p in params]
    consts = (
        _conv1_matrix(w1),                                  # (768, 2048)
        _tile_quadrants(b1),                                # (1, 2048)
        _tile_quadrants(al1),                               # (1, 2048)
        _conv2_matrix(w2),                                  # (512, 400)
        np.tile(b2, H2 * W2_).reshape(1, -1),               # (1, 400)
        np.tile(al2, H2 * W2_).reshape(1, -1),              # (1, 400)
        _conv3_matrix(w3),                                  # (400, 288)
        np.tile(b3, H3 * W3_).reshape(1, -1),               # (1, 288)
        np.tile(al3, H3 * W3_).reshape(1, -1),              # (1, 288)
    ) + _head_matrix(w41, b41, w42, b42)                    # (288, 128), (1, 128)
    return [jnp.asarray(c) for c in consts]


def _choose_b_tile(n, b_tile_max):
    """Batch tile: multiple of 8; force >=2 grid steps for large batches so
    dimension_semantics=('parallel',) can use both TensorCores on v7x."""
    b_max = max(8, (int(b_tile_max) // 8) * 8)
    b = min(b_max, _round_up(max(n, 1), 8))
    if n >= 16 and _round_up(n, b) == b:         # would be a single grid step
        half = _round_up(n, 16) // 2
        b = max(8, (half // 8) * 8)
    return b


# --------------------------------------------------------------------------
# Public forward
# --------------------------------------------------------------------------
def pnet_forward(x_nchw, params, *, b_tile_max=256):
    """PNet forward; returns (reg, prob) in NCHW like the torch module (b, a)."""
    n = x_nchw.shape[0]
    assert x_nchw.shape[1:] == (C_IN, H_IN, W_IN), \
        "kernel is specialized to 3x16x16 inputs (pool ceil_mode path unused)"

    kparams = prepare_kernel_params(params)

    b_tile = _choose_b_tile(n, b_tile_max)
    n_pad = _round_up(n, b_tile)

    # NCHW -> NCHW-flat (free reshape, no transpose pass over HBM); the conv1
    # matmul weight encodes the (c, h, w) ordering.
    x = x_nchw.astype(jnp.float32).reshape(n, X_LANES)
    if n_pad != n:
        x = jnp.pad(x, ((0, n_pad - n), (0, 0)))

    grid = (n_pad // b_tile,)

    def const_spec(a):
        nd = a.ndim
        return pl.BlockSpec(a.shape, lambda i, _nd=nd: (0,) * _nd)

    in_specs = [pl.BlockSpec((b_tile, X_LANES), lambda i: (i, 0))]
    in_specs += [const_spec(p) for p in kparams]
    out_spec = pl.BlockSpec((b_tile, OUT_PAD), lambda i: (i, 0))

    out = pl.pallas_call(
        pnet_kernel,
        out_shape=jax.ShapeDtypeStruct((n_pad, OUT_PAD), jnp.float32),
        grid_spec=pltpu.PrefetchScalarGridSpec(
            num_scalar_prefetch=0,
            grid=grid,
            in_specs=in_specs,
            out_specs=out_spec),
        compiler_params=pltpu.CompilerParams(
            dimension_semantics=("parallel",),   # shards grid steps across TCs on v7x
            vmem_limit_bytes=48 * 1024 * 1024),  # ~24 MiB actual use at b_tile=256
    )(x, *kparams)

    out = out[:n]
    hw = H3 * W3_
    prob = out[:, :N_PROB * hw].reshape(n, N_PROB, H3, W3_)
    reg = out[:, N_PROB * hw:(N_PROB + N_REG) * hw].reshape(n, N_REG, H3, W3_)
    return reg, prob                              # (b, a) like the torch module


# --------------------------------------------------------------------------
# Parameters & plain-JAX reference (for validation)
# --------------------------------------------------------------------------
def init_params(key):
    ks = jax.random.split(key, 13)

    def w(k, shape, scale=0.1):
        return scale * jax.random.normal(k, shape, jnp.float32)

    w1 = w(ks[0], (3, 3, C_IN, C1)); b1 = w(ks[1], (C1,), 0.05)
    al1 = 0.25 + 0.05 * jax.random.normal(ks[2], (C1,), jnp.float32)
    w2 = w(ks[3], (3, 3, C1, C2)); b2 = w(ks[4], (C2,), 0.05)
    al2 = 0.25 + 0.05 * jax.random.normal(ks[5], (C2,), jnp.float32)
    w3 = w(ks[6], (3, 3, C2, C3)); b3 = w(ks[7], (C3,), 0.05)
    al3 = 0.25 + 0.05 * jax.random.normal(ks[8], (C3,), jnp.float32)
    w41 = w(ks[9], (C3, N_PROB)); b41 = w(ks[10], (N_PROB,), 0.05)
    w42 = w(ks[11], (C3, N_REG)); b42 = w(ks[12], (N_REG,), 0.05)
    return (w1, b1, al1, w2, b2, al2, w3, b3, al3, w41, b41, w42, b42)


def pnet_reference(x_nchw, params):
    (w1, b1, al1, w2, b2, al2, w3, b3, al3, w41, b41, w42, b42) = params
    x = jnp.transpose(x_nchw, (0, 2, 3, 1)).astype(jnp.float32)

    def conv(h, wmat, b):
        y = lax.conv_general_dilated(h, wmat, (1, 1), "VALID",
                                     dimension_numbers=("NHWC", "HWIO", "NHWC"))
        return y + b.reshape(1, 1, 1, -1)

    def prelu(h, a):
        return jnp.where(h >= 0, h, a.reshape(1, 1, 1, -1) * h)

    h = prelu(conv(x, w1, b1), al1)
    h = lax.reduce_window(h, -jnp.inf, lax.max, (1, 2, 2, 1), (1, 2, 2, 1), "VALID")
    h = prelu(conv(h, w2, b2), al2)
    h = prelu(conv(h, w3, b3), al3)
    prob = jax.nn.softmax(jnp.einsum("nhwc,ck->nhwk", h, w41)
                          + b41.reshape(1, 1, 1, -1), axis=-1)
    reg = jnp.einsum("nhwc,ck->nhwk", h, w42) + b42.reshape(1, 1, 1, -1)
    return jnp.transpose(reg, (0, 3, 1, 2)), jnp.transpose(prob, (0, 3, 1, 2))


if __name__ == "__main__":
    key = jax.random.PRNGKey(0)
    kx, kp = jax.random.split(key)
    x = jax.random.normal(kx, (2, C_IN, H_IN, W_IN), jnp.float32)   # NCHW like PyTorch
    params = init_params(kp)

    reg, prob = pnet_forward(x, params)
    jax.block_until_ready((reg, prob))

    reg_ref, prob_ref = pnet_reference(x, params)
    assert reg.shape == (2, N_REG, H3, W3_) and prob.shape == (2, N_PROB, H3, W3_)
    assert bool(jnp.allclose(reg, reg_ref, atol=1e-4, rtol=1e-4))
    assert bool(jnp.allclose(prob, prob_ref, atol=1e-4, rtol=1e-4))
    print("KERNEL_OK")
</pallas_src>

<mosaic_0001>
module attributes {stable_mosaic.version = 11 : i64} {
  func.func @pnet_kernel(%arg0: i32, %arg1: memref<8x768xf32, #tpu.memory_space<vmem>>, %arg2: memref<768x2048xf32, #tpu.memory_space<vmem>>, %arg3: memref<1x2048xf32, #tpu.memory_space<vmem>>, %arg4: memref<1x2048xf32, #tpu.memory_space<vmem>>, %arg5: memref<512x400xf32, #tpu.memory_space<vmem>>, %arg6: memref<1x400xf32, #tpu.memory_space<vmem>>, %arg7: memref<1x400xf32, #tpu.memory_space<vmem>>, %arg8: memref<400x288xf32, #tpu.memory_space<vmem>>, %arg9: memref<1x288xf32, #tpu.memory_space<vmem>>, %arg10: memref<1x288xf32, #tpu.memory_space<vmem>>, %arg11: memref<288x128xf32, #tpu.memory_space<vmem>>, %arg12: memref<1x128xf32, #tpu.memory_space<vmem>>, %arg13: memref<8x128xf32, #tpu.memory_space<vmem>>) attributes {dimension_semantics = [#tpu.dimension_semantics<parallel>], iteration_bounds = array<i64: 1>, scalar_prefetch = 0 : i64, scratch_operands = 0 : i64, tpu.core_type = #tpu.core_type<tc>, window_params = [{transform_indices = @transform_0, window_bounds = array<i64: 8, 768>}, {pipeline_mode = #tpu.pipeline_mode<synchronous>, transform_indices = @transform_1, window_bounds = array<i64: 768, 2048>}, {pipeline_mode = #tpu.pipeline_mode<synchronous>, transform_indices = @transform_2, window_bounds = array<i64: 1, 2048>}, {pipeline_mode = #tpu.pipeline_mode<synchronous>, transform_indices = @transform_3, window_bounds = array<i64: 1, 2048>}, {pipeline_mode = #tpu.pipeline_mode<synchronous>, transform_indices = @transform_4, window_bounds = array<i64: 512, 400>}, {pipeline_mode = #tpu.pipeline_mode<synchronous>, transform_indices = @transform_5, window_bounds = array<i64: 1, 400>}, {pipeline_mode = #tpu.pipeline_mode<synchronous>, transform_indices = @transform_6, window_bounds = array<i64: 1, 400>}, {pipeline_mode = #tpu.pipeline_mode<synchronous>, transform_indices = @transform_7, window_bounds = array<i64: 400, 288>}, {pipeline_mode = #tpu.pipeline_mode<synchronous>, transform_indices = @transform_8, window_bounds = array<i64: 1, 288>}, {pipeline_mode = #tpu.pipeline_mode<synchronous>, transform_indices = @transform_9, window_bounds = array<i64: 1, 288>}, {pipeline_mode = #tpu.pipeline_mode<synchronous>, transform_indices = @transform_10, window_bounds = array<i64: 288, 128>}, {pipeline_mode = #tpu.pipeline_mode<synchronous>, transform_indices = @transform_11, window_bounds = array<i64: 1, 128>}, {transform_indices = @transform_12, window_bounds = array<i64: 8, 128>}]} {
    %c0 = arith.constant 0 : index
    %c0_0 = arith.constant 0 : index
    %0 = vector.load %arg1[%c0, %c0_0] : memref<8x768xf32, #tpu.memory_space<vmem>>, vector<8x768xf32>
    %c0_1 = arith.constant 0 : index
    %c0_2 = arith.constant 0 : index
    %1 = vector.load %arg2[%c0_1, %c0_2] : memref<768x2048xf32, #tpu.memory_space<vmem>>, vector<768x2048xf32>
    %cst = arith.constant dense<0.000000e+00> : vector<8x2048xf32>
    %2 = tpu.matmul %0, %1, %cst {dimension_numbers = #tpu.dot_dimension_numbers<[1], [0], [0], [1], [0, 0, 1, 1], [], []>} : vector<8x768xf32>, vector<768x2048xf32>, vector<8x2048xf32> -> vector<8x2048xf32>
    %c0_3 = arith.constant 0 : index
    %c0_4 = arith.constant 0 : index
    %3 = vector.load %arg3[%c0_3, %c0_4] : memref<1x2048xf32, #tpu.memory_space<vmem>>, vector<1x2048xf32>
    %4 = vector.broadcast %3 : vector<1x2048xf32> to vector<8x2048xf32>
    %5 = arith.addf %2, %4 : vector<8x2048xf32>
    %cst_5 = arith.constant 0.000000e+00 : f32
    %6 = vector.broadcast %cst_5 : f32 to vector<8x2048xf32>
    %7 = arith.cmpf oge, %5, %6 : vector<8x2048xf32>
    %c0_6 = arith.constant 0 : index
    %c0_7 = arith.constant 0 : index
    %8 = vector.load %arg4[%c0_6, %c0_7] : memref<1x2048xf32, #tpu.memory_space<vmem>>, vector<1x2048xf32>
    %9 = vector.broadcast %8 : vector<1x2048xf32> to vector<8x2048xf32>
    %10 = arith.mulf %9, %5 : vector<8x2048xf32>
    %11 = arith.select %7, %5, %10 : vector<8x2048xi1>, vector<8x2048xf32>
    %12 = vector.extract_strided_slice %11 {offsets = [0, 0], sizes = [8, 512], strides = [1, 1]} : vector<8x2048xf32> to vector<8x512xf32>
    %13 = vector.extract_strided_slice %11 {offsets = [0, 512], sizes = [8, 512], strides = [1, 1]} : vector<8x2048xf32> to vector<8x512xf32>
    %14 = arith.maximumf %12, %13 : vector<8x512xf32>
    %15 = vector.extract_strided_slice %11 {offsets = [0, 1024], sizes = [8, 512], strides = [1, 1]} : vector<8x2048xf32> to vector<8x512xf32>
    %16 = vector.extract_strided_slice %11 {offsets = [0, 1536], sizes = [8, 512], strides = [1, 1]} : vector<8x2048xf32> to vector<8x512xf32>
    %17 = arith.maximumf %15, %16 : vector<8x512xf32>
    %18 = arith.maximumf %14, %17 : vector<8x512xf32>
    %c0_8 = arith.constant 0 : index
    %c0_9 = arith.constant 0 : index
    %19 = vector.load %arg5[%c0_8, %c0_9] : memref<512x400xf32, #tpu.memory_space<vmem>>, vector<512x400xf32>
    %cst_10 = arith.constant dense<0.000000e+00> : vector<8x400xf32>
    %20 = tpu.matmul %18, %19, %cst_10 {dimension_numbers = #tpu.dot_dimension_numbers<[1], [0], [0], [1], [0, 0, 1, 1], [], []>} : vector<8x512xf32>, vector<512x400xf32>, vector<8x400xf32> -> vector<8x400xf32>
    %c0_11 = arith.constant 0 : index
    %c0_12 = arith.constant 0 : index
    %21 = vector.load %arg6[%c0_11, %c0_12] : memref<1x400xf32, #tpu.memory_space<vmem>>, vector<1x400xf32>
    %22 = vector.broadcast %21 : vector<1x400xf32> to vector<8x400xf32>
    %23 = arith.addf %20, %22 : vector<8x400xf32>
    %cst_13 = arith.constant 0.000000e+00 : f32
    %24 = vector.broadcast %cst_13 : f32 to vector<8x400xf32>
    %25 = arith.cmpf oge, %23, %24 : vector<8x400xf32>
    %c0_14 = arith.constant 0 : index
    %c0_15 = arith.constant 0 : index
    %26 = vector.load %arg7[%c0_14, %c0_15] : memref<1x400xf32, #tpu.memory_space<vmem>>, vector<1x400xf32>
    %27 = vector.broadcast %26 : vector<1x400xf32> to vector<8x400xf32>
    %28 = arith.mulf %27, %23 : vector<8x400xf32>
    %29 = arith.select %25, %23, %28 : vector<8x400xi1>, vector<8x400xf32>
    %c0_16 = arith.constant 0 : index
    %c0_17 = arith.constant 0 : index
    %30 = vector.load %arg8[%c0_16, %c0_17] : memref<400x288xf32, #tpu.memory_space<vmem>>, vector<400x288xf32>
    %cst_18 = arith.constant dense<0.000000e+00> : vector<8x288xf32>
    %31 = tpu.matmul %29, %30, %cst_18 {dimension_numbers = #tpu.dot_dimension_numbers<[1], [0], [0], [1], [0, 0, 1, 1], [], []>} : vector<8x400xf32>, vector<400x288xf32>, vector<8x288xf32> -> vector<8x288xf32>
    %c0_19 = arith.constant 0 : index
    %c0_20 = arith.constant 0 : index
    %32 = vector.load %arg9[%c0_19, %c0_20] : memref<1x288xf32, #tpu.memory_space<vmem>>, vector<1x288xf32>
    %33 = vector.broadcast %32 : vector<1x288xf32> to vector<8x288xf32>
    %34 = arith.addf %31, %33 : vector<8x288xf32>
    %cst_21 = arith.constant 0.000000e+00 : f32
    %35 = vector.broadcast %cst_21 : f32 to vector<8x288xf32>
    %36 = arith.cmpf oge, %34, %35 : vector<8x288xf32>
    %c0_22 = arith.constant 0 : index
    %c0_23 = arith.constant 0 : index
    %37 = vector.load %arg10[%c0_22, %c0_23] : memref<1x288xf32, #tpu.memory_space<vmem>>, vector<1x288xf32>
    %38 = vector.broadcast %37 : vector<1x288xf32> to vector<8x288xf32>
    %39 = arith.mulf %38, %34 : vector<8x288xf32>
    %40 = arith.select %36, %34, %39 : vector<8x288xi1>, vector<8x288xf32>
    %c0_24 = arith.constant 0 : index
    %c0_25 = arith.constant 0 : index
    %41 = vector.load %arg11[%c0_24, %c0_25] : memref<288x128xf32, #tpu.memory_space<vmem>>, vector<288x128xf32>
    %cst_26 = arith.constant dense<0.000000e+00> : vector<8x128xf32>
    %42 = tpu.matmul %40, %41, %cst_26 {dimension_numbers = #tpu.dot_dimension_numbers<[1], [0], [0], [1], [0, 0, 1, 1], [], []>} : vector<8x288xf32>, vector<288x128xf32>, vector<8x128xf32> -> vector<8x128xf32>
    %c0_27 = arith.constant 0 : index
    %c0_28 = arith.constant 0 : index
    %43 = vector.load %arg12[%c0_27, %c0_28] : memref<1x128xf32, #tpu.memory_space<vmem>>, vector<1x128xf32>
    %44 = vector.broadcast %43 : vector<1x128xf32> to vector<8x128xf32>
    %45 = arith.addf %42, %44 : vector<8x128xf32>
    %46 = vector.extract_strided_slice %45 {offsets = [0, 0], sizes = [8, 9], strides = [1, 1]} : vector<8x128xf32> to vector<8x9xf32>
    %47 = vector.extract_strided_slice %45 {offsets = [0, 9], sizes = [8, 9], strides = [1, 1]} : vector<8x128xf32> to vector<8x9xf32>
    %48 = arith.maximumf %46, %47 : vector<8x9xf32>
    %49 = arith.subf %46, %48 : vector<8x9xf32>
    %50 = math.exp %49 : vector<8x9xf32>
    %51 = arith.subf %47, %48 : vector<8x9xf32>
    %52 = math.exp %51 : vector<8x9xf32>
    %53 = arith.addf %50, %52 : vector<8x9xf32>
    %54 = tpu.reciprocal %53 {approx = true} : vector<8x9xf32> -> vector<8x9xf32>
    %55 = arith.mulf %53, %54 : vector<8x9xf32>
    %cst_29 = arith.constant 2.000000e+00 : f32
    %56 = vector.broadcast %cst_29 : f32 to vector<8x9xf32>
    %57 = arith.subf %56, %55 : vector<8x9xf32>
    %58 = arith.mulf %54, %57 : vector<8x9xf32>
    %c0_30 = arith.constant 0 : index
    %c0_31 = arith.constant 0 : index
    %59 = vector.load %arg13[%c0_30, %c0_31] : memref<8x128xf32, #tpu.memory_space<vmem>>, vector<8x128xf32>
    tpu.vector_store %arg13[%c0_30, %c0_31], %45 {strides = array<i32>} : memref<8x128xf32, #tpu.memory_space<vmem>>, vector<8x128xf32>,
    %60 = arith.mulf %50, %58 : vector<8x9xf32>
    %c0_32 = arith.constant 0 : index
    %c0_33 = arith.constant 0 : index
    %61 = vector.load %arg13[%c0_32, %c0_33] : memref<8x128xf32, #tpu.memory_space<vmem>>, vector<8x9xf32>
    tpu.vector_store %arg13[%c0_32, %c0_33], %60 {strides = array<i32>} : memref<8x128xf32, #tpu.memory_space<vmem>>, vector<8x9xf32>,
    %62 = arith.mulf %52, %58 : vector<8x9xf32>
    %c0_34 = arith.constant 0 : index
    %c9 = arith.constant 9 : index
    %63 = vector.load %arg13[%c0_34, %c9] : memref<8x128xf32, #tpu.memory_space<vmem>>, vector<8x9xf32>
    tpu.vector_store %arg13[%c0_34, %c9], %62 {strides = array<i32>} : memref<8x128xf32, #tpu.memory_space<vmem>>, vector<8x9xf32>,
    return
  }
  func.func @transform_0(%arg0: i32) -> (i32, i32) {
    %c0_i32 = arith.constant 0 : i32
    %c0_i32_0 = arith.constant 0 : i32
    return %arg0, %c0_i32 : i32, i32
  }
  func.func @transform_1(%arg0: i32) -> (i32, i32) {
    %c0_i32 = arith.constant 0 : i32
    %c0_i32_0 = arith.constant 0 : i32
    %c0_i32_1 = arith.constant 0 : i32
    return %c0_i32, %c0_i32_0 : i32, i32
  }
  func.func @transform_2(%arg0: i32) -> (i32, i32) {
    %c0_i32 = arith.constant 0 : i32
    %c0_i32_0 = arith.constant 0 : i32
    %c0_i32_1 = arith.constant 0 : i32
    return %c0_i32, %c0_i32_0 : i32, i32
  }
  func.func @transform_3(%arg0: i32) -> (i32, i32) {
    %c0_i32 = arith.constant 0 : i32
    %c0_i32_0 = arith.constant 0 : i32
    %c0_i32_1 = arith.constant 0 : i32
    return %c0_i32, %c0_i32_0 : i32, i32
  }
  func.func @transform_4(%arg0: i32) -> (i32, i32) {
    %c0_i32 = arith.constant 0 : i32
    %c0_i32_0 = arith.constant 0 : i32
    %c0_i32_1 = arith.constant 0 : i32
    return %c0_i32, %c0_i32_0 : i32, i32
  }
  func.func @transform_5(%arg0: i32) -> (i32, i32) {
    %c0_i32 = arith.constant 0 : i32
    %c0_i32_0 = arith.constant 0 : i32
    %c0_i32_1 = arith.constant 0 : i32
    return %c0_i32, %c0_i32_0 : i32, i32
  }
  func.func @transform_6(%arg0: i32) -> (i32, i32) {
    %c0_i32 = arith.constant 0 : i32
    %c0_i32_0 = arith.constant 0 : i32
    %c0_i32_1 = arith.constant 0 : i32
    return %c0_i32, %c0_i32_0 : i32, i32
  }
  func.func @transform_7(%arg0: i32) -> (i32, i32) {
    %c0_i32 = arith.constant 0 : i32
    %c0_i32_0 = arith.constant 0 : i32
    %c0_i32_1 = arith.constant 0 : i32
    return %c0_i32, %c0_i32_0 : i32, i32
  }
  func.func @transform_8(%arg0: i32) -> (i32, i32) {
    %c0_i32 = arith.constant 0 : i32
    %c0_i32_0 = arith.constant 0 : i32
    %c0_i32_1 = arith.constant 0 : i32
    return %c0_i32, %c0_i32_0 : i32, i32
  }
  func.func @transform_9(%arg0: i32) -> (i32, i32) {
    %c0_i32 = arith.constant 0 : i32
    %c0_i32_0 = arith.constant 0 : i32
    %c0_i32_1 = arith.constant 0 : i32
    return %c0_i32, %c0_i32_0 : i32, i32
  }
  func.func @transform_10(%arg0: i32) -> (i32, i32) {
    %c0_i32 = arith.constant 0 : i32
    %c0_i32_0 = arith.constant 0 : i32
    %c0_i32_1 = arith.constant 0 : i32
    return %c0_i32, %c0_i32_0 : i32, i32
  }
  func.func @transform_11(%arg0: i32) -> (i32, i32) {
    %c0_i32 = arith.constant 0 : i32
    %c0_i32_0 = arith.constant 0 : i32
    %c0_i32_1 = arith.constant 0 : i32
    return %c0_i32, %c0_i32_0 : i32, i32
  }
  func.func @transform_12(%arg0: i32) -> (i32, i32) {
    %c0_i32 = arith.constant 0 : i32
    %c0_i32_0 = arith.constant 0 : i32
    return %arg0, %c0_i32 : i32, i32
  }
}

</mosaic_0001>

<bundles_post_ra>
// kernel: tpu_custom_call.1
= control target key start
LH: loop header
LB: loop body
LE: loop exit
PB: predicated region body
PF: predicated region fallthrough
CT: control target
= control target key end

     0   :  { %17 = vsyncpa [#allocation3], 0  ;;  %s9019_s0 = inlined_call_operand.hbm [shape: f32[8,768], index: 0, kind: input, shape index: {}]   ;;  %s9020_s1 = inlined_call_operand.hbm [shape: f32[768,2048], index: 1, kind: input, shape index: {}]   ;;  %s9021_s2 = inlined_call_operand.hbm [shape: f32[1,2048], index: 2, kind: input, shape index: {}]   ;;  %s9022_s3 = inlined_call_operand.hbm [shape: f32[1,2048], index: 3, kind: input, shape index: {}]   ;;  %s9023_s4 = inlined_call_operand.vmem [shape: f32[512,400], index: 4, kind: input, shape index: {}]   ;;  %s9024_s5 = inlined_call_operand.hbm [shape: f32[1,400], index: 5, kind: input, shape index: {}]   ;;  %s9025_s6 = inlined_call_operand.hbm [shape: f32[1,400], index: 6, kind: input, shape index: {}]   ;;  %s9026_s7 = inlined_call_operand.vmem [shape: f32[400,288], index: 7, kind: input, shape index: {}]   ;;  %s9027_s8 = inlined_call_operand.hbm [shape: f32[1,288], index: 8, kind: input, shape index: {}]   ;;  %s9028_s9 = inlined_call_operand.hbm [shape: f32[1,288], index: 9, kind: input, shape index: {}]   ;;  %s9029_s10 = inlined_call_operand.hbm [shape: f32[288,128], index: 10, kind: input, shape index: {}]   ;;  %s9030_s11 = inlined_call_operand.hbm [shape: f32[1,128], index: 11, kind: input, shape index: {}]   ;;  %s9031_s12 = inlined_call_operand.hbm [shape: f32[8,128], index: 12, kind: output, shape index: {}]  }
   0x1   :  { %18 = vsyncpa [#allocation6], 0 }
   0x2   :  { %19 = vsyncpa [#allocation9], 0 }
   0x3   :  { %20 = vsyncpa [#allocation12], 0 }
   0x4   :  { %21 = vsyncpa [#allocation15], 0 }
   0x5   :  { %22 = vsyncpa [#allocation18], 0 }
   0x6   :  { %23 = vsyncpa [#allocation4], 0  ;;  %s7391_s21 = smov [#allocation5]   ;;  %s7135_s25 = scalar_lea.hbm %s9020_s1, 196608 }
   0x7   :  { %s39_s22 = sshll.u32 %s7391_s21, 4  ;;  %p7136_p0 = scmp.ne.s32.totalorder %s9020_s1, %s7135_s25  ;;  %s40_s22 = int_to_ptr.vmem [resolvable:$true] %s39_s22 }
   0x8   :  { %p7139_p1 = scmp.lt.u32.totalorder %s7135_s25, %s9020_s1 }
   0xa   :  { %p7141_p2 = pnand %p7139_p1, %p7136_p0 }
   0xc   :  { %7144 = shalt.err (!%p7141_p2)
}
   0xd   :  { %s7145_s30 = scalar_lea.vmem %s40_s22, 196608  ;;  %p7150_p4 = scmp.lt.s32.totalorder %s40_s22, %s40_s22 }
   0xe   :  { %p7146_p3 = scmp.ne.s32.totalorder %s40_s22, %s7145_s30  ;;  %p7151_p5 = scmp.lt.s32.totalorder %s7145_s30, %s7145_s30 }
  0x10   :  { %p7152_p6 = por %p7151_p5, %p7150_p4 }
  0x12   :  { %p7153_p7 = pnand %p7152_p6, %p7146_p3 }
  0x14   :  { %7156 = shalt.err (!%p7153_p7)
}
  0x15   :  { %s7392_s13 = smov 2048   ;;  %s7393_s14 = smov 128  }
  0x16   :  { %45 = dma.hbm_to_vmem [thread:$0]  %s9020_s1, 196608, %s40_s22, [#allocation6], %s7392_s13, %s7392_s13, %s7393_s14  }
  0x17   :  { %s7394_s17 = smov [#allocation8]   ;;  %s7395_s19 = smov [#allocation11]  }
  0x18   :  { %s62_s18 = sshll.u32 %s7394_s17, 4  ;;  %s84_s20 = sshll.u32 %s7395_s19, 4  ;;  %s63_s18 = int_to_ptr.vmem [resolvable:$true] %s62_s18  ;;  %s85_s20 = int_to_ptr.vmem [resolvable:$true] %s84_s20 }
  0x19   :  { %s7157_s24 = scalar_lea.hbm %s9022_s3, 256 }
  0x1a   :  { %p7158_p8 = scmp.ne.s32.totalorder %s9022_s3, %s7157_s24  ;;  %p7161_p9 = scmp.lt.u32.totalorder %s7157_s24, %s9022_s3 }
  0x1c   :  { %p7163_p10 = pnand %p7161_p9, %p7158_p8 }
  0x1e   :  { %7166 = shalt.err (!%p7163_p10)
}
  0x1f   :  { %s7167_s1 = scalar_lea.vmem %s63_s18, 256  ;;  %p7172_p12 = scmp.lt.s32.totalorder %s63_s18, %s63_s18 }
  0x20   :  { %p7168_p11 = scmp.ne.s32.totalorder %s63_s18, %s7167_s1  ;;  %p7173_p13 = scmp.lt.s32.totalorder %s7167_s1, %s7167_s1 }
  0x22   :  { %p7174_p0 = por %p7173_p13, %p7172_p12 }
  0x24   :  { %p7175_p1 = pnand %p7174_p0, %p7168_p11 }
  0x26   :  { %7178 = shalt.err (!%p7175_p1)
}
  0x27   :  { %65 = dma.hbm_to_vmem [thread:$0]  %s9022_s3, 256, %s63_s18, [#allocation9]  }
  0x28   :  { %s7179_s15 = scalar_lea.hbm %s9025_s6, 64 }
  0x29   :  { %p7180_p2 = scmp.ne.s32.totalorder %s9025_s6, %s7179_s15  ;;  %p7183_p3 = scmp.lt.u32.totalorder %s7179_s15, %s9025_s6 }
  0x2b   :  { %p7185_p4 = pnand %p7183_p3, %p7180_p2 }
  0x2d   :  { %7188 = shalt.err (!%p7185_p4)
}
  0x2e   :  { %s7189_s23 = scalar_lea.vmem %s85_s20, 64  ;;  %p7194_p6 = scmp.lt.s32.totalorder %s85_s20, %s85_s20 }
  0x2f   :  { %p7190_p5 = scmp.ne.s32.totalorder %s85_s20, %s7189_s23  ;;  %p7195_p7 = scmp.lt.s32.totalorder %s7189_s23, %s7189_s23 }
  0x31   :  { %p7196_p8 = por %p7195_p7, %p7194_p6 }
  0x33   :  { %p7197_p9 = pnand %p7196_p8, %p7190_p5 }
  0x35   :  { %7200 = shalt.err (!%p7197_p9)
}
  0x36   :  { %87 = dma.hbm_to_vmem [thread:$0]  %s9025_s6, 64, %s85_s20, [#allocation12]  }
  0x37   :  { %s7396_s24 = smov [#allocation14]   ;;  %s7397_s26 = smov [#allocation2]  }
  0x38   :  { %s106_s25 = sshll.u32 %s7396_s24, 4  ;;  %s30_s27 = sshll.u32 %s7397_s26, 4  ;;  %s107_s25 = int_to_ptr.vmem [resolvable:$true] %s106_s25  ;;  %s31_s27 = int_to_ptr.vmem [resolvable:$true] %s30_s27 }
  0x39   :  { %s7201_s22 = scalar_lea.hbm %s9028_s9, 48 }
  0x3a   :  { %p7202_p10 = scmp.ne.s32.totalorder %s9028_s9, %s7201_s22  ;;  %p7205_p11 = scmp.lt.u32.totalorder %s7201_s22, %s9028_s9 }
  0x3c   :  { %p7207_p12 = pnand %p7205_p11, %p7202_p10 }
  0x3e   :  { %7210 = shalt.err (!%p7207_p12)
}
  0x3f   :  { %s7211_s6 = scalar_lea.vmem %s107_s25, 48  ;;  %s7215_s20 = scalar_lea.vmem %s107_s25, 64 }
  0x40   :  { %p7212_p13 = scmp.ne.s32.totalorder %s107_s25, %s7211_s6  ;;  %p7216_p0 = scmp.lt.s32.totalorder %s107_s25, %s107_s25 }
  0x41   :  { %p7217_p1 = scmp.lt.s32.totalorder %s7215_s20, %s7211_s6 }
  0x43   :  { %p7218_p2 = por %p7217_p1, %p7216_p0 }
  0x45   :  { %p7219_p3 = pnand %p7218_p2, %p7212_p13 }
  0x47   :  { %7222 = shalt.err (!%p7219_p3)
}
  0x48   :  { %109 = dma.hbm_to_vmem [thread:$0]  %s9028_s9, 48, %s107_s25, [#allocation15]  }
  0x49   :  { %s7223_s23 = scalar_lea.hbm %s9019_s0, 768 }
  0x4a   :  { %p7224_p4 = scmp.ne.s32.totalorder %s9019_s0, %s7223_s23  ;;  %p7227_p5 = scmp.lt.u32.totalorder %s7223_s23, %s9019_s0 }
  0x4c   :  { %p7229_p6 = pnand %p7227_p5, %p7224_p4 }
  0x4e   :  { %7232 = shalt.err (!%p7229_p6)
}
  0x4f   :  { %s7233_s28 = scalar_lea.vmem %s31_s27, 768  ;;  %p7238_p8 = scmp.lt.s32.totalorder %s31_s27, %s31_s27 }
  0x50   :  { %p7234_p7 = scmp.ne.s32.totalorder %s31_s27, %s7233_s28  ;;  %p7239_p9 = scmp.lt.s32.totalorder %s7233_s28, %s7233_s28 }
  0x52   :  { %p7240_p10 = por %p7239_p9, %p7238_p8 }
  0x54   :  { %p7241_p11 = pnand %p7240_p10, %p7234_p7 }
  0x56   :  { %7244 = shalt.err (!%p7241_p11)
}
  0x57   :  { %33 = dma.hbm_to_vmem [thread:$0]  %s9019_s0, 768, %s31_s27, [#allocation3]  }
  0x58   :  { %s7398_s1 = smov [#allocation7]   ;;  %s7399_s29 = smov [#allocation10]  }
  0x59   :  { %s52_s22 = sshll.u32 %s7398_s1, 4  ;;  %s74_s30 = sshll.u32 %s7399_s29, 4  ;;  %s53_s22 = int_to_ptr.vmem [resolvable:$true] %s52_s22  ;;  %s75_s30 = int_to_ptr.vmem [resolvable:$true] %s74_s30 }
  0x5a   :  { %s7245_s6 = scalar_lea.hbm %s9021_s2, 256 }
  0x5b   :  { %p7246_p12 = scmp.ne.s32.totalorder %s9021_s2, %s7245_s6  ;;  %p7249_p13 = scmp.lt.u32.totalorder %s7245_s6, %s9021_s2 }
  0x5d   :  { %p7251_p0 = pnand %p7249_p13, %p7246_p12 }
  0x5f   :  { %7254 = shalt.err (!%p7251_p0)
}
  0x60   :  { %s7255_s0 = scalar_lea.vmem %s53_s22, 256  ;;  %p7260_p2 = scmp.lt.s32.totalorder %s53_s22, %s53_s22 }
  0x61   :  { %p7256_p1 = scmp.ne.s32.totalorder %s53_s22, %s7255_s0  ;;  %p7261_p3 = scmp.lt.s32.totalorder %s7255_s0, %s7255_s0 }
  0x63   :  { %p7262_p4 = por %p7261_p3, %p7260_p2 }
  0x65   :  { %p7263_p5 = pnand %p7262_p4, %p7256_p1 }
  0x67   :  { %7266 = shalt.err (!%p7263_p5)
}
  0x68   :  { %55 = dma.hbm_to_vmem [thread:$0]  %s9021_s2, 256, %s53_s22, [#allocation6]  }
  0x69   :  { %s7267_s18 = scalar_lea.hbm %s9024_s5, 64 }
  0x6a   :  { %p7268_p6 = scmp.ne.s32.totalorder %s9024_s5, %s7267_s18  ;;  %p7271_p7 = scmp.lt.u32.totalorder %s7267_s18, %s9024_s5 }
  0x6c   :  { %p7273_p8 = pnand %p7271_p7, %p7268_p6 }
  0x6e   :  { %7276 = shalt.err (!%p7273_p8)
}
  0x6f   :  { %s7277_s25 = scalar_lea.vmem %s75_s30, 64  ;;  %p7282_p10 = scmp.lt.s32.totalorder %s75_s30, %s75_s30 }
  0x70   :  { %p7278_p9 = scmp.ne.s32.totalorder %s75_s30, %s7277_s25  ;;  %p7283_p11 = scmp.lt.s32.totalorder %s7277_s25, %s7277_s25 }
  0x72   :  { %p7284_p12 = por %p7283_p11, %p7282_p10 }
  0x74   :  { %p7285_p13 = pnand %p7284_p12, %p7278_p9 }
  0x76   :  { %7288 = shalt.err (!%p7285_p13)
}
  0x77   :  { %77 = dma.hbm_to_vmem [thread:$0]  %s9024_s5, 64, %s75_s30, [#allocation9]  }
  0x78   :  { %s7400_s22 = smov [#allocation13]   ;;  %s7401_s13 = smov [#allocation16]  }
  0x79   :  { %s96_s29 = sshll.u32 %s7400_s22, 4  ;;  %s115_s15 = sshll.u32 %s7401_s13, 4  ;;  %s97_s29 = int_to_ptr.vmem [resolvable:$true] %s96_s29  ;;  %s116_s15 = int_to_ptr.vmem [resolvable:$true] %s115_s15 }
  0x7a   :  { %s7289_s16 = scalar_lea.hbm %s9027_s8, 48 }
  0x7b   :  { %p7290_p0 = scmp.ne.s32.totalorder %s9027_s8, %s7289_s16  ;;  %p7293_p1 = scmp.lt.u32.totalorder %s7289_s16, %s9027_s8 }
  0x7d   :  { %p7295_p2 = pnand %p7293_p1, %p7290_p0 }
  0x7f   :  { %7298 = shalt.err (!%p7295_p2)
}
  0x80   :  { %s7299_s5 = scalar_lea.vmem %s97_s29, 48  ;;  %s7303_s30 = scalar_lea.vmem %s97_s29, 64 }
  0x81   :  { %p7300_p3 = scmp.ne.s32.totalorder %s97_s29, %s7299_s5  ;;  %p7304_p4 = scmp.lt.s32.totalorder %s97_s29, %s97_s29 }
  0x82   :  { %p7305_p5 = scmp.lt.s32.totalorder %s7303_s30, %s7299_s5 }
  0x84   :  { %p7306_p6 = por %p7305_p5, %p7304_p4 }
  0x86   :  { %p7307_p7 = pnand %p7306_p6, %p7300_p3 }
  0x88   :  { %7310 = shalt.err (!%p7307_p7)
}
  0x89   :  { %99 = dma.hbm_to_vmem [thread:$0]  %s9027_s8, 48, %s97_s29, [#allocation12]  }
  0x8a   :  { %s7311_s24 = scalar_lea.hbm %s9029_s10, 4608 }
  0x8b   :  { %p7312_p8 = scmp.ne.s32.totalorder %s9029_s10, %s7311_s24  ;;  %p7315_p9 = scmp.lt.u32.totalorder %s7311_s24, %s9029_s10 }
  0x8d   :  { %p7317_p10 = pnand %p7315_p9, %p7312_p8 }
  0x8f   :  { %7320 = shalt.err (!%p7317_p10)
}
  0x90   :  { %s7321_s2 = scalar_lea.vmem %s116_s15, 4608  ;;  %p7326_p12 = scmp.lt.s32.totalorder %s116_s15, %s116_s15 }
  0x91   :  { %p7322_p11 = scmp.ne.s32.totalorder %s116_s15, %s7321_s2  ;;  %p7327_p13 = scmp.lt.s32.totalorder %s7321_s2, %s7321_s2 }
  0x93   :  { %p7328_p0 = por %p7327_p13, %p7326_p12 }
  0x95   :  { %p7329_p1 = pnand %p7328_p0, %p7322_p11 }
  0x97   :  { %7332 = shalt.err (!%p7329_p1)
}
  0x98   :  { %s7402_s8 = smov 8   ;;  %s7403_s29 = smov [#allocation17]  }
  0x99   :  { %121 = dma.hbm_to_vmem [thread:$0]  %s9029_s10, 4608, %s116_s15, [#allocation15], %s7393_s14, %s7393_s14, %s7402_s8  }
  0x9a   :  { %s128_s13 = sshll.u32 %s7403_s29, 4  ;;  %s7333_s16 = scalar_lea.hbm %s9030_s11, 16  ;;  %s129_s13 = int_to_ptr.vmem [resolvable:$true] %s128_s13 }
  0x9b   :  { %p7334_p2 = scmp.ne.s32.totalorder %s9030_s11, %s7333_s16  ;;  %p7337_p3 = scmp.lt.u32.totalorder %s7333_s16, %s9030_s11 }
  0x9d   :  { %p7339_p4 = pnand %p7337_p3, %p7334_p2 }
  0x9f   :  { %7342 = shalt.err (!%p7339_p4)
}
  0xa0   :  { %s7343_s5 = scalar_lea.vmem %s129_s13, 16  ;;  %s7347_s10 = scalar_lea.vmem %s129_s13, 32 }
  0xa1   :  { %p7344_p5 = scmp.ne.s32.totalorder %s129_s13, %s7343_s5  ;;  %p7348_p6 = scmp.lt.s32.totalorder %s129_s13, %s129_s13 }
  0xa2   :  { %p7349_p7 = scmp.lt.s32.totalorder %s7347_s10, %s7343_s5 }
  0xa4   :  { %p7350_p8 = por %p7349_p7, %p7348_p6 }
  0xa6   :  { %p7351_p9 = pnand %p7350_p8, %p7344_p5 }
  0xa8   :  { %7354 = shalt.err (!%p7351_p9)
}
  0xa9   :  { %131 = dma.hbm_to_vmem [thread:$0]  %s9030_s11, 16, %s129_s13, [#allocation18]  }
  0xaa   :  { %7377 = dma.done.wait [#allocation3], 768  }
  0xab   :  { %7378 = vsyncadd [#allocation3], 4294966528 }
  0xac   :  { %7379 = dma.done.wait [#allocation6], 196864  }
  0xad   :  { %7380 = vsyncadd [#allocation6], 4294770432 }
  0xae   :  { %7381 = dma.done.wait [#allocation9], 320  }
  0xaf   :  { %7382 = vsyncadd [#allocation9], 4294966976 }
  0xb0   :  { %7383 = dma.done.wait [#allocation12], 112  }
  0xb1   :  { %7384 = vsyncadd [#allocation12], 4294967184 }
  0xb2   :  { %7385 = dma.done.wait [#allocation15], 4656  }
  0xb3   :  { %7386 = vsyncadd [#allocation15], 4294962640 }
  0xb4   :  { %7387 = dma.done.wait [#allocation18], 16  }
  0xb5   :  { %7388 = vsyncadd [#allocation18], 4294967280  ;;  %v169_v0 = vld [vmem:[#allocation5 + $0x8] sm:$0xff]  ;;  %v171_v2 = vld [vmem:[#allocation5 + $0x18] sm:$0xff]  ;;  %s7408_s6 = smov 9   ;;  %s7409_s20 = smov [#allocation19]  }
  0xb6   :  { %v185_v1 = vld [vmem:[#allocation5 + $0x88] sm:$0xff]  ;;  %v187_v4 = vld [vmem:[#allocation5 + $0x98] sm:$0xff]  ;;  %v168_v5 = vld [vmem:[#allocation5] sm:$0xff]  ;;  %s4939_s16 = sshll.u32 %s7409_s20, 4  ;;  %s4940_s16 = int_to_ptr.vmem [resolvable:$true] %s4939_s16 }
  0xb7   :  { %v5043_v3 = vpack.c.bf16 %v185_v1, %v169_v0  ;;  %v184_v6 = vld [vmem:[#allocation5 + $0x80] sm:$0xff]  ;;  %v5235_v7 = vpack.c.bf16 %v187_v4, %v171_v2  ;;  %v170_v9 = vld [vmem:[#allocation5 + $0x10] sm:$0xff]  ;;  %v201_v11 = vld [vmem:[#allocation5 + $0x108] sm:$0xff]  ;;  %s7355_s17 = scalar_lea.vmem %s4940_s16, 128  ;;  %p7360_p11 = scmp.lt.s32.totalorder %s4940_s16, %s4940_s16 }
  0xb8   :  { %v5045_v8 = vpack.c.bf16 %v184_v6, %v168_v5  ;;  %v186_v10 = vld [vmem:[#allocation5 + $0x90] sm:$0xff]  ;;  %v217_v13 = vld [vmem:[#allocation5 + $0x188] sm:$0xff]  ;;  %v203_v14 = vld [vmem:[#allocation5 + $0x118] sm:$0xff]  ;;  %p7356_p10 = scmp.ne.s32.totalorder %s4940_s16, %s7355_s17  ;;  %p7361_p12 = scmp.lt.s32.totalorder %s7355_s17, %s7355_s17 }
  0xb9   :  { %5044 = vmatprep.subr.bf16.mxu0 %v5043_v3  ;;  %v5237_v12 = vpack.c.bf16 %v186_v10, %v170_v9  ;;  %v219_v15 = vld [vmem:[#allocation5 + $0x198] sm:$0xff]  ;;  %5236 = vmatprep.subr.bf16.mxu1 %v5235_v7  ;;  %v5047_v16 = vpack.c.bf16 %v217_v13, %v201_v11  ;;  %v200_v18 = vld [vmem:[#allocation5 + $0x100] sm:$0xff]  ;;  %v202_v20 = vld [vmem:[#allocation5 + $0x110] sm:$0xff] }
  0xba   :  { %5046 = vmatpush1.bf16.msra.mxu0 %v5045_v8  ;;  %v5239_v17 = vpack.c.bf16 %v219_v15, %v203_v14  ;;  %v216_v19 = vld [vmem:[#allocation5 + $0x180] sm:$0xff]  ;;  %v218_v22 = vld [vmem:[#allocation5 + $0x190] sm:$0xff]  ;;  %v233_v23 = vld [vmem:[#allocation5 + $0x208] sm:$0xff]  ;;  %p7362_p13 = por %p7361_p12, %p7360_p11 }
  0xbb   :  { %5238 = vmatpush1.bf16.msra.mxu1 %v5237_v12  ;;  %v5049_v21 = vpack.c.bf16 %v216_v19, %v200_v18  ;;  %v249_v24 = vld [vmem:[#allocation5 + $0x288] sm:$0xff]  ;;  %5048 = vmatprep.subr.bf16.mxu0 %v5047_v16  ;;  %v5241_v25 = vpack.c.bf16 %v218_v22, %v202_v20  ;;  %v235_v27 = vld [vmem:[#allocation5 + $0x218] sm:$0xff]  ;;  %v232_v29 = vld [vmem:[#allocation5 + $0x200] sm:$0xff] }
  0xbc   :  { %5240 = vmatprep.subr.bf16.mxu1 %v5239_v17  ;;  %v5051_v26 = vpack.c.bf16 %v249_v24, %v233_v23  ;;  %v251_v28 = vld [vmem:[#allocation5 + $0x298] sm:$0xff]  ;;  %v248_v31 = vld [vmem:[#allocation5 + $0x280] sm:$0xff]  ;;  %v234_v32 = vld [vmem:[#allocation5 + $0x210] sm:$0xff]  ;;  %p7363_p0 = pnand %p7362_p13, %p7356_p10 }
  0xbd   :  { %v5243_v30 = vpack.c.bf16 %v251_v28, %v235_v27  ;;  %v250_v33 = vld [vmem:[#allocation5 + $0x290] sm:$0xff]  ;;  %v5053_v34 = vpack.c.bf16 %v248_v31, %v232_v29  ;;  %v265_v35 = vld [vmem:[#allocation5 + $0x308] sm:$0xff]  ;;  %v267_v37 = vld [vmem:[#allocation5 + $0x318] sm:$0xff] }
  0xbe   :  { %5050 = vmatpush1.bf16.msra.mxu0 %v5049_v21  ;;  %v281_v36 = vld [vmem:[#allocation5 + $0x388] sm:$0xff]  ;;  %v5245_v38 = vpack.c.bf16 %v250_v33, %v234_v32  ;;  %v283_v40 = vld [vmem:[#allocation5 + $0x398] sm:$0xff]  ;;  %v264_v41 = vld [vmem:[#allocation5 + $0x300] sm:$0xff] }
  0xbf   :  { %5242 = vmatpush1.bf16.msra.mxu1 %v5241_v25  ;;  %5052 = vmatprep.subr.bf16.mxu0 %v5051_v26  ;;  %v5055_v39 = vpack.c.bf16 %v281_v36, %v265_v35  ;;  %v280_v42 = vld [vmem:[#allocation5 + $0x380] sm:$0xff]  ;;  %v5247_v43 = vpack.c.bf16 %v283_v40, %v267_v37  ;;  %v266_v44 = vld [vmem:[#allocation5 + $0x310] sm:$0xff]  ;;  %v297_v46 = vld [vmem:[#allocation5 + $0x408] sm:$0xff] }
  0xc0   :  { %5244 = vmatprep.subr.bf16.mxu1 %v5243_v30  ;;  %v282_v45 = vld [vmem:[#allocation5 + $0x390] sm:$0xff]  ;;  %v313_v47 = vld [vmem:[#allocation5 + $0x488] sm:$0xff]  ;;  %v299_v48 = vld [vmem:[#allocation5 + $0x418] sm:$0xff]  ;;  %v5057_v50 = vpack.c.bf16 %v280_v42, %v264_v41 }
  0xc1   :  { %v315_v49 = vld [vmem:[#allocation5 + $0x498] sm:$0xff]  ;;  %v5249_v51 = vpack.c.bf16 %v282_v45, %v266_v44  ;;  %v5059_v52 = vpack.c.bf16 %v313_v47, %v297_v46  ;;  %v296_v53 = vld [vmem:[#allocation5 + $0x400] sm:$0xff]  ;;  %v298_v55 = vld [vmem:[#allocation5 + $0x410] sm:$0xff] }
  0xc2   :  { %5054 = vmatpush1.bf16.msra.mxu0 %v5053_v34  ;;  %v312_v54 = vld [vmem:[#allocation5 + $0x480] sm:$0xff]  ;;  %v5251_v56 = vpack.c.bf16 %v315_v49, %v299_v48  ;;  %v314_v57 = vld [vmem:[#allocation5 + $0x490] sm:$0xff]  ;;  %v329_v58 = vld [vmem:[#allocation5 + $0x508] sm:$0xff] }
  0xc3   :  { %5246 = vmatpush1.bf16.msra.mxu1 %v5245_v38  ;;  %5056 = vmatprep.subr.bf16.mxu0 %v5055_v39  ;;  %v345_v59 = vld [vmem:[#allocation5 + $0x588] sm:$0xff]  ;;  %v331_v60 = vld [vmem:[#allocation5 + $0x518] sm:$0xff]  ;;  %v5061_v62 = vpack.c.bf16 %v312_v54, %v296_v53  ;;  %v5253_v63 = vpack.c.bf16 %v314_v57, %v298_v55  ;;  %v328_v1 = vld [vmem:[#allocation5 + $0x500] sm:$0xff] }
  0xc4   :  { %5248 = vmatprep.subr.bf16.mxu1 %v5247_v43  ;;  %v347_v61 = vld [vmem:[#allocation5 + $0x598] sm:$0xff]  ;;  %v5063_v0 = vpack.c.bf16 %v345_v59, %v329_v58  ;;  %v344_v2 = vld [vmem:[#allocation5 + $0x580] sm:$0xff]  ;;  %v330_v3 = vld [vmem:[#allocation5 + $0x510] sm:$0xff] }
  0xc5   :  { %v5255_v4 = vpack.c.bf16 %v347_v61, %v331_v60  ;;  %v346_v5 = vld [vmem:[#allocation5 + $0x590] sm:$0xff]  ;;  %v361_v6 = vld [vmem:[#allocation5 + $0x608] sm:$0xff]  ;;  %v363_v8 = vld [vmem:[#allocation5 + $0x618] sm:$0xff]  ;;  %v5065_v10 = vpack.c.bf16 %v344_v2, %v328_v1 }
  0xc6   :  { %5058 = vmatpush1.bf16.msra.mxu0 %v5057_v50  ;;  %v377_v7 = vld [vmem:[#allocation5 + $0x688] sm:$0xff]  ;;  %v379_v9 = vld [vmem:[#allocation5 + $0x698] sm:$0xff]  ;;  %v5257_v11 = vpack.c.bf16 %v346_v5, %v330_v3  ;;  %v360_v13 = vld [vmem:[#allocation5 + $0x600] sm:$0xff] }
  0xc7   :  { %5250 = vmatpush1.bf16.msra.mxu1 %v5249_v51  ;;  %5060 = vmatprep.subr.bf16.mxu0 %v5059_v52  ;;  %v5067_v12 = vpack.c.bf16 %v377_v7, %v361_v6  ;;  %v376_v14 = vld [vmem:[#allocation5 + $0x680] sm:$0xff]  ;;  %v362_v15 = vld [vmem:[#allocation5 + $0x610] sm:$0xff]  ;;  %v5259_v16 = vpack.c.bf16 %v379_v9, %v363_v8  ;;  %v393_v18 = vld [vmem:[#allocation5 + $0x708] sm:$0xff] }
  0xc8   :  { %5252 = vmatprep.subr.bf16.mxu1 %v5251_v56  ;;  %v378_v17 = vld [vmem:[#allocation5 + $0x690] sm:$0xff]  ;;  %v409_v19 = vld [vmem:[#allocation5 + $0x788] sm:$0xff]  ;;  %v395_v20 = vld [vmem:[#allocation5 + $0x718] sm:$0xff]  ;;  %v5069_v22 = vpack.c.bf16 %v376_v14, %v360_v13 }
  0xc9   :  { %v411_v21 = vld [vmem:[#allocation5 + $0x798] sm:$0xff]  ;;  %v5261_v23 = vpack.c.bf16 %v378_v17, %v362_v15  ;;  %v5071_v24 = vpack.c.bf16 %v409_v19, %v393_v18  ;;  %v392_v25 = vld [vmem:[#allocation5 + $0x700] sm:$0xff]  ;;  %v394_v27 = vld [vmem:[#allocation5 + $0x710] sm:$0xff] }
  0xca   :  { %5062 = vmatpush1.bf16.msra.mxu0 %v5061_v62  ;;  %v408_v26 = vld [vmem:[#allocation5 + $0x780] sm:$0xff]  ;;  %v5263_v28 = vpack.c.bf16 %v411_v21, %v395_v20  ;;  %v410_v29 = vld [vmem:[#allocation5 + $0x790] sm:$0xff]  ;;  %v425_v30 = vld [vmem:[#allocation5 + $0x808] sm:$0xff] }
  0xcb   :  { %5254 = vmatpush1.bf16.msra.mxu1 %v5253_v63  ;;  %5064 = vmatprep.subr.bf16.mxu0 %v5063_v0  ;;  %v441_v31 = vld [vmem:[#allocation5 + $0x888] sm:$0xff]  ;;  %v427_v32 = vld [vmem:[#allocation5 + $0x818] sm:$0xff]  ;;  %v5073_v34 = vpack.c.bf16 %v408_v26, %v392_v25  ;;  %v5265_v35 = vpack.c.bf16 %v410_v29, %v394_v27  ;;  %v424_v37 = vld [vmem:[#allocation5 + $0x800] sm:$0xff] }
  0xcc   :  { %5256 = vmatprep.subr.bf16.mxu1 %v5255_v4  ;;  %v443_v33 = vld [vmem:[#allocation5 + $0x898] sm:$0xff]  ;;  %v5075_v36 = vpack.c.bf16 %v441_v31, %v425_v30  ;;  %v440_v38 = vld [vmem:[#allocation5 + $0x880] sm:$0xff]  ;;  %v426_v39 = vld [vmem:[#allocation5 + $0x810] sm:$0xff] }
  0xcd   :  { %v5267_v40 = vpack.c.bf16 %v443_v33, %v427_v32  ;;  %v442_v41 = vld [vmem:[#allocation5 + $0x890] sm:$0xff]  ;;  %v457_v42 = vld [vmem:[#allocation5 + $0x908] sm:$0xff]  ;;  %v459_v44 = vld [vmem:[#allocation5 + $0x918] sm:$0xff]  ;;  %v5077_v46 = vpack.c.bf16 %v440_v38, %v424_v37 }
  0xce   :  { %5066 = vmatpush1.bf16.msra.mxu0 %v5065_v10  ;;  %v473_v43 = vld [vmem:[#allocation5 + $0x988] sm:$0xff]  ;;  %v475_v45 = vld [vmem:[#allocation5 + $0x998] sm:$0xff]  ;;  %v5269_v47 = vpack.c.bf16 %v442_v41, %v426_v39  ;;  %v456_v49 = vld [vmem:[#allocation5 + $0x900] sm:$0xff] }
  0xcf   :  { %5258 = vmatpush1.bf16.msra.mxu1 %v5257_v11  ;;  %5068 = vmatprep.subr.bf16.mxu0 %v5067_v12  ;;  %v5079_v48 = vpack.c.bf16 %v473_v43, %v457_v42  ;;  %v472_v50 = vld [vmem:[#allocation5 + $0x980] sm:$0xff]  ;;  %v458_v51 = vld [vmem:[#allocation5 + $0x910] sm:$0xff]  ;;  %v5271_v52 = vpack.c.bf16 %v475_v45, %v459_v44  ;;  %v489_v54 = vld [vmem:[#allocation5 + $0xa08] sm:$0xff] }
  0xd0   :  { %5260 = vmatprep.subr.bf16.mxu1 %v5259_v16  ;;  %v474_v53 = vld [vmem:[#allocation5 + $0x990] sm:$0xff]  ;;  %v505_v55 = vld [vmem:[#allocation5 + $0xa88] sm:$0xff]  ;;  %v491_v56 = vld [vmem:[#allocation5 + $0xa18] sm:$0xff]  ;;  %v5081_v58 = vpack.c.bf16 %v472_v50, %v456_v49 }
  0xd1   :  { %v507_v57 = vld [vmem:[#allocation5 + $0xa98] sm:$0xff]  ;;  %v5273_v59 = vpack.c.bf16 %v474_v53, %v458_v51  ;;  %v5083_v60 = vpack.c.bf16 %v505_v55, %v489_v54  ;;  %v488_v61 = vld [vmem:[#allocation5 + $0xa00] sm:$0xff]  ;;  %v490_v63 = vld [vmem:[#allocation5 + $0xa10] sm:$0xff] }
  0xd2   :  { %5070 = vmatpush1.bf16.msra.mxu0 %v5069_v22  ;;  %v504_v62 = vld [vmem:[#allocation5 + $0xa80] sm:$0xff]  ;;  %v5275_v0 = vpack.c.bf16 %v507_v57, %v491_v56  ;;  %v506_v1 = vld [vmem:[#allocation5 + $0xa90] sm:$0xff]  ;;  %v521_v2 = vld [vmem:[#allocation5 + $0xb08] sm:$0xff] }
  0xd3   :  { %5262 = vmatpush1.bf16.msra.mxu1 %v5261_v23  ;;  %5072 = vmatprep.subr.bf16.mxu0 %v5071_v24  ;;  %v537_v3 = vld [vmem:[#allocation5 + $0xb88] sm:$0xff]  ;;  %v523_v4 = vld [vmem:[#allocation5 + $0xb18] sm:$0xff]  ;;  %v5085_v6 = vpack.c.bf16 %v504_v62, %v488_v61  ;;  %v520_v7 = vld [vmem:[#allocation5 + $0xb00] sm:$0xff]  ;;  %v5277_v8 = vpack.c.bf16 %v506_v1, %v490_v63 }
  0xd4   :  { %5264 = vmatprep.subr.bf16.mxu1 %v5263_v28  ;;  %v539_v5 = vld [vmem:[#allocation5 + $0xb98] sm:$0xff]  ;;  %v5087_v9 = vpack.c.bf16 %v537_v3, %v521_v2  ;;  %v536_v10 = vld [vmem:[#allocation5 + $0xb80] sm:$0xff]  ;;  %v522_v11 = vld [vmem:[#allocation5 + $0xb10] sm:$0xff] }
  0xd5   :  { %v538_v12 = vld [vmem:[#allocation5 + $0xb90] sm:$0xff]  ;;  %v5279_v13 = vpack.c.bf16 %v539_v5, %v523_v4  ;;  %v553_v14 = vld [vmem:[#allocation5 + $0xc08] sm:$0xff]  ;;  %v163_v16 = vld [vmem:[#allocation2 + $0x8] sm:$0xff]  ;;  %v5089_v19 = vpack.c.bf16 %v536_v10, %v520_v7 }
  0xd6   :  { %5074 = vmatpush1.bf16.msra.mxu0 %v5073_v34  ;;  %v569_v15 = vld [vmem:[#allocation5 + $0xc88] sm:$0xff]  ;;  %v555_v17 = vld [vmem:[#allocation5 + $0xc18] sm:$0xff]  ;;  %1852 = vmatprep.mubr.f32.mxu0 %v163_v16  ;;  %v5281_v20 = vpack.c.bf16 %v538_v12, %v522_v11  ;;  %v552_v22 = vld [vmem:[#allocation5 + $0xc00] sm:$0xff] }
  0xd7   :  { %5266 = vmatpush1.bf16.msra.mxu1 %v5265_v35  ;;  %5076 = vmatprep.subr.bf16.mxu0 %v5075_v36  ;;  %v571_v18 = vld [vmem:[#allocation5 + $0xc98] sm:$0xff]  ;;  %v5091_v21 = vpack.c.bf16 %v569_v15, %v553_v14  ;;  %v568_v23 = vld [vmem:[#allocation5 + $0xc80] sm:$0xff]  ;;  %v554_v24 = vld [vmem:[#allocation5 + $0xc10] sm:$0xff] }
  0xd8   :  { %5268 = vmatprep.subr.bf16.mxu1 %v5267_v40  ;;  %2065 = vmatprep.mubr.f32.mxu1 %v163_v16  ;;  %v5283_v25 = vpack.c.bf16 %v571_v18, %v555_v17  ;;  %v570_v26 = vld [vmem:[#allocation5 + $0xc90] sm:$0xff]  ;;  %v585_v27 = vld [vmem:[#allocation5 + $0xd08] sm:$0xff]  ;;  %v587_v29 = vld [vmem:[#allocation5 + $0xd18] sm:$0xff]  ;;  %v5093_v31 = vpack.c.bf16 %v568_v23, %v552_v22 }
  0xd9   :  { %v601_v28 = vld [vmem:[#allocation5 + $0xd88] sm:$0xff]  ;;  %v603_v30 = vld [vmem:[#allocation5 + $0xd98] sm:$0xff]  ;;  %v5285_v32 = vpack.c.bf16 %v570_v26, %v554_v24  ;;  %v584_v34 = vld [vmem:[#allocation5 + $0xd00] sm:$0xff] }
  0xda   :  { %5078 = vmatpush1.bf16.msra.mxu0 %v5077_v46  ;;  %v5095_v33 = vpack.c.bf16 %v601_v28, %v585_v27  ;;  %v600_v35 = vld [vmem:[#allocation5 + $0xd80] sm:$0xff]  ;;  %v586_v36 = vld [vmem:[#allocation5 + $0xd10] sm:$0xff]  ;;  %v5287_v37 = vpack.c.bf16 %v603_v30, %v587_v29  ;;  %v617_v39 = vld [vmem:[#allocation5 + $0xe08] sm:$0xff] }
  0xdb   :  { %5270 = vmatpush1.bf16.msra.mxu1 %v5269_v47  ;;  %5080 = vmatprep.subr.bf16.mxu0 %v5079_v48  ;;  %v602_v38 = vld [vmem:[#allocation5 + $0xd90] sm:$0xff]  ;;  %v633_v40 = vld [vmem:[#allocation5 + $0xe88] sm:$0xff]  ;;  %v619_v41 = vld [vmem:[#allocation5 + $0xe18] sm:$0xff]  ;;  %v5097_v43 = vpack.c.bf16 %v600_v35, %v584_v34 }
  0xdc   :  { %5272 = vmatprep.subr.bf16.mxu1 %v5271_v52  ;;  %v635_v42 = vld [vmem:[#allocation5 + $0xe98] sm:$0xff]  ;;  %v5289_v44 = vpack.c.bf16 %v602_v38, %v586_v36  ;;  %v5099_v45 = vpack.c.bf16 %v633_v40, %v617_v39  ;;  %v616_v46 = vld [vmem:[#allocation5 + $0xe00] sm:$0xff]  ;;  %v618_v48 = vld [vmem:[#allocation5 + $0xe10] sm:$0xff] }
  0xdd   :  { %v632_v47 = vld [vmem:[#allocation5 + $0xe80] sm:$0xff]  ;;  %v5291_v49 = vpack.c.bf16 %v635_v42, %v619_v41  ;;  %v634_v50 = vld [vmem:[#allocation5 + $0xe90] sm:$0xff]  ;;  %v649_v51 = vld [vmem:[#allocation5 + $0xf08] sm:$0xff] }
  0xde   :  { %5082 = vmatpush1.bf16.msra.mxu0 %v5081_v58  ;;  %v665_v52 = vld [vmem:[#allocation5 + $0xf88] sm:$0xff]  ;;  %v651_v53 = vld [vmem:[#allocation5 + $0xf18] sm:$0xff]  ;;  %v5101_v55 = vpack.c.bf16 %v632_v47, %v616_v46  ;;  %v5293_v56 = vpack.c.bf16 %v634_v50, %v618_v48  ;;  %v648_v58 = vld [vmem:[#allocation5 + $0xf00] sm:$0xff] }
  0xdf   :  { %5274 = vmatpush1.bf16.msra.mxu1 %v5273_v59  ;;  %5084 = vmatprep.subr.bf16.mxu0 %v5083_v60  ;;  %v667_v54 = vld [vmem:[#allocation5 + $0xf98] sm:$0xff]  ;;  %v5103_v57 = vpack.c.bf16 %v665_v52, %v649_v51  ;;  %v664_v59 = vld [vmem:[#allocation5 + $0xf80] sm:$0xff]  ;;  %v650_v60 = vld [vmem:[#allocation5 + $0xf10] sm:$0xff] }
  0xe0   :  { %5276 = vmatprep.subr.bf16.mxu1 %v5275_v0  ;;  %v5295_v61 = vpack.c.bf16 %v667_v54, %v651_v53  ;;  %v666_v62 = vld [vmem:[#allocation5 + $0xf90] sm:$0xff]  ;;  %v681_v63 = vld [vmem:[#allocation5 + $0x1008] sm:$0xff]  ;;  %v683_v1 = vld [vmem:[#allocation5 + $0x1018] sm:$0xff]  ;;  %v5105_v3 = vpack.c.bf16 %v664_v59, %v648_v58 }
  0xe1   :  { %v697_v0 = vld [vmem:[#allocation5 + $0x1088] sm:$0xff]  ;;  %v699_v2 = vld [vmem:[#allocation5 + $0x1098] sm:$0xff]  ;;  %v5297_v4 = vpack.c.bf16 %v666_v62, %v650_v60  ;;  %v696_v7 = vld [vmem:[#allocation5 + $0x1080] sm:$0xff] }
  0xe2   :  { %5086 = vmatpush1.bf16.msra.mxu0 %v5085_v6  ;;  %v5107_v5 = vpack.c.bf16 %v697_v0, %v681_v63  ;;  %v680_v6 = vld [vmem:[#allocation5 + $0x1000] sm:$0xff]  ;;  %v698_v10 = vld [vmem:[#allocation5 + $0x1090] sm:$0xff]  ;;  %v713_v11 = vld [vmem:[#allocation5 + $0x1108] sm:$0xff] }
  0xe3   :  { %5278 = vmatpush1.bf16.msra.mxu1 %v5277_v8  ;;  %5088 = vmatprep.subr.bf16.mxu0 %v5087_v9  ;;  %v682_v8 = vld [vmem:[#allocation5 + $0x1010] sm:$0xff]  ;;  %v5299_v9 = vpack.c.bf16 %v699_v2, %v683_v1  ;;  %v729_v12 = vld [vmem:[#allocation5 + $0x1188] sm:$0xff]  ;;  %v731_v14 = vld [vmem:[#allocation5 + $0x1198] sm:$0xff]  ;;  %v5109_v16 = vpack.c.bf16 %v696_v7, %v680_v6 }
  0xe4   :  { %5280 = vmatprep.subr.bf16.mxu1 %v5279_v13  ;;  %v715_v13 = vld [vmem:[#allocation5 + $0x1118] sm:$0xff]  ;;  %v162_v15 = vld [vmem:[#allocation2] sm:$0xff]  ;;  %v5301_v17 = vpack.c.bf16 %v698_v10, %v682_v8  ;;  %v5111_v18 = vpack.c.bf16 %v729_v12, %v713_v11  ;;  %v745_v24 = vld [vmem:[#allocation5 + $0x1208] sm:$0xff] }
  0xe5   :  { %v5303_v22 = vpack.c.bf16 %v731_v14, %v715_v13  ;;  %v730_v23 = vld [vmem:[#allocation5 + $0x1190] sm:$0xff]  ;;  %v747_v26 = vld [vmem:[#allocation5 + $0x1218] sm:$0xff]  ;;  %v777_v36 = vld [vmem:[#allocation5 + $0x1308] sm:$0xff] }
  0xe6   :  { %5090 = vmatpush1.bf16.msra.mxu0 %v5089_v19  ;;  %v712_v19 = vld [vmem:[#allocation5 + $0x1100] sm:$0xff]  ;;  %v763_v27 = vld [vmem:[#allocation5 + $0x1298] sm:$0xff]  ;;  %v762_v35 = vld [vmem:[#allocation5 + $0x1290] sm:$0xff] }
  0xe7   :  { %5282 = vmatpush1.bf16.msra.mxu1 %v5281_v20  ;;  %5092 = vmatprep.subr.bf16.mxu0 %v5091_v21  ;;  %v728_v20 = vld [vmem:[#allocation5 + $0x1180] sm:$0xff]  ;;  %v714_v21 = vld [vmem:[#allocation5 + $0x1110] sm:$0xff]  ;;  %v5307_v34 = vpack.c.bf16 %v763_v27, %v747_v26  ;;  %v779_v38 = vld [vmem:[#allocation5 + $0x1318] sm:$0xff] }
  0xe8   :  { %5284 = vmatprep.subr.bf16.mxu1 %v5283_v25  ;;  %v761_v25 = vld [vmem:[#allocation5 + $0x1288] sm:$0xff]  ;;  %v5113_v28 = vpack.c.bf16 %v728_v20, %v712_v19  ;;  %v5305_v29 = vpack.c.bf16 %v730_v23, %v714_v21  ;;  %v795_v39 = vld [vmem:[#allocation5 + $0x1398] sm:$0xff]  ;;  %v794_v47 = vld [vmem:[#allocation5 + $0x1390] sm:$0xff] }
  0xe9   :  { %v5115_v30 = vpack.c.bf16 %v761_v25, %v745_v24  ;;  %v5311_v46 = vpack.c.bf16 %v795_v39, %v779_v38  ;;  %v809_v48 = vld [vmem:[#allocation5 + $0x1408] sm:$0xff]  ;;  %v811_v50 = vld [vmem:[#allocation5 + $0x1418] sm:$0xff]  ;;  %v826_v59 = vld [vmem:[#allocation5 + $0x1490] sm:$0xff] }
  0xea   :  { %5094 = vmatpush1.bf16.msra.mxu0 %v5093_v31  ;;  %v744_v31 = vld [vmem:[#allocation5 + $0x1200] sm:$0xff]  ;;  %v827_v51 = vld [vmem:[#allocation5 + $0x1498] sm:$0xff]  ;;  %v841_v60 = vld [vmem:[#allocation5 + $0x1508] sm:$0xff] }
  0xeb   :  { %5286 = vmatpush1.bf16.msra.mxu1 %v5285_v32  ;;  %5096 = vmatprep.subr.bf16.mxu0 %v5095_v33  ;;  %v760_v32 = vld [vmem:[#allocation5 + $0x1280] sm:$0xff]  ;;  %v746_v33 = vld [vmem:[#allocation5 + $0x1210] sm:$0xff]  ;;  %v5315_v58 = vpack.c.bf16 %v827_v51, %v811_v50  ;;  %v843_v62 = vld [vmem:[#allocation5 + $0x1518] sm:$0xff] }
  0xec   :  { %5288 = vmatprep.subr.bf16.mxu1 %v5287_v37  ;;  %v793_v37 = vld [vmem:[#allocation5 + $0x1388] sm:$0xff]  ;;  %v5117_v40 = vpack.c.bf16 %v760_v32, %v744_v31  ;;  %v5309_v41 = vpack.c.bf16 %v762_v35, %v746_v33  ;;  %v859_v63 = vld [vmem:[#allocation5 + $0x1598] sm:$0xff]  ;;  %v858_v7 = vld [vmem:[#allocation5 + $0x1590] sm:$0xff] }
  0xed   :  { %v5119_v42 = vpack.c.bf16 %v793_v37, %v777_v36  ;;  %v5319_v6 = vpack.c.bf16 %v859_v63, %v843_v62  ;;  %v873_v8 = vld [vmem:[#allocation5 + $0x1608] sm:$0xff]  ;;  %v875_v10 = vld [vmem:[#allocation5 + $0x1618] sm:$0xff]  ;;  %v872_v13 = vld [vmem:[#allocation5 + $0x1600] sm:$0xff] }
  0xee   :  { %5098 = vmatpush1.bf16.msra.mxu0 %v5097_v43  ;;  %v776_v43 = vld [vmem:[#allocation5 + $0x1300] sm:$0xff]  ;;  %v891_v11 = vld [vmem:[#allocation5 + $0x1698] sm:$0xff]  ;;  %v905_v20 = vld [vmem:[#allocation5 + $0x1708] sm:$0xff] }
  0xef   :  { %5290 = vmatpush1.bf16.msra.mxu1 %v5289_v44  ;;  %5100 = vmatprep.subr.bf16.mxu0 %v5099_v45  ;;  %v792_v44 = vld [vmem:[#allocation5 + $0x1380] sm:$0xff]  ;;  %v778_v45 = vld [vmem:[#allocation5 + $0x1310] sm:$0xff]  ;;  %v5323_v19 = vpack.c.bf16 %v891_v11, %v875_v10  ;;  %v921_v21 = vld [vmem:[#allocation5 + $0x1788] sm:$0xff] }
  0xf0   :  { %5292 = vmatprep.subr.bf16.mxu1 %v5291_v49  ;;  %v825_v49 = vld [vmem:[#allocation5 + $0x1488] sm:$0xff]  ;;  %v5121_v52 = vpack.c.bf16 %v792_v44, %v776_v43  ;;  %v5313_v53 = vpack.c.bf16 %v794_v47, %v778_v45  ;;  %v907_v23 = vld [vmem:[#allocation5 + $0x1718] sm:$0xff]  ;;  %v5135_v27 = vpack.c.bf16 %v921_v21, %v905_v20  ;;  %v922_v32 = vld [vmem:[#allocation5 + $0x1790] sm:$0xff] }
  0xf1   :  { %v5123_v54 = vpack.c.bf16 %v825_v49, %v809_v48  ;;  %v923_v24 = vld [vmem:[#allocation5 + $0x1798] sm:$0xff]  ;;  %v937_v33 = vld [vmem:[#allocation5 + $0x1808] sm:$0xff]  ;;  %v954_v44 = vld [vmem:[#allocation5 + $0x1890] sm:$0xff] }
  0xf2   :  { %5102 = vmatpush1.bf16.msra.mxu0 %v5101_v55  ;;  %v808_v55 = vld [vmem:[#allocation5 + $0x1400] sm:$0xff]  ;;  %v5327_v31 = vpack.c.bf16 %v923_v24, %v907_v23  ;;  %v939_v35 = vld [vmem:[#allocation5 + $0x1818] sm:$0xff]  ;;  %v969_v45 = vld [vmem:[#allocation5 + $0x1908] sm:$0xff] }
  0xf3   :  { %5294 = vmatpush1.bf16.msra.mxu1 %v5293_v56  ;;  %5104 = vmatprep.subr.bf16.mxu0 %v5103_v57  ;;  %v824_v56 = vld [vmem:[#allocation5 + $0x1480] sm:$0xff]  ;;  %v810_v57 = vld [vmem:[#allocation5 + $0x1410] sm:$0xff]  ;;  %v955_v36 = vld [vmem:[#allocation5 + $0x1898] sm:$0xff] }
  0xf4   :  { %5296 = vmatprep.subr.bf16.mxu1 %v5295_v61  ;;  %v857_v61 = vld [vmem:[#allocation5 + $0x1588] sm:$0xff]  ;;  %v5125_v0 = vpack.c.bf16 %v824_v56, %v808_v55  ;;  %v5317_v1 = vpack.c.bf16 %v826_v59, %v810_v57  ;;  %v5331_v43 = vpack.c.bf16 %v955_v36, %v939_v35  ;;  %v971_v47 = vld [vmem:[#allocation5 + $0x1918] sm:$0xff]  ;;  %v986_v56 = vld [vmem:[#allocation5 + $0x1990] sm:$0xff] }
  0xf5   :  { %v5127_v2 = vpack.c.bf16 %v857_v61, %v841_v60  ;;  %v987_v48 = vld [vmem:[#allocation5 + $0x1998] sm:$0xff]  ;;  %v1001_v57 = vld [vmem:[#allocation5 + $0x1a08] sm:$0xff]  ;;  %v1064_v24 = vld [vmem:[#allocation5 + $0x1c00] sm:$0xff] }
  0xf6   :  { %5106 = vmatpush1.bf16.msra.mxu0 %v5105_v3  ;;  %v840_v3 = vld [vmem:[#allocation5 + $0x1500] sm:$0xff]  ;;  %v5335_v55 = vpack.c.bf16 %v987_v48, %v971_v47  ;;  %v1003_v59 = vld [vmem:[#allocation5 + $0x1a18] sm:$0xff] }
  0xf7   :  { %5298 = vmatpush1.bf16.msra.mxu1 %v5297_v4  ;;  %5108 = vmatprep.subr.bf16.mxu0 %v5107_v5  ;;  %v856_v4 = vld [vmem:[#allocation5 + $0x1580] sm:$0xff]  ;;  %v842_v5 = vld [vmem:[#allocation5 + $0x1510] sm:$0xff]  ;;  %v1019_v60 = vld [vmem:[#allocation5 + $0x1a98] sm:$0xff] }
  0xf8   :  { %5300 = vmatprep.subr.bf16.mxu1 %v5299_v9  ;;  %v889_v9 = vld [vmem:[#allocation5 + $0x1688] sm:$0xff]  ;;  %v5129_v12 = vpack.c.bf16 %v856_v4, %v840_v3  ;;  %v5321_v14 = vpack.c.bf16 %v858_v7, %v842_v5  ;;  %v5339_v3 = vpack.c.bf16 %v1019_v60, %v1003_v59  ;;  %v1018_v4 = vld [vmem:[#allocation5 + $0x1a90] sm:$0xff]  ;;  %v1035_v7 = vld [vmem:[#allocation5 + $0x1b18] sm:$0xff] }
  0xf9   :  { %1853 = vmatmul.mubr.f32.vlgmr.msra.gmra.mrb[0].mxu0 %v162_v15  ;;  %v1033_v5 = vld [vmem:[#allocation5 + $0x1b08] sm:$0xff]  ;;  %v1083_v20 = vld [vmem:[#allocation5 + $0x1c98] sm:$0xff]  ;;  %v1096_v36 = vld [vmem:[#allocation5 + $0x1d00] sm:$0xff] }
  0xfa   :  { %5110 = vmatpush1.bf16.msra.mxu0 %v5109_v16  ;;  %2066 = vmatmul.mubr.f32.vlgmr.msra.gmra.mrb[0].mxu1 %v162_v15  ;;  %v5131_v15 = vpack.c.bf16 %v889_v9, %v873_v8  ;;  %v888_v16 = vld [vmem:[#allocation5 + $0x1680] sm:$0xff]  ;;  %v1051_v8 = vld [vmem:[#allocation5 + $0x1b98] sm:$0xff] }
  0xfb   :  { %5302 = vmatpush1.bf16.msra.mxu1 %v5301_v17  ;;  %5112 = vmatprep.subr.bf16.mxu0 %v5111_v18  ;;  %v874_v17 = vld [vmem:[#allocation5 + $0x1610] sm:$0xff]  ;;  %v5133_v25 = vpack.c.bf16 %v888_v16, %v872_v13  ;;  %v1048_v13 = vld [vmem:[#allocation5 + $0x1b80] sm:$0xff] }
  0xfc   :  { %5304 = vmatprep.subr.bf16.mxu1 %v5303_v22  ;;  %v890_v18 = vld [vmem:[#allocation5 + $0x1690] sm:$0xff]  ;;  %v165_v22 = vld [vmem:[#allocation2 + $0x18] sm:$0xff]  ;;  %v1128_v48 = vld [vmem:[#allocation5 + $0x1e00] sm:$0xff] }
  0xfd   :  { %1923 = vmatprep.mubr.f32.mxu0 %v165_v22  ;;  %2136 = vmatprep.mubr.f32.mxu1 %v165_v22  ;;  %v5325_v26 = vpack.c.bf16 %v890_v18, %v874_v17  ;;  %v1050_v16 = vld [vmem:[#allocation5 + $0x1b90] sm:$0xff]  ;;  %v1065_v17 = vld [vmem:[#allocation5 + $0x1c08] sm:$0xff]  ;;  %v1160_v60 = vld [vmem:[#allocation5 + $0x1f00] sm:$0xff] }
  0xfe   :  { %5114 = vmatpush1.bf16.msra.mxu0 %v5113_v28  ;;  %v904_v28 = vld [vmem:[#allocation5 + $0x1700] sm:$0xff]  ;;  %v1081_v18 = vld [vmem:[#allocation5 + $0x1c88] sm:$0xff] }
  0xff   :  { %5306 = vmatpush1.bf16.msra.mxu1 %v5305_v29  ;;  %5116 = vmatprep.subr.bf16.mxu0 %v5115_v30  ;;  %v920_v29 = vld [vmem:[#allocation5 + $0x1780] sm:$0xff]  ;;  %v906_v30 = vld [vmem:[#allocation5 + $0x1710] sm:$0xff]  ;;  %v5155_v23 = vpack.c.bf16 %v1081_v18, %v1065_v17 }
 0x100   :  { %5308 = vmatprep.subr.bf16.mxu1 %v5307_v34  ;;  %v953_v34 = vld [vmem:[#allocation5 + $0x1888] sm:$0xff]  ;;  %v5137_v37 = vpack.c.bf16 %v920_v29, %v904_v28  ;;  %v5329_v38 = vpack.c.bf16 %v922_v32, %v906_v30  ;;  %v1082_v28 = vld [vmem:[#allocation5 + $0x1c90] sm:$0xff]  ;;  %v1115_v32 = vld [vmem:[#allocation5 + $0x1d98] sm:$0xff] }
 0x101   :  { %v5139_v39 = vpack.c.bf16 %v953_v34, %v937_v33  ;;  %v1097_v29 = vld [vmem:[#allocation5 + $0x1d08] sm:$0xff]  ;;  %v164_v17 = vld [vmem:[#allocation2 + $0x10] sm:$0xff] }
 0x102   :  { %5118 = vmatpush1.bf16.msra.mxu0 %v5117_v40  ;;  %v936_v40 = vld [vmem:[#allocation5 + $0x1800] sm:$0xff]  ;;  %v1113_v30 = vld [vmem:[#allocation5 + $0x1d88] sm:$0xff] }
 0x103   :  { %5310 = vmatpush1.bf16.msra.mxu1 %v5309_v41  ;;  %5120 = vmatprep.subr.bf16.mxu0 %v5119_v42  ;;  %v952_v41 = vld [vmem:[#allocation5 + $0x1880] sm:$0xff]  ;;  %v938_v42 = vld [vmem:[#allocation5 + $0x1810] sm:$0xff]  ;;  %v5159_v35 = vpack.c.bf16 %v1113_v30, %v1097_v29  ;;  %v1275_v29 = vld [vmem:[#allocation5 + $0x2298] sm:$0xff] }
 0x104   :  { %5312 = vmatprep.subr.bf16.mxu1 %v5311_v46  ;;  %v985_v46 = vld [vmem:[#allocation5 + $0x1988] sm:$0xff]  ;;  %v5141_v49 = vpack.c.bf16 %v952_v41, %v936_v40  ;;  %v5333_v50 = vpack.c.bf16 %v954_v44, %v938_v42  ;;  %v1114_v40 = vld [vmem:[#allocation5 + $0x1d90] sm:$0xff]  ;;  %v1147_v44 = vld [vmem:[#allocation5 + $0x1e98] sm:$0xff] }
 0x105   :  { %v5143_v51 = vpack.c.bf16 %v985_v46, %v969_v45  ;;  %v1129_v41 = vld [vmem:[#allocation5 + $0x1e08] sm:$0xff]  ;;  %v167_v30 = vld [vmem:[#allocation2 + $0x28] sm:$0xff] }
 0x106   :  { %5122 = vmatpush1.bf16.msra.mxu0 %v5121_v52  ;;  %v968_v52 = vld [vmem:[#allocation5 + $0x1900] sm:$0xff]  ;;  %v1145_v42 = vld [vmem:[#allocation5 + $0x1e88] sm:$0xff] }
 0x107   :  { %5314 = vmatpush1.bf16.msra.mxu1 %v5313_v53  ;;  %5124 = vmatprep.subr.bf16.mxu0 %v5123_v54  ;;  %v984_v53 = vld [vmem:[#allocation5 + $0x1980] sm:$0xff]  ;;  %v970_v54 = vld [vmem:[#allocation5 + $0x1910] sm:$0xff]  ;;  %v5163_v47 = vpack.c.bf16 %v1145_v42, %v1129_v41  ;;  %v1291_v41 = vld [vmem:[#allocation5 + $0x2318] sm:$0xff] }
 0x108   :  { %5316 = vmatprep.subr.bf16.mxu1 %v5315_v58  ;;  %v1017_v58 = vld [vmem:[#allocation5 + $0x1a88] sm:$0xff]  ;;  %v5145_v61 = vpack.c.bf16 %v984_v53, %v968_v52  ;;  %v5337_v62 = vpack.c.bf16 %v986_v56, %v970_v54  ;;  %v1146_v52 = vld [vmem:[#allocation5 + $0x1e90] sm:$0xff]  ;;  %v1179_v56 = vld [vmem:[#allocation5 + $0x1f98] sm:$0xff] }
 0x109   :  { %v5147_v63 = vpack.c.bf16 %v1017_v58, %v1001_v57  ;;  %v1161_v53 = vld [vmem:[#allocation5 + $0x1f08] sm:$0xff]  ;;  %v1307_v42 = vld [vmem:[#allocation5 + $0x2398] sm:$0xff] }
 0x10a   :  { %5126 = vmatpush1.bf16.msra.mxu0 %v5125_v0  ;;  %v1000_v0 = vld [vmem:[#allocation5 + $0x1a00] sm:$0xff]  ;;  %v1177_v54 = vld [vmem:[#allocation5 + $0x1f88] sm:$0xff] }
 0x10b   :  { %5318 = vmatpush1.bf16.msra.mxu1 %v5317_v1  ;;  %5128 = vmatprep.subr.bf16.mxu0 %v5127_v2  ;;  %v1016_v1 = vld [vmem:[#allocation5 + $0x1a80] sm:$0xff]  ;;  %v1002_v2 = vld [vmem:[#allocation5 + $0x1a10] sm:$0xff]  ;;  %v5167_v59 = vpack.c.bf16 %v1177_v54, %v1161_v53  ;;  %v1323_v53 = vld [vmem:[#allocation5 + $0x2418] sm:$0xff] }
 0x10c   :  { %5320 = vmatprep.subr.bf16.mxu1 %v5319_v6  ;;  %v1049_v6 = vld [vmem:[#allocation5 + $0x1b88] sm:$0xff]  ;;  %v5149_v9 = vpack.c.bf16 %v1016_v1, %v1000_v0  ;;  %v5341_v10 = vpack.c.bf16 %v1018_v4, %v1002_v2  ;;  %v1178_v0 = vld [vmem:[#allocation5 + $0x1f90] sm:$0xff]  ;;  %v1211_v4 = vld [vmem:[#allocation5 + $0x2098] sm:$0xff] }
 0x10d   :  { %v5151_v11 = vpack.c.bf16 %v1049_v6, %v1033_v5  ;;  %v1193_v1 = vld [vmem:[#allocation5 + $0x2008] sm:$0xff]  ;;  %v1339_v54 = vld [vmem:[#allocation5 + $0x2498] sm:$0xff] }
 0x10e   :  { %5130 = vmatpush1.bf16.msra.mxu0 %v5129_v12  ;;  %v1032_v12 = vld [vmem:[#allocation5 + $0x1b00] sm:$0xff]  ;;  %v1209_v2 = vld [vmem:[#allocation5 + $0x2088] sm:$0xff] }
 0x10f   :  { %5322 = vmatpush1.bf16.msra.mxu1 %v5321_v14  ;;  %5132 = vmatprep.subr.bf16.mxu0 %v5131_v15  ;;  %v1034_v14 = vld [vmem:[#allocation5 + $0x1b10] sm:$0xff]  ;;  %v5343_v15 = vpack.c.bf16 %v1051_v8, %v1035_v7  ;;  %v5153_v21 = vpack.c.bf16 %v1048_v13, %v1032_v12  ;;  %v5171_v7 = vpack.c.bf16 %v1209_v2, %v1193_v1  ;;  %v1192_v8 = vld [vmem:[#allocation5 + $0x2000] sm:$0xff]  ;;  %v1225_v13 = vld [vmem:[#allocation5 + $0x2108] sm:$0xff] }
 0x110   :  { %5324 = vmatprep.subr.bf16.mxu1 %v5323_v19  ;;  %v1067_v19 = vld [vmem:[#allocation5 + $0x1c18] sm:$0xff]  ;;  %v5345_v22 = vpack.c.bf16 %v1050_v16, %v1034_v14  ;;  %v1210_v12 = vld [vmem:[#allocation5 + $0x2090] sm:$0xff]  ;;  %v1241_v14 = vld [vmem:[#allocation5 + $0x2188] sm:$0xff] }
 0x111   :  { %v1243_v16 = vld [vmem:[#allocation5 + $0x2198] sm:$0xff] }
 0x112   :  { %5134 = vmatpush1.bf16.msra.mxu0 %v5133_v25  ;;  %v1080_v25 = vld [vmem:[#allocation5 + $0x1c80] sm:$0xff]  ;;  %v1355_v1 = vld [vmem:[#allocation5 + $0x2518] sm:$0xff] }
 0x113   :  { %5326 = vmatpush1.bf16.msra.mxu1 %v5325_v26  ;;  %5136 = vmatprep.subr.bf16.mxu0 %v5135_v27  ;;  %v1066_v26 = vld [vmem:[#allocation5 + $0x1c10] sm:$0xff]  ;;  %v5347_v27 = vpack.c.bf16 %v1083_v20, %v1067_v19  ;;  %v5157_v33 = vpack.c.bf16 %v1080_v25, %v1064_v24  ;;  %v5175_v20 = vpack.c.bf16 %v1241_v14, %v1225_v13  ;;  %v1371_v2 = vld [vmem:[#allocation5 + $0x2598] sm:$0xff] }
 0x114   :  { %5328 = vmatprep.subr.bf16.mxu1 %v5327_v31  ;;  %v1099_v31 = vld [vmem:[#allocation5 + $0x1d18] sm:$0xff]  ;;  %v5349_v34 = vpack.c.bf16 %v1082_v28, %v1066_v26  ;;  %v1242_v25 = vld [vmem:[#allocation5 + $0x2190] sm:$0xff]  ;;  %v1257_v26 = vld [vmem:[#allocation5 + $0x2208] sm:$0xff] }
 0x115   :  { %v1259_v28 = vld [vmem:[#allocation5 + $0x2218] sm:$0xff] }
 0x116   :  { %5138 = vmatpush1.bf16.msra.mxu0 %v5137_v37  ;;  %v1112_v37 = vld [vmem:[#allocation5 + $0x1d80] sm:$0xff]  ;;  %v1387_v13 = vld [vmem:[#allocation5 + $0x2618] sm:$0xff] }
 0x117   :  { %5330 = vmatpush1.bf16.msra.mxu1 %v5329_v38  ;;  %5140 = vmatprep.subr.bf16.mxu0 %v5139_v39  ;;  %v1098_v38 = vld [vmem:[#allocation5 + $0x1d10] sm:$0xff]  ;;  %v5351_v39 = vpack.c.bf16 %v1115_v32, %v1099_v31  ;;  %v5161_v45 = vpack.c.bf16 %v1112_v37, %v1096_v36  ;;  %v5371_v37 = vpack.c.bf16 %v1275_v29, %v1259_v28  ;;  %v1403_v14 = vld [vmem:[#allocation5 + $0x2698] sm:$0xff] }
 0x118   :  { %5332 = vmatprep.subr.bf16.mxu1 %v5331_v43  ;;  %v1131_v43 = vld [vmem:[#allocation5 + $0x1e18] sm:$0xff]  ;;  %v5353_v46 = vpack.c.bf16 %v1114_v40, %v1098_v38  ;;  %v1258_v36 = vld [vmem:[#allocation5 + $0x2210] sm:$0xff]  ;;  %v1305_v40 = vld [vmem:[#allocation5 + $0x2388] sm:$0xff] }
 0x119   :  { %v1274_v38 = vld [vmem:[#allocation5 + $0x2290] sm:$0xff] }
 0x11a   :  { %5142 = vmatpush1.bf16.msra.mxu0 %v5141_v49  ;;  %v1144_v49 = vld [vmem:[#allocation5 + $0x1e80] sm:$0xff] }
 0x11b   :  { %5334 = vmatpush1.bf16.msra.mxu1 %v5333_v50  ;;  %5144 = vmatprep.subr.bf16.mxu0 %v5143_v51  ;;  %v1130_v50 = vld [vmem:[#allocation5 + $0x1e10] sm:$0xff]  ;;  %v5355_v51 = vpack.c.bf16 %v1147_v44, %v1131_v43  ;;  %v5165_v57 = vpack.c.bf16 %v1144_v49, %v1128_v48  ;;  %v5373_v44 = vpack.c.bf16 %v1274_v38, %v1258_v36  ;;  %v1465_v36 = vld [vmem:[#allocation5 + $0x2888] sm:$0xff]  ;;  %v1467_v38 = vld [vmem:[#allocation5 + $0x2898] sm:$0xff] }
 0x11c   :  { %5336 = vmatprep.subr.bf16.mxu1 %v5335_v55  ;;  %v1163_v55 = vld [vmem:[#allocation5 + $0x1f18] sm:$0xff]  ;;  %v5357_v58 = vpack.c.bf16 %v1146_v52, %v1130_v50  ;;  %v1290_v48 = vld [vmem:[#allocation5 + $0x2310] sm:$0xff]  ;;  %v5375_v49 = vpack.c.bf16 %v1307_v42, %v1291_v41  ;;  %v1337_v52 = vld [vmem:[#allocation5 + $0x2488] sm:$0xff] }
 0x11d   :  { %v1306_v50 = vld [vmem:[#allocation5 + $0x2390] sm:$0xff]  ;;  %v1448_v42 = vld [vmem:[#allocation5 + $0x2800] sm:$0xff] }
 0x11e   :  { %5146 = vmatpush1.bf16.msra.mxu0 %v5145_v61  ;;  %v1176_v61 = vld [vmem:[#allocation5 + $0x1f80] sm:$0xff] }
 0x11f   :  { %5338 = vmatpush1.bf16.msra.mxu1 %v5337_v62  ;;  %5148 = vmatprep.subr.bf16.mxu0 %v5147_v63  ;;  %v1162_v62 = vld [vmem:[#allocation5 + $0x1f10] sm:$0xff]  ;;  %v5359_v63 = vpack.c.bf16 %v1179_v56, %v1163_v55  ;;  %v5169_v5 = vpack.c.bf16 %v1176_v61, %v1160_v60  ;;  %v5377_v56 = vpack.c.bf16 %v1306_v50, %v1290_v48  ;;  %v1497_v48 = vld [vmem:[#allocation5 + $0x2988] sm:$0xff]  ;;  %v1499_v50 = vld [vmem:[#allocation5 + $0x2998] sm:$0xff] }
 0x120   :  { %5340 = vmatprep.subr.bf16.mxu1 %v5339_v3  ;;  %v1195_v3 = vld [vmem:[#allocation5 + $0x2018] sm:$0xff]  ;;  %v5361_v6 = vpack.c.bf16 %v1178_v0, %v1162_v62  ;;  %v1322_v60 = vld [vmem:[#allocation5 + $0x2410] sm:$0xff]  ;;  %v5379_v61 = vpack.c.bf16 %v1339_v54, %v1323_v53  ;;  %v1369_v0 = vld [vmem:[#allocation5 + $0x2588] sm:$0xff] }
 0x121   :  { %v1338_v62 = vld [vmem:[#allocation5 + $0x2490] sm:$0xff]  ;;  %v1480_v54 = vld [vmem:[#allocation5 + $0x2900] sm:$0xff] }
 0x122   :  { %5150 = vmatpush1.bf16.msra.mxu0 %v5149_v9  ;;  %v1208_v9 = vld [vmem:[#allocation5 + $0x2080] sm:$0xff] }
 0x123   :  { %5342 = vmatpush1.bf16.msra.mxu1 %v5341_v10  ;;  %5152 = vmatprep.subr.bf16.mxu0 %v5151_v11  ;;  %v1194_v10 = vld [vmem:[#allocation5 + $0x2010] sm:$0xff]  ;;  %v5363_v11 = vpack.c.bf16 %v1211_v4, %v1195_v3  ;;  %v5173_v18 = vpack.c.bf16 %v1208_v9, %v1192_v8  ;;  %v5381_v4 = vpack.c.bf16 %v1338_v62, %v1322_v60  ;;  %v1529_v60 = vld [vmem:[#allocation5 + $0x2a88] sm:$0xff]  ;;  %v1531_v62 = vld [vmem:[#allocation5 + $0x2a98] sm:$0xff] }
 0x124   :  { %5344 = vmatprep.subr.bf16.mxu1 %v5343_v15  ;;  %v1227_v15 = vld [vmem:[#allocation5 + $0x2118] sm:$0xff]  ;;  %v5365_v19 = vpack.c.bf16 %v1210_v12, %v1194_v10  ;;  %v1354_v8 = vld [vmem:[#allocation5 + $0x2510] sm:$0xff]  ;;  %v5383_v9 = vpack.c.bf16 %v1371_v2, %v1355_v1  ;;  %v1401_v12 = vld [vmem:[#allocation5 + $0x2688] sm:$0xff] }
 0x125   :  { %v5367_v24 = vpack.c.bf16 %v1243_v16, %v1227_v15  ;;  %v1370_v10 = vld [vmem:[#allocation5 + $0x2590] sm:$0xff]  ;;  %v1512_v2 = vld [vmem:[#allocation5 + $0x2a00] sm:$0xff] }
 0x126   :  { %5154 = vmatpush1.bf16.msra.mxu0 %v5153_v21  ;;  %v1224_v21 = vld [vmem:[#allocation5 + $0x2100] sm:$0xff]  ;;  %v5385_v16 = vpack.c.bf16 %v1370_v10, %v1354_v8  ;;  %v1561_v8 = vld [vmem:[#allocation5 + $0x2b88] sm:$0xff]  ;;  %v1563_v10 = vld [vmem:[#allocation5 + $0x2b98] sm:$0xff] }
 0x127   :  { %5346 = vmatpush1.bf16.msra.mxu1 %v5345_v22  ;;  %5156 = vmatprep.subr.bf16.mxu0 %v5155_v23  ;;  %v1240_v22 = vld [vmem:[#allocation5 + $0x2180] sm:$0xff]  ;;  %v1226_v23 = vld [vmem:[#allocation5 + $0x2110] sm:$0xff] }
 0x128   :  { %5348 = vmatprep.subr.bf16.mxu1 %v5347_v27  ;;  %v1273_v27 = vld [vmem:[#allocation5 + $0x2288] sm:$0xff]  ;;  %v5177_v31 = vpack.c.bf16 %v1240_v22, %v1224_v21  ;;  %v5369_v32 = vpack.c.bf16 %v1242_v25, %v1226_v23  ;;  %v5387_v21 = vpack.c.bf16 %v1403_v14, %v1387_v13  ;;  %v1402_v22 = vld [vmem:[#allocation5 + $0x2690] sm:$0xff]  ;;  %v1419_v25 = vld [vmem:[#allocation5 + $0x2718] sm:$0xff] }
 0x129   :  { %v1417_v23 = vld [vmem:[#allocation5 + $0x2708] sm:$0xff]  ;;  %v1544_v14 = vld [vmem:[#allocation5 + $0x2b00] sm:$0xff] }
 0x12a   :  { %5158 = vmatpush1.bf16.msra.mxu0 %v5157_v33  ;;  %v5179_v33 = vpack.c.bf16 %v1273_v27, %v1257_v26  ;;  %v1435_v26 = vld [vmem:[#allocation5 + $0x2798] sm:$0xff] }
 0x12b   :  { %5350 = vmatpush1.bf16.msra.mxu1 %v5349_v34  ;;  %5160 = vmatprep.subr.bf16.mxu0 %v5159_v35  ;;  %v1256_v34 = vld [vmem:[#allocation5 + $0x2200] sm:$0xff] }
 0x12c   :  { %5352 = vmatprep.subr.bf16.mxu1 %v5351_v39  ;;  %v1272_v35 = vld [vmem:[#allocation5 + $0x2280] sm:$0xff]  ;;  %v1289_v39 = vld [vmem:[#allocation5 + $0x2308] sm:$0xff] }
 0x12d   :  { %v5181_v43 = vpack.c.bf16 %v1272_v35, %v1256_v34  ;;  %v1434_v34 = vld [vmem:[#allocation5 + $0x2790] sm:$0xff]  ;;  %v1449_v35 = vld [vmem:[#allocation5 + $0x2808] sm:$0xff] }
 0x12e   :  { %5162 = vmatpush1.bf16.msra.mxu0 %v5161_v45  ;;  %v5183_v45 = vpack.c.bf16 %v1305_v40, %v1289_v39  ;;  %v5203_v41 = vpack.c.bf16 %v1465_v36, %v1449_v35 }
 0x12f   :  { %5354 = vmatpush1.bf16.msra.mxu1 %v5353_v46  ;;  %5164 = vmatprep.subr.bf16.mxu0 %v5163_v47  ;;  %v1288_v46 = vld [vmem:[#allocation5 + $0x2300] sm:$0xff] }
 0x130   :  { %5356 = vmatprep.subr.bf16.mxu1 %v5355_v51  ;;  %v1304_v47 = vld [vmem:[#allocation5 + $0x2380] sm:$0xff]  ;;  %v1321_v51 = vld [vmem:[#allocation5 + $0x2408] sm:$0xff] }
 0x131   :  { %v5185_v55 = vpack.c.bf16 %v1304_v47, %v1288_v46  ;;  %v1466_v46 = vld [vmem:[#allocation5 + $0x2890] sm:$0xff]  ;;  %v1481_v47 = vld [vmem:[#allocation5 + $0x2908] sm:$0xff] }
 0x132   :  { %5166 = vmatpush1.bf16.msra.mxu0 %v5165_v57  ;;  %v5187_v57 = vpack.c.bf16 %v1337_v52, %v1321_v51  ;;  %v5207_v53 = vpack.c.bf16 %v1497_v48, %v1481_v47 }
 0x133   :  { %5358 = vmatpush1.bf16.msra.mxu1 %v5357_v58  ;;  %5168 = vmatprep.subr.bf16.mxu0 %v5167_v59  ;;  %v1320_v58 = vld [vmem:[#allocation5 + $0x2400] sm:$0xff] }
 0x134   :  { %5360 = vmatprep.subr.bf16.mxu1 %v5359_v63  ;;  %v1336_v59 = vld [vmem:[#allocation5 + $0x2480] sm:$0xff]  ;;  %v1353_v63 = vld [vmem:[#allocation5 + $0x2508] sm:$0xff] }
 0x135   :  { %v5189_v3 = vpack.c.bf16 %v1336_v59, %v1320_v58  ;;  %v1498_v58 = vld [vmem:[#allocation5 + $0x2990] sm:$0xff]  ;;  %v1513_v59 = vld [vmem:[#allocation5 + $0x2a08] sm:$0xff] }
 0x136   :  { %5170 = vmatpush1.bf16.msra.mxu0 %v5169_v5  ;;  %v5191_v5 = vpack.c.bf16 %v1369_v0, %v1353_v63  ;;  %v5211_v1 = vpack.c.bf16 %v1529_v60, %v1513_v59 }
 0x137   :  { %5362 = vmatpush1.bf16.msra.mxu1 %v5361_v6  ;;  %5172 = vmatprep.subr.bf16.mxu0 %v5171_v7  ;;  %v1352_v6 = vld [vmem:[#allocation5 + $0x2500] sm:$0xff] }
 0x138   :  { %5364 = vmatprep.subr.bf16.mxu1 %v5363_v11  ;;  %v1368_v7 = vld [vmem:[#allocation5 + $0x2580] sm:$0xff]  ;;  %v1385_v11 = vld [vmem:[#allocation5 + $0x2608] sm:$0xff] }
 0x139   :  { %1924 = vmatmul.mubr.f32.vlgmr.msra.gmra.mrb[0].mxu0 %v164_v17  ;;  %v5193_v15 = vpack.c.bf16 %v1368_v7, %v1352_v6  ;;  %v1530_v6 = vld [vmem:[#allocation5 + $0x2a90] sm:$0xff]  ;;  %v1545_v7 = vld [vmem:[#allocation5 + $0x2b08] sm:$0xff] }
 0x13a   :  { %5174 = vmatpush1.bf16.msra.mxu0 %v5173_v18  ;;  %2137 = vmatmul.mubr.f32.vlgmr.msra.gmra.mrb[0].mxu1 %v164_v17  ;;  %v5195_v17 = vpack.c.bf16 %v1401_v12, %v1385_v11  ;;  %v1384_v18 = vld [vmem:[#allocation5 + $0x2600] sm:$0xff]  ;;  %v5215_v13 = vpack.c.bf16 %v1561_v8, %v1545_v7 }
 0x13b   :  { %5366 = vmatpush1.bf16.msra.mxu1 %v5365_v19  ;;  %5176 = vmatprep.subr.bf16.mxu0 %v5175_v20  ;;  %v1400_v19 = vld [vmem:[#allocation5 + $0x2680] sm:$0xff]  ;;  %v1386_v20 = vld [vmem:[#allocation5 + $0x2610] sm:$0xff] }
 0x13c   :  { %5368 = vmatprep.subr.bf16.mxu1 %v5367_v24  ;;  %1994 = vmatprep.mubr.f32.mxu0 %v167_v30  ;;  %v1433_v24 = vld [vmem:[#allocation5 + $0x2788] sm:$0xff]  ;;  %v5197_v27 = vpack.c.bf16 %v1400_v19, %v1384_v18  ;;  %v5389_v28 = vpack.c.bf16 %v1402_v22, %v1386_v20  ;;  %v1562_v18 = vld [vmem:[#allocation5 + $0x2b90] sm:$0xff]  ;;  %v1595_v22 = vld [vmem:[#allocation5 + $0x2c98] sm:$0xff] }
 0x13d   :  { %2207 = vmatprep.mubr.f32.mxu1 %v167_v30  ;;  %v5199_v29 = vpack.c.bf16 %v1433_v24, %v1417_v23  ;;  %v1416_v30 = vld [vmem:[#allocation5 + $0x2700] sm:$0xff]  ;;  %v1577_v19 = vld [vmem:[#allocation5 + $0x2c08] sm:$0xff] }
 0x13e   :  { %5178 = vmatpush1.bf16.msra.mxu0 %v5177_v31  ;;  %v1432_v31 = vld [vmem:[#allocation5 + $0x2780] sm:$0xff]  ;;  %v1593_v20 = vld [vmem:[#allocation5 + $0x2c88] sm:$0xff] }
 0x13f   :  { %5370 = vmatpush1.bf16.msra.mxu1 %v5369_v32  ;;  %5180 = vmatprep.subr.bf16.mxu0 %v5179_v33  ;;  %v1418_v32 = vld [vmem:[#allocation5 + $0x2710] sm:$0xff]  ;;  %v5391_v33 = vpack.c.bf16 %v1435_v26, %v1419_v25  ;;  %v5201_v39 = vpack.c.bf16 %v1432_v31, %v1416_v30  ;;  %v5219_v25 = vpack.c.bf16 %v1593_v20, %v1577_v19  ;;  %v1576_v26 = vld [vmem:[#allocation5 + $0x2c00] sm:$0xff]  ;;  %v1609_v31 = vld [vmem:[#allocation5 + $0x2d08] sm:$0xff] }
 0x140   :  { %5372 = vmatprep.subr.bf16.mxu1 %v5371_v37  ;;  %v1451_v37 = vld [vmem:[#allocation5 + $0x2818] sm:$0xff]  ;;  %v5393_v40 = vpack.c.bf16 %v1434_v34, %v1418_v32  ;;  %v1594_v30 = vld [vmem:[#allocation5 + $0x2c90] sm:$0xff]  ;;  %v1625_v32 = vld [vmem:[#allocation5 + $0x2d88] sm:$0xff] }
 0x141   :  { %v1627_v34 = vld [vmem:[#allocation5 + $0x2d98] sm:$0xff]  ;;  %v166_v19 = vld [vmem:[#allocation2 + $0x20] sm:$0xff] }
 0x142   :  { %5182 = vmatpush1.bf16.msra.mxu0 %v5181_v43  ;;  %v1464_v43 = vld [vmem:[#allocation5 + $0x2880] sm:$0xff] }
 0x143   :  { %5374 = vmatpush1.bf16.msra.mxu1 %v5373_v44  ;;  %5184 = vmatprep.subr.bf16.mxu0 %v5183_v45  ;;  %v1450_v44 = vld [vmem:[#allocation5 + $0x2810] sm:$0xff]  ;;  %v5395_v45 = vpack.c.bf16 %v1467_v38, %v1451_v37  ;;  %v5205_v51 = vpack.c.bf16 %v1464_v43, %v1448_v42  ;;  %v5223_v37 = vpack.c.bf16 %v1625_v32, %v1609_v31  ;;  %v1608_v38 = vld [vmem:[#allocation5 + $0x2d00] sm:$0xff]  ;;  %v1641_v43 = vld [vmem:[#allocation5 + $0x2e08] sm:$0xff] }
 0x144   :  { %5376 = vmatprep.subr.bf16.mxu1 %v5375_v49  ;;  %v1483_v49 = vld [vmem:[#allocation5 + $0x2918] sm:$0xff]  ;;  %v5397_v52 = vpack.c.bf16 %v1466_v46, %v1450_v44  ;;  %v1626_v42 = vld [vmem:[#allocation5 + $0x2d90] sm:$0xff]  ;;  %v1657_v44 = vld [vmem:[#allocation5 + $0x2e88] sm:$0xff] }
 0x145   :  { %v1659_v46 = vld [vmem:[#allocation5 + $0x2e98] sm:$0xff] }
 0x146   :  { %5186 = vmatpush1.bf16.msra.mxu0 %v5185_v55  ;;  %v1496_v55 = vld [vmem:[#allocation5 + $0x2980] sm:$0xff]  ;;  %v255_v31 = vld [vmem:[#allocation5 + $0x2b8] sm:$0xff] }
 0x147   :  { %5378 = vmatpush1.bf16.msra.mxu1 %v5377_v56  ;;  %5188 = vmatprep.subr.bf16.mxu0 %v5187_v57  ;;  %v1482_v56 = vld [vmem:[#allocation5 + $0x2910] sm:$0xff]  ;;  %v5399_v57 = vpack.c.bf16 %v1499_v50, %v1483_v49  ;;  %v5209_v63 = vpack.c.bf16 %v1496_v55, %v1480_v54  ;;  %v5227_v49 = vpack.c.bf16 %v1657_v44, %v1641_v43  ;;  %v1640_v50 = vld [vmem:[#allocation5 + $0x2e00] sm:$0xff]  ;;  %v1673_v55 = vld [vmem:[#allocation5 + $0x2f08] sm:$0xff] }
 0x148   :  { %5380 = vmatprep.subr.bf16.mxu1 %v5379_v61  ;;  %v1515_v61 = vld [vmem:[#allocation5 + $0x2a18] sm:$0xff]  ;;  %v5401_v0 = vpack.c.bf16 %v1498_v58, %v1482_v56  ;;  %v1658_v54 = vld [vmem:[#allocation5 + $0x2e90] sm:$0xff]  ;;  %v1689_v56 = vld [vmem:[#allocation5 + $0x2f88] sm:$0xff] }
 0x149   :  { %v1691_v58 = vld [vmem:[#allocation5 + $0x2f98] sm:$0xff] }
 0x14a   :  { %5190 = vmatpush1.bf16.msra.mxu0 %v5189_v3  ;;  %v1528_v3 = vld [vmem:[#allocation5 + $0x2a80] sm:$0xff]  ;;  %v271_v43 = vld [vmem:[#allocation5 + $0x338] sm:$0xff] }
 0x14b   :  { %5382 = vmatpush1.bf16.msra.mxu1 %v5381_v4  ;;  %5192 = vmatprep.subr.bf16.mxu0 %v5191_v5  ;;  %v1514_v4 = vld [vmem:[#allocation5 + $0x2a10] sm:$0xff]  ;;  %v5403_v5 = vpack.c.bf16 %v1531_v62, %v1515_v61  ;;  %v5213_v11 = vpack.c.bf16 %v1528_v3, %v1512_v2  ;;  %v5231_v61 = vpack.c.bf16 %v1689_v56, %v1673_v55  ;;  %v1672_v62 = vld [vmem:[#allocation5 + $0x2f00] sm:$0xff]  ;;  %v173_v3 = vld [vmem:[#allocation5 + $0x28] sm:$0xff] }
 0x14c   :  { %5384 = vmatprep.subr.bf16.mxu1 %v5383_v9  ;;  %v1547_v9 = vld [vmem:[#allocation5 + $0x2b18] sm:$0xff]  ;;  %v5405_v12 = vpack.c.bf16 %v1530_v6, %v1514_v4  ;;  %v1690_v2 = vld [vmem:[#allocation5 + $0x2f90] sm:$0xff]  ;;  %v189_v4 = vld [vmem:[#allocation5 + $0xa8] sm:$0xff] }
 0x14d   :  { %v191_v6 = vld [vmem:[#allocation5 + $0xb8] sm:$0xff] }
 0x14e   :  { %5194 = vmatpush1.bf16.msra.mxu0 %v5193_v15  ;;  %v1560_v15 = vld [vmem:[#allocation5 + $0x2b80] sm:$0xff]  ;;  %v287_v44 = vld [vmem:[#allocation5 + $0x3b8] sm:$0xff] }
 0x14f   :  { %5386 = vmatpush1.bf16.msra.mxu1 %v5385_v16  ;;  %5196 = vmatprep.subr.bf16.mxu0 %v5195_v17  ;;  %v1546_v16 = vld [vmem:[#allocation5 + $0x2b10] sm:$0xff]  ;;  %v5407_v17 = vpack.c.bf16 %v1563_v10, %v1547_v9  ;;  %v5217_v23 = vpack.c.bf16 %v1560_v15, %v1544_v14  ;;  %v5427_v9 = vpack.c.bf16 %v189_v4, %v173_v3  ;;  %v172_v10 = vld [vmem:[#allocation5 + $0x20] sm:$0xff]  ;;  %v205_v15 = vld [vmem:[#allocation5 + $0x128] sm:$0xff] }
 0x150   :  { %5388 = vmatprep.subr.bf16.mxu1 %v5387_v21  ;;  %v1579_v21 = vld [vmem:[#allocation5 + $0x2c18] sm:$0xff]  ;;  %v5409_v24 = vpack.c.bf16 %v1562_v18, %v1546_v16  ;;  %v190_v14 = vld [vmem:[#allocation5 + $0xb0] sm:$0xff]  ;;  %v221_v16 = vld [vmem:[#allocation5 + $0x1a8] sm:$0xff] }
 0x151   :  { %v223_v18 = vld [vmem:[#allocation5 + $0x1b8] sm:$0xff] }
 0x152   :  { %5198 = vmatpush1.bf16.msra.mxu0 %v5197_v27  ;;  %v1592_v27 = vld [vmem:[#allocation5 + $0x2c80] sm:$0xff]  ;;  %v303_v55 = vld [vmem:[#allocation5 + $0x438] sm:$0xff] }
 0x153   :  { %5390 = vmatpush1.bf16.msra.mxu1 %v5389_v28  ;;  %5200 = vmatprep.subr.bf16.mxu0 %v5199_v29  ;;  %v1578_v28 = vld [vmem:[#allocation5 + $0x2c10] sm:$0xff]  ;;  %v5411_v29 = vpack.c.bf16 %v1595_v22, %v1579_v21  ;;  %v5221_v35 = vpack.c.bf16 %v1592_v27, %v1576_v26  ;;  %v5431_v22 = vpack.c.bf16 %v221_v16, %v205_v15  ;;  %v319_v56 = vld [vmem:[#allocation5 + $0x4b8] sm:$0xff] }
 0x154   :  { %5392 = vmatprep.subr.bf16.mxu1 %v5391_v33  ;;  %v1611_v33 = vld [vmem:[#allocation5 + $0x2d18] sm:$0xff]  ;;  %v5413_v36 = vpack.c.bf16 %v1594_v30, %v1578_v28  ;;  %v222_v27 = vld [vmem:[#allocation5 + $0x1b0] sm:$0xff]  ;;  %v237_v28 = vld [vmem:[#allocation5 + $0x228] sm:$0xff] }
 0x155   :  { %v239_v30 = vld [vmem:[#allocation5 + $0x238] sm:$0xff] }
 0x156   :  { %5202 = vmatpush1.bf16.msra.mxu0 %v5201_v39  ;;  %v1624_v39 = vld [vmem:[#allocation5 + $0x2d80] sm:$0xff]  ;;  %v335_v3 = vld [vmem:[#allocation5 + $0x538] sm:$0xff] }
 0x157   :  { %5394 = vmatpush1.bf16.msra.mxu1 %v5393_v40  ;;  %5204 = vmatprep.subr.bf16.mxu0 %v5203_v41  ;;  %v1610_v40 = vld [vmem:[#allocation5 + $0x2d10] sm:$0xff]  ;;  %v5415_v41 = vpack.c.bf16 %v1627_v34, %v1611_v33  ;;  %v5225_v47 = vpack.c.bf16 %v1624_v39, %v1608_v38  ;;  %v5627_v38 = vpack.c.bf16 %v255_v31, %v239_v30  ;;  %v351_v4 = vld [vmem:[#allocation5 + $0x5b8] sm:$0xff] }
 0x158   :  { %5396 = vmatprep.subr.bf16.mxu1 %v5395_v45  ;;  %v1643_v45 = vld [vmem:[#allocation5 + $0x2e18] sm:$0xff]  ;;  %v5417_v48 = vpack.c.bf16 %v1626_v42, %v1610_v40  ;;  %v254_v39 = vld [vmem:[#allocation5 + $0x2b0] sm:$0xff]  ;;  %v269_v40 = vld [vmem:[#allocation5 + $0x328] sm:$0xff] }
 0x159   :  { %v7117_v42 = vld [vmem:[#allocation2 + $0x8] sm:$0xff] }
 0x15a   :  { %5206 = vmatpush1.bf16.msra.mxu0 %v5205_v51  ;;  %v1656_v51 = vld [vmem:[#allocation5 + $0x2e80] sm:$0xff]  ;;  %v367_v15 = vld [vmem:[#allocation5 + $0x638] sm:$0xff] }
 0x15b   :  { %5398 = vmatpush1.bf16.msra.mxu1 %v5397_v52  ;;  %5208 = vmatprep.subr.bf16.mxu0 %v5207_v53  ;;  %v1642_v52 = vld [vmem:[#allocation5 + $0x2e10] sm:$0xff]  ;;  %v5419_v53 = vpack.c.bf16 %v1659_v46, %v1643_v45  ;;  %v5229_v59 = vpack.c.bf16 %v1656_v51, %v1640_v50  ;;  %v5631_v51 = vpack.c.bf16 %v287_v44, %v271_v43  ;;  %v383_v16 = vld [vmem:[#allocation5 + $0x6b8] sm:$0xff]  ;;  %v428_v44 = vld [vmem:[#allocation5 + $0x820] sm:$0xff] }
 0x15c   :  { %5400 = vmatprep.subr.bf16.mxu1 %v5399_v57  ;;  %v1675_v57 = vld [vmem:[#allocation5 + $0x2f18] sm:$0xff]  ;;  %v5421_v60 = vpack.c.bf16 %v1658_v54, %v1642_v52  ;;  %v270_v50 = vld [vmem:[#allocation5 + $0x330] sm:$0xff]  ;;  %v317_v54 = vld [vmem:[#allocation5 + $0x4a8] sm:$0xff] }
 0x15d   :  { %v286_v52 = vld [vmem:[#allocation5 + $0x3b0] sm:$0xff] }
 0x15e   :  { %5210 = vmatpush1.bf16.msra.mxu0 %v5209_v63  ;;  %v1688_v63 = vld [vmem:[#allocation5 + $0x2f80] sm:$0xff] }
 0x15f   :  { %5402 = vmatpush1.bf16.msra.mxu1 %v5401_v0  ;;  %5212 = vmatprep.subr.bf16.mxu0 %v5211_v1  ;;  %v1674_v0 = vld [vmem:[#allocation5 + $0x2f10] sm:$0xff]  ;;  %v5423_v1 = vpack.c.bf16 %v1691_v58, %v1675_v57  ;;  %v5233_v7 = vpack.c.bf16 %v1688_v63, %v1672_v62  ;;  %v5633_v58 = vpack.c.bf16 %v286_v52, %v270_v50  ;;  %v477_v50 = vld [vmem:[#allocation5 + $0x9a8] sm:$0xff]  ;;  %v479_v52 = vld [vmem:[#allocation5 + $0x9b8] sm:$0xff] }
 0x160   :  { %5404 = vmatprep.subr.bf16.mxu1 %v5403_v5  ;;  %v175_v5 = vld [vmem:[#allocation5 + $0x38] sm:$0xff]  ;;  %v5425_v8 = vpack.c.bf16 %v1690_v2, %v1674_v0  ;;  %v302_v62 = vld [vmem:[#allocation5 + $0x430] sm:$0xff]  ;;  %v5635_v63 = vpack.c.bf16 %v319_v56, %v303_v55  ;;  %v349_v2 = vld [vmem:[#allocation5 + $0x5a8] sm:$0xff] }
 0x161   :  { %v318_v0 = vld [vmem:[#allocation5 + $0x4b0] sm:$0xff]  ;;  %v460_v56 = vld [vmem:[#allocation5 + $0x920] sm:$0xff] }
 0x162   :  { %5214 = vmatpush1.bf16.msra.mxu0 %v5213_v11  ;;  %v188_v11 = vld [vmem:[#allocation5 + $0xa0] sm:$0xff] }
 0x163   :  { %5406 = vmatpush1.bf16.msra.mxu1 %v5405_v12  ;;  %5216 = vmatprep.subr.bf16.mxu0 %v5215_v13  ;;  %v174_v12 = vld [vmem:[#allocation5 + $0x30] sm:$0xff]  ;;  %v5619_v13 = vpack.c.bf16 %v191_v6, %v175_v5  ;;  %v5429_v20 = vpack.c.bf16 %v188_v11, %v172_v10  ;;  %v5637_v6 = vpack.c.bf16 %v318_v0, %v302_v62  ;;  %v509_v62 = vld [vmem:[#allocation5 + $0xaa8] sm:$0xff]  ;;  %v511_v0 = vld [vmem:[#allocation5 + $0xab8] sm:$0xff] }
 0x164   :  { %5408 = vmatprep.subr.bf16.mxu1 %v5407_v17  ;;  %v207_v17 = vld [vmem:[#allocation5 + $0x138] sm:$0xff]  ;;  %v5621_v21 = vpack.c.bf16 %v190_v14, %v174_v12  ;;  %v334_v10 = vld [vmem:[#allocation5 + $0x530] sm:$0xff]  ;;  %v5639_v11 = vpack.c.bf16 %v351_v4, %v335_v3  ;;  %v381_v14 = vld [vmem:[#allocation5 + $0x6a8] sm:$0xff] }
 0x165   :  { %v5623_v26 = vpack.c.bf16 %v223_v18, %v207_v17  ;;  %v350_v12 = vld [vmem:[#allocation5 + $0x5b0] sm:$0xff]  ;;  %v492_v4 = vld [vmem:[#allocation5 + $0xa20] sm:$0xff] }
 0x166   :  { %5218 = vmatpush1.bf16.msra.mxu0 %v5217_v23  ;;  %v204_v23 = vld [vmem:[#allocation5 + $0x120] sm:$0xff]  ;;  %v5641_v18 = vpack.c.bf16 %v350_v12, %v334_v10  ;;  %v541_v10 = vld [vmem:[#allocation5 + $0xba8] sm:$0xff]  ;;  %v543_v12 = vld [vmem:[#allocation5 + $0xbb8] sm:$0xff] }
 0x167   :  { %5410 = vmatpush1.bf16.msra.mxu1 %v5409_v24  ;;  %5220 = vmatprep.subr.bf16.mxu0 %v5219_v25  ;;  %v220_v24 = vld [vmem:[#allocation5 + $0x1a0] sm:$0xff]  ;;  %v206_v25 = vld [vmem:[#allocation5 + $0x130] sm:$0xff] }
 0x168   :  { %5412 = vmatprep.subr.bf16.mxu1 %v5411_v29  ;;  %v253_v29 = vld [vmem:[#allocation5 + $0x2a8] sm:$0xff]  ;;  %v5433_v32 = vpack.c.bf16 %v220_v24, %v204_v23  ;;  %v5625_v33 = vpack.c.bf16 %v222_v27, %v206_v25  ;;  %v5643_v23 = vpack.c.bf16 %v383_v16, %v367_v15  ;;  %v382_v24 = vld [vmem:[#allocation5 + $0x6b0] sm:$0xff]  ;;  %v399_v27 = vld [vmem:[#allocation5 + $0x738] sm:$0xff] }
 0x169   :  { %v5435_v34 = vpack.c.bf16 %v253_v29, %v237_v28  ;;  %v397_v25 = vld [vmem:[#allocation5 + $0x728] sm:$0xff]  ;;  %v415_v28 = vld [vmem:[#allocation5 + $0x7b8] sm:$0xff]  ;;  %v524_v16 = vld [vmem:[#allocation5 + $0xb20] sm:$0xff] }
 0x16a   :  { %5222 = vmatpush1.bf16.msra.mxu0 %v5221_v35  ;;  %v236_v35 = vld [vmem:[#allocation5 + $0x220] sm:$0xff] }
 0x16b   :  { %5414 = vmatpush1.bf16.msra.mxu1 %v5413_v36  ;;  %5224 = vmatprep.subr.bf16.mxu0 %v5223_v37  ;;  %v252_v36 = vld [vmem:[#allocation5 + $0x2a0] sm:$0xff]  ;;  %v238_v37 = vld [vmem:[#allocation5 + $0x230] sm:$0xff] }
 0x16c   :  { %5416 = vmatprep.subr.bf16.mxu1 %v5415_v41  ;;  %v285_v41 = vld [vmem:[#allocation5 + $0x3a8] sm:$0xff]  ;;  %v5437_v45 = vpack.c.bf16 %v252_v36, %v236_v35  ;;  %v5629_v46 = vpack.c.bf16 %v254_v39, %v238_v37  ;;  %v5647_v35 = vpack.c.bf16 %v415_v28, %v399_v27  ;;  %v414_v36 = vld [vmem:[#allocation5 + $0x7b0] sm:$0xff]  ;;  %v431_v39 = vld [vmem:[#allocation5 + $0x838] sm:$0xff] }
 0x16d   :  { %v429_v37 = vld [vmem:[#allocation5 + $0x828] sm:$0xff]  ;;  %v556_v28 = vld [vmem:[#allocation5 + $0xc20] sm:$0xff] }
 0x16e   :  { %5226 = vmatpush1.bf16.msra.mxu0 %v5225_v47  ;;  %v5439_v47 = vpack.c.bf16 %v285_v41, %v269_v40  ;;  %v447_v40 = vld [vmem:[#allocation5 + $0x8b8] sm:$0xff] }
 0x16f   :  { %5418 = vmatpush1.bf16.msra.mxu1 %v5417_v48  ;;  %5228 = vmatprep.subr.bf16.mxu0 %v5227_v49  ;;  %v268_v48 = vld [vmem:[#allocation5 + $0x320] sm:$0xff] }
 0x170   :  { %5420 = vmatprep.subr.bf16.mxu1 %v5419_v53  ;;  %v284_v49 = vld [vmem:[#allocation5 + $0x3a0] sm:$0xff]  ;;  %v301_v53 = vld [vmem:[#allocation5 + $0x428] sm:$0xff] }
 0x171   :  { %v5441_v57 = vpack.c.bf16 %v284_v49, %v268_v48  ;;  %v446_v48 = vld [vmem:[#allocation5 + $0x8b0] sm:$0xff]  ;;  %v461_v49 = vld [vmem:[#allocation5 + $0x928] sm:$0xff] }
 0x172   :  { %5230 = vmatpush1.bf16.msra.mxu0 %v5229_v59  ;;  %v5443_v59 = vpack.c.bf16 %v317_v54, %v301_v53  ;;  %v5463_v55 = vpack.c.bf16 %v477_v50, %v461_v49 }
 0x173   :  { %5422 = vmatpush1.bf16.msra.mxu1 %v5421_v60  ;;  %5232 = vmatprep.subr.bf16.mxu0 %v5231_v61  ;;  %v300_v60 = vld [vmem:[#allocation5 + $0x420] sm:$0xff] }
 0x174   :  { %5424 = vmatprep.subr.bf16.mxu1 %v5423_v1  ;;  %v316_v61 = vld [vmem:[#allocation5 + $0x4a0] sm:$0xff]  ;;  %v333_v1 = vld [vmem:[#allocation5 + $0x528] sm:$0xff] }
 0x175   :  { %v5445_v5 = vpack.c.bf16 %v316_v61, %v300_v60  ;;  %v478_v60 = vld [vmem:[#allocation5 + $0x9b0] sm:$0xff]  ;;  %v493_v61 = vld [vmem:[#allocation5 + $0xa28] sm:$0xff] }
 0x176   :  { %5234 = vmatpush1.bf16.msra.mxu0 %v5233_v7  ;;  %v5447_v7 = vpack.c.bf16 %v349_v2, %v333_v1  ;;  %v5467_v3 = vpack.c.bf16 %v509_v62, %v493_v61 }
 0x177   :  { %5426 = vmatpush1.bf16.msra.mxu1 %v5425_v8  ;;  %5428 = vmatprep.subr.bf16.mxu0 %v5427_v9  ;;  %v332_v8 = vld [vmem:[#allocation5 + $0x520] sm:$0xff] }
 0x178   :  { %5620 = vmatprep.subr.bf16.mxu1 %v5619_v13  ;;  %v348_v9 = vld [vmem:[#allocation5 + $0x5a0] sm:$0xff]  ;;  %v365_v13 = vld [vmem:[#allocation5 + $0x628] sm:$0xff] }
 0x179   :  { %1995 = vmatmul.mubr.f32.vlgmr.msra.gmra.mrb[0].mxu0 %v166_v19  ;;  %v5449_v17 = vpack.c.bf16 %v348_v9, %v332_v8  ;;  %v510_v8 = vld [vmem:[#allocation5 + $0xab0] sm:$0xff]  ;;  %v525_v9 = vld [vmem:[#allocation5 + $0xb28] sm:$0xff] }
 0x17a   :  { %2208 = vmatmul.mubr.f32.vlgmr.msra.gmra.mrb[0].mxu1 %v166_v19  ;;  %5430 = vmatpush1.bf16.msra.mxu0 %v5429_v20  ;;  %v5451_v19 = vpack.c.bf16 %v381_v14, %v365_v13  ;;  %v364_v20 = vld [vmem:[#allocation5 + $0x620] sm:$0xff]  ;;  %v5471_v15 = vpack.c.bf16 %v541_v10, %v525_v9 }
 0x17b   :  { %5622 = vmatpush1.bf16.msra.mxu1 %v5621_v21  ;;  %5432 = vmatprep.subr.bf16.mxu0 %v5431_v22  ;;  %v380_v21 = vld [vmem:[#allocation5 + $0x6a0] sm:$0xff]  ;;  %v366_v22 = vld [vmem:[#allocation5 + $0x630] sm:$0xff] }
 0x17c   :  { %5624 = vmatprep.subr.bf16.mxu1 %v5623_v26  ;;  %2278 = vmatprep.mubr.f32.mxu0 %v7117_v42  ;;  %v413_v26 = vld [vmem:[#allocation5 + $0x7a8] sm:$0xff]  ;;  %v5453_v29 = vpack.c.bf16 %v380_v21, %v364_v20  ;;  %v5645_v30 = vpack.c.bf16 %v382_v24, %v366_v22  ;;  %v542_v20 = vld [vmem:[#allocation5 + $0xbb0] sm:$0xff]  ;;  %v575_v24 = vld [vmem:[#allocation5 + $0xcb8] sm:$0xff] }
 0x17d   :  { %2491 = vmatprep.mubr.f32.mxu1 %v7117_v42  ;;  %v5455_v31 = vpack.c.bf16 %v413_v26, %v397_v25  ;;  %v557_v21 = vld [vmem:[#allocation5 + $0xc28] sm:$0xff] }
 0x17e   :  { %5434 = vmatpush1.bf16.msra.mxu0 %v5433_v32  ;;  %v396_v32 = vld [vmem:[#allocation5 + $0x720] sm:$0xff]  ;;  %v573_v22 = vld [vmem:[#allocation5 + $0xca8] sm:$0xff] }
 0x17f   :  { %5626 = vmatpush1.bf16.msra.mxu1 %v5625_v33  ;;  %5436 = vmatprep.subr.bf16.mxu0 %v5435_v34  ;;  %v412_v33 = vld [vmem:[#allocation5 + $0x7a0] sm:$0xff]  ;;  %v398_v34 = vld [vmem:[#allocation5 + $0x730] sm:$0xff]  ;;  %v5475_v27 = vpack.c.bf16 %v573_v22, %v557_v21 }
 0x180   :  { %5628 = vmatprep.subr.bf16.mxu1 %v5627_v38  ;;  %v445_v38 = vld [vmem:[#allocation5 + $0x8a8] sm:$0xff]  ;;  %v5457_v41 = vpack.c.bf16 %v412_v33, %v396_v32  ;;  %v5649_v42 = vpack.c.bf16 %v414_v36, %v398_v34  ;;  %v574_v32 = vld [vmem:[#allocation5 + $0xcb0] sm:$0xff]  ;;  %v607_v36 = vld [vmem:[#allocation5 + $0xdb8] sm:$0xff] }
 0x181   :  { %v5459_v43 = vpack.c.bf16 %v445_v38, %v429_v37  ;;  %v589_v33 = vld [vmem:[#allocation5 + $0xd28] sm:$0xff] }
 0x182   :  { %5438 = vmatpush1.bf16.msra.mxu0 %v5437_v45  ;;  %v444_v45 = vld [vmem:[#allocation5 + $0x8a0] sm:$0xff]  ;;  %v605_v34 = vld [vmem:[#allocation5 + $0xda8] sm:$0xff] }
 0x183   :  { %5630 = vmatpush1.bf16.msra.mxu1 %v5629_v46  ;;  %5440 = vmatprep.subr.bf16.mxu0 %v5439_v47  ;;  %v430_v46 = vld [vmem:[#allocation5 + $0x830] sm:$0xff]  ;;  %v5651_v47 = vpack.c.bf16 %v447_v40, %v431_v39  ;;  %v5461_v53 = vpack.c.bf16 %v444_v45, %v428_v44  ;;  %v5479_v39 = vpack.c.bf16 %v605_v34, %v589_v33  ;;  %v588_v40 = vld [vmem:[#allocation5 + $0xd20] sm:$0xff]  ;;  %v621_v45 = vld [vmem:[#allocation5 + $0xe28] sm:$0xff] }
 0x184   :  { %5632 = vmatprep.subr.bf16.mxu1 %v5631_v51  ;;  %v463_v51 = vld [vmem:[#allocation5 + $0x938] sm:$0xff]  ;;  %v5653_v54 = vpack.c.bf16 %v446_v48, %v430_v46  ;;  %v606_v44 = vld [vmem:[#allocation5 + $0xdb0] sm:$0xff]  ;;  %v637_v46 = vld [vmem:[#allocation5 + $0xea8] sm:$0xff] }
 0x185   :  { %v639_v48 = vld [vmem:[#allocation5 + $0xeb8] sm:$0xff] }
 0x186   :  { %5442 = vmatpush1.bf16.msra.mxu0 %v5441_v57  ;;  %v476_v57 = vld [vmem:[#allocation5 + $0x9a0] sm:$0xff]  ;;  %v767_v33 = vld [vmem:[#allocation5 + $0x12b8] sm:$0xff] }
 0x187   :  { %5634 = vmatpush1.bf16.msra.mxu1 %v5633_v58  ;;  %5444 = vmatprep.subr.bf16.mxu0 %v5443_v59  ;;  %v462_v58 = vld [vmem:[#allocation5 + $0x930] sm:$0xff]  ;;  %v5655_v59 = vpack.c.bf16 %v479_v52, %v463_v51  ;;  %v5465_v1 = vpack.c.bf16 %v476_v57, %v460_v56  ;;  %v5483_v51 = vpack.c.bf16 %v637_v46, %v621_v45  ;;  %v620_v52 = vld [vmem:[#allocation5 + $0xe20] sm:$0xff]  ;;  %v653_v57 = vld [vmem:[#allocation5 + $0xf28] sm:$0xff] }
 0x188   :  { %5636 = vmatprep.subr.bf16.mxu1 %v5635_v63  ;;  %v495_v63 = vld [vmem:[#allocation5 + $0xa38] sm:$0xff]  ;;  %v5657_v2 = vpack.c.bf16 %v478_v60, %v462_v58  ;;  %v638_v56 = vld [vmem:[#allocation5 + $0xeb0] sm:$0xff]  ;;  %v669_v58 = vld [vmem:[#allocation5 + $0xfa8] sm:$0xff] }
 0x189   :  { %v671_v60 = vld [vmem:[#allocation5 + $0xfb8] sm:$0xff] }
 0x18a   :  { %5446 = vmatpush1.bf16.msra.mxu0 %v5445_v5  ;;  %v508_v5 = vld [vmem:[#allocation5 + $0xaa0] sm:$0xff]  ;;  %v783_v45 = vld [vmem:[#allocation5 + $0x1338] sm:$0xff] }
 0x18b   :  { %5638 = vmatpush1.bf16.msra.mxu1 %v5637_v6  ;;  %5448 = vmatprep.subr.bf16.mxu0 %v5447_v7  ;;  %v494_v6 = vld [vmem:[#allocation5 + $0xa30] sm:$0xff]  ;;  %v5659_v7 = vpack.c.bf16 %v511_v0, %v495_v63  ;;  %v5469_v13 = vpack.c.bf16 %v508_v5, %v492_v4  ;;  %v5487_v63 = vpack.c.bf16 %v669_v58, %v653_v57  ;;  %v652_v0 = vld [vmem:[#allocation5 + $0xf20] sm:$0xff]  ;;  %v685_v5 = vld [vmem:[#allocation5 + $0x1028] sm:$0xff] }
 0x18c   :  { %5640 = vmatprep.subr.bf16.mxu1 %v5639_v11  ;;  %v527_v11 = vld [vmem:[#allocation5 + $0xb38] sm:$0xff]  ;;  %v5661_v14 = vpack.c.bf16 %v510_v8, %v494_v6  ;;  %v670_v4 = vld [vmem:[#allocation5 + $0xfb0] sm:$0xff]  ;;  %v701_v6 = vld [vmem:[#allocation5 + $0x10a8] sm:$0xff] }
 0x18d   :  { %v703_v8 = vld [vmem:[#allocation5 + $0x10b8] sm:$0xff] }
 0x18e   :  { %5450 = vmatpush1.bf16.msra.mxu0 %v5449_v17  ;;  %v540_v17 = vld [vmem:[#allocation5 + $0xba0] sm:$0xff]  ;;  %v799_v46 = vld [vmem:[#allocation5 + $0x13b8] sm:$0xff] }
 0x18f   :  { %5642 = vmatpush1.bf16.msra.mxu1 %v5641_v18  ;;  %5452 = vmatprep.subr.bf16.mxu0 %v5451_v19  ;;  %v526_v18 = vld [vmem:[#allocation5 + $0xb30] sm:$0xff]  ;;  %v5663_v19 = vpack.c.bf16 %v543_v12, %v527_v11  ;;  %v5473_v25 = vpack.c.bf16 %v540_v17, %v524_v16  ;;  %v5491_v11 = vpack.c.bf16 %v701_v6, %v685_v5  ;;  %v684_v12 = vld [vmem:[#allocation5 + $0x1020] sm:$0xff]  ;;  %v717_v17 = vld [vmem:[#allocation5 + $0x1128] sm:$0xff] }
 0x190   :  { %5644 = vmatprep.subr.bf16.mxu1 %v5643_v23  ;;  %v559_v23 = vld [vmem:[#allocation5 + $0xc38] sm:$0xff]  ;;  %v5665_v26 = vpack.c.bf16 %v542_v20, %v526_v18  ;;  %v702_v16 = vld [vmem:[#allocation5 + $0x10b0] sm:$0xff]  ;;  %v733_v18 = vld [vmem:[#allocation5 + $0x11a8] sm:$0xff] }
 0x191   :  { %v735_v20 = vld [vmem:[#allocation5 + $0x11b8] sm:$0xff] }
 0x192   :  { %5454 = vmatpush1.bf16.msra.mxu0 %v5453_v29  ;;  %v572_v29 = vld [vmem:[#allocation5 + $0xca0] sm:$0xff]  ;;  %v815_v57 = vld [vmem:[#allocation5 + $0x1438] sm:$0xff] }
 0x193   :  { %5646 = vmatpush1.bf16.msra.mxu1 %v5645_v30  ;;  %5456 = vmatprep.subr.bf16.mxu0 %v5455_v31  ;;  %v558_v30 = vld [vmem:[#allocation5 + $0xc30] sm:$0xff]  ;;  %v5667_v31 = vpack.c.bf16 %v575_v24, %v559_v23  ;;  %v5477_v37 = vpack.c.bf16 %v572_v29, %v556_v28  ;;  %v5495_v23 = vpack.c.bf16 %v733_v18, %v717_v17  ;;  %v716_v24 = vld [vmem:[#allocation5 + $0x1120] sm:$0xff]  ;;  %v749_v29 = vld [vmem:[#allocation5 + $0x1228] sm:$0xff] }
 0x194   :  { %5648 = vmatprep.subr.bf16.mxu1 %v5647_v35  ;;  %v591_v35 = vld [vmem:[#allocation5 + $0xd38] sm:$0xff]  ;;  %v5669_v38 = vpack.c.bf16 %v574_v32, %v558_v30  ;;  %v734_v28 = vld [vmem:[#allocation5 + $0x11b0] sm:$0xff]  ;;  %v765_v30 = vld [vmem:[#allocation5 + $0x12a8] sm:$0xff] }
 0x195   :  { %v751_v32 = vld [vmem:[#allocation5 + $0x1238] sm:$0xff] }
 0x196   :  { %5458 = vmatpush1.bf16.msra.mxu0 %v5457_v41  ;;  %v604_v41 = vld [vmem:[#allocation5 + $0xda0] sm:$0xff]  ;;  %v831_v58 = vld [vmem:[#allocation5 + $0x14b8] sm:$0xff] }
 0x197   :  { %5650 = vmatpush1.bf16.msra.mxu1 %v5649_v42  ;;  %5460 = vmatprep.subr.bf16.mxu0 %v5459_v43  ;;  %v590_v42 = vld [vmem:[#allocation5 + $0xd30] sm:$0xff]  ;;  %v5671_v43 = vpack.c.bf16 %v607_v36, %v591_v35  ;;  %v5481_v49 = vpack.c.bf16 %v604_v41, %v588_v40  ;;  %v5499_v36 = vpack.c.bf16 %v765_v30, %v749_v29  ;;  %v847_v5 = vld [vmem:[#allocation5 + $0x1538] sm:$0xff] }
 0x198   :  { %5652 = vmatprep.subr.bf16.mxu1 %v5651_v47  ;;  %v623_v47 = vld [vmem:[#allocation5 + $0xe38] sm:$0xff]  ;;  %v5673_v50 = vpack.c.bf16 %v606_v44, %v590_v42  ;;  %v5691_v40 = vpack.c.bf16 %v767_v33, %v751_v32  ;;  %v766_v41 = vld [vmem:[#allocation5 + $0x12b0] sm:$0xff]  ;;  %v781_v42 = vld [vmem:[#allocation5 + $0x1328] sm:$0xff] }
 0x199   :  { %v7119_v44 = vld [vmem:[#allocation2 + $0x18] sm:$0xff]  ;;  %v863_v6 = vld [vmem:[#allocation5 + $0x15b8] sm:$0xff] }
 0x19a   :  { %5462 = vmatpush1.bf16.msra.mxu0 %v5461_v53  ;;  %v636_v53 = vld [vmem:[#allocation5 + $0xea0] sm:$0xff]  ;;  %v879_v17 = vld [vmem:[#allocation5 + $0x1638] sm:$0xff] }
 0x19b   :  { %5654 = vmatpush1.bf16.msra.mxu1 %v5653_v54  ;;  %5464 = vmatprep.subr.bf16.mxu0 %v5463_v55  ;;  %v622_v54 = vld [vmem:[#allocation5 + $0xe30] sm:$0xff]  ;;  %v5675_v55 = vpack.c.bf16 %v639_v48, %v623_v47  ;;  %v5485_v61 = vpack.c.bf16 %v636_v53, %v620_v52  ;;  %v5695_v53 = vpack.c.bf16 %v799_v46, %v783_v45  ;;  %v895_v18 = vld [vmem:[#allocation5 + $0x16b8] sm:$0xff]  ;;  %v940_v46 = vld [vmem:[#allocation5 + $0x1820] sm:$0xff] }
 0x19c   :  { %5656 = vmatprep.subr.bf16.mxu1 %v5655_v59  ;;  %v655_v59 = vld [vmem:[#allocation5 + $0xf38] sm:$0xff]  ;;  %v5677_v62 = vpack.c.bf16 %v638_v56, %v622_v54  ;;  %v782_v52 = vld [vmem:[#allocation5 + $0x1330] sm:$0xff]  ;;  %v829_v56 = vld [vmem:[#allocation5 + $0x14a8] sm:$0xff] }
 0x19d   :  { %v798_v54 = vld [vmem:[#allocation5 + $0x13b0] sm:$0xff]  ;;  %v911_v29 = vld [vmem:[#allocation5 + $0x1738] sm:$0xff] }
 0x19e   :  { %5466 = vmatpush1.bf16.msra.mxu0 %v5465_v1  ;;  %v668_v1 = vld [vmem:[#allocation5 + $0xfa0] sm:$0xff]  ;;  %v927_v30 = vld [vmem:[#allocation5 + $0x17b8] sm:$0xff] }
 0x19f   :  { %5658 = vmatpush1.bf16.msra.mxu1 %v5657_v2  ;;  %5468 = vmatprep.subr.bf16.mxu0 %v5467_v3  ;;  %v654_v2 = vld [vmem:[#allocation5 + $0xf30] sm:$0xff]  ;;  %v5679_v3 = vpack.c.bf16 %v671_v60, %v655_v59  ;;  %v5489_v9 = vpack.c.bf16 %v668_v1, %v652_v0  ;;  %v5697_v60 = vpack.c.bf16 %v798_v54, %v782_v52  ;;  %v989_v52 = vld [vmem:[#allocation5 + $0x19a8] sm:$0xff]  ;;  %v991_v54 = vld [vmem:[#allocation5 + $0x19b8] sm:$0xff] }
 0x1a0   :  { %5660 = vmatprep.subr.bf16.mxu1 %v5659_v7  ;;  %v687_v7 = vld [vmem:[#allocation5 + $0x1038] sm:$0xff]  ;;  %v5681_v10 = vpack.c.bf16 %v670_v4, %v654_v2  ;;  %v814_v0 = vld [vmem:[#allocation5 + $0x1430] sm:$0xff]  ;;  %v5699_v1 = vpack.c.bf16 %v831_v58, %v815_v57  ;;  %v861_v4 = vld [vmem:[#allocation5 + $0x15a8] sm:$0xff] }
 0x1a1   :  { %v830_v2 = vld [vmem:[#allocation5 + $0x14b0] sm:$0xff]  ;;  %v972_v58 = vld [vmem:[#allocation5 + $0x1920] sm:$0xff] }
 0x1a2   :  { %5470 = vmatpush1.bf16.msra.mxu0 %v5469_v13  ;;  %v700_v13 = vld [vmem:[#allocation5 + $0x10a0] sm:$0xff] }
 0x1a3   :  { %5662 = vmatpush1.bf16.msra.mxu1 %v5661_v14  ;;  %5472 = vmatprep.subr.bf16.mxu0 %v5471_v15  ;;  %v686_v14 = vld [vmem:[#allocation5 + $0x1030] sm:$0xff]  ;;  %v5683_v15 = vpack.c.bf16 %v703_v8, %v687_v7  ;;  %v5493_v21 = vpack.c.bf16 %v700_v13, %v684_v12  ;;  %v5701_v8 = vpack.c.bf16 %v830_v2, %v814_v0  ;;  %v1021_v0 = vld [vmem:[#allocation5 + $0x1aa8] sm:$0xff]  ;;  %v1023_v2 = vld [vmem:[#allocation5 + $0x1ab8] sm:$0xff] }
 0x1a4   :  { %5664 = vmatprep.subr.bf16.mxu1 %v5663_v19  ;;  %v719_v19 = vld [vmem:[#allocation5 + $0x1138] sm:$0xff]  ;;  %v5685_v22 = vpack.c.bf16 %v702_v16, %v686_v14  ;;  %v846_v12 = vld [vmem:[#allocation5 + $0x1530] sm:$0xff]  ;;  %v5703_v13 = vpack.c.bf16 %v863_v6, %v847_v5  ;;  %v893_v16 = vld [vmem:[#allocation5 + $0x16a8] sm:$0xff] }
 0x1a5   :  { %v862_v14 = vld [vmem:[#allocation5 + $0x15b0] sm:$0xff]  ;;  %v1004_v6 = vld [vmem:[#allocation5 + $0x1a20] sm:$0xff] }
 0x1a6   :  { %5474 = vmatpush1.bf16.msra.mxu0 %v5473_v25  ;;  %v732_v25 = vld [vmem:[#allocation5 + $0x11a0] sm:$0xff] }
 0x1a7   :  { %5666 = vmatpush1.bf16.msra.mxu1 %v5665_v26  ;;  %5476 = vmatprep.subr.bf16.mxu0 %v5475_v27  ;;  %v718_v26 = vld [vmem:[#allocation5 + $0x1130] sm:$0xff]  ;;  %v5687_v27 = vpack.c.bf16 %v735_v20, %v719_v19  ;;  %v5497_v34 = vpack.c.bf16 %v732_v25, %v716_v24  ;;  %v5705_v20 = vpack.c.bf16 %v862_v14, %v846_v12  ;;  %v1053_v12 = vld [vmem:[#allocation5 + $0x1ba8] sm:$0xff]  ;;  %v1055_v14 = vld [vmem:[#allocation5 + $0x1bb8] sm:$0xff] }
 0x1a8   :  { %5668 = vmatprep.subr.bf16.mxu1 %v5667_v31  ;;  %v7118_v31 = vld [vmem:[#allocation2] sm:$0xff]  ;;  %v5689_v35 = vpack.c.bf16 %v734_v28, %v718_v26  ;;  %v5707_v25 = vpack.c.bf16 %v895_v18, %v879_v17  ;;  %v925_v28 = vld [vmem:[#allocation5 + $0x17a8] sm:$0xff]  ;;  %v1036_v18 = vld [vmem:[#allocation5 + $0x1b20] sm:$0xff] }
 0x1a9   :  { %v878_v24 = vld [vmem:[#allocation5 + $0x1630] sm:$0xff] }
 0x1aa   :  { %5478 = vmatpush1.bf16.msra.mxu0 %v5477_v37  ;;  %v748_v37 = vld [vmem:[#allocation5 + $0x1220] sm:$0xff]  ;;  %v894_v26 = vld [vmem:[#allocation5 + $0x16b0] sm:$0xff] }
 0x1ab   :  { %5670 = vmatpush1.bf16.msra.mxu1 %v5669_v38  ;;  %5480 = vmatprep.subr.bf16.mxu0 %v5479_v39  ;;  %v764_v38 = vld [vmem:[#allocation5 + $0x12a0] sm:$0xff]  ;;  %v750_v39 = vld [vmem:[#allocation5 + $0x1230] sm:$0xff]  ;;  %v5709_v32 = vpack.c.bf16 %v894_v26, %v878_v24  ;;  %v1085_v24 = vld [vmem:[#allocation5 + $0x1ca8] sm:$0xff] }
 0x1ac   :  { %5672 = vmatprep.subr.bf16.mxu1 %v5671_v43  ;;  %v797_v43 = vld [vmem:[#allocation5 + $0x13a8] sm:$0xff]  ;;  %v5501_v47 = vpack.c.bf16 %v764_v38, %v748_v37  ;;  %v5693_v48 = vpack.c.bf16 %v766_v41, %v750_v39  ;;  %v5711_v37 = vpack.c.bf16 %v927_v30, %v911_v29  ;;  %v926_v38 = vld [vmem:[#allocation5 + $0x17b0] sm:$0xff]  ;;  %v943_v41 = vld [vmem:[#allocation5 + $0x1838] sm:$0xff] }
 0x1ad   :  { %v941_v39 = vld [vmem:[#allocation5 + $0x1828] sm:$0xff]  ;;  %v1087_v26 = vld [vmem:[#allocation5 + $0x1cb8] sm:$0xff]  ;;  %v1068_v30 = vld [vmem:[#allocation5 + $0x1c20] sm:$0xff] }
 0x1ae   :  { %5482 = vmatpush1.bf16.msra.mxu0 %v5481_v49  ;;  %v5503_v49 = vpack.c.bf16 %v797_v43, %v781_v42  ;;  %v959_v42 = vld [vmem:[#allocation5 + $0x18b8] sm:$0xff] }
 0x1af   :  { %5674 = vmatpush1.bf16.msra.mxu1 %v5673_v50  ;;  %5484 = vmatprep.subr.bf16.mxu0 %v5483_v51  ;;  %v780_v50 = vld [vmem:[#allocation5 + $0x1320] sm:$0xff] }
 0x1b0   :  { %5676 = vmatprep.subr.bf16.mxu1 %v5675_v55  ;;  %v796_v51 = vld [vmem:[#allocation5 + $0x13a0] sm:$0xff]  ;;  %v813_v55 = vld [vmem:[#allocation5 + $0x1428] sm:$0xff] }
 0x1b1   :  { %v5505_v59 = vpack.c.bf16 %v796_v51, %v780_v50  ;;  %v958_v50 = vld [vmem:[#allocation5 + $0x18b0] sm:$0xff]  ;;  %v973_v51 = vld [vmem:[#allocation5 + $0x1928] sm:$0xff] }
 0x1b2   :  { %5486 = vmatpush1.bf16.msra.mxu0 %v5485_v61  ;;  %v5507_v61 = vpack.c.bf16 %v829_v56, %v813_v55  ;;  %v5527_v57 = vpack.c.bf16 %v989_v52, %v973_v51 }
 0x1b3   :  { %5678 = vmatpush1.bf16.msra.mxu1 %v5677_v62  ;;  %5488 = vmatprep.subr.bf16.mxu0 %v5487_v63  ;;  %v812_v62 = vld [vmem:[#allocation5 + $0x1420] sm:$0xff] }
 0x1b4   :  { %5680 = vmatprep.subr.bf16.mxu1 %v5679_v3  ;;  %v828_v63 = vld [vmem:[#allocation5 + $0x14a0] sm:$0xff]  ;;  %v845_v3 = vld [vmem:[#allocation5 + $0x1528] sm:$0xff] }
 0x1b5   :  { %v5509_v7 = vpack.c.bf16 %v828_v63, %v812_v62  ;;  %v990_v62 = vld [vmem:[#allocation5 + $0x19b0] sm:$0xff]  ;;  %v1005_v63 = vld [vmem:[#allocation5 + $0x1a28] sm:$0xff] }
 0x1b6   :  { %5490 = vmatpush1.bf16.msra.mxu0 %v5489_v9  ;;  %v5511_v9 = vpack.c.bf16 %v861_v4, %v845_v3  ;;  %v5531_v5 = vpack.c.bf16 %v1021_v0, %v1005_v63 }
 0x1b7   :  { %5682 = vmatpush1.bf16.msra.mxu1 %v5681_v10  ;;  %5492 = vmatprep.subr.bf16.mxu0 %v5491_v11  ;;  %v844_v10 = vld [vmem:[#allocation5 + $0x1520] sm:$0xff] }
 0x1b8   :  { %5684 = vmatprep.subr.bf16.mxu1 %v5683_v15  ;;  %v860_v11 = vld [vmem:[#allocation5 + $0x15a0] sm:$0xff]  ;;  %v877_v15 = vld [vmem:[#allocation5 + $0x1628] sm:$0xff] }
 0x1b9   :  { %2279 = vmatmul.mubr.f32.vlgmr.msra.gmra.mrb[2].mxu0 %v7118_v31  ;;  %v5513_v19 = vpack.c.bf16 %v860_v11, %v844_v10  ;;  %v1022_v10 = vld [vmem:[#allocation5 + $0x1ab0] sm:$0xff]  ;;  %v1037_v11 = vld [vmem:[#allocation5 + $0x1b28] sm:$0xff] }
 0x1ba   :  { %5494 = vmatpush1.bf16.msra.mxu0 %v5493_v21  ;;  %2492 = vmatmul.mubr.f32.vlgmr.msra.gmra.mrb[2].mxu1 %v7118_v31  ;;  %v5515_v21 = vpack.c.bf16 %v893_v16, %v877_v15  ;;  %v5535_v17 = vpack.c.bf16 %v1053_v12, %v1037_v11 }
 0x1bb   :  { %5686 = vmatpush1.bf16.msra.mxu1 %v5685_v22  ;;  %5496 = vmatprep.subr.bf16.mxu0 %v5495_v23  ;;  %v876_v22 = vld [vmem:[#allocation5 + $0x1620] sm:$0xff] }
 0x1bc   :  { %5688 = vmatprep.subr.bf16.mxu1 %v5687_v27  ;;  %2349 = vmatprep.mubr.f32.mxu0 %v7119_v44  ;;  %v892_v23 = vld [vmem:[#allocation5 + $0x16a0] sm:$0xff]  ;;  %v909_v27 = vld [vmem:[#allocation5 + $0x1728] sm:$0xff] }
 0x1bd   :  { %2562 = vmatprep.mubr.f32.mxu1 %v7119_v44  ;;  %v5517_v31 = vpack.c.bf16 %v892_v23, %v876_v22  ;;  %v5519_v33 = vpack.c.bf16 %v925_v28, %v909_v27  ;;  %v1054_v22 = vld [vmem:[#allocation5 + $0x1bb0] sm:$0xff]  ;;  %v1069_v23 = vld [vmem:[#allocation5 + $0x1c28] sm:$0xff] }
 0x1be   :  { %5498 = vmatpush1.bf16.msra.mxu0 %v5497_v34  ;;  %v908_v34 = vld [vmem:[#allocation5 + $0x1720] sm:$0xff]  ;;  %v5539_v29 = vpack.c.bf16 %v1085_v24, %v1069_v23 }
 0x1bf   :  { %5690 = vmatpush1.bf16.msra.mxu1 %v5689_v35  ;;  %5500 = vmatprep.subr.bf16.mxu0 %v5499_v36  ;;  %v924_v35 = vld [vmem:[#allocation5 + $0x17a0] sm:$0xff]  ;;  %v910_v36 = vld [vmem:[#allocation5 + $0x1730] sm:$0xff] }
 0x1c0   :  { %5692 = vmatprep.subr.bf16.mxu1 %v5691_v40  ;;  %v957_v40 = vld [vmem:[#allocation5 + $0x18a8] sm:$0xff]  ;;  %v5521_v43 = vpack.c.bf16 %v924_v35, %v908_v34  ;;  %v5713_v44 = vpack.c.bf16 %v926_v38, %v910_v36  ;;  %v1086_v34 = vld [vmem:[#allocation5 + $0x1cb0] sm:$0xff]  ;;  %v1119_v38 = vld [vmem:[#allocation5 + $0x1db8] sm:$0xff] }
 0x1c1   :  { %v5523_v45 = vpack.c.bf16 %v957_v40, %v941_v39  ;;  %v1101_v35 = vld [vmem:[#allocation5 + $0x1d28] sm:$0xff] }
 0x1c2   :  { %5502 = vmatpush1.bf16.msra.mxu0 %v5501_v47  ;;  %v956_v47 = vld [vmem:[#allocation5 + $0x18a0] sm:$0xff]  ;;  %v1117_v36 = vld [vmem:[#allocation5 + $0x1da8] sm:$0xff] }
 0x1c3   :  { %5694 = vmatpush1.bf16.msra.mxu1 %v5693_v48  ;;  %5504 = vmatprep.subr.bf16.mxu0 %v5503_v49  ;;  %v942_v48 = vld [vmem:[#allocation5 + $0x1830] sm:$0xff]  ;;  %v5715_v49 = vpack.c.bf16 %v959_v42, %v943_v41  ;;  %v5525_v55 = vpack.c.bf16 %v956_v47, %v940_v46  ;;  %v5543_v41 = vpack.c.bf16 %v1117_v36, %v1101_v35  ;;  %v1100_v42 = vld [vmem:[#allocation5 + $0x1d20] sm:$0xff]  ;;  %v1133_v47 = vld [vmem:[#allocation5 + $0x1e28] sm:$0xff] }
 0x1c4   :  { %5696 = vmatprep.subr.bf16.mxu1 %v5695_v53  ;;  %v975_v53 = vld [vmem:[#allocation5 + $0x1938] sm:$0xff]  ;;  %v5717_v56 = vpack.c.bf16 %v958_v50, %v942_v48  ;;  %v1118_v46 = vld [vmem:[#allocation5 + $0x1db0] sm:$0xff]  ;;  %v1149_v48 = vld [vmem:[#allocation5 + $0x1ea8] sm:$0xff] }
 0x1c5   :  { %v1151_v50 = vld [vmem:[#allocation5 + $0x1eb8] sm:$0xff] }
 0x1c6   :  { %5506 = vmatpush1.bf16.msra.mxu0 %v5505_v59  ;;  %v988_v59 = vld [vmem:[#allocation5 + $0x19a0] sm:$0xff]  ;;  %v1279_v35 = vld [vmem:[#allocation5 + $0x22b8] sm:$0xff] }
 0x1c7   :  { %5698 = vmatpush1.bf16.msra.mxu1 %v5697_v60  ;;  %5508 = vmatprep.subr.bf16.mxu0 %v5507_v61  ;;  %v974_v60 = vld [vmem:[#allocation5 + $0x1930] sm:$0xff]  ;;  %v5719_v61 = vpack.c.bf16 %v991_v54, %v975_v53  ;;  %v5529_v3 = vpack.c.bf16 %v988_v59, %v972_v58  ;;  %v5547_v53 = vpack.c.bf16 %v1149_v48, %v1133_v47  ;;  %v1132_v54 = vld [vmem:[#allocation5 + $0x1e20] sm:$0xff]  ;;  %v1165_v59 = vld [vmem:[#allocation5 + $0x1f28] sm:$0xff] }
 0x1c8   :  { %5700 = vmatprep.subr.bf16.mxu1 %v5699_v1  ;;  %v1007_v1 = vld [vmem:[#allocation5 + $0x1a38] sm:$0xff]  ;;  %v5721_v4 = vpack.c.bf16 %v990_v62, %v974_v60  ;;  %v1150_v58 = vld [vmem:[#allocation5 + $0x1eb0] sm:$0xff]  ;;  %v1181_v60 = vld [vmem:[#allocation5 + $0x1fa8] sm:$0xff] }
 0x1c9   :  { %v1183_v62 = vld [vmem:[#allocation5 + $0x1fb8] sm:$0xff] }
 0x1ca   :  { %5510 = vmatpush1.bf16.msra.mxu0 %v5509_v7  ;;  %v1020_v7 = vld [vmem:[#allocation5 + $0x1aa0] sm:$0xff]  ;;  %v1295_v47 = vld [vmem:[#allocation5 + $0x2338] sm:$0xff] }
 0x1cb   :  { %5702 = vmatpush1.bf16.msra.mxu1 %v5701_v8  ;;  %5512 = vmatprep.subr.bf16.mxu0 %v5511_v9  ;;  %v1006_v8 = vld [vmem:[#allocation5 + $0x1a30] sm:$0xff]  ;;  %v5723_v9 = vpack.c.bf16 %v1023_v2, %v1007_v1  ;;  %v5533_v15 = vpack.c.bf16 %v1020_v7, %v1004_v6  ;;  %v5551_v1 = vpack.c.bf16 %v1181_v60, %v1165_v59  ;;  %v1164_v2 = vld [vmem:[#allocation5 + $0x1f20] sm:$0xff]  ;;  %v1197_v7 = vld [vmem:[#allocation5 + $0x2028] sm:$0xff] }
 0x1cc   :  { %5704 = vmatprep.subr.bf16.mxu1 %v5703_v13  ;;  %v1039_v13 = vld [vmem:[#allocation5 + $0x1b38] sm:$0xff]  ;;  %v5725_v16 = vpack.c.bf16 %v1022_v10, %v1006_v8  ;;  %v1182_v6 = vld [vmem:[#allocation5 + $0x1fb0] sm:$0xff]  ;;  %v1213_v8 = vld [vmem:[#allocation5 + $0x20a8] sm:$0xff] }
 0x1cd   :  { %v1215_v10 = vld [vmem:[#allocation5 + $0x20b8] sm:$0xff] }
 0x1ce   :  { %5514 = vmatpush1.bf16.msra.mxu0 %v5513_v19  ;;  %v1052_v19 = vld [vmem:[#allocation5 + $0x1ba0] sm:$0xff]  ;;  %v1311_v48 = vld [vmem:[#allocation5 + $0x23b8] sm:$0xff] }
 0x1cf   :  { %5706 = vmatpush1.bf16.msra.mxu1 %v5705_v20  ;;  %5516 = vmatprep.subr.bf16.mxu0 %v5515_v21  ;;  %v1038_v20 = vld [vmem:[#allocation5 + $0x1b30] sm:$0xff]  ;;  %v5727_v21 = vpack.c.bf16 %v1055_v14, %v1039_v13  ;;  %v5537_v27 = vpack.c.bf16 %v1052_v19, %v1036_v18  ;;  %v5555_v13 = vpack.c.bf16 %v1213_v8, %v1197_v7  ;;  %v1196_v14 = vld [vmem:[#allocation5 + $0x2020] sm:$0xff]  ;;  %v1229_v19 = vld [vmem:[#allocation5 + $0x2128] sm:$0xff] }
 0x1d0   :  { %5708 = vmatprep.subr.bf16.mxu1 %v5707_v25  ;;  %v1071_v25 = vld [vmem:[#allocation5 + $0x1c38] sm:$0xff]  ;;  %v5729_v28 = vpack.c.bf16 %v1054_v22, %v1038_v20  ;;  %v1214_v18 = vld [vmem:[#allocation5 + $0x20b0] sm:$0xff]  ;;  %v1245_v20 = vld [vmem:[#allocation5 + $0x21a8] sm:$0xff] }
 0x1d1   :  { %v1247_v22 = vld [vmem:[#allocation5 + $0x21b8] sm:$0xff] }
 0x1d2   :  { %5518 = vmatpush1.bf16.msra.mxu0 %v5517_v31  ;;  %v1084_v31 = vld [vmem:[#allocation5 + $0x1ca0] sm:$0xff]  ;;  %v1327_v59 = vld [vmem:[#allocation5 + $0x2438] sm:$0xff] }
 0x1d3   :  { %5710 = vmatpush1.bf16.msra.mxu1 %v5709_v32  ;;  %5520 = vmatprep.subr.bf16.mxu0 %v5519_v33  ;;  %v1070_v32 = vld [vmem:[#allocation5 + $0x1c30] sm:$0xff]  ;;  %v5731_v33 = vpack.c.bf16 %v1087_v26, %v1071_v25  ;;  %v5541_v39 = vpack.c.bf16 %v1084_v31, %v1068_v30  ;;  %v5559_v25 = vpack.c.bf16 %v1245_v20, %v1229_v19  ;;  %v1228_v26 = vld [vmem:[#allocation5 + $0x2120] sm:$0xff]  ;;  %v1261_v31 = vld [vmem:[#allocation5 + $0x2228] sm:$0xff] }
 0x1d4   :  { %5712 = vmatprep.subr.bf16.mxu1 %v5711_v37  ;;  %v1103_v37 = vld [vmem:[#allocation5 + $0x1d38] sm:$0xff]  ;;  %v5733_v40 = vpack.c.bf16 %v1086_v34, %v1070_v32  ;;  %v1246_v30 = vld [vmem:[#allocation5 + $0x21b0] sm:$0xff]  ;;  %v1277_v32 = vld [vmem:[#allocation5 + $0x22a8] sm:$0xff] }
 0x1d5   :  { %v1263_v34 = vld [vmem:[#allocation5 + $0x2238] sm:$0xff] }
 0x1d6   :  { %5522 = vmatpush1.bf16.msra.mxu0 %v5521_v43  ;;  %v1116_v43 = vld [vmem:[#allocation5 + $0x1da0] sm:$0xff]  ;;  %v1343_v60 = vld [vmem:[#allocation5 + $0x24b8] sm:$0xff] }
 0x1d7   :  { %5714 = vmatpush1.bf16.msra.mxu1 %v5713_v44  ;;  %5524 = vmatprep.subr.bf16.mxu0 %v5523_v45  ;;  %v1102_v44 = vld [vmem:[#allocation5 + $0x1d30] sm:$0xff]  ;;  %v5735_v45 = vpack.c.bf16 %v1119_v38, %v1103_v37  ;;  %v5545_v51 = vpack.c.bf16 %v1116_v43, %v1100_v42  ;;  %v5563_v38 = vpack.c.bf16 %v1277_v32, %v1261_v31  ;;  %v1359_v7 = vld [vmem:[#allocation5 + $0x2538] sm:$0xff] }
 0x1d8   :  { %5716 = vmatprep.subr.bf16.mxu1 %v5715_v49  ;;  %v1135_v49 = vld [vmem:[#allocation5 + $0x1e38] sm:$0xff]  ;;  %v5737_v52 = vpack.c.bf16 %v1118_v46, %v1102_v44  ;;  %v5755_v42 = vpack.c.bf16 %v1279_v35, %v1263_v34  ;;  %v1278_v43 = vld [vmem:[#allocation5 + $0x22b0] sm:$0xff]  ;;  %v1293_v44 = vld [vmem:[#allocation5 + $0x2328] sm:$0xff] }
 0x1d9   :  { %v7121_v46 = vld [vmem:[#allocation2 + $0x28] sm:$0xff] }
 0x1da   :  { %5526 = vmatpush1.bf16.msra.mxu0 %v5525_v55  ;;  %v1148_v55 = vld [vmem:[#allocation5 + $0x1ea0] sm:$0xff]  ;;  %v1375_v8 = vld [vmem:[#allocation5 + $0x25b8] sm:$0xff] }
 0x1db   :  { %5718 = vmatpush1.bf16.msra.mxu1 %v5717_v56  ;;  %5528 = vmatprep.subr.bf16.mxu0 %v5527_v57  ;;  %v1134_v56 = vld [vmem:[#allocation5 + $0x1e30] sm:$0xff]  ;;  %v5739_v57 = vpack.c.bf16 %v1151_v50, %v1135_v49  ;;  %v5549_v63 = vpack.c.bf16 %v1148_v55, %v1132_v54  ;;  %v5759_v55 = vpack.c.bf16 %v1311_v48, %v1295_v47  ;;  %v1391_v19 = vld [vmem:[#allocation5 + $0x2638] sm:$0xff]  ;;  %v1452_v48 = vld [vmem:[#allocation5 + $0x2820] sm:$0xff] }
 0x1dc   :  { %5720 = vmatprep.subr.bf16.mxu1 %v5719_v61  ;;  %v1167_v61 = vld [vmem:[#allocation5 + $0x1f38] sm:$0xff]  ;;  %v5741_v0 = vpack.c.bf16 %v1150_v58, %v1134_v56  ;;  %v1294_v54 = vld [vmem:[#allocation5 + $0x2330] sm:$0xff]  ;;  %v1341_v58 = vld [vmem:[#allocation5 + $0x24a8] sm:$0xff] }
 0x1dd   :  { %v1310_v56 = vld [vmem:[#allocation5 + $0x23b0] sm:$0xff]  ;;  %v1407_v20 = vld [vmem:[#allocation5 + $0x26b8] sm:$0xff] }
 0x1de   :  { %5530 = vmatpush1.bf16.msra.mxu0 %v5529_v3  ;;  %v1180_v3 = vld [vmem:[#allocation5 + $0x1fa0] sm:$0xff]  ;;  %v1423_v31 = vld [vmem:[#allocation5 + $0x2738] sm:$0xff] }
 0x1df   :  { %5722 = vmatpush1.bf16.msra.mxu1 %v5721_v4  ;;  %5532 = vmatprep.subr.bf16.mxu0 %v5531_v5  ;;  %v1166_v4 = vld [vmem:[#allocation5 + $0x1f30] sm:$0xff]  ;;  %v5743_v5 = vpack.c.bf16 %v1183_v62, %v1167_v61  ;;  %v5553_v11 = vpack.c.bf16 %v1180_v3, %v1164_v2  ;;  %v5761_v62 = vpack.c.bf16 %v1310_v56, %v1294_v54  ;;  %v1439_v32 = vld [vmem:[#allocation5 + $0x27b8] sm:$0xff]  ;;  %v1501_v54 = vld [vmem:[#allocation5 + $0x29a8] sm:$0xff] }
 0x1e0   :  { %5724 = vmatprep.subr.bf16.mxu1 %v5723_v9  ;;  %v1199_v9 = vld [vmem:[#allocation5 + $0x2038] sm:$0xff]  ;;  %v5745_v12 = vpack.c.bf16 %v1182_v6, %v1166_v4  ;;  %v1326_v2 = vld [vmem:[#allocation5 + $0x2430] sm:$0xff]  ;;  %v5763_v3 = vpack.c.bf16 %v1343_v60, %v1327_v59  ;;  %v1373_v6 = vld [vmem:[#allocation5 + $0x25a8] sm:$0xff] }
 0x1e1   :  { %v1342_v4 = vld [vmem:[#allocation5 + $0x24b0] sm:$0xff]  ;;  %v1503_v56 = vld [vmem:[#allocation5 + $0x29b8] sm:$0xff]  ;;  %v1484_v60 = vld [vmem:[#allocation5 + $0x2920] sm:$0xff] }
 0x1e2   :  { %5534 = vmatpush1.bf16.msra.mxu0 %v5533_v15  ;;  %v1212_v15 = vld [vmem:[#allocation5 + $0x20a0] sm:$0xff] }
 0x1e3   :  { %5726 = vmatpush1.bf16.msra.mxu1 %v5725_v16  ;;  %5536 = vmatprep.subr.bf16.mxu0 %v5535_v17  ;;  %v1198_v16 = vld [vmem:[#allocation5 + $0x2030] sm:$0xff]  ;;  %v5747_v17 = vpack.c.bf16 %v1215_v10, %v1199_v9  ;;  %v5557_v23 = vpack.c.bf16 %v1212_v15, %v1196_v14  ;;  %v5765_v10 = vpack.c.bf16 %v1342_v4, %v1326_v2  ;;  %v1533_v2 = vld [vmem:[#allocation5 + $0x2aa8] sm:$0xff]  ;;  %v1535_v4 = vld [vmem:[#allocation5 + $0x2ab8] sm:$0xff] }
 0x1e4   :  { %5728 = vmatprep.subr.bf16.mxu1 %v5727_v21  ;;  %v1231_v21 = vld [vmem:[#allocation5 + $0x2138] sm:$0xff]  ;;  %v5749_v24 = vpack.c.bf16 %v1214_v18, %v1198_v16  ;;  %v1358_v14 = vld [vmem:[#allocation5 + $0x2530] sm:$0xff]  ;;  %v5767_v15 = vpack.c.bf16 %v1375_v8, %v1359_v7  ;;  %v1405_v18 = vld [vmem:[#allocation5 + $0x26a8] sm:$0xff] }
 0x1e5   :  { %v1374_v16 = vld [vmem:[#allocation5 + $0x25b0] sm:$0xff]  ;;  %v1516_v8 = vld [vmem:[#allocation5 + $0x2a20] sm:$0xff] }
 0x1e6   :  { %5538 = vmatpush1.bf16.msra.mxu0 %v5537_v27  ;;  %v1244_v27 = vld [vmem:[#allocation5 + $0x21a0] sm:$0xff] }
 0x1e7   :  { %5730 = vmatpush1.bf16.msra.mxu1 %v5729_v28  ;;  %5540 = vmatprep.subr.bf16.mxu0 %v5539_v29  ;;  %v1230_v28 = vld [vmem:[#allocation5 + $0x2130] sm:$0xff]  ;;  %v5751_v29 = vpack.c.bf16 %v1247_v22, %v1231_v21  ;;  %v5561_v36 = vpack.c.bf16 %v1244_v27, %v1228_v26  ;;  %v5769_v22 = vpack.c.bf16 %v1374_v16, %v1358_v14  ;;  %v1565_v14 = vld [vmem:[#allocation5 + $0x2ba8] sm:$0xff]  ;;  %v1567_v16 = vld [vmem:[#allocation5 + $0x2bb8] sm:$0xff] }
 0x1e8   :  { %5732 = vmatprep.subr.bf16.mxu1 %v5731_v33  ;;  %v7120_v33 = vld [vmem:[#allocation2 + $0x10] sm:$0xff]  ;;  %v5753_v37 = vpack.c.bf16 %v1246_v30, %v1230_v28  ;;  %v1390_v26 = vld [vmem:[#allocation5 + $0x2630] sm:$0xff]  ;;  %v5771_v27 = vpack.c.bf16 %v1407_v20, %v1391_v19  ;;  %v1437_v30 = vld [vmem:[#allocation5 + $0x27a8] sm:$0xff] }
 0x1e9   :  { %v1406_v28 = vld [vmem:[#allocation5 + $0x26b0] sm:$0xff]  ;;  %v1548_v20 = vld [vmem:[#allocation5 + $0x2b20] sm:$0xff] }
 0x1ea   :  { %5542 = vmatpush1.bf16.msra.mxu0 %v5541_v39  ;;  %v1260_v39 = vld [vmem:[#allocation5 + $0x2220] sm:$0xff]  ;;  %v5773_v34 = vpack.c.bf16 %v1406_v28, %v1390_v26  ;;  %v1597_v26 = vld [vmem:[#allocation5 + $0x2ca8] sm:$0xff]  ;;  %v1599_v28 = vld [vmem:[#allocation5 + $0x2cb8] sm:$0xff] }
 0x1eb   :  { %5734 = vmatpush1.bf16.msra.mxu1 %v5733_v40  ;;  %5544 = vmatprep.subr.bf16.mxu0 %v5543_v41  ;;  %v1276_v40 = vld [vmem:[#allocation5 + $0x22a0] sm:$0xff]  ;;  %v1262_v41 = vld [vmem:[#allocation5 + $0x2230] sm:$0xff] }
 0x1ec   :  { %5736 = vmatprep.subr.bf16.mxu1 %v5735_v45  ;;  %v1309_v45 = vld [vmem:[#allocation5 + $0x23a8] sm:$0xff]  ;;  %v5565_v49 = vpack.c.bf16 %v1276_v40, %v1260_v39  ;;  %v5757_v50 = vpack.c.bf16 %v1278_v43, %v1262_v41  ;;  %v5775_v39 = vpack.c.bf16 %v1439_v32, %v1423_v31  ;;  %v1438_v40 = vld [vmem:[#allocation5 + $0x27b0] sm:$0xff]  ;;  %v1455_v43 = vld [vmem:[#allocation5 + $0x2838] sm:$0xff] }
 0x1ed   :  { %v1453_v41 = vld [vmem:[#allocation5 + $0x2828] sm:$0xff]  ;;  %v1580_v32 = vld [vmem:[#allocation5 + $0x2c20] sm:$0xff] }
 0x1ee   :  { %5546 = vmatpush1.bf16.msra.mxu0 %v5545_v51  ;;  %v5567_v51 = vpack.c.bf16 %v1309_v45, %v1293_v44  ;;  %v1471_v44 = vld [vmem:[#allocation5 + $0x28b8] sm:$0xff] }
 0x1ef   :  { %5738 = vmatpush1.bf16.msra.mxu1 %v5737_v52  ;;  %5548 = vmatprep.subr.bf16.mxu0 %v5547_v53  ;;  %v1292_v52 = vld [vmem:[#allocation5 + $0x2320] sm:$0xff] }
 0x1f0   :  { %5740 = vmatprep.subr.bf16.mxu1 %v5739_v57  ;;  %v1308_v53 = vld [vmem:[#allocation5 + $0x23a0] sm:$0xff]  ;;  %v1325_v57 = vld [vmem:[#allocation5 + $0x2428] sm:$0xff] }
 0x1f1   :  { %v5569_v61 = vpack.c.bf16 %v1308_v53, %v1292_v52  ;;  %v1470_v52 = vld [vmem:[#allocation5 + $0x28b0] sm:$0xff]  ;;  %v1485_v53 = vld [vmem:[#allocation5 + $0x2928] sm:$0xff] }
 0x1f2   :  { %5550 = vmatpush1.bf16.msra.mxu0 %v5549_v63  ;;  %v5571_v63 = vpack.c.bf16 %v1341_v58, %v1325_v57  ;;  %v5591_v59 = vpack.c.bf16 %v1501_v54, %v1485_v53 }
 0x1f3   :  { %5742 = vmatpush1.bf16.msra.mxu1 %v5741_v0  ;;  %5552 = vmatprep.subr.bf16.mxu0 %v5551_v1  ;;  %v1324_v0 = vld [vmem:[#allocation5 + $0x2420] sm:$0xff] }
 0x1f4   :  { %5744 = vmatprep.subr.bf16.mxu1 %v5743_v5  ;;  %v1340_v1 = vld [vmem:[#allocation5 + $0x24a0] sm:$0xff]  ;;  %v1357_v5 = vld [vmem:[#allocation5 + $0x2528] sm:$0xff] }
 0x1f5   :  { %v5573_v9 = vpack.c.bf16 %v1340_v1, %v1324_v0  ;;  %v1502_v0 = vld [vmem:[#allocation5 + $0x29b0] sm:$0xff]  ;;  %v1517_v1 = vld [vmem:[#allocation5 + $0x2a28] sm:$0xff] }
 0x1f6   :  { %5554 = vmatpush1.bf16.msra.mxu0 %v5553_v11  ;;  %v5575_v11 = vpack.c.bf16 %v1373_v6, %v1357_v5  ;;  %v5595_v7 = vpack.c.bf16 %v1533_v2, %v1517_v1 }
 0x1f7   :  { %5746 = vmatpush1.bf16.msra.mxu1 %v5745_v12  ;;  %5556 = vmatprep.subr.bf16.mxu0 %v5555_v13  ;;  %v1356_v12 = vld [vmem:[#allocation5 + $0x2520] sm:$0xff] }
 0x1f8   :  { %5748 = vmatprep.subr.bf16.mxu1 %v5747_v17  ;;  %v1372_v13 = vld [vmem:[#allocation5 + $0x25a0] sm:$0xff]  ;;  %v1389_v17 = vld [vmem:[#allocation5 + $0x2628] sm:$0xff] }
 0x1f9   :  { %2350 = vmatmul.mubr.f32.vlgmr.msra.gmra.mrb[2].mxu0 %v7120_v33  ;;  %v5577_v21 = vpack.c.bf16 %v1372_v13, %v1356_v12  ;;  %v1534_v12 = vld [vmem:[#allocation5 + $0x2ab0] sm:$0xff]  ;;  %v1549_v13 = vld [vmem:[#allocation5 + $0x2b28] sm:$0xff] }
 0x1fa   :  { %5558 = vmatpush1.bf16.msra.mxu0 %v5557_v23  ;;  %2563 = vmatmul.mubr.f32.vlgmr.msra.gmra.mrb[2].mxu1 %v7120_v33  ;;  %v5579_v23 = vpack.c.bf16 %v1405_v18, %v1389_v17  ;;  %v5599_v19 = vpack.c.bf16 %v1565_v14, %v1549_v13 }
 0x1fb   :  { %5750 = vmatpush1.bf16.msra.mxu1 %v5749_v24  ;;  %5560 = vmatprep.subr.bf16.mxu0 %v5559_v25  ;;  %v1388_v24 = vld [vmem:[#allocation5 + $0x2620] sm:$0xff] }
 0x1fc   :  { %5752 = vmatprep.subr.bf16.mxu1 %v5751_v29  ;;  %2420 = vmatprep.mubr.f32.mxu0 %v7121_v46  ;;  %v1404_v25 = vld [vmem:[#allocation5 + $0x26a0] sm:$0xff]  ;;  %v1421_v29 = vld [vmem:[#allocation5 + $0x2728] sm:$0xff] }
 0x1fd   :  { %2633 = vmatprep.mubr.f32.mxu1 %v7121_v46  ;;  %v5581_v33 = vpack.c.bf16 %v1404_v25, %v1388_v24  ;;  %v5583_v35 = vpack.c.bf16 %v1437_v30, %v1421_v29  ;;  %v1566_v24 = vld [vmem:[#allocation5 + $0x2bb0] sm:$0xff]  ;;  %v1581_v25 = vld [vmem:[#allocation5 + $0x2c28] sm:$0xff] }
 0x1fe   :  { %5562 = vmatpush1.bf16.msra.mxu0 %v5561_v36  ;;  %v1420_v36 = vld [vmem:[#allocation5 + $0x2720] sm:$0xff]  ;;  %v5603_v31 = vpack.c.bf16 %v1597_v26, %v1581_v25 }
 0x1ff   :  { %5754 = vmatpush1.bf16.msra.mxu1 %v5753_v37  ;;  %5564 = vmatprep.subr.bf16.mxu0 %v5563_v38  ;;  %v1436_v37 = vld [vmem:[#allocation5 + $0x27a0] sm:$0xff]  ;;  %v1422_v38 = vld [vmem:[#allocation5 + $0x2730] sm:$0xff] }
 0x200   :  { %5756 = vmatprep.subr.bf16.mxu1 %v5755_v42  ;;  %v1469_v42 = vld [vmem:[#allocation5 + $0x28a8] sm:$0xff]  ;;  %v5585_v45 = vpack.c.bf16 %v1436_v37, %v1420_v36  ;;  %v5777_v46 = vpack.c.bf16 %v1438_v40, %v1422_v38  ;;  %v1598_v36 = vld [vmem:[#allocation5 + $0x2cb0] sm:$0xff]  ;;  %v1631_v40 = vld [vmem:[#allocation5 + $0x2db8] sm:$0xff] }
 0x201   :  { %v5587_v47 = vpack.c.bf16 %v1469_v42, %v1453_v41  ;;  %v1613_v37 = vld [vmem:[#allocation5 + $0x2d28] sm:$0xff] }
 0x202   :  { %5566 = vmatpush1.bf16.msra.mxu0 %v5565_v49  ;;  %v1468_v49 = vld [vmem:[#allocation5 + $0x28a0] sm:$0xff]  ;;  %v1629_v38 = vld [vmem:[#allocation5 + $0x2da8] sm:$0xff] }
 0x203   :  { %5758 = vmatpush1.bf16.msra.mxu1 %v5757_v50  ;;  %5568 = vmatprep.subr.bf16.mxu0 %v5567_v51  ;;  %v1454_v50 = vld [vmem:[#allocation5 + $0x2830] sm:$0xff]  ;;  %v5779_v51 = vpack.c.bf16 %v1471_v44, %v1455_v43  ;;  %v5589_v57 = vpack.c.bf16 %v1468_v49, %v1452_v48  ;;  %v5607_v43 = vpack.c.bf16 %v1629_v38, %v1613_v37  ;;  %v1612_v44 = vld [vmem:[#allocation5 + $0x2d20] sm:$0xff]  ;;  %v1645_v49 = vld [vmem:[#allocation5 + $0x2e28] sm:$0xff] }
 0x204   :  { %5760 = vmatprep.subr.bf16.mxu1 %v5759_v55  ;;  %v1487_v55 = vld [vmem:[#allocation5 + $0x2938] sm:$0xff]  ;;  %v5781_v58 = vpack.c.bf16 %v1470_v52, %v1454_v50  ;;  %v1630_v48 = vld [vmem:[#allocation5 + $0x2db0] sm:$0xff]  ;;  %v1661_v50 = vld [vmem:[#allocation5 + $0x2ea8] sm:$0xff] }
 0x205   :  { %v1663_v52 = vld [vmem:[#allocation5 + $0x2eb8] sm:$0xff] }
 0x206   :  { %5570 = vmatpush1.bf16.msra.mxu0 %v5569_v61  ;;  %v1500_v61 = vld [vmem:[#allocation5 + $0x29a0] sm:$0xff]  ;;  %v259_v37 = vld [vmem:[#allocation5 + $0x2d8] sm:$0xff] }
 0x207   :  { %5762 = vmatpush1.bf16.msra.mxu1 %v5761_v62  ;;  %5572 = vmatprep.subr.bf16.mxu0 %v5571_v63  ;;  %v1486_v62 = vld [vmem:[#allocation5 + $0x2930] sm:$0xff]  ;;  %v5783_v63 = vpack.c.bf16 %v1503_v56, %v1487_v55  ;;  %v5593_v5 = vpack.c.bf16 %v1500_v61, %v1484_v60  ;;  %v5611_v55 = vpack.c.bf16 %v1661_v50, %v1645_v49  ;;  %v1644_v56 = vld [vmem:[#allocation5 + $0x2e20] sm:$0xff]  ;;  %v1677_v61 = vld [vmem:[#allocation5 + $0x2f28] sm:$0xff] }
 0x208   :  { %5764 = vmatprep.subr.bf16.mxu1 %v5763_v3  ;;  %v1519_v3 = vld [vmem:[#allocation5 + $0x2a38] sm:$0xff]  ;;  %v5785_v6 = vpack.c.bf16 %v1502_v0, %v1486_v62  ;;  %v1662_v60 = vld [vmem:[#allocation5 + $0x2eb0] sm:$0xff]  ;;  %v1693_v62 = vld [vmem:[#allocation5 + $0x2fa8] sm:$0xff] }
 0x209   :  { %v1695_v0 = vld [vmem:[#allocation5 + $0x2fb8] sm:$0xff] }
 0x20a   :  { %5574 = vmatpush1.bf16.msra.mxu0 %v5573_v9  ;;  %v1532_v9 = vld [vmem:[#allocation5 + $0x2aa0] sm:$0xff]  ;;  %v275_v49 = vld [vmem:[#allocation5 + $0x358] sm:$0xff] }
 0x20b   :  { %5766 = vmatpush1.bf16.msra.mxu1 %v5765_v10  ;;  %5576 = vmatprep.subr.bf16.mxu0 %v5575_v11  ;;  %v1518_v10 = vld [vmem:[#allocation5 + $0x2a30] sm:$0xff]  ;;  %v5787_v11 = vpack.c.bf16 %v1535_v4, %v1519_v3  ;;  %v5597_v17 = vpack.c.bf16 %v1532_v9, %v1516_v8  ;;  %v5615_v3 = vpack.c.bf16 %v1693_v62, %v1677_v61  ;;  %v1676_v4 = vld [vmem:[#allocation5 + $0x2f20] sm:$0xff]  ;;  %v177_v9 = vld [vmem:[#allocation5 + $0x48] sm:$0xff] }
 0x20c   :  { %5768 = vmatprep.subr.bf16.mxu1 %v5767_v15  ;;  %v1551_v15 = vld [vmem:[#allocation5 + $0x2b38] sm:$0xff]  ;;  %v5789_v18 = vpack.c.bf16 %v1534_v12, %v1518_v10  ;;  %v1694_v8 = vld [vmem:[#allocation5 + $0x2fb0] sm:$0xff]  ;;  %v193_v10 = vld [vmem:[#allocation5 + $0xc8] sm:$0xff] }
 0x20d   :  { %v195_v12 = vld [vmem:[#allocation5 + $0xd8] sm:$0xff] }
 0x20e   :  { %5578 = vmatpush1.bf16.msra.mxu0 %v5577_v21  ;;  %v1564_v21 = vld [vmem:[#allocation5 + $0x2ba0] sm:$0xff]  ;;  %v291_v50 = vld [vmem:[#allocation5 + $0x3d8] sm:$0xff] }
 0x20f   :  { %5770 = vmatpush1.bf16.msra.mxu1 %v5769_v22  ;;  %5580 = vmatprep.subr.bf16.mxu0 %v5579_v23  ;;  %v1550_v22 = vld [vmem:[#allocation5 + $0x2b30] sm:$0xff]  ;;  %v5791_v23 = vpack.c.bf16 %v1567_v16, %v1551_v15  ;;  %v5601_v29 = vpack.c.bf16 %v1564_v21, %v1548_v20  ;;  %v5811_v15 = vpack.c.bf16 %v193_v10, %v177_v9  ;;  %v176_v16 = vld [vmem:[#allocation5 + $0x40] sm:$0xff]  ;;  %v209_v21 = vld [vmem:[#allocation5 + $0x148] sm:$0xff] }
 0x210   :  { %5772 = vmatprep.subr.bf16.mxu1 %v5771_v27  ;;  %v1583_v27 = vld [vmem:[#allocation5 + $0x2c38] sm:$0xff]  ;;  %v5793_v30 = vpack.c.bf16 %v1566_v24, %v1550_v22  ;;  %v194_v20 = vld [vmem:[#allocation5 + $0xd0] sm:$0xff]  ;;  %v225_v22 = vld [vmem:[#allocation5 + $0x1c8] sm:$0xff] }
 0x211   :  { %v227_v24 = vld [vmem:[#allocation5 + $0x1d8] sm:$0xff] }
 0x212   :  { %5582 = vmatpush1.bf16.msra.mxu0 %v5581_v33  ;;  %v1596_v33 = vld [vmem:[#allocation5 + $0x2ca0] sm:$0xff]  ;;  %v307_v61 = vld [vmem:[#allocation5 + $0x458] sm:$0xff] }
 0x213   :  { %5774 = vmatpush1.bf16.msra.mxu1 %v5773_v34  ;;  %5584 = vmatprep.subr.bf16.mxu0 %v5583_v35  ;;  %v1582_v34 = vld [vmem:[#allocation5 + $0x2c30] sm:$0xff]  ;;  %v5795_v35 = vpack.c.bf16 %v1599_v28, %v1583_v27  ;;  %v5605_v41 = vpack.c.bf16 %v1596_v33, %v1580_v32  ;;  %v5815_v27 = vpack.c.bf16 %v225_v22, %v209_v21  ;;  %v208_v28 = vld [vmem:[#allocation5 + $0x140] sm:$0xff]  ;;  %v241_v33 = vld [vmem:[#allocation5 + $0x248] sm:$0xff] }
 0x214   :  { %5776 = vmatprep.subr.bf16.mxu1 %v5775_v39  ;;  %v1615_v39 = vld [vmem:[#allocation5 + $0x2d38] sm:$0xff]  ;;  %v5797_v42 = vpack.c.bf16 %v1598_v36, %v1582_v34  ;;  %v226_v32 = vld [vmem:[#allocation5 + $0x1d0] sm:$0xff]  ;;  %v257_v34 = vld [vmem:[#allocation5 + $0x2c8] sm:$0xff] }
 0x215   :  { %v243_v36 = vld [vmem:[#allocation5 + $0x258] sm:$0xff] }
 0x216   :  { %5586 = vmatpush1.bf16.msra.mxu0 %v5585_v45  ;;  %v1628_v45 = vld [vmem:[#allocation5 + $0x2da0] sm:$0xff]  ;;  %v323_v62 = vld [vmem:[#allocation5 + $0x4d8] sm:$0xff] }
 0x217   :  { %5778 = vmatpush1.bf16.msra.mxu1 %v5777_v46  ;;  %5588 = vmatprep.subr.bf16.mxu0 %v5587_v47  ;;  %v1614_v46 = vld [vmem:[#allocation5 + $0x2d30] sm:$0xff]  ;;  %v5799_v47 = vpack.c.bf16 %v1631_v40, %v1615_v39  ;;  %v5609_v53 = vpack.c.bf16 %v1628_v45, %v1612_v44  ;;  %v5819_v40 = vpack.c.bf16 %v257_v34, %v241_v33  ;;  %v339_v9 = vld [vmem:[#allocation5 + $0x558] sm:$0xff]  ;;  %v417_v33 = vld [vmem:[#allocation5 + $0x7c8] sm:$0xff] }
 0x218   :  { %5780 = vmatprep.subr.bf16.mxu1 %v5779_v51  ;;  %v1647_v51 = vld [vmem:[#allocation5 + $0x2e38] sm:$0xff]  ;;  %v5801_v54 = vpack.c.bf16 %v1630_v48, %v1614_v46  ;;  %v6011_v44 = vpack.c.bf16 %v259_v37, %v243_v36  ;;  %v258_v45 = vld [vmem:[#allocation5 + $0x2d0] sm:$0xff]  ;;  %v273_v46 = vld [vmem:[#allocation5 + $0x348] sm:$0xff] }
 0x219   :  { %v7123_v48 = vld [vmem:[#allocation2 + $0x8] sm:$0xff] }
 0x21a   :  { %5590 = vmatpush1.bf16.msra.mxu0 %v5589_v57  ;;  %v1660_v57 = vld [vmem:[#allocation5 + $0x2ea0] sm:$0xff]  ;;  %v355_v10 = vld [vmem:[#allocation5 + $0x5d8] sm:$0xff] }
 0x21b   :  { %5782 = vmatpush1.bf16.msra.mxu1 %v5781_v58  ;;  %5592 = vmatprep.subr.bf16.mxu0 %v5591_v59  ;;  %v1646_v58 = vld [vmem:[#allocation5 + $0x2e30] sm:$0xff]  ;;  %v5803_v59 = vpack.c.bf16 %v1663_v52, %v1647_v51  ;;  %v5613_v1 = vpack.c.bf16 %v1660_v57, %v1644_v56  ;;  %v6015_v57 = vpack.c.bf16 %v291_v50, %v275_v49  ;;  %v371_v21 = vld [vmem:[#allocation5 + $0x658] sm:$0xff] }
 0x21c   :  { %5784 = vmatprep.subr.bf16.mxu1 %v5783_v63  ;;  %v1679_v63 = vld [vmem:[#allocation5 + $0x2f38] sm:$0xff]  ;;  %v5805_v2 = vpack.c.bf16 %v1662_v60, %v1646_v58  ;;  %v274_v56 = vld [vmem:[#allocation5 + $0x350] sm:$0xff]  ;;  %v321_v60 = vld [vmem:[#allocation5 + $0x4c8] sm:$0xff] }
 0x21d   :  { %v290_v58 = vld [vmem:[#allocation5 + $0x3d0] sm:$0xff]  ;;  %v387_v22 = vld [vmem:[#allocation5 + $0x6d8] sm:$0xff] }
 0x21e   :  { %5594 = vmatpush1.bf16.msra.mxu0 %v5593_v5  ;;  %v1692_v5 = vld [vmem:[#allocation5 + $0x2fa0] sm:$0xff]  ;;  %v403_v36 = vld [vmem:[#allocation5 + $0x758] sm:$0xff] }
 0x21f   :  { %5786 = vmatpush1.bf16.msra.mxu1 %v5785_v6  ;;  %5596 = vmatprep.subr.bf16.mxu0 %v5595_v7  ;;  %v1678_v6 = vld [vmem:[#allocation5 + $0x2f30] sm:$0xff]  ;;  %v5807_v7 = vpack.c.bf16 %v1695_v0, %v1679_v63  ;;  %v5617_v13 = vpack.c.bf16 %v1692_v5, %v1676_v4  ;;  %v6017_v0 = vpack.c.bf16 %v290_v58, %v274_v56  ;;  %v419_v37 = vld [vmem:[#allocation5 + $0x7d8] sm:$0xff] }
 0x220   :  { %5788 = vmatprep.subr.bf16.mxu1 %v5787_v11  ;;  %v179_v11 = vld [vmem:[#allocation5 + $0x58] sm:$0xff]  ;;  %v5809_v14 = vpack.c.bf16 %v1694_v8, %v1678_v6  ;;  %v306_v4 = vld [vmem:[#allocation5 + $0x450] sm:$0xff]  ;;  %v6019_v5 = vpack.c.bf16 %v323_v62, %v307_v61  ;;  %v353_v8 = vld [vmem:[#allocation5 + $0x5c8] sm:$0xff] }
 0x221   :  { %v322_v6 = vld [vmem:[#allocation5 + $0x4d0] sm:$0xff]  ;;  %v435_v49 = vld [vmem:[#allocation5 + $0x858] sm:$0xff] }
 0x222   :  { %5598 = vmatpush1.bf16.msra.mxu0 %v5597_v17  ;;  %v192_v17 = vld [vmem:[#allocation5 + $0xc0] sm:$0xff]  ;;  %v451_v50 = vld [vmem:[#allocation5 + $0x8d8] sm:$0xff]  ;;  %v434_v56 = vld [vmem:[#allocation5 + $0x850] sm:$0xff] }
 0x223   :  { %5790 = vmatpush1.bf16.msra.mxu1 %v5789_v18  ;;  %5600 = vmatprep.subr.bf16.mxu0 %v5599_v19  ;;  %v178_v18 = vld [vmem:[#allocation5 + $0x50] sm:$0xff]  ;;  %v6003_v19 = vpack.c.bf16 %v195_v12, %v179_v11  ;;  %v5813_v25 = vpack.c.bf16 %v192_v17, %v176_v16  ;;  %v6021_v12 = vpack.c.bf16 %v322_v6, %v306_v4  ;;  %v467_v61 = vld [vmem:[#allocation5 + $0x958] sm:$0xff] }
 0x224   :  { %5792 = vmatprep.subr.bf16.mxu1 %v5791_v23  ;;  %v211_v23 = vld [vmem:[#allocation5 + $0x158] sm:$0xff]  ;;  %v6005_v26 = vpack.c.bf16 %v194_v20, %v178_v18  ;;  %v338_v16 = vld [vmem:[#allocation5 + $0x550] sm:$0xff]  ;;  %v6023_v17 = vpack.c.bf16 %v355_v10, %v339_v9  ;;  %v385_v20 = vld [vmem:[#allocation5 + $0x6c8] sm:$0xff] }
 0x225   :  { %v354_v18 = vld [vmem:[#allocation5 + $0x5d0] sm:$0xff]  ;;  %v483_v62 = vld [vmem:[#allocation5 + $0x9d8] sm:$0xff] }
 0x226   :  { %5602 = vmatpush1.bf16.msra.mxu0 %v5601_v29  ;;  %v224_v29 = vld [vmem:[#allocation5 + $0x1c0] sm:$0xff]  ;;  %v450_v58 = vld [vmem:[#allocation5 + $0x8d0] sm:$0xff]  ;;  %v499_v9 = vld [vmem:[#allocation5 + $0xa58] sm:$0xff] }
 0x227   :  { %5794 = vmatpush1.bf16.msra.mxu1 %v5793_v30  ;;  %5604 = vmatprep.subr.bf16.mxu0 %v5603_v31  ;;  %v210_v30 = vld [vmem:[#allocation5 + $0x150] sm:$0xff]  ;;  %v6007_v31 = vpack.c.bf16 %v227_v24, %v211_v23  ;;  %v5817_v38 = vpack.c.bf16 %v224_v29, %v208_v28  ;;  %v6025_v24 = vpack.c.bf16 %v354_v18, %v338_v16  ;;  %v515_v10 = vld [vmem:[#allocation5 + $0xad8] sm:$0xff] }
 0x228   :  { %5796 = vmatprep.subr.bf16.mxu1 %v5795_v35  ;;  %v7122_v35 = vld [vmem:[#allocation2 + $0x20] sm:$0xff]  ;;  %v6009_v39 = vpack.c.bf16 %v226_v32, %v210_v30  ;;  %v6027_v30 = vpack.c.bf16 %v387_v22, %v371_v21  ;;  %v401_v32 = vld [vmem:[#allocation5 + $0x748] sm:$0xff]  ;;  %v531_v21 = vld [vmem:[#allocation5 + $0xb58] sm:$0xff] }
 0x229   :  { %v370_v28 = vld [vmem:[#allocation5 + $0x650] sm:$0xff]  ;;  %v547_v22 = vld [vmem:[#allocation5 + $0xbd8] sm:$0xff] }
 0x22a   :  { %5606 = vmatpush1.bf16.msra.mxu0 %v5605_v41  ;;  %v240_v41 = vld [vmem:[#allocation5 + $0x240] sm:$0xff]  ;;  %v466_v4 = vld [vmem:[#allocation5 + $0x950] sm:$0xff] }
 0x22b   :  { %5798 = vmatpush1.bf16.msra.mxu1 %v5797_v42  ;;  %5608 = vmatprep.subr.bf16.mxu0 %v5607_v43  ;;  %v256_v42 = vld [vmem:[#allocation5 + $0x2c0] sm:$0xff]  ;;  %v242_v43 = vld [vmem:[#allocation5 + $0x250] sm:$0xff] }
 0x22c   :  { %5800 = vmatprep.subr.bf16.mxu1 %v5799_v47  ;;  %v289_v47 = vld [vmem:[#allocation5 + $0x3c8] sm:$0xff]  ;;  %v5821_v51 = vpack.c.bf16 %v256_v42, %v240_v41  ;;  %v6013_v52 = vpack.c.bf16 %v258_v45, %v242_v43  ;;  %v5839_v41 = vpack.c.bf16 %v417_v33, %v401_v32  ;;  %v400_v42 = vld [vmem:[#allocation5 + $0x740] sm:$0xff]  ;;  %v6031_v45 = vpack.c.bf16 %v419_v37, %v403_v36  ;;  %v482_v6 = vld [vmem:[#allocation5 + $0x9d0] sm:$0xff] }
 0x22d   :  { %v416_v43 = vld [vmem:[#allocation5 + $0x7c0] sm:$0xff]  ;;  %v498_v16 = vld [vmem:[#allocation5 + $0xa50] sm:$0xff]  ;;  %v561_v32 = vld [vmem:[#allocation5 + $0xc48] sm:$0xff] }
 0x22e   :  { %5610 = vmatpush1.bf16.msra.mxu0 %v5609_v53  ;;  %v5823_v53 = vpack.c.bf16 %v289_v47, %v273_v46  ;;  %v418_v46 = vld [vmem:[#allocation5 + $0x7d0] sm:$0xff]  ;;  %v433_v47 = vld [vmem:[#allocation5 + $0x848] sm:$0xff]  ;;  %v563_v36 = vld [vmem:[#allocation5 + $0xc58] sm:$0xff] }
 0x22f   :  { %5802 = vmatpush1.bf16.msra.mxu1 %v5801_v54  ;;  %5612 = vmatprep.subr.bf16.mxu0 %v5611_v55  ;;  %v272_v54 = vld [vmem:[#allocation5 + $0x340] sm:$0xff]  ;;  %v514_v18 = vld [vmem:[#allocation5 + $0xad0] sm:$0xff]  ;;  %v577_v33 = vld [vmem:[#allocation5 + $0xcc8] sm:$0xff] }
 0x230   :  { %5804 = vmatprep.subr.bf16.mxu1 %v5803_v59  ;;  %v288_v55 = vld [vmem:[#allocation5 + $0x3c0] sm:$0xff]  ;;  %v305_v59 = vld [vmem:[#allocation5 + $0x448] sm:$0xff]  ;;  %v579_v37 = vld [vmem:[#allocation5 + $0xcd8] sm:$0xff] }
 0x231   :  { %v5825_v63 = vpack.c.bf16 %v288_v55, %v272_v54  ;;  %v432_v54 = vld [vmem:[#allocation5 + $0x840] sm:$0xff] }
 0x232   :  { %5614 = vmatpush1.bf16.msra.mxu0 %v5613_v1  ;;  %v5827_v1 = vpack.c.bf16 %v321_v60, %v305_v59  ;;  %v448_v55 = vld [vmem:[#allocation5 + $0x8c0] sm:$0xff]  ;;  %v465_v59 = vld [vmem:[#allocation5 + $0x948] sm:$0xff] }
 0x233   :  { %5806 = vmatpush1.bf16.msra.mxu1 %v5805_v2  ;;  %5616 = vmatprep.subr.bf16.mxu0 %v5615_v3  ;;  %v304_v2 = vld [vmem:[#allocation5 + $0x440] sm:$0xff]  ;;  %v481_v60 = vld [vmem:[#allocation5 + $0x9c8] sm:$0xff] }
 0x234   :  { %5808 = vmatprep.subr.bf16.mxu1 %v5807_v7  ;;  %v320_v3 = vld [vmem:[#allocation5 + $0x4c0] sm:$0xff]  ;;  %v337_v7 = vld [vmem:[#allocation5 + $0x548] sm:$0xff] }
 0x235   :  { %v5829_v11 = vpack.c.bf16 %v320_v3, %v304_v2  ;;  %v464_v2 = vld [vmem:[#allocation5 + $0x940] sm:$0xff] }
 0x236   :  { %5618 = vmatpush1.bf16.msra.mxu0 %v5617_v13  ;;  %v5831_v13 = vpack.c.bf16 %v353_v8, %v337_v7  ;;  %v480_v3 = vld [vmem:[#allocation5 + $0x9c0] sm:$0xff]  ;;  %v497_v7 = vld [vmem:[#allocation5 + $0xa48] sm:$0xff] }
 0x237   :  { %5810 = vmatpush1.bf16.msra.mxu1 %v5809_v14  ;;  %5812 = vmatprep.subr.bf16.mxu0 %v5811_v15  ;;  %v336_v14 = vld [vmem:[#allocation5 + $0x540] sm:$0xff]  ;;  %v513_v8 = vld [vmem:[#allocation5 + $0xac8] sm:$0xff] }
 0x238   :  { %6004 = vmatprep.subr.bf16.mxu1 %v6003_v19  ;;  %v352_v15 = vld [vmem:[#allocation5 + $0x5c0] sm:$0xff]  ;;  %v369_v19 = vld [vmem:[#allocation5 + $0x648] sm:$0xff] }
 0x239   :  { %2421 = vmatmul.mubr.f32.vlgmr.msra.gmra.mrb[2].mxu0 %v7122_v35  ;;  %v5833_v23 = vpack.c.bf16 %v352_v15, %v336_v14  ;;  %v496_v14 = vld [vmem:[#allocation5 + $0xa40] sm:$0xff] }
 0x23a   :  { %2634 = vmatmul.mubr.f32.vlgmr.msra.gmra.mrb[2].mxu1 %v7122_v35  ;;  %5814 = vmatpush1.bf16.msra.mxu0 %v5813_v25  ;;  %v5835_v25 = vpack.c.bf16 %v385_v20, %v369_v19  ;;  %v512_v15 = vld [vmem:[#allocation5 + $0xac0] sm:$0xff]  ;;  %v529_v19 = vld [vmem:[#allocation5 + $0xb48] sm:$0xff] }
 0x23b   :  { %6006 = vmatpush1.bf16.msra.mxu1 %v6005_v26  ;;  %5816 = vmatprep.subr.bf16.mxu0 %v5815_v27  ;;  %v368_v26 = vld [vmem:[#allocation5 + $0x640] sm:$0xff]  ;;  %v545_v20 = vld [vmem:[#allocation5 + $0xbc8] sm:$0xff] }
 0x23c   :  { %6008 = vmatprep.subr.bf16.mxu1 %v6007_v31  ;;  %2704 = vmatprep.mubr.f32.mxu0 %v7123_v48  ;;  %v384_v27 = vld [vmem:[#allocation5 + $0x6c0] sm:$0xff]  ;;  %v386_v31 = vld [vmem:[#allocation5 + $0x6d0] sm:$0xff] }
 0x23d   :  { %2917 = vmatprep.mubr.f32.mxu1 %v7123_v48  ;;  %v449_v48 = vld [vmem:[#allocation5 + $0x8c8] sm:$0xff] }
 0x23e   :  { %5818 = vmatpush1.bf16.msra.mxu0 %v5817_v38 }
 0x23f   :  { %6010 = vmatpush1.bf16.msra.mxu1 %v6009_v39  ;;  %5820 = vmatprep.subr.bf16.mxu0 %v5819_v40  ;;  %v5837_v39 = vpack.c.bf16 %v384_v27, %v368_v26  ;;  %v6029_v40 = vpack.c.bf16 %v386_v31, %v370_v28  ;;  %v528_v26 = vld [vmem:[#allocation5 + $0xb40] sm:$0xff]  ;;  %v530_v28 = vld [vmem:[#allocation5 + $0xb50] sm:$0xff] }
 0x240   :  { %6012 = vmatprep.subr.bf16.mxu1 %v6011_v44  ;;  %v402_v44 = vld [vmem:[#allocation5 + $0x750] sm:$0xff]  ;;  %v544_v27 = vld [vmem:[#allocation5 + $0xbc0] sm:$0xff] }
 0x241   :  { %v546_v31 = vld [vmem:[#allocation5 + $0xbd0] sm:$0xff] }
 0x242   :  { %5822 = vmatpush1.bf16.msra.mxu0 %v5821_v51  ;;  %v5841_v51 = vpack.c.bf16 %v416_v43, %v400_v42  ;;  %v560_v42 = vld [vmem:[#allocation5 + $0xc40] sm:$0xff] }
 0x243   :  { %6014 = vmatpush1.bf16.msra.mxu1 %v6013_v52  ;;  %5824 = vmatprep.subr.bf16.mxu0 %v5823_v53  ;;  %v6033_v52 = vpack.c.bf16 %v418_v46, %v402_v44  ;;  %v5843_v53 = vpack.c.bf16 %v449_v48, %v433_v47  ;;  %v576_v43 = vld [vmem:[#allocation5 + $0xcc0] sm:$0xff]  ;;  %v562_v44 = vld [vmem:[#allocation5 + $0xc50] sm:$0xff]  ;;  %v593_v47 = vld [vmem:[#allocation5 + $0xd48] sm:$0xff] }
 0x244   :  { %6016 = vmatprep.subr.bf16.mxu1 %v6015_v57  ;;  %v6035_v57 = vpack.c.bf16 %v451_v50, %v435_v49  ;;  %v578_v46 = vld [vmem:[#allocation5 + $0xcd0] sm:$0xff]  ;;  %v609_v48 = vld [vmem:[#allocation5 + $0xdc8] sm:$0xff]  ;;  %v595_v49 = vld [vmem:[#allocation5 + $0xd58] sm:$0xff] }
 0x245   :  { %v611_v50 = vld [vmem:[#allocation5 + $0xdd8] sm:$0xff] }
 0x246   :  { %5826 = vmatpush1.bf16.msra.mxu0 %v5825_v63  ;;  %v5845_v63 = vpack.c.bf16 %v448_v55, %v432_v54  ;;  %v592_v54 = vld [vmem:[#allocation5 + $0xd40] sm:$0xff] }
 0x247   :  { %6018 = vmatpush1.bf16.msra.mxu1 %v6017_v0  ;;  %5828 = vmatprep.subr.bf16.mxu0 %v5827_v1  ;;  %v6037_v0 = vpack.c.bf16 %v450_v58, %v434_v56  ;;  %v5847_v1 = vpack.c.bf16 %v481_v60, %v465_v59  ;;  %v608_v55 = vld [vmem:[#allocation5 + $0xdc0] sm:$0xff]  ;;  %v594_v56 = vld [vmem:[#allocation5 + $0xd50] sm:$0xff]  ;;  %v625_v59 = vld [vmem:[#allocation5 + $0xe48] sm:$0xff] }
 0x248   :  { %6020 = vmatprep.subr.bf16.mxu1 %v6019_v5  ;;  %v6039_v5 = vpack.c.bf16 %v483_v62, %v467_v61  ;;  %v610_v58 = vld [vmem:[#allocation5 + $0xdd0] sm:$0xff]  ;;  %v641_v60 = vld [vmem:[#allocation5 + $0xec8] sm:$0xff]  ;;  %v627_v61 = vld [vmem:[#allocation5 + $0xe58] sm:$0xff] }
 0x249   :  { %v643_v62 = vld [vmem:[#allocation5 + $0xed8] sm:$0xff] }
 0x24a   :  { %5830 = vmatpush1.bf16.msra.mxu0 %v5829_v11  ;;  %v5849_v11 = vpack.c.bf16 %v480_v3, %v464_v2  ;;  %v624_v2 = vld [vmem:[#allocation5 + $0xe40] sm:$0xff] }
 0x24b   :  { %6022 = vmatpush1.bf16.msra.mxu1 %v6021_v12  ;;  %5832 = vmatprep.subr.bf16.mxu0 %v5831_v13  ;;  %v6041_v12 = vpack.c.bf16 %v482_v6, %v466_v4  ;;  %v5851_v13 = vpack.c.bf16 %v513_v8, %v497_v7  ;;  %v640_v3 = vld [vmem:[#allocation5 + $0xec0] sm:$0xff]  ;;  %v626_v4 = vld [vmem:[#allocation5 + $0xe50] sm:$0xff]  ;;  %v657_v7 = vld [vmem:[#allocation5 + $0xf48] sm:$0xff] }
 0x24c   :  { %v7598_v29 = vpop.f32.mrb[0].mxu0  ;;  %6024 = vmatprep.subr.bf16.mxu1 %v6023_v17  ;;  %v6043_v17 = vpack.c.bf16 %v515_v10, %v499_v9  ;;  %v642_v6 = vld [vmem:[#allocation5 + $0xed0] sm:$0xff]  ;;  %v673_v8 = vld [vmem:[#allocation5 + $0xfc8] sm:$0xff]  ;;  %v659_v9 = vld [vmem:[#allocation5 + $0xf58] sm:$0xff] }
 0x24d   :  { %v7600_v34 = vpop.f32.mrb[0].mxu1  ;;  %v7602_v35 = vpop.f32.mrb[1].mxu0  ;;  %v675_v10 = vld [vmem:[#allocation5 + $0xfd8] sm:$0xff] }
 0x24e   :  { %v7604_v38 = vpop.f32.mrb[1].mxu1  ;;  %5834 = vmatpush1.bf16.msra.mxu0 %v5833_v23  ;;  %v5853_v23 = vpack.c.bf16 %v512_v15, %v496_v14  ;;  %v656_v14 = vld [vmem:[#allocation5 + $0xf40] sm:$0xff] }
 0x24f   :  { %6026 = vmatpush1.bf16.msra.mxu1 %v6025_v24  ;;  %5836 = vmatprep.subr.bf16.mxu0 %v5835_v25  ;;  %v6045_v24 = vpack.c.bf16 %v514_v18, %v498_v16  ;;  %v5855_v25 = vpack.c.bf16 %v545_v20, %v529_v19  ;;  %v672_v15 = vld [vmem:[#allocation5 + $0xfc0] sm:$0xff]  ;;  %v658_v16 = vld [vmem:[#allocation5 + $0xf50] sm:$0xff]  ;;  %v689_v19 = vld [vmem:[#allocation5 + $0x1048] sm:$0xff] }
 0x250   :  { %6028 = vmatprep.subr.bf16.mxu1 %v6027_v30  ;;  %v6047_v30 = vpack.c.bf16 %v547_v22, %v531_v21  ;;  %v674_v18 = vld [vmem:[#allocation5 + $0xfd0] sm:$0xff]  ;;  %v705_v20 = vld [vmem:[#allocation5 + $0x10c8] sm:$0xff]  ;;  %v691_v21 = vld [vmem:[#allocation5 + $0x1058] sm:$0xff] }
 0x251   :  { %v707_v22 = vld [vmem:[#allocation5 + $0x10d8] sm:$0xff] }
 0x252   :  { %5838 = vmatpush1.bf16.msra.mxu0 %v5837_v39  ;;  %v5857_v39 = vpack.c.bf16 %v544_v27, %v528_v26  ;;  %v688_v26 = vld [vmem:[#allocation5 + $0x1040] sm:$0xff] }
 0x253   :  { %6030 = vmatpush1.bf16.msra.mxu1 %v6029_v40  ;;  %5840 = vmatprep.subr.bf16.mxu0 %v5839_v41  ;;  %v6049_v40 = vpack.c.bf16 %v546_v31, %v530_v28  ;;  %v5859_v41 = vpack.c.bf16 %v577_v33, %v561_v32  ;;  %v704_v27 = vld [vmem:[#allocation5 + $0x10c0] sm:$0xff]  ;;  %v690_v28 = vld [vmem:[#allocation5 + $0x1050] sm:$0xff]  ;;  %v721_v32 = vld [vmem:[#allocation5 + $0x1148] sm:$0xff] }
 0x254   :  { %6032 = vmatprep.subr.bf16.mxu1 %v6031_v45  ;;  %v6051_v45 = vpack.c.bf16 %v579_v37, %v563_v36  ;;  %v706_v31 = vld [vmem:[#allocation5 + $0x10d0] sm:$0xff]  ;;  %v737_v33 = vld [vmem:[#allocation5 + $0x11c8] sm:$0xff]  ;;  %v723_v36 = vld [vmem:[#allocation5 + $0x1158] sm:$0xff] }
 0x255   :  { %v739_v37 = vld [vmem:[#allocation5 + $0x11d8] sm:$0xff] }
 0x256   :  { %5842 = vmatpush1.bf16.msra.mxu0 %v5841_v51  ;;  %v5861_v51 = vpack.c.bf16 %v576_v43, %v560_v42  ;;  %v720_v42 = vld [vmem:[#allocation5 + $0x1140] sm:$0xff] }
 0x257   :  { %6034 = vmatpush1.bf16.msra.mxu1 %v6033_v52  ;;  %5844 = vmatprep.subr.bf16.mxu0 %v5843_v53  ;;  %v6053_v52 = vpack.c.bf16 %v578_v46, %v562_v44  ;;  %v5863_v53 = vpack.c.bf16 %v609_v48, %v593_v47  ;;  %v736_v43 = vld [vmem:[#allocation5 + $0x11c0] sm:$0xff]  ;;  %v722_v44 = vld [vmem:[#allocation5 + $0x1150] sm:$0xff]  ;;  %v753_v47 = vld [vmem:[#allocation5 + $0x1248] sm:$0xff] }
 0x258   :  { %6036 = vmatprep.subr.bf16.mxu1 %v6035_v57  ;;  %v6055_v57 = vpack.c.bf16 %v611_v50, %v595_v49  ;;  %v738_v46 = vld [vmem:[#allocation5 + $0x11d0] sm:$0xff]  ;;  %v769_v48 = vld [vmem:[#allocation5 + $0x12c8] sm:$0xff]  ;;  %v755_v50 = vld [vmem:[#allocation5 + $0x1258] sm:$0xff] }
 0x259   :  { %v7124_v49 = vld [vmem:[#allocation2] sm:$0xff] }
 0x25a   :  { %5846 = vmatpush1.bf16.msra.mxu0 %v5845_v63  ;;  %v5865_v63 = vpack.c.bf16 %v608_v55, %v592_v54  ;;  %v5883_v54 = vpack.c.bf16 %v769_v48, %v753_v47  ;;  %v752_v55 = vld [vmem:[#allocation5 + $0x1240] sm:$0xff]  ;;  %v898_v48 = vld [vmem:[#allocation5 + $0x16d0] sm:$0xff] }
 0x25b   :  { %6038 = vmatpush1.bf16.msra.mxu1 %v6037_v0  ;;  %5848 = vmatprep.subr.bf16.mxu0 %v5847_v1  ;;  %v6057_v0 = vpack.c.bf16 %v610_v58, %v594_v56  ;;  %v5867_v1 = vpack.c.bf16 %v641_v60, %v625_v59  ;;  %v768_v56 = vld [vmem:[#allocation5 + $0x12c0] sm:$0xff]  ;;  %v770_v59 = vld [vmem:[#allocation5 + $0x12d0] sm:$0xff]  ;;  %v785_v60 = vld [vmem:[#allocation5 + $0x1348] sm:$0xff] }
 0x25c   :  { %6040 = vmatprep.subr.bf16.mxu1 %v6039_v5  ;;  %v6059_v5 = vpack.c.bf16 %v643_v62, %v627_v61  ;;  %v801_v61 = vld [vmem:[#allocation5 + $0x13c8] sm:$0xff] }
 0x25d   :  { %v7125_v62 = vld [vmem:[#allocation2 + $0x18] sm:$0xff] }
 0x25e   :  { %5850 = vmatpush1.bf16.msra.mxu0 %v5849_v11  ;;  %v5869_v11 = vpack.c.bf16 %v640_v3, %v624_v2  ;;  %v5887_v3 = vpack.c.bf16 %v801_v61, %v785_v60  ;;  %v930_v60 = vld [vmem:[#allocation5 + $0x17d0] sm:$0xff]  ;;  %v945_v61 = vld [vmem:[#allocation5 + $0x1848] sm:$0xff] }
 0x25f   :  { %6042 = vmatpush1.bf16.msra.mxu1 %v6041_v12  ;;  %5852 = vmatprep.subr.bf16.mxu0 %v5851_v13  ;;  %v6061_v12 = vpack.c.bf16 %v642_v6, %v626_v4  ;;  %v5871_v13 = vpack.c.bf16 %v673_v8, %v657_v7  ;;  %v784_v4 = vld [vmem:[#allocation5 + $0x1340] sm:$0xff]  ;;  %v786_v6 = vld [vmem:[#allocation5 + $0x1350] sm:$0xff] }
 0x260   :  { %6044 = vmatprep.subr.bf16.mxu1 %v6043_v17  ;;  %v6063_v17 = vpack.c.bf16 %v675_v10, %v659_v9  ;;  %v802_v8 = vld [vmem:[#allocation5 + $0x13d0] sm:$0xff]  ;;  %v817_v9 = vld [vmem:[#allocation5 + $0x1448] sm:$0xff] }
 0x261   :  { %v833_v10 = vld [vmem:[#allocation5 + $0x14c8] sm:$0xff] }
 0x262   :  { %5854 = vmatpush1.bf16.msra.mxu0 %v5853_v23  ;;  %v5873_v23 = vpack.c.bf16 %v672_v15, %v656_v14  ;;  %v6081_v14 = vpack.c.bf16 %v802_v8, %v786_v6  ;;  %v5891_v15 = vpack.c.bf16 %v833_v10, %v817_v9  ;;  %v946_v6 = vld [vmem:[#allocation5 + $0x1850] sm:$0xff]  ;;  %v977_v9 = vld [vmem:[#allocation5 + $0x1948] sm:$0xff] }
 0x263   :  { %6046 = vmatpush1.bf16.msra.mxu1 %v6045_v24  ;;  %5856 = vmatprep.subr.bf16.mxu0 %v5855_v25  ;;  %v6065_v24 = vpack.c.bf16 %v674_v18, %v658_v16  ;;  %v5875_v25 = vpack.c.bf16 %v705_v20, %v689_v19  ;;  %v816_v16 = vld [vmem:[#allocation5 + $0x1440] sm:$0xff]  ;;  %v818_v18 = vld [vmem:[#allocation5 + $0x1450] sm:$0xff]  ;;  %v993_v10 = vld [vmem:[#allocation5 + $0x19c8] sm:$0xff] }
 0x264   :  { %6048 = vmatprep.subr.bf16.mxu1 %v6047_v30  ;;  %v6067_v30 = vpack.c.bf16 %v707_v22, %v691_v21  ;;  %v834_v20 = vld [vmem:[#allocation5 + $0x14d0] sm:$0xff]  ;;  %v849_v21 = vld [vmem:[#allocation5 + $0x1548] sm:$0xff] }
 0x265   :  { %v865_v22 = vld [vmem:[#allocation5 + $0x15c8] sm:$0xff]  ;;  %v962_v8 = vld [vmem:[#allocation5 + $0x18d0] sm:$0xff] }
 0x266   :  { %5858 = vmatpush1.bf16.msra.mxu0 %v5857_v39  ;;  %v5877_v39 = vpack.c.bf16 %v704_v27, %v688_v26  ;;  %v6085_v26 = vpack.c.bf16 %v834_v20, %v818_v18  ;;  %v5895_v27 = vpack.c.bf16 %v865_v22, %v849_v21  ;;  %v978_v18 = vld [vmem:[#allocation5 + $0x1950] sm:$0xff]  ;;  %v1009_v21 = vld [vmem:[#allocation5 + $0x1a48] sm:$0xff] }
 0x267   :  { %6050 = vmatpush1.bf16.msra.mxu1 %v6049_v40  ;;  %5860 = vmatprep.subr.bf16.mxu0 %v5859_v41  ;;  %v6069_v40 = vpack.c.bf16 %v706_v31, %v690_v28  ;;  %v5879_v41 = vpack.c.bf16 %v737_v33, %v721_v32  ;;  %v848_v28 = vld [vmem:[#allocation5 + $0x1540] sm:$0xff]  ;;  %v850_v31 = vld [vmem:[#allocation5 + $0x1550] sm:$0xff]  ;;  %v1025_v22 = vld [vmem:[#allocation5 + $0x1ac8] sm:$0xff] }
 0x268   :  { %6052 = vmatprep.subr.bf16.mxu1 %v6051_v45  ;;  %v6071_v45 = vpack.c.bf16 %v739_v37, %v723_v36  ;;  %v866_v33 = vld [vmem:[#allocation5 + $0x15d0] sm:$0xff]  ;;  %v881_v36 = vld [vmem:[#allocation5 + $0x1648] sm:$0xff] }
 0x269   :  { %v897_v37 = vld [vmem:[#allocation5 + $0x16c8] sm:$0xff]  ;;  %v994_v20 = vld [vmem:[#allocation5 + $0x19d0] sm:$0xff] }
 0x26a   :  { %5862 = vmatpush1.bf16.msra.mxu0 %v5861_v51  ;;  %v771_v51 = vld [vmem:[#allocation5 + $0x12d8] sm:$0xff] }
 0x26b   :  { %6054 = vmatpush1.bf16.msra.mxu1 %v6053_v52  ;;  %5864 = vmatprep.subr.bf16.mxu0 %v5863_v53  ;;  %v5881_v52 = vpack.c.bf16 %v736_v43, %v720_v42  ;;  %v6073_v53 = vpack.c.bf16 %v738_v46, %v722_v44  ;;  %v6075_v58 = vpack.c.bf16 %v771_v51, %v755_v50  ;;  %v880_v44 = vld [vmem:[#allocation5 + $0x1640] sm:$0xff]  ;;  %v882_v46 = vld [vmem:[#allocation5 + $0x1650] sm:$0xff]  ;;  %v929_v50 = vld [vmem:[#allocation5 + $0x17c8] sm:$0xff] }
 0x26c   :  { %6056 = vmatprep.subr.bf16.mxu1 %v6055_v57  ;;  %v754_v57 = vld [vmem:[#allocation5 + $0x1250] sm:$0xff]  ;;  %v6089_v42 = vpack.c.bf16 %v866_v33, %v850_v31  ;;  %v5899_v43 = vpack.c.bf16 %v897_v37, %v881_v36  ;;  %v915_v51 = vld [vmem:[#allocation5 + $0x1758] sm:$0xff]  ;;  %v1041_v36 = vld [vmem:[#allocation5 + $0x1b48] sm:$0xff] }
 0x26d   :  { %v6077_v2 = vpack.c.bf16 %v770_v59, %v754_v57  ;;  %v928_v57 = vld [vmem:[#allocation5 + $0x17c0] sm:$0xff]  ;;  %v1010_v31 = vld [vmem:[#allocation5 + $0x1a50] sm:$0xff]  ;;  %v1057_v37 = vld [vmem:[#allocation5 + $0x1bc8] sm:$0xff] }
 0x26e   :  { %5866 = vmatpush1.bf16.msra.mxu0 %v5865_v63  ;;  %v787_v63 = vld [vmem:[#allocation5 + $0x1358] sm:$0xff]  ;;  %v1026_v33 = vld [vmem:[#allocation5 + $0x1ad0] sm:$0xff] }
 0x26f   :  { %6058 = vmatpush1.bf16.msra.mxu1 %v6057_v0  ;;  %5868 = vmatprep.subr.bf16.mxu0 %v5867_v1  ;;  %v803_v0 = vld [vmem:[#allocation5 + $0x13d8] sm:$0xff]  ;;  %v5885_v1 = vpack.c.bf16 %v768_v56, %v752_v55  ;;  %v912_v56 = vld [vmem:[#allocation5 + $0x1740] sm:$0xff] }
 0x270   :  { %6060 = vmatprep.subr.bf16.mxu1 %v6059_v5  ;;  %v800_v5 = vld [vmem:[#allocation5 + $0x13c0] sm:$0xff]  ;;  %v6079_v7 = vpack.c.bf16 %v803_v0, %v787_v63  ;;  %v947_v63 = vld [vmem:[#allocation5 + $0x1858] sm:$0xff] }
 0x271   :  { %v963_v0 = vld [vmem:[#allocation5 + $0x18d8] sm:$0xff] }
 0x272   :  { %5870 = vmatpush1.bf16.msra.mxu0 %v5869_v11  ;;  %v819_v11 = vld [vmem:[#allocation5 + $0x1458] sm:$0xff] }
 0x273   :  { %6062 = vmatpush1.bf16.msra.mxu1 %v6061_v12  ;;  %5872 = vmatprep.subr.bf16.mxu0 %v5871_v13  ;;  %v835_v12 = vld [vmem:[#allocation5 + $0x14d8] sm:$0xff]  ;;  %v5889_v13 = vpack.c.bf16 %v800_v5, %v784_v4  ;;  %v944_v4 = vld [vmem:[#allocation5 + $0x1840] sm:$0xff] }
 0x274   :  { %6064 = vmatprep.subr.bf16.mxu1 %v6063_v17  ;;  %v832_v17 = vld [vmem:[#allocation5 + $0x14c0] sm:$0xff]  ;;  %v6083_v19 = vpack.c.bf16 %v835_v12, %v819_v11  ;;  %v979_v11 = vld [vmem:[#allocation5 + $0x1958] sm:$0xff] }
 0x275   :  { %v960_v5 = vld [vmem:[#allocation5 + $0x18c0] sm:$0xff]  ;;  %v995_v12 = vld [vmem:[#allocation5 + $0x19d8] sm:$0xff] }
 0x276   :  { %5874 = vmatpush1.bf16.msra.mxu0 %v5873_v23  ;;  %v851_v23 = vld [vmem:[#allocation5 + $0x1558] sm:$0xff] }
 0x277   :  { %6066 = vmatpush1.bf16.msra.mxu1 %v6065_v24  ;;  %5876 = vmatprep.subr.bf16.mxu0 %v5875_v25  ;;  %v867_v24 = vld [vmem:[#allocation5 + $0x15d8] sm:$0xff]  ;;  %v5893_v25 = vpack.c.bf16 %v832_v17, %v816_v16  ;;  %v976_v16 = vld [vmem:[#allocation5 + $0x1940] sm:$0xff] }
 0x278   :  { %6068 = vmatprep.subr.bf16.mxu1 %v6067_v30  ;;  %v864_v30 = vld [vmem:[#allocation5 + $0x15c0] sm:$0xff]  ;;  %v6087_v32 = vpack.c.bf16 %v867_v24, %v851_v23  ;;  %v1011_v23 = vld [vmem:[#allocation5 + $0x1a58] sm:$0xff] }
 0x279   :  { %2705 = vmatmul.mubr.f32.vlgmr.msra.gmra.mrb[4].mxu0 %v7124_v49  ;;  %v992_v17 = vld [vmem:[#allocation5 + $0x19c0] sm:$0xff]  ;;  %v1027_v24 = vld [vmem:[#allocation5 + $0x1ad8] sm:$0xff] }
 0x27a   :  { %5878 = vmatpush1.bf16.msra.mxu0 %v5877_v39  ;;  %2918 = vmatmul.mubr.f32.vlgmr.msra.gmra.mrb[4].mxu1 %v7124_v49  ;;  %v883_v39 = vld [vmem:[#allocation5 + $0x1658] sm:$0xff]  ;;  %v913_v49 = vld [vmem:[#allocation5 + $0x1748] sm:$0xff] }
 0x27b   :  { %6070 = vmatpush1.bf16.msra.mxu1 %v6069_v40  ;;  %5880 = vmatprep.subr.bf16.mxu0 %v5879_v41  ;;  %v899_v40 = vld [vmem:[#allocation5 + $0x16d8] sm:$0xff]  ;;  %v5897_v41 = vpack.c.bf16 %v864_v30, %v848_v28  ;;  %v5903_v55 = vpack.c.bf16 %v929_v50, %v913_v49  ;;  %v1008_v28 = vld [vmem:[#allocation5 + $0x1a40] sm:$0xff]  ;;  %v1073_v49 = vld [vmem:[#allocation5 + $0x1c48] sm:$0xff] }
 0x27c   :  { %6072 = vmatprep.subr.bf16.mxu1 %v6071_v45  ;;  %2775 = vmatprep.mubr.f32.mxu0 %v7125_v62  ;;  %v896_v45 = vld [vmem:[#allocation5 + $0x16c0] sm:$0xff]  ;;  %v6091_v47 = vpack.c.bf16 %v899_v40, %v883_v39  ;;  %v1043_v39 = vld [vmem:[#allocation5 + $0x1b58] sm:$0xff]  ;;  %v1089_v50 = vld [vmem:[#allocation5 + $0x1cc8] sm:$0xff] }
 0x27d   :  { %2988 = vmatprep.mubr.f32.mxu1 %v7125_v62  ;;  %v961_v62 = vld [vmem:[#allocation5 + $0x18c8] sm:$0xff]  ;;  %v1024_v30 = vld [vmem:[#allocation5 + $0x1ac0] sm:$0xff]  ;;  %v1059_v40 = vld [vmem:[#allocation5 + $0x1bd8] sm:$0xff] }
 0x27e   :  { %5882 = vmatpush1.bf16.msra.mxu0 %v5881_v52  ;;  %v931_v52 = vld [vmem:[#allocation5 + $0x17d8] sm:$0xff] }
 0x27f   :  { %6074 = vmatpush1.bf16.msra.mxu1 %v6073_v53  ;;  %5884 = vmatprep.subr.bf16.mxu0 %v5883_v54  ;;  %v5901_v53 = vpack.c.bf16 %v896_v45, %v880_v44  ;;  %v6093_v54 = vpack.c.bf16 %v898_v48, %v882_v46  ;;  %v6095_v59 = vpack.c.bf16 %v931_v52, %v915_v51  ;;  %v1040_v44 = vld [vmem:[#allocation5 + $0x1b40] sm:$0xff]  ;;  %v1042_v46 = vld [vmem:[#allocation5 + $0x1b50] sm:$0xff]  ;;  %v1075_v51 = vld [vmem:[#allocation5 + $0x1c58] sm:$0xff] }
 0x280   :  { %6076 = vmatprep.subr.bf16.mxu1 %v6075_v58  ;;  %v914_v58 = vld [vmem:[#allocation5 + $0x1750] sm:$0xff]  ;;  %v1056_v45 = vld [vmem:[#allocation5 + $0x1bc0] sm:$0xff]  ;;  %v1091_v52 = vld [vmem:[#allocation5 + $0x1cd8] sm:$0xff] }
 0x281   :  { %v1058_v48 = vld [vmem:[#allocation5 + $0x1bd0] sm:$0xff] }
 0x282   :  { %5886 = vmatpush1.bf16.msra.mxu0 %v5885_v1  ;;  %v5905_v1 = vpack.c.bf16 %v928_v57, %v912_v56  ;;  %v1072_v56 = vld [vmem:[#allocation5 + $0x1c40] sm:$0xff] }
 0x283   :  { %6078 = vmatpush1.bf16.msra.mxu1 %v6077_v2  ;;  %5888 = vmatprep.subr.bf16.mxu0 %v5887_v3  ;;  %v6097_v2 = vpack.c.bf16 %v930_v60, %v914_v58  ;;  %v5907_v3 = vpack.c.bf16 %v961_v62, %v945_v61  ;;  %v1088_v57 = vld [vmem:[#allocation5 + $0x1cc0] sm:$0xff]  ;;  %v1074_v58 = vld [vmem:[#allocation5 + $0x1c50] sm:$0xff]  ;;  %v1105_v61 = vld [vmem:[#allocation5 + $0x1d48] sm:$0xff] }
 0x284   :  { %6080 = vmatprep.subr.bf16.mxu1 %v6079_v7  ;;  %v6099_v7 = vpack.c.bf16 %v963_v0, %v947_v63  ;;  %v1090_v60 = vld [vmem:[#allocation5 + $0x1cd0] sm:$0xff]  ;;  %v1121_v62 = vld [vmem:[#allocation5 + $0x1dc8] sm:$0xff]  ;;  %v1107_v63 = vld [vmem:[#allocation5 + $0x1d58] sm:$0xff] }
 0x285   :  { %v1123_v0 = vld [vmem:[#allocation5 + $0x1dd8] sm:$0xff] }
 0x286   :  { %5890 = vmatpush1.bf16.msra.mxu0 %v5889_v13  ;;  %v5909_v13 = vpack.c.bf16 %v960_v5, %v944_v4  ;;  %v1104_v4 = vld [vmem:[#allocation5 + $0x1d40] sm:$0xff] }
 0x287   :  { %6082 = vmatpush1.bf16.msra.mxu1 %v6081_v14  ;;  %5892 = vmatprep.subr.bf16.mxu0 %v5891_v15  ;;  %v6101_v14 = vpack.c.bf16 %v962_v8, %v946_v6  ;;  %v5911_v15 = vpack.c.bf16 %v993_v10, %v977_v9  ;;  %v1120_v5 = vld [vmem:[#allocation5 + $0x1dc0] sm:$0xff]  ;;  %v1106_v6 = vld [vmem:[#allocation5 + $0x1d50] sm:$0xff]  ;;  %v1137_v9 = vld [vmem:[#allocation5 + $0x1e48] sm:$0xff] }
 0x288   :  { %6084 = vmatprep.subr.bf16.mxu1 %v6083_v19  ;;  %v6103_v19 = vpack.c.bf16 %v995_v12, %v979_v11  ;;  %v1122_v8 = vld [vmem:[#allocation5 + $0x1dd0] sm:$0xff]  ;;  %v1153_v10 = vld [vmem:[#allocation5 + $0x1ec8] sm:$0xff]  ;;  %v1139_v11 = vld [vmem:[#allocation5 + $0x1e58] sm:$0xff] }
 0x289   :  { %v1155_v12 = vld [vmem:[#allocation5 + $0x1ed8] sm:$0xff] }
 0x28a   :  { %5894 = vmatpush1.bf16.msra.mxu0 %v5893_v25  ;;  %v5913_v25 = vpack.c.bf16 %v992_v17, %v976_v16  ;;  %v1136_v16 = vld [vmem:[#allocation5 + $0x1e40] sm:$0xff] }
 0x28b   :  { %6086 = vmatpush1.bf16.msra.mxu1 %v6085_v26  ;;  %5896 = vmatprep.subr.bf16.mxu0 %v5895_v27  ;;  %v6105_v26 = vpack.c.bf16 %v994_v20, %v978_v18  ;;  %v5915_v27 = vpack.c.bf16 %v1025_v22, %v1009_v21  ;;  %v1152_v17 = vld [vmem:[#allocation5 + $0x1ec0] sm:$0xff]  ;;  %v1138_v18 = vld [vmem:[#allocation5 + $0x1e50] sm:$0xff]  ;;  %v1169_v21 = vld [vmem:[#allocation5 + $0x1f48] sm:$0xff] }
 0x28c   :  { %6088 = vmatprep.subr.bf16.mxu1 %v6087_v32  ;;  %v6107_v32 = vpack.c.bf16 %v1027_v24, %v1011_v23  ;;  %v1154_v20 = vld [vmem:[#allocation5 + $0x1ed0] sm:$0xff]  ;;  %v1185_v22 = vld [vmem:[#allocation5 + $0x1fc8] sm:$0xff]  ;;  %v1171_v23 = vld [vmem:[#allocation5 + $0x1f58] sm:$0xff] }
 0x28d   :  { %v1187_v24 = vld [vmem:[#allocation5 + $0x1fd8] sm:$0xff] }
 0x28e   :  { %5898 = vmatpush1.bf16.msra.mxu0 %v5897_v41  ;;  %v5917_v41 = vpack.c.bf16 %v1024_v30, %v1008_v28  ;;  %v1168_v28 = vld [vmem:[#allocation5 + $0x1f40] sm:$0xff] }
 0x28f   :  { %6090 = vmatpush1.bf16.msra.mxu1 %v6089_v42  ;;  %5900 = vmatprep.subr.bf16.mxu0 %v5899_v43  ;;  %v6109_v42 = vpack.c.bf16 %v1026_v33, %v1010_v31  ;;  %v5919_v43 = vpack.c.bf16 %v1057_v37, %v1041_v36  ;;  %v1184_v30 = vld [vmem:[#allocation5 + $0x1fc0] sm:$0xff]  ;;  %v1170_v31 = vld [vmem:[#allocation5 + $0x1f50] sm:$0xff]  ;;  %v1201_v36 = vld [vmem:[#allocation5 + $0x2048] sm:$0xff] }
 0x290   :  { %6092 = vmatprep.subr.bf16.mxu1 %v6091_v47  ;;  %v6111_v47 = vpack.c.bf16 %v1059_v40, %v1043_v39  ;;  %v1186_v33 = vld [vmem:[#allocation5 + $0x1fd0] sm:$0xff]  ;;  %v1217_v37 = vld [vmem:[#allocation5 + $0x20c8] sm:$0xff]  ;;  %v1203_v39 = vld [vmem:[#allocation5 + $0x2058] sm:$0xff] }
 0x291   :  { %v1219_v40 = vld [vmem:[#allocation5 + $0x20d8] sm:$0xff] }
 0x292   :  { %5902 = vmatpush1.bf16.msra.mxu0 %v5901_v53  ;;  %v5921_v53 = vpack.c.bf16 %v1056_v45, %v1040_v44  ;;  %v1200_v44 = vld [vmem:[#allocation5 + $0x2040] sm:$0xff] }
 0x293   :  { %6094 = vmatpush1.bf16.msra.mxu1 %v6093_v54  ;;  %5904 = vmatprep.subr.bf16.mxu0 %v5903_v55  ;;  %v6113_v54 = vpack.c.bf16 %v1058_v48, %v1042_v46  ;;  %v5923_v55 = vpack.c.bf16 %v1089_v50, %v1073_v49  ;;  %v1216_v45 = vld [vmem:[#allocation5 + $0x20c0] sm:$0xff]  ;;  %v1202_v46 = vld [vmem:[#allocation5 + $0x2050] sm:$0xff]  ;;  %v1233_v49 = vld [vmem:[#allocation5 + $0x2148] sm:$0xff] }
 0x294   :  { %6096 = vmatprep.subr.bf16.mxu1 %v6095_v59  ;;  %v6115_v59 = vpack.c.bf16 %v1091_v52, %v1075_v51  ;;  %v1218_v48 = vld [vmem:[#allocation5 + $0x20d0] sm:$0xff]  ;;  %v1249_v50 = vld [vmem:[#allocation5 + $0x21c8] sm:$0xff]  ;;  %v1235_v51 = vld [vmem:[#allocation5 + $0x2158] sm:$0xff] }
 0x295   :  { %v1251_v52 = vld [vmem:[#allocation5 + $0x21d8] sm:$0xff] }
 0x296   :  { %5906 = vmatpush1.bf16.msra.mxu0 %v5905_v1  ;;  %v5925_v1 = vpack.c.bf16 %v1088_v57, %v1072_v56  ;;  %v1232_v56 = vld [vmem:[#allocation5 + $0x2140] sm:$0xff] }
 0x297   :  { %6098 = vmatpush1.bf16.msra.mxu1 %v6097_v2  ;;  %5908 = vmatprep.subr.bf16.mxu0 %v5907_v3  ;;  %v6117_v2 = vpack.c.bf16 %v1090_v60, %v1074_v58  ;;  %v5927_v3 = vpack.c.bf16 %v1121_v62, %v1105_v61  ;;  %v1248_v57 = vld [vmem:[#allocation5 + $0x21c0] sm:$0xff]  ;;  %v1234_v58 = vld [vmem:[#allocation5 + $0x2150] sm:$0xff]  ;;  %v1265_v61 = vld [vmem:[#allocation5 + $0x2248] sm:$0xff] }
 0x298   :  { %6100 = vmatprep.subr.bf16.mxu1 %v6099_v7  ;;  %v6119_v7 = vpack.c.bf16 %v1123_v0, %v1107_v63  ;;  %v1250_v60 = vld [vmem:[#allocation5 + $0x21d0] sm:$0xff]  ;;  %v1281_v62 = vld [vmem:[#allocation5 + $0x22c8] sm:$0xff]  ;;  %v7126_v63 = vld [vmem:[#allocation2 + $0x10] sm:$0xff] }
 0x299   :  { %v1267_v0 = vld [vmem:[#allocation5 + $0x2258] sm:$0xff] }
 0x29a   :  { %5910 = vmatpush1.bf16.msra.mxu0 %v5909_v13  ;;  %v5929_v13 = vpack.c.bf16 %v1120_v5, %v1104_v4  ;;  %v5947_v4 = vpack.c.bf16 %v1281_v62, %v1265_v61  ;;  %v1264_v5 = vld [vmem:[#allocation5 + $0x2240] sm:$0xff]  ;;  %v1410_v62 = vld [vmem:[#allocation5 + $0x26d0] sm:$0xff] }
 0x29b   :  { %6102 = vmatpush1.bf16.msra.mxu1 %v6101_v14  ;;  %5912 = vmatprep.subr.bf16.mxu0 %v5911_v15  ;;  %v6121_v14 = vpack.c.bf16 %v1122_v8, %v1106_v6  ;;  %v5931_v15 = vpack.c.bf16 %v1153_v10, %v1137_v9  ;;  %v1280_v6 = vld [vmem:[#allocation5 + $0x22c0] sm:$0xff]  ;;  %v1282_v9 = vld [vmem:[#allocation5 + $0x22d0] sm:$0xff]  ;;  %v1297_v10 = vld [vmem:[#allocation5 + $0x2348] sm:$0xff] }
 0x29c   :  { %6104 = vmatprep.subr.bf16.mxu1 %v6103_v19  ;;  %v6123_v19 = vpack.c.bf16 %v1155_v12, %v1139_v11  ;;  %v1313_v11 = vld [vmem:[#allocation5 + $0x23c8] sm:$0xff]  ;;  %v7127_v12 = vld [vmem:[#allocation2 + $0x28] sm:$0xff] }
 0x29e   :  { %5914 = vmatpush1.bf16.msra.mxu0 %v5913_v25  ;;  %v5933_v25 = vpack.c.bf16 %v1152_v17, %v1136_v16  ;;  %v5951_v17 = vpack.c.bf16 %v1313_v11, %v1297_v10  ;;  %v1442_v10 = vld [vmem:[#allocation5 + $0x27d0] sm:$0xff]  ;;  %v1457_v11 = vld [vmem:[#allocation5 + $0x2848] sm:$0xff] }
 0x29f   :  { %6106 = vmatpush1.bf16.msra.mxu1 %v6105_v26  ;;  %5916 = vmatprep.subr.bf16.mxu0 %v5915_v27  ;;  %v6125_v26 = vpack.c.bf16 %v1154_v20, %v1138_v18  ;;  %v5935_v27 = vpack.c.bf16 %v1185_v22, %v1169_v21  ;;  %v1296_v18 = vld [vmem:[#allocation5 + $0x2340] sm:$0xff]  ;;  %v1298_v20 = vld [vmem:[#allocation5 + $0x2350] sm:$0xff] }
 0x2a0   :  { %6108 = vmatprep.subr.bf16.mxu1 %v6107_v32  ;;  %v6127_v32 = vpack.c.bf16 %v1187_v24, %v1171_v23  ;;  %v1314_v22 = vld [vmem:[#allocation5 + $0x23d0] sm:$0xff]  ;;  %v1329_v23 = vld [vmem:[#allocation5 + $0x2448] sm:$0xff] }
 0x2a1   :  { %v1345_v24 = vld [vmem:[#allocation5 + $0x24c8] sm:$0xff] }
 0x2a2   :  { %5918 = vmatpush1.bf16.msra.mxu0 %v5917_v41  ;;  %v5937_v41 = vpack.c.bf16 %v1184_v30, %v1168_v28  ;;  %v6145_v28 = vpack.c.bf16 %v1314_v22, %v1298_v20  ;;  %v5955_v30 = vpack.c.bf16 %v1345_v24, %v1329_v23  ;;  %v1458_v20 = vld [vmem:[#allocation5 + $0x2850] sm:$0xff]  ;;  %v1489_v23 = vld [vmem:[#allocation5 + $0x2948] sm:$0xff] }
 0x2a3   :  { %6110 = vmatpush1.bf16.msra.mxu1 %v6109_v42  ;;  %5920 = vmatprep.subr.bf16.mxu0 %v5919_v43  ;;  %v6129_v42 = vpack.c.bf16 %v1186_v33, %v1170_v31  ;;  %v5939_v43 = vpack.c.bf16 %v1217_v37, %v1201_v36  ;;  %v1328_v31 = vld [vmem:[#allocation5 + $0x2440] sm:$0xff]  ;;  %v1330_v33 = vld [vmem:[#allocation5 + $0x2450] sm:$0xff]  ;;  %v1505_v24 = vld [vmem:[#allocation5 + $0x29c8] sm:$0xff] }
 0x2a4   :  { %6112 = vmatprep.subr.bf16.mxu1 %v6111_v47  ;;  %v6131_v47 = vpack.c.bf16 %v1219_v40, %v1203_v39  ;;  %v1346_v37 = vld [vmem:[#allocation5 + $0x24d0] sm:$0xff]  ;;  %v1361_v39 = vld [vmem:[#allocation5 + $0x2548] sm:$0xff] }
 0x2a5   :  { %v1377_v40 = vld [vmem:[#allocation5 + $0x25c8] sm:$0xff]  ;;  %v1474_v22 = vld [vmem:[#allocation5 + $0x28d0] sm:$0xff] }
 0x2a6   :  { %5922 = vmatpush1.bf16.msra.mxu0 %v5921_v53  ;;  %v5941_v53 = vpack.c.bf16 %v1216_v45, %v1200_v44  ;;  %v6149_v44 = vpack.c.bf16 %v1346_v37, %v1330_v33  ;;  %v5959_v45 = vpack.c.bf16 %v1377_v40, %v1361_v39  ;;  %v1490_v33 = vld [vmem:[#allocation5 + $0x2950] sm:$0xff]  ;;  %v1521_v39 = vld [vmem:[#allocation5 + $0x2a48] sm:$0xff] }
 0x2a7   :  { %6114 = vmatpush1.bf16.msra.mxu1 %v6113_v54  ;;  %5924 = vmatprep.subr.bf16.mxu0 %v5923_v55  ;;  %v6133_v54 = vpack.c.bf16 %v1218_v48, %v1202_v46  ;;  %v5943_v55 = vpack.c.bf16 %v1249_v50, %v1233_v49  ;;  %v1360_v46 = vld [vmem:[#allocation5 + $0x2540] sm:$0xff]  ;;  %v1362_v48 = vld [vmem:[#allocation5 + $0x2550] sm:$0xff]  ;;  %v1537_v40 = vld [vmem:[#allocation5 + $0x2ac8] sm:$0xff] }
 0x2a8   :  { %6116 = vmatprep.subr.bf16.mxu1 %v6115_v59  ;;  %v6135_v59 = vpack.c.bf16 %v1251_v52, %v1235_v51  ;;  %v1378_v50 = vld [vmem:[#allocation5 + $0x25d0] sm:$0xff]  ;;  %v1393_v51 = vld [vmem:[#allocation5 + $0x2648] sm:$0xff] }
 0x2a9   :  { %v1409_v52 = vld [vmem:[#allocation5 + $0x26c8] sm:$0xff]  ;;  %v1506_v37 = vld [vmem:[#allocation5 + $0x29d0] sm:$0xff] }
 0x2aa   :  { %5926 = vmatpush1.bf16.msra.mxu0 %v5925_v1  ;;  %v1283_v1 = vld [vmem:[#allocation5 + $0x22d8] sm:$0xff] }
 0x2ab   :  { %6118 = vmatpush1.bf16.msra.mxu1 %v6117_v2  ;;  %5928 = vmatprep.subr.bf16.mxu0 %v5927_v3  ;;  %v5945_v2 = vpack.c.bf16 %v1248_v57, %v1232_v56  ;;  %v6137_v3 = vpack.c.bf16 %v1250_v60, %v1234_v58  ;;  %v6139_v8 = vpack.c.bf16 %v1283_v1, %v1267_v0  ;;  %v1392_v58 = vld [vmem:[#allocation5 + $0x2640] sm:$0xff]  ;;  %v1394_v60 = vld [vmem:[#allocation5 + $0x2650] sm:$0xff]  ;;  %v1441_v0 = vld [vmem:[#allocation5 + $0x27c8] sm:$0xff] }
 0x2ac   :  { %6120 = vmatprep.subr.bf16.mxu1 %v6119_v7  ;;  %v1266_v7 = vld [vmem:[#allocation5 + $0x2250] sm:$0xff]  ;;  %v6153_v56 = vpack.c.bf16 %v1378_v50, %v1362_v48  ;;  %v5963_v57 = vpack.c.bf16 %v1409_v52, %v1393_v51  ;;  %v1427_v1 = vld [vmem:[#allocation5 + $0x2758] sm:$0xff]  ;;  %v1553_v51 = vld [vmem:[#allocation5 + $0x2b48] sm:$0xff] }
 0x2ad   :  { %v6141_v16 = vpack.c.bf16 %v1282_v9, %v1266_v7  ;;  %v1440_v7 = vld [vmem:[#allocation5 + $0x27c0] sm:$0xff]  ;;  %v1522_v48 = vld [vmem:[#allocation5 + $0x2a50] sm:$0xff]  ;;  %v1569_v52 = vld [vmem:[#allocation5 + $0x2bc8] sm:$0xff] }
 0x2ae   :  { %5930 = vmatpush1.bf16.msra.mxu0 %v5929_v13  ;;  %v1299_v13 = vld [vmem:[#allocation5 + $0x2358] sm:$0xff]  ;;  %v1538_v50 = vld [vmem:[#allocation5 + $0x2ad0] sm:$0xff] }
 0x2af   :  { %6122 = vmatpush1.bf16.msra.mxu1 %v6121_v14  ;;  %5932 = vmatprep.subr.bf16.mxu0 %v5931_v15  ;;  %v1315_v14 = vld [vmem:[#allocation5 + $0x23d8] sm:$0xff]  ;;  %v5949_v15 = vpack.c.bf16 %v1280_v6, %v1264_v5  ;;  %v1424_v6 = vld [vmem:[#allocation5 + $0x2740] sm:$0xff] }
 0x2b0   :  { %6124 = vmatprep.subr.bf16.mxu1 %v6123_v19  ;;  %v1312_v19 = vld [vmem:[#allocation5 + $0x23c0] sm:$0xff]  ;;  %v6143_v21 = vpack.c.bf16 %v1315_v14, %v1299_v13  ;;  %v1459_v13 = vld [vmem:[#allocation5 + $0x2858] sm:$0xff] }
 0x2b1   :  { %v1475_v14 = vld [vmem:[#allocation5 + $0x28d8] sm:$0xff] }
 0x2b2   :  { %5934 = vmatpush1.bf16.msra.mxu0 %v5933_v25  ;;  %v1331_v25 = vld [vmem:[#allocation5 + $0x2458] sm:$0xff] }
 0x2b3   :  { %6126 = vmatpush1.bf16.msra.mxu1 %v6125_v26  ;;  %5936 = vmatprep.subr.bf16.mxu0 %v5935_v27  ;;  %v1347_v26 = vld [vmem:[#allocation5 + $0x24d8] sm:$0xff]  ;;  %v5953_v27 = vpack.c.bf16 %v1312_v19, %v1296_v18  ;;  %v1456_v18 = vld [vmem:[#allocation5 + $0x2840] sm:$0xff] }
 0x2b4   :  { %6128 = vmatprep.subr.bf16.mxu1 %v6127_v32  ;;  %v1344_v32 = vld [vmem:[#allocation5 + $0x24c0] sm:$0xff]  ;;  %v6147_v36 = vpack.c.bf16 %v1347_v26, %v1331_v25  ;;  %v1491_v25 = vld [vmem:[#allocation5 + $0x2958] sm:$0xff] }
 0x2b5   :  { %v1472_v19 = vld [vmem:[#allocation5 + $0x28c0] sm:$0xff]  ;;  %v1507_v26 = vld [vmem:[#allocation5 + $0x29d8] sm:$0xff] }
 0x2b6   :  { %5938 = vmatpush1.bf16.msra.mxu0 %v5937_v41  ;;  %v1363_v41 = vld [vmem:[#allocation5 + $0x2558] sm:$0xff] }
 0x2b7   :  { %6130 = vmatpush1.bf16.msra.mxu1 %v6129_v42  ;;  %5940 = vmatprep.subr.bf16.mxu0 %v5939_v43  ;;  %v1379_v42 = vld [vmem:[#allocation5 + $0x25d8] sm:$0xff]  ;;  %v5957_v43 = vpack.c.bf16 %v1344_v32, %v1328_v31  ;;  %v1488_v31 = vld [vmem:[#allocation5 + $0x2940] sm:$0xff] }
 0x2b8   :  { %6132 = vmatprep.subr.bf16.mxu1 %v6131_v47  ;;  %v1376_v47 = vld [vmem:[#allocation5 + $0x25c0] sm:$0xff]  ;;  %v6151_v49 = vpack.c.bf16 %v1379_v42, %v1363_v41  ;;  %v1523_v41 = vld [vmem:[#allocation5 + $0x2a58] sm:$0xff] }
 0x2b9   :  { %2776 = vmatmul.mubr.f32.vlgmr.msra.gmra.mrb[4].mxu0 %v7126_v63  ;;  %v1504_v32 = vld [vmem:[#allocation5 + $0x29c0] sm:$0xff]  ;;  %v1539_v42 = vld [vmem:[#allocation5 + $0x2ad8] sm:$0xff] }
 0x2ba   :  { %5942 = vmatpush1.bf16.msra.mxu0 %v5941_v53  ;;  %2989 = vmatmul.mubr.f32.vlgmr.msra.gmra.mrb[4].mxu1 %v7126_v63  ;;  %v1395_v53 = vld [vmem:[#allocation5 + $0x2658] sm:$0xff]  ;;  %v1425_v63 = vld [vmem:[#allocation5 + $0x2748] sm:$0xff] }
 0x2bb   :  { %6134 = vmatpush1.bf16.msra.mxu1 %v6133_v54  ;;  %5944 = vmatprep.subr.bf16.mxu0 %v5943_v55  ;;  %v1411_v54 = vld [vmem:[#allocation5 + $0x26d8] sm:$0xff]  ;;  %v5961_v55 = vpack.c.bf16 %v1376_v47, %v1360_v46  ;;  %v5967_v5 = vpack.c.bf16 %v1441_v0, %v1425_v63  ;;  %v1520_v46 = vld [vmem:[#allocation5 + $0x2a40] sm:$0xff]  ;;  %v1585_v63 = vld [vmem:[#allocation5 + $0x2c48] sm:$0xff] }
 0x2bc   :  { %6136 = vmatprep.subr.bf16.mxu1 %v6135_v59  ;;  %2846 = vmatprep.mubr.f32.mxu0 %v7127_v12  ;;  %v1408_v59 = vld [vmem:[#allocation5 + $0x26c0] sm:$0xff]  ;;  %v6155_v61 = vpack.c.bf16 %v1411_v54, %v1395_v53  ;;  %v1555_v53 = vld [vmem:[#allocation5 + $0x2b58] sm:$0xff]  ;;  %v1601_v0 = vld [vmem:[#allocation5 + $0x2cc8] sm:$0xff] }
 0x2bd   :  { %3059 = vmatprep.mubr.f32.mxu1 %v7127_v12  ;;  %v1473_v12 = vld [vmem:[#allocation5 + $0x28c8] sm:$0xff]  ;;  %v1536_v47 = vld [vmem:[#allocation5 + $0x2ac0] sm:$0xff]  ;;  %v1571_v54 = vld [vmem:[#allocation5 + $0x2bd8] sm:$0xff] }
 0x2be   :  { %5946 = vmatpush1.bf16.msra.mxu0 %v5945_v2  ;;  %v1443_v2 = vld [vmem:[#allocation5 + $0x27d8] sm:$0xff] }
 0x2bf   :  { %6138 = vmatpush1.bf16.msra.mxu1 %v6137_v3  ;;  %5948 = vmatprep.subr.bf16.mxu0 %v5947_v4  ;;  %v5965_v3 = vpack.c.bf16 %v1408_v59, %v1392_v58  ;;  %v6157_v4 = vpack.c.bf16 %v1410_v62, %v1394_v60  ;;  %v6159_v9 = vpack.c.bf16 %v1443_v2, %v1427_v1  ;;  %v1552_v58 = vld [vmem:[#allocation5 + $0x2b40] sm:$0xff]  ;;  %v1554_v60 = vld [vmem:[#allocation5 + $0x2b50] sm:$0xff]  ;;  %v1587_v1 = vld [vmem:[#allocation5 + $0x2c58] sm:$0xff] }
 0x2c0   :  { %6140 = vmatprep.subr.bf16.mxu1 %v6139_v8  ;;  %v1426_v8 = vld [vmem:[#allocation5 + $0x2750] sm:$0xff]  ;;  %v1568_v59 = vld [vmem:[#allocation5 + $0x2bc0] sm:$0xff]  ;;  %v1603_v2 = vld [vmem:[#allocation5 + $0x2cd8] sm:$0xff] }
 0x2c1   :  { %v1570_v62 = vld [vmem:[#allocation5 + $0x2bd0] sm:$0xff] }
 0x2c2   :  { %5950 = vmatpush1.bf16.msra.mxu0 %v5949_v15  ;;  %v5969_v15 = vpack.c.bf16 %v1440_v7, %v1424_v6  ;;  %v1584_v6 = vld [vmem:[#allocation5 + $0x2c40] sm:$0xff] }
 0x2c3   :  { %6142 = vmatpush1.bf16.msra.mxu1 %v6141_v16  ;;  %5952 = vmatprep.subr.bf16.mxu0 %v5951_v17  ;;  %v6161_v16 = vpack.c.bf16 %v1442_v10, %v1426_v8  ;;  %v5971_v17 = vpack.c.bf16 %v1473_v12, %v1457_v11  ;;  %v1600_v7 = vld [vmem:[#allocation5 + $0x2cc0] sm:$0xff]  ;;  %v1586_v8 = vld [vmem:[#allocation5 + $0x2c50] sm:$0xff]  ;;  %v1617_v11 = vld [vmem:[#allocation5 + $0x2d48] sm:$0xff] }
 0x2c4   :  { %6144 = vmatprep.subr.bf16.mxu1 %v6143_v21  ;;  %v6163_v21 = vpack.c.bf16 %v1475_v14, %v1459_v13  ;;  %v1602_v10 = vld [vmem:[#allocation5 + $0x2cd0] sm:$0xff]  ;;  %v1633_v12 = vld [vmem:[#allocation5 + $0x2dc8] sm:$0xff]  ;;  %v1619_v13 = vld [vmem:[#allocation5 + $0x2d58] sm:$0xff] }
 0x2c5   :  { %v1635_v14 = vld [vmem:[#allocation5 + $0x2dd8] sm:$0xff] }
 0x2c6   :  { %5954 = vmatpush1.bf16.msra.mxu0 %v5953_v27  ;;  %v5973_v27 = vpack.c.bf16 %v1472_v19, %v1456_v18  ;;  %v1616_v18 = vld [vmem:[#allocation5 + $0x2d40] sm:$0xff] }
 0x2c7   :  { %6146 = vmatpush1.bf16.msra.mxu1 %v6145_v28  ;;  %5956 = vmatprep.subr.bf16.mxu0 %v5955_v30  ;;  %v6165_v28 = vpack.c.bf16 %v1474_v22, %v1458_v20  ;;  %v5975_v30 = vpack.c.bf16 %v1505_v24, %v1489_v23  ;;  %v1632_v19 = vld [vmem:[#allocation5 + $0x2dc0] sm:$0xff]  ;;  %v1618_v20 = vld [vmem:[#allocation5 + $0x2d50] sm:$0xff]  ;;  %v1649_v23 = vld [vmem:[#allocation5 + $0x2e48] sm:$0xff] }
 0x2c8   :  { %6148 = vmatprep.subr.bf16.mxu1 %v6147_v36  ;;  %v6167_v36 = vpack.c.bf16 %v1507_v26, %v1491_v25  ;;  %v1634_v22 = vld [vmem:[#allocation5 + $0x2dd0] sm:$0xff]  ;;  %v1665_v24 = vld [vmem:[#allocation5 + $0x2ec8] sm:$0xff]  ;;  %v1651_v25 = vld [vmem:[#allocation5 + $0x2e58] sm:$0xff] }
 0x2c9   :  { %v1667_v26 = vld [vmem:[#allocation5 + $0x2ed8] sm:$0xff] }
 0x2ca   :  { %5958 = vmatpush1.bf16.msra.mxu0 %v5957_v43  ;;  %v5977_v43 = vpack.c.bf16 %v1504_v32, %v1488_v31  ;;  %v1648_v31 = vld [vmem:[#allocation5 + $0x2e40] sm:$0xff] }
 0x2cb   :  { %6150 = vmatpush1.bf16.msra.mxu1 %v6149_v44  ;;  %5960 = vmatprep.subr.bf16.mxu0 %v5959_v45  ;;  %v6169_v44 = vpack.c.bf16 %v1506_v37, %v1490_v33  ;;  %v5979_v45 = vpack.c.bf16 %v1537_v40, %v1521_v39  ;;  %v1664_v32 = vld [vmem:[#allocation5 + $0x2ec0] sm:$0xff]  ;;  %v1650_v33 = vld [vmem:[#allocation5 + $0x2e50] sm:$0xff]  ;;  %v1681_v39 = vld [vmem:[#allocation5 + $0x2f48] sm:$0xff] }
 0x2cc   :  { %6152 = vmatprep.subr.bf16.mxu1 %v6151_v49  ;;  %v6171_v49 = vpack.c.bf16 %v1539_v42, %v1523_v41  ;;  %v1666_v37 = vld [vmem:[#allocation5 + $0x2ed0] sm:$0xff]  ;;  %v1697_v40 = vld [vmem:[#allocation5 + $0x2fc8] sm:$0xff]  ;;  %v1683_v41 = vld [vmem:[#allocation5 + $0x2f58] sm:$0xff] }
 0x2cd   :  { %v1699_v42 = vld [vmem:[#allocation5 + $0x2fd8] sm:$0xff] }
 0x2ce   :  { %5962 = vmatpush1.bf16.msra.mxu0 %v5961_v55  ;;  %v5981_v55 = vpack.c.bf16 %v1536_v47, %v1520_v46  ;;  %v1680_v46 = vld [vmem:[#allocation5 + $0x2f40] sm:$0xff] }
 0x2cf   :  { %6154 = vmatpush1.bf16.msra.mxu1 %v6153_v56  ;;  %5964 = vmatprep.subr.bf16.mxu0 %v5963_v57  ;;  %v6173_v56 = vpack.c.bf16 %v1538_v50, %v1522_v48  ;;  %v5983_v57 = vpack.c.bf16 %v1569_v52, %v1553_v51  ;;  %v1696_v47 = vld [vmem:[#allocation5 + $0x2fc0] sm:$0xff]  ;;  %v1682_v48 = vld [vmem:[#allocation5 + $0x2f50] sm:$0xff]  ;;  %v6191_v50 = vpack.c.bf16 %v1699_v42, %v1683_v41  ;;  %v181_v52 = vld [vmem:[#allocation5 + $0x68] sm:$0xff] }
 0x2d0   :  { %6156 = vmatprep.subr.bf16.mxu1 %v6155_v61  ;;  %v6175_v61 = vpack.c.bf16 %v1571_v54, %v1555_v53  ;;  %v1698_v51 = vld [vmem:[#allocation5 + $0x2fd0] sm:$0xff]  ;;  %v197_v53 = vld [vmem:[#allocation5 + $0xe8] sm:$0xff]  ;;  %v183_v54 = vld [vmem:[#allocation5 + $0x78] sm:$0xff] }
 0x2d1   :  { %v279_v41 = vld [vmem:[#allocation5 + $0x378] sm:$0xff] }
 0x2d2   :  { %5966 = vmatpush1.bf16.msra.mxu0 %v5965_v3  ;;  %v5985_v3 = vpack.c.bf16 %v1568_v59, %v1552_v58  ;;  %v6195_v58 = vpack.c.bf16 %v197_v53, %v181_v52  ;;  %v180_v59 = vld [vmem:[#allocation5 + $0x60] sm:$0xff]  ;;  %v295_v42 = vld [vmem:[#allocation5 + $0x3f8] sm:$0xff]  ;;  %v294_v53 = vld [vmem:[#allocation5 + $0x3f0] sm:$0xff] }
 0x2d3   :  { %6158 = vmatpush1.bf16.msra.mxu1 %v6157_v4  ;;  %5968 = vmatprep.subr.bf16.mxu0 %v5967_v5  ;;  %v6177_v4 = vpack.c.bf16 %v1570_v62, %v1554_v60  ;;  %v5987_v5 = vpack.c.bf16 %v1601_v0, %v1585_v63  ;;  %v196_v60 = vld [vmem:[#allocation5 + $0xe0] sm:$0xff]  ;;  %v198_v0 = vld [vmem:[#allocation5 + $0xf0] sm:$0xff]  ;;  %v6399_v52 = vpack.c.bf16 %v295_v42, %v279_v41  ;;  %v391_v41 = vld [vmem:[#allocation5 + $0x6f8] sm:$0xff] }
 0x2d4   :  { %6160 = vmatprep.subr.bf16.mxu1 %v6159_v9  ;;  %v6179_v9 = vpack.c.bf16 %v1603_v2, %v1587_v1  ;;  %v213_v1 = vld [vmem:[#allocation5 + $0x168] sm:$0xff] }
 0x2d5   :  { %v229_v2 = vld [vmem:[#allocation5 + $0x1e8] sm:$0xff] }
 0x2d6   :  { %5970 = vmatpush1.bf16.msra.mxu0 %v5969_v15  ;;  %v5989_v15 = vpack.c.bf16 %v1600_v7, %v1584_v6  ;;  %v6199_v7 = vpack.c.bf16 %v229_v2, %v213_v1  ;;  %v308_v1 = vld [vmem:[#allocation5 + $0x460] sm:$0xff] }
 0x2d7   :  { %6162 = vmatpush1.bf16.msra.mxu1 %v6161_v16  ;;  %5972 = vmatprep.subr.bf16.mxu0 %v5971_v17  ;;  %v6181_v16 = vpack.c.bf16 %v1602_v10, %v1586_v8  ;;  %v5991_v17 = vpack.c.bf16 %v1633_v12, %v1617_v11  ;;  %v212_v8 = vld [vmem:[#allocation5 + $0x160] sm:$0xff]  ;;  %v214_v10 = vld [vmem:[#allocation5 + $0x170] sm:$0xff] }
 0x2d8   :  { %6164 = vmatprep.subr.bf16.mxu1 %v6163_v21  ;;  %v6183_v21 = vpack.c.bf16 %v1635_v14, %v1619_v13  ;;  %v230_v13 = vld [vmem:[#allocation5 + $0x1f0] sm:$0xff]  ;;  %v245_v14 = vld [vmem:[#allocation5 + $0x268] sm:$0xff]  ;;  %v324_v2 = vld [vmem:[#allocation5 + $0x4e0] sm:$0xff] }
 0x2da   :  { %5974 = vmatpush1.bf16.msra.mxu0 %v5973_v27  ;;  %v5993_v27 = vpack.c.bf16 %v1632_v19, %v1616_v18  ;;  %v7128_v18 = vld [vmem:[#allocation2 + $0x20] sm:$0xff]  ;;  %v247_v19 = vld [vmem:[#allocation5 + $0x278] sm:$0xff] }
 0x2db   :  { %6166 = vmatpush1.bf16.msra.mxu1 %v6165_v28  ;;  %5976 = vmatprep.subr.bf16.mxu0 %v5975_v30  ;;  %v6185_v28 = vpack.c.bf16 %v1634_v22, %v1618_v20  ;;  %v5995_v30 = vpack.c.bf16 %v1665_v24, %v1649_v23  ;;  %v263_v20 = vld [vmem:[#allocation5 + $0x2f8] sm:$0xff]  ;;  %v6393_v22 = vpack.c.bf16 %v230_v13, %v214_v10  ;;  %v244_v24 = vld [vmem:[#allocation5 + $0x260] sm:$0xff] }
 0x2dc   :  { %6168 = vmatprep.subr.bf16.mxu1 %v6167_v36  ;;  %v6187_v36 = vpack.c.bf16 %v1667_v26, %v1651_v25  ;;  %v260_v25 = vld [vmem:[#allocation5 + $0x2e0] sm:$0xff]  ;;  %v246_v26 = vld [vmem:[#allocation5 + $0x270] sm:$0xff] }
 0x2de   :  { %5978 = vmatpush1.bf16.msra.mxu0 %v5977_v43  ;;  %v5997_v43 = vpack.c.bf16 %v1664_v32, %v1648_v31  ;;  %v262_v31 = vld [vmem:[#allocation5 + $0x2f0] sm:$0xff]  ;;  %v277_v32 = vld [vmem:[#allocation5 + $0x368] sm:$0xff] }
 0x2df   :  { %6170 = vmatpush1.bf16.msra.mxu1 %v6169_v44  ;;  %5980 = vmatprep.subr.bf16.mxu0 %v5979_v45  ;;  %v6189_v44 = vpack.c.bf16 %v1666_v37, %v1650_v33  ;;  %v5999_v45 = vpack.c.bf16 %v1697_v40, %v1681_v39  ;;  %v293_v33 = vld [vmem:[#allocation5 + $0x3e8] sm:$0xff]  ;;  %v7621_v37 = vld [vmem:[#allocation8] sm:$0xff] }
 0x2e0   :  { %6172 = vmatprep.subr.bf16.mxu1 %v6171_v49  ;;  %v1708_v49 = vlaneseq }
 0x2e2   :  { %5982 = vmatpush1.bf16.msra.mxu0 %v5981_v55  ;;  %v199_v55 = vld [vmem:[#allocation5 + $0xf8] sm:$0xff]  ;;  %v7606_v62 = vshrl.u32 %v1708_v49, 7 }
 0x2e3   :  { %6174 = vmatpush1.bf16.msra.mxu1 %v6173_v56  ;;  %5984 = vmatprep.subr.bf16.mxu0 %v5983_v57  ;;  %v6001_v56 = vpack.c.bf16 %v1696_v47, %v1680_v46  ;;  %v6193_v57 = vpack.c.bf16 %v1698_v51, %v1682_v48  ;;  %v6387_v63 = vpack.c.bf16 %v199_v55, %v183_v54  ;;  %v276_v46 = vld [vmem:[#allocation5 + $0x360] sm:$0xff]  ;;  %v278_v48 = vld [vmem:[#allocation5 + $0x370] sm:$0xff]  ;;  %v309_v54 = vld [vmem:[#allocation5 + $0x468] sm:$0xff] }
 0x2e4   :  { %6176 = vmatprep.subr.bf16.mxu1 %v6175_v61  ;;  %v182_v61 = vld [vmem:[#allocation5 + $0x70] sm:$0xff]  ;;  %v7609_v11 = vsub.s32 0, %v7606_v62  ;;  %v7626_v40 = vsub.s32 3, %v7606_v62  ;;  %v292_v47 = vld [vmem:[#allocation5 + $0x3e0] sm:$0xff]  ;;  %v325_v55 = vld [vmem:[#allocation5 + $0x4e8] sm:$0xff]  ;;  %v7645_v13 = vsub.s32 4, %v7606_v62 }
 0x2e5   :  { %v6389_v6 = vpack.c.bf16 %v198_v0, %v182_v61  ;;  %v6209_v61 = vpack.c.bf16 %v292_v47, %v276_v46  ;;  %v6401_v0 = vpack.c.bf16 %v294_v53, %v278_v48  ;;  %v372_v46 = vld [vmem:[#allocation5 + $0x660] sm:$0xff]  ;;  %v374_v48 = vld [vmem:[#allocation5 + $0x670] sm:$0xff]  ;;  %v405_v53 = vld [vmem:[#allocation5 + $0x768] sm:$0xff] }
 0x2e6   :  { %5986 = vmatpush1.bf16.msra.mxu0 %v5985_v3  ;;  %v215_v3 = vld [vmem:[#allocation5 + $0x178] sm:$0xff]  ;;  %v388_v47 = vld [vmem:[#allocation5 + $0x6e0] sm:$0xff] }
 0x2e7   :  { %6178 = vmatpush1.bf16.msra.mxu1 %v6177_v4  ;;  %5988 = vmatprep.subr.bf16.mxu0 %v5987_v5  ;;  %v231_v4 = vld [vmem:[#allocation5 + $0x1f8] sm:$0xff]  ;;  %v6197_v5 = vpack.c.bf16 %v196_v60, %v180_v59 }
 0x2e8   :  { %6180 = vmatprep.subr.bf16.mxu1 %v6179_v9  ;;  %v228_v9 = vld [vmem:[#allocation5 + $0x1e0] sm:$0xff]  ;;  %v6391_v12 = vpack.c.bf16 %v231_v4, %v215_v3  ;;  %v327_v59 = vld [vmem:[#allocation5 + $0x4f8] sm:$0xff]  ;;  %v310_v3 = vld [vmem:[#allocation5 + $0x470] sm:$0xff] }
 0x2ea   :  { %5990 = vmatpush1.bf16.msra.mxu0 %v5989_v15  ;;  %v261_v15 = vld [vmem:[#allocation5 + $0x2e8] sm:$0xff] }
 0x2eb   :  { %6182 = vmatpush1.bf16.msra.mxu1 %v6181_v16  ;;  %5992 = vmatprep.subr.bf16.mxu0 %v5991_v17  ;;  %v7611_v16 = vld [vmem:[#allocation7] sm:$0xff]  ;;  %v7614_v17 = vsub.s32 2, %v7606_v62  ;;  %v6203_v23 = vpack.c.bf16 %v261_v15, %v245_v14  ;;  %v343_v14 = vld [vmem:[#allocation5 + $0x578] sm:$0xff] }
 0x2ec   :  { %6184 = vmatprep.subr.bf16.mxu1 %v6183_v21  ;;  %v6201_v21 = vpack.c.bf16 %v228_v9, %v212_v8  ;;  %v341_v8 = vld [vmem:[#allocation5 + $0x568] sm:$0xff]  ;;  %v359_v15 = vld [vmem:[#allocation5 + $0x5f8] sm:$0xff] }
 0x2ed   :  { %v1719_v39 = vrot.slane %v7611_v16, %v7614_v17  ;;  %v357_v9 = vld [vmem:[#allocation5 + $0x5e8] sm:$0xff] }
 0x2ee   :  { %5994 = vmatpush1.bf16.msra.mxu0 %v5993_v27  ;;  %v1711_v27 = vrot.slane %v7611_v16, %v7609_v11 }
 0x2ef   :  { %6186 = vmatpush1.bf16.msra.mxu1 %v6185_v28  ;;  %5996 = vmatprep.subr.bf16.mxu0 %v5995_v30  ;;  %v7619_v28 = vsub.s32 1, %v7606_v62  ;;  %v6395_v30 = vpack.c.bf16 %v263_v20, %v247_v19  ;;  %v7648_v19 = vsub.s32 6, %v7606_v62  ;;  %v7654_v20 = vsub.s32 7, %v7606_v62 }
 0x2f0   :  { %6188 = vmatprep.subr.bf16.mxu1 %v6187_v36  ;;  %v7129_v36 = vld [vmem:[#allocation2 + $0x8] sm:$0xff]  ;;  %v7032_v49 = vadd.f32 %v7598_v29, %v1711_v27  ;;  %v6407_v27 = vpack.c.bf16 %v359_v15, %v343_v14  ;;  %v406_v14 = vld [vmem:[#allocation5 + $0x770] sm:$0xff] }
 0x2f1   :  { %v1715_v51 = vrot.slane %v7611_v16, %v7619_v28  ;;  %v311_v29 = vld [vmem:[#allocation5 + $0x478] sm:$0xff]  ;;  %v3519_v60 = vrot.slane %v7621_v37, %v7619_v28  ;;  %v1735_v42 = vrot.slane %v7611_v16, %v7648_v19  ;;  %v422_v15 = vld [vmem:[#allocation5 + $0x7f0] sm:$0xff] }
 0x2f2   :  { %5998 = vmatpush1.bf16.msra.mxu0 %v5997_v43  ;;  %v6205_v43 = vpack.c.bf16 %v260_v25, %v244_v24  ;;  %vm3492_vm0 = vcmp.ge.f32.partialorder %v7032_v49, 0.0  ;;  %v342_v24 = vld [vmem:[#allocation5 + $0x570] sm:$0xff] }
 0x2f3   :  { %6190 = vmatpush1.bf16.msra.mxu1 %v6189_v44  ;;  %6000 = vmatprep.subr.bf16.mxu0 %v5999_v45  ;;  %v6397_v44 = vpack.c.bf16 %v262_v31, %v246_v26  ;;  %v6207_v45 = vpack.c.bf16 %v293_v33, %v277_v32  ;;  %v373_v31 = vld [vmem:[#allocation5 + $0x668] sm:$0xff] }
 0x2f4   :  { %6192 = vmatprep.subr.bf16.mxu1 %v6191_v50  ;;  %v3515_v50 = vrot.slane %v7621_v37, %v7609_v11  ;;  %v389_v32 = vld [vmem:[#allocation5 + $0x6e8] sm:$0xff] }
 0x2f6   :  { %6002 = vmatpush1.bf16.msra.mxu0 %v6001_v56  ;;  %v7034_v56 = vadd.f32 %v7600_v34, %v1719_v39  ;;  %v6211_v34 = vpack.c.bf16 %v325_v55, %v309_v54  ;;  %v3592_v4 = vmul.f32 %v7032_v49, %v3515_v50  ;;  %v375_v39 = vld [vmem:[#allocation5 + $0x678] sm:$0xff]  ;;  %v421_v54 = vld [vmem:[#allocation5 + $0x7e8] sm:$0xff] }
 0x2f7   :  { %6194 = vmatpush1.bf16.msra.mxu1 %v6193_v57  ;;  %6196 = vmatprep.subr.bf16.mxu0 %v6195_v58  ;;  %v3523_v57 = vrot.slane %v7621_v37, %v7614_v17  ;;  %v1723_v58 = vrot.slane %v7611_v16, %v7626_v40 }
 0x2f8   :  { %6388 = vmatprep.subr.bf16.mxu1 %v6387_v63  ;;  %v3527_v63 = vrot.slane %v7621_v37, %v7626_v40  ;;  %vm3494_vm1 = vcmp.ge.f32.partialorder %v7034_v56, 0.0  ;;  %v7657_v25 = vsel %vm3492_vm0, %v7032_v49, %v3592_v4  ;;  %v3531_v49 = vrot.slane %v7621_v37, %v7645_v13 }
 0x2f9   :  { %2847 = vmatmul.mubr.f32.vlgmr.msra.gmra.mrb[4].mxu0 %v7128_v18  ;;  %v3594_v10 = vmul.f32 %v7034_v56, %v3523_v57 }
 0x2fa   :  { %3060 = vmatmul.mubr.f32.vlgmr.msra.gmra.mrb[4].mxu1 %v7128_v18  ;;  %6198 = vmatpush1.bf16.msra.mxu0 %v6197_v5  ;;  %v7033_v5 = vadd.f32 %v7602_v35, %v1715_v51  ;;  %v6213_v18 = vpack.c.bf16 %v324_v2, %v308_v1  ;;  %v7651_v35 = vsub.s32 5, %v7606_v62  ;;  %v6219_v51 = vpack.c.bf16 %v389_v32, %v373_v31 }
 0x2fb   :  { %6390 = vmatpush1.bf16.msra.mxu1 %v6389_v6  ;;  %6200 = vmatprep.subr.bf16.mxu0 %v6199_v7  ;;  %v6403_v6 = vpack.c.bf16 %v327_v59, %v311_v29  ;;  %v326_v7 = vld [vmem:[#allocation5 + $0x4f0] sm:$0xff]  ;;  %v7660_v62 = vsel %vm3494_vm1, %v7034_v56, %v3594_v10  ;;  %v407_v29 = vld [vmem:[#allocation5 + $0x778] sm:$0xff]  ;;  %v6221_v1 = vpack.c.bf16 %v388_v47, %v372_v46  ;;  %v469_v47 = vld [vmem:[#allocation5 + $0x968] sm:$0xff] }
 0x2fc   :  { %6392 = vmatprep.subr.bf16.mxu1 %v6391_v12  ;;  %3130 = vmatprep.mubr.f32.mxu0 %v7129_v36  ;;  %v7035_v12 = vadd.f32 %v7604_v38, %v1723_v58  ;;  %v6215_v38 = vpack.c.bf16 %v357_v9, %v341_v8  ;;  %vm3493_vm2 = vcmp.ge.f32.partialorder %v7033_v5, 0.0  ;;  %v3593_v26 = vmul.f32 %v7033_v5, %v3519_v60  ;;  %v423_v59 = vld [vmem:[#allocation5 + $0x7f8] sm:$0xff]  ;;  %v420_v8 = vld [vmem:[#allocation5 + $0x7e0] sm:$0xff]  ;;  %v454_v46 = vld [vmem:[#allocation5 + $0x8f0] sm:$0xff] }
 0x2fd   :  { %3343 = vmatprep.mubr.f32.mxu1 %v7129_v36  ;;  %v1727_v36 = vrot.slane %v7611_v16, %v7645_v13  ;;  %v3535_v57 = vrot.slane %v7621_v37, %v7651_v35  ;;  %v6411_v58 = vpack.c.bf16 %v391_v41, %v375_v39 }
 0x2fe   :  { %6202 = vmatpush1.bf16.msra.mxu0 %v6201_v21  ;;  %v6405_v21 = vpack.c.bf16 %v326_v7, %v310_v3  ;;  %vm3495_vm3 = vcmp.ge.f32.partialorder %v7035_v12, 0.0  ;;  %v3595_v33 = vmul.f32 %v7035_v12, %v3527_v63  ;;  %v7673_v55 = vsel %vm3493_vm2, %v7033_v5, %v3593_v26  ;;  %v404_v7 = vld [vmem:[#allocation5 + $0x760] sm:$0xff]  ;;  %v439_v26 = vld [vmem:[#allocation5 + $0x878] sm:$0xff] }
 0x2ff   :  { %6394 = vmatpush1.bf16.msra.mxu1 %v6393_v22  ;;  %6204 = vmatprep.subr.bf16.mxu0 %v6203_v23  ;;  %v340_v22 = vld [vmem:[#allocation5 + $0x560] sm:$0xff] }
 0x300   :  { %6396 = vmatprep.subr.bf16.mxu1 %v6395_v30  ;;  %v356_v23 = vld [vmem:[#allocation5 + $0x5e0] sm:$0xff]  ;;  %v358_v30 = vld [vmem:[#allocation5 + $0x5f0] sm:$0xff]  ;;  %v7680_v60 = vsel %vm3495_vm3, %v7035_v12, %v3595_v33  ;;  %v6415_v12 = vpack.c.bf16 %v423_v59, %v407_v29  ;;  %v6417_v33 = vpack.c.bf16 %v422_v15, %v406_v14  ;;  %v551_v14 = vld [vmem:[#allocation5 + $0xbf8] sm:$0xff]  ;;  %vm4399_vm3 = vcmask 130048  }
 0x301   :  { %v6409_v50 = vpack.c.bf16 %v358_v30, %v342_v24  ;;  %v6225_v24 = vpack.c.bf16 %v420_v8, %v404_v7  ;;  %v486_v59 = vld [vmem:[#allocation5 + $0x9f0] sm:$0xff] }
 0x302   :  { %6206 = vmatpush1.bf16.msra.mxu0 %v6205_v43  ;;  %v1731_v43 = vrot.slane %v7611_v16, %v7651_v35  ;;  %v518_v8 = vld [vmem:[#allocation5 + $0xaf0] sm:$0xff] }
 0x303   :  { %6398 = vmatpush1.bf16.msra.mxu1 %v6397_v44  ;;  %6208 = vmatprep.subr.bf16.mxu0 %v6207_v45  ;;  %v1739_v44 = vrot.slane %v7611_v16, %v7654_v20  ;;  %v6217_v45 = vpack.c.bf16 %v356_v23, %v340_v22  ;;  %v3539_v16 = vrot.slane %v7621_v37, %v7648_v19 }
 0x304   :  { %6400 = vmatprep.subr.bf16.mxu1 %v6399_v52  ;;  %v390_v52 = vld [vmem:[#allocation5 + $0x6f0] sm:$0xff] }
 0x305   :  { %v6413_v5 = vpack.c.bf16 %v390_v52, %v374_v48  ;;  %v485_v48 = vld [vmem:[#allocation5 + $0x9e8] sm:$0xff]  ;;  %v487_v52 = vld [vmem:[#allocation5 + $0x9f8] sm:$0xff] }
 0x306   :  { %6210 = vmatpush1.bf16.msra.mxu0 %v6209_v61 }
 0x307   :  { %6402 = vmatpush1.bf16.msra.mxu1 %v6401_v0  ;;  %6212 = vmatprep.subr.bf16.mxu0 %v6211_v34  ;;  %v3543_v34 = vrot.slane %v7621_v37, %v7654_v20 }
 0x308   :  { %6404 = vmatprep.subr.bf16.mxu1 %v6403_v6  ;;  %v6223_v6 = vpack.c.bf16 %v421_v54, %v405_v53 }
 0x30a   :  { %6214 = vmatpush1.bf16.msra.mxu0 %v6213_v18 }
 0x30b   :  { %6406 = vmatpush1.bf16.msra.mxu1 %v6405_v21  ;;  %6216 = vmatprep.subr.bf16.mxu0 %v6215_v38  ;;  %v437_v21 = vld [vmem:[#allocation5 + $0x868] sm:$0xff] }
 0x30c   :  { %v2422_v56 = vpop.f32.mrb[2].mxu0  ;;  %6408 = vmatprep.subr.bf16.mxu1 %v6407_v27  ;;  %v453_v38 = vld [vmem:[#allocation5 + $0x8e8] sm:$0xff]  ;;  %v455_v27 = vld [vmem:[#allocation5 + $0x8f8] sm:$0xff] }
 0x30d   :  { %v7036_v61 = vadd.f32 %v2422_v56, %v1727_v36  ;;  %v2635_v63 = vpop.f32.mrb[2].mxu1  ;;  %v2424_v0 = vpop.f32.mrb[3].mxu0  ;;  %v6227_v41 = vpack.c.bf16 %v453_v38, %v437_v21  ;;  %v6231_v56 = vpack.c.bf16 %v485_v48, %v469_v47  ;;  %v532_v21 = vld [vmem:[#allocation5 + $0xb60] sm:$0xff]  ;;  %v566_v48 = vld [vmem:[#allocation5 + $0xc70] sm:$0xff] }
 0x30e   :  { %v7038_v2 = vadd.f32 %v2635_v63, %v1735_v42  ;;  %v7037_v3 = vadd.f32 %v2424_v0, %v1731_v43  ;;  %v2637_v4 = vpop.f32.mrb[3].mxu1  ;;  %6218 = vmatpush1.bf16.msra.mxu0 %v6217_v45  ;;  %v436_v42 = vld [vmem:[#allocation5 + $0x860] sm:$0xff]  ;;  %v6419_v45 = vpack.c.bf16 %v455_v27, %v439_v26  ;;  %v517_v63 = vld [vmem:[#allocation5 + $0xae8] sm:$0xff]  ;;  %v503_v0 = vld [vmem:[#allocation5 + $0xa78] sm:$0xff] }
 0x30f   :  { %vm3496_vm4 = vcmp.ge.f32.partialorder %v7036_v61, 0.0  ;;  %v3596_v9 = vmul.f32 %v7036_v61, %v3531_v49  ;;  %v7039_v10 = vadd.f32 %v2637_v4, %v1739_v44  ;;  %6410 = vmatpush1.bf16.msra.mxu1 %v6409_v50  ;;  %6220 = vmatprep.subr.bf16.mxu0 %v6219_v51  ;;  %v452_v43 = vld [vmem:[#allocation5 + $0x8e0] sm:$0xff]  ;;  %v438_v44 = vld [vmem:[#allocation5 + $0x870] sm:$0xff]  ;;  %v471_v51 = vld [vmem:[#allocation5 + $0x978] sm:$0xff] }
 0x310   :  { %vm3498_vm5 = vcmp.ge.f32.partialorder %v7038_v2, 0.0  ;;  %v3598_v18 = vmul.f32 %v7038_v2, %v3539_v16  ;;  %vm3497_vm6 = vcmp.ge.f32.partialorder %v7037_v3, 0.0  ;;  %v3597_v37 = vmul.f32 %v7037_v3, %v3535_v57  ;;  %6412 = vmatprep.subr.bf16.mxu1 %v6411_v58  ;;  %v468_v16 = vld [vmem:[#allocation5 + $0x960] sm:$0xff]  ;;  %v470_v58 = vld [vmem:[#allocation5 + $0x970] sm:$0xff]  ;;  %v565_v27 = vld [vmem:[#allocation5 + $0xc68] sm:$0xff] }
 0x311   :  { %v7684_v22 = vsel %vm3496_vm4, %v7036_v61, %v3596_v9  ;;  %vm3499_vm7 = vcmp.ge.f32.partialorder %v7039_v10, 0.0  ;;  %v3599_v23 = vmul.f32 %v7039_v10, %v3543_v34  ;;  %v6229_v53 = vpack.c.bf16 %v452_v43, %v436_v42  ;;  %v484_v57 = vld [vmem:[#allocation5 + $0x9e0] sm:$0xff]  ;;  %v501_v61 = vld [vmem:[#allocation5 + $0xa68] sm:$0xff]  ;;  %v519_v34 = vld [vmem:[#allocation5 + $0xaf8] sm:$0xff] }
 0x312   :  { %v3624_v30 = vmax.f32 %v7657_v25, %v7684_v22  ;;  %v7688_v31 = vsel %vm3498_vm5, %v7038_v2, %v3598_v18  ;;  %v7690_v32 = vsel %vm3497_vm6, %v7037_v3, %v3597_v37  ;;  %6222 = vmatpush1.bf16.msra.mxu0 %v6221_v1  ;;  %v6421_v54 = vpack.c.bf16 %v454_v46, %v438_v44  ;;  %v500_v4 = vld [vmem:[#allocation5 + $0xa60] sm:$0xff]  ;;  %v533_v9 = vld [vmem:[#allocation5 + $0xb68] sm:$0xff]  ;;  %v550_v26 = vld [vmem:[#allocation5 + $0xbf0] sm:$0xff] }
 0x313   :  { %v3626_v36 = vmax.f32 %v7660_v62, %v7688_v31  ;;  %v7694_v39 = vsel %vm3499_vm7, %v7039_v10, %v3599_v23  ;;  %6414 = vmatpush1.bf16.msra.mxu1 %v6413_v5  ;;  %6224 = vmatprep.subr.bf16.mxu0 %v6223_v6  ;;  %v3625_v49 = vmax.f32 %v7673_v55, %v7690_v32  ;;  %v516_v5 = vld [vmem:[#allocation5 + $0xae0] sm:$0xff]  ;;  %v502_v6 = vld [vmem:[#allocation5 + $0xa70] sm:$0xff]  ;;  %v549_v10 = vld [vmem:[#allocation5 + $0xbe8] sm:$0xff]  ;;  %vm7405_vm5 = vmmov 0  }
 0x314   :  { %6416 = vmatprep.subr.bf16.mxu1 %v6415_v12  ;;  %v3627_v50 = vmax.f32 %v7680_v60, %v7694_v39  ;;  %v6423_v29 = vpack.c.bf16 %v487_v52, %v471_v51  ;;  %v6233_v1 = vpack.c.bf16 %v484_v57, %v468_v16  ;;  %v6425_v2 = vpack.c.bf16 %v486_v59, %v470_v58  ;;  %v535_v12 = vld [vmem:[#allocation5 + $0xb78] sm:$0xff]  ;;  %v548_v38 = vld [vmem:[#allocation5 + $0xbe0] sm:$0xff]  ;;  %v534_v23 = vld [vmem:[#allocation5 + $0xb70] sm:$0xff] }
 0x315   :  { %v6235_v3 = vpack.c.bf16 %v517_v63, %v501_v61  ;;  %v6427_v7 = vpack.c.bf16 %v519_v34, %v503_v0  ;;  %v6237_v15 = vpack.c.bf16 %v516_v5, %v500_v4  ;;  %v6429_v18 = vpack.c.bf16 %v518_v8, %v502_v6  ;;  %v583_v42 = vld [vmem:[#allocation5 + $0xcf8] sm:$0xff]  ;;  %v564_v46 = vld [vmem:[#allocation5 + $0xc60] sm:$0xff]  ;;  %v582_v52 = vld [vmem:[#allocation5 + $0xcf0] sm:$0xff] }
 0x316   :  { %6226 = vmatpush1.bf16.msra.mxu0 %v6225_v24  ;;  %v6239_v37 = vpack.c.bf16 %v549_v10, %v533_v9  ;;  %v6431_v24 = vpack.c.bf16 %v551_v14, %v535_v12  ;;  %v6241_v43 = vpack.c.bf16 %v548_v38, %v532_v21  ;;  %v6433_v44 = vpack.c.bf16 %v550_v26, %v534_v23  ;;  %v580_v47 = vld [vmem:[#allocation5 + $0xce0] sm:$0xff]  ;;  %v615_v16 = vld [vmem:[#allocation5 + $0xdf8] sm:$0xff]  ;;  %v598_v63 = vld [vmem:[#allocation5 + $0xd70] sm:$0xff] }
 0x317   :  { %6418 = vmatpush1.bf16.msra.mxu1 %v6417_v33  ;;  %6228 = vmatprep.subr.bf16.mxu0 %v6227_v41  ;;  %v581_v33 = vld [vmem:[#allocation5 + $0xce8] sm:$0xff]  ;;  %v567_v41 = vld [vmem:[#allocation5 + $0xc78] sm:$0xff]  ;;  %v6245_v57 = vpack.c.bf16 %v580_v47, %v564_v46  ;;  %v6437_v58 = vpack.c.bf16 %v582_v52, %v566_v48  ;;  %v596_v59 = vld [vmem:[#allocation5 + $0xd60] sm:$0xff]  ;;  %vm4754_vm7 = vcmask 261120  }
 0x318   :  { %6420 = vmatprep.subr.bf16.mxu1 %v6419_v45  ;;  %v6243_v45 = vpack.c.bf16 %v581_v33, %v565_v27  ;;  %v6435_v51 = vpack.c.bf16 %v583_v42, %v567_v41  ;;  %v612_v61 = vld [vmem:[#allocation5 + $0xde0] sm:$0xff]  ;;  %v614_v34 = vld [vmem:[#allocation5 + $0xdf0] sm:$0xff]  ;;  %v647_v4 = vld [vmem:[#allocation5 + $0xef8] sm:$0xff] }
 0x319   :  { %v6249_v5 = vpack.c.bf16 %v612_v61, %v596_v59  ;;  %v6441_v6 = vpack.c.bf16 %v614_v34, %v598_v63  ;;  %v628_v8 = vld [vmem:[#allocation5 + $0xe60] sm:$0xff]  ;;  %v630_v10 = vld [vmem:[#allocation5 + $0xe70] sm:$0xff]  ;;  %v679_v21 = vld [vmem:[#allocation5 + $0xff8] sm:$0xff] }
 0x31a   :  { %6230 = vmatpush1.bf16.msra.mxu0 %v6229_v53  ;;  %v597_v53 = vld [vmem:[#allocation5 + $0xd68] sm:$0xff]  ;;  %v644_v9 = vld [vmem:[#allocation5 + $0xee0] sm:$0xff]  ;;  %v646_v14 = vld [vmem:[#allocation5 + $0xef0] sm:$0xff] }
 0x31b   :  { %6422 = vmatpush1.bf16.msra.mxu1 %v6421_v54  ;;  %6232 = vmatprep.subr.bf16.mxu0 %v6231_v56  ;;  %v613_v54 = vld [vmem:[#allocation5 + $0xde8] sm:$0xff]  ;;  %v599_v56 = vld [vmem:[#allocation5 + $0xd78] sm:$0xff]  ;;  %v6253_v38 = vpack.c.bf16 %v644_v9, %v628_v8  ;;  %v6445_v23 = vpack.c.bf16 %v646_v14, %v630_v10  ;;  %v660_v26 = vld [vmem:[#allocation5 + $0xf60] sm:$0xff] }
 0x31c   :  { %6424 = vmatprep.subr.bf16.mxu1 %v6423_v29  ;;  %v6247_v29 = vpack.c.bf16 %v613_v54, %v597_v53  ;;  %v6439_v0 = vpack.c.bf16 %v615_v16, %v599_v56  ;;  %v676_v27 = vld [vmem:[#allocation5 + $0xfe0] sm:$0xff]  ;;  %v662_v33 = vld [vmem:[#allocation5 + $0xf70] sm:$0xff]  ;;  %v711_v46 = vld [vmem:[#allocation5 + $0x10f8] sm:$0xff] }
 0x31d   :  { %v678_v42 = vld [vmem:[#allocation5 + $0xff0] sm:$0xff]  ;;  %v6257_v47 = vpack.c.bf16 %v676_v27, %v660_v26  ;;  %v692_v52 = vld [vmem:[#allocation5 + $0x1060] sm:$0xff]  ;;  %v743_v59 = vld [vmem:[#allocation5 + $0x11f8] sm:$0xff] }
 0x31e   :  { %6234 = vmatpush1.bf16.msra.mxu0 %v6233_v1  ;;  %v629_v1 = vld [vmem:[#allocation5 + $0xe68] sm:$0xff]  ;;  %v6449_v48 = vpack.c.bf16 %v678_v42, %v662_v33  ;;  %v708_v53 = vld [vmem:[#allocation5 + $0x10e0] sm:$0xff]  ;;  %v694_v54 = vld [vmem:[#allocation5 + $0x1070] sm:$0xff] }
 0x31f   :  { %6426 = vmatpush1.bf16.msra.mxu1 %v6425_v2  ;;  %6236 = vmatprep.subr.bf16.mxu0 %v6235_v3  ;;  %v645_v2 = vld [vmem:[#allocation5 + $0xee8] sm:$0xff]  ;;  %v631_v3 = vld [vmem:[#allocation5 + $0xe78] sm:$0xff]  ;;  %v710_v16 = vld [vmem:[#allocation5 + $0x10f0] sm:$0xff]  ;;  %v6261_v61 = vpack.c.bf16 %v708_v53, %v692_v52 }
 0x320   :  { %6428 = vmatprep.subr.bf16.mxu1 %v6427_v7  ;;  %v6251_v7 = vpack.c.bf16 %v645_v2, %v629_v1  ;;  %v6443_v12 = vpack.c.bf16 %v647_v4, %v631_v3  ;;  %v6453_v63 = vpack.c.bf16 %v710_v16, %v694_v54  ;;  %v724_v34 = vld [vmem:[#allocation5 + $0x1160] sm:$0xff]  ;;  %v726_v2 = vld [vmem:[#allocation5 + $0x1170] sm:$0xff]  ;;  %v759_v8 = vld [vmem:[#allocation5 + $0x1278] sm:$0xff] }
 0x321   :  { %v740_v1 = vld [vmem:[#allocation5 + $0x11e0] sm:$0xff]  ;;  %v742_v4 = vld [vmem:[#allocation5 + $0x11f0] sm:$0xff]  ;;  %v775_v9 = vld [vmem:[#allocation5 + $0x12f8] sm:$0xff] }
 0x322   :  { %6238 = vmatpush1.bf16.msra.mxu0 %v6237_v15  ;;  %v661_v15 = vld [vmem:[#allocation5 + $0xf68] sm:$0xff]  ;;  %v6265_v10 = vpack.c.bf16 %v740_v1, %v724_v34  ;;  %v791_v27 = vld [vmem:[#allocation5 + $0x1378] sm:$0xff]  ;;  %v3772_v22 = vld [vmem:[%s9023_s4 + $0x440] sm:$0xff] }
 0x323   :  { %6430 = vmatpush1.bf16.msra.mxu1 %v6429_v18  ;;  %6240 = vmatprep.subr.bf16.mxu0 %v6239_v37  ;;  %v677_v18 = vld [vmem:[#allocation5 + $0xfe8] sm:$0xff]  ;;  %v663_v37 = vld [vmem:[#allocation5 + $0xf78] sm:$0xff]  ;;  %v3774_v32 = vld [vmem:[%s9023_s4 + $0x450] sm:$0xff] }
 0x324   :  { %6432 = vmatprep.subr.bf16.mxu1 %v6431_v24  ;;  %v6255_v24 = vpack.c.bf16 %v677_v18, %v661_v15  ;;  %v6447_v41 = vpack.c.bf16 %v679_v21, %v663_v37  ;;  %v756_v15 = vld [vmem:[#allocation5 + $0x1260] sm:$0xff]  ;;  %v758_v37 = vld [vmem:[#allocation5 + $0x1270] sm:$0xff]  ;;  %v6459_v21 = vpack.c.bf16 %v775_v9, %v759_v8  ;;  %v7131_v26 = vld [vmem:[#allocation2 + $0x18] sm:$0xff] }
 0x325   :  { %v772_v18 = vld [vmem:[#allocation5 + $0x12e0] sm:$0xff]  ;;  %v807_v33 = vld [vmem:[#allocation5 + $0x13f8] sm:$0xff]  ;;  %v837_v52 = vld [vmem:[#allocation5 + $0x14e8] sm:$0xff] }
 0x326   :  { %6242 = vmatpush1.bf16.msra.mxu0 %v6241_v43  ;;  %v693_v43 = vld [vmem:[#allocation5 + $0x1068] sm:$0xff]  ;;  %v823_v53 = vld [vmem:[#allocation5 + $0x1478] sm:$0xff]  ;;  %v854_v8 = vld [vmem:[#allocation5 + $0x1570] sm:$0xff] }
 0x327   :  { %6434 = vmatpush1.bf16.msra.mxu1 %v6433_v44  ;;  %6244 = vmatprep.subr.bf16.mxu0 %v6243_v45  ;;  %v709_v44 = vld [vmem:[#allocation5 + $0x10e8] sm:$0xff]  ;;  %v695_v45 = vld [vmem:[#allocation5 + $0x1078] sm:$0xff] }
 0x328   :  { %6436 = vmatprep.subr.bf16.mxu1 %v6435_v51  ;;  %v6259_v51 = vpack.c.bf16 %v709_v44, %v693_v43  ;;  %v6451_v56 = vpack.c.bf16 %v711_v46, %v695_v45  ;;  %v788_v44 = vld [vmem:[#allocation5 + $0x1360] sm:$0xff]  ;;  %v790_v46 = vld [vmem:[#allocation5 + $0x1370] sm:$0xff]  ;;  %v839_v54 = vld [vmem:[#allocation5 + $0x14f8] sm:$0xff] }
 0x329   :  { %v804_v45 = vld [vmem:[#allocation5 + $0x13e0] sm:$0xff]  ;;  %v869_v34 = vld [vmem:[#allocation5 + $0x15e8] sm:$0xff]  ;;  %v855_v1 = vld [vmem:[#allocation5 + $0x1578] sm:$0xff] }
 0x32a   :  { %6246 = vmatpush1.bf16.msra.mxu0 %v6245_v57  ;;  %v725_v57 = vld [vmem:[#allocation5 + $0x1168] sm:$0xff]  ;;  %v3785_v60 = vld [vmem:[%s9023_s4 + $0x4a8] sm:$0xff] }
 0x32b   :  { %6438 = vmatpush1.bf16.msra.mxu1 %v6437_v58  ;;  %6248 = vmatprep.subr.bf16.mxu0 %v6247_v29  ;;  %v741_v58 = vld [vmem:[#allocation5 + $0x11e8] sm:$0xff]  ;;  %v727_v29 = vld [vmem:[#allocation5 + $0x1178] sm:$0xff] }
 0x32c   :  { %6440 = vmatprep.subr.bf16.mxu1 %v6439_v0  ;;  %v6263_v0 = vpack.c.bf16 %v741_v58, %v725_v57  ;;  %v6455_v3 = vpack.c.bf16 %v743_v59, %v727_v29  ;;  %v820_v58 = vld [vmem:[#allocation5 + $0x1460] sm:$0xff]  ;;  %v822_v59 = vld [vmem:[#allocation5 + $0x1470] sm:$0xff]  ;;  %v3787_v39 = vld [vmem:[%s9023_s4 + $0x4b8] sm:$0xff] }
 0x32d   :  { %v836_v29 = vld [vmem:[#allocation5 + $0x14e0] sm:$0xff] }
 0x32e   :  { %6250 = vmatpush1.bf16.msra.mxu0 %v6249_v5  ;;  %v757_v5 = vld [vmem:[#allocation5 + $0x1268] sm:$0xff] }
 0x32f   :  { %6442 = vmatpush1.bf16.msra.mxu1 %v6441_v6  ;;  %6252 = vmatprep.subr.bf16.mxu0 %v6251_v7  ;;  %v773_v6 = vld [vmem:[#allocation5 + $0x12e8] sm:$0xff]  ;;  %v7130_v7 = vld [vmem:[#allocation2] sm:$0xff] }
 0x330   :  { %6444 = vmatprep.subr.bf16.mxu1 %v6443_v12  ;;  %v6457_v12 = vpack.c.bf16 %v742_v4, %v726_v2  ;;  %v6267_v14 = vpack.c.bf16 %v773_v6, %v757_v5  ;;  %v871_v2 = vld [vmem:[#allocation5 + $0x15f8] sm:$0xff]  ;;  %v852_v6 = vld [vmem:[#allocation5 + $0x1560] sm:$0xff] }
 0x331   :  { %v6471_v9 = vpack.c.bf16 %v871_v2, %v855_v1  ;;  %v966_v2 = vld [vmem:[#allocation5 + $0x18f0] sm:$0xff] }
 0x332   :  { %6254 = vmatpush1.bf16.msra.mxu0 %v6253_v38  ;;  %v774_v38 = vld [vmem:[#allocation5 + $0x12f0] sm:$0xff] }
 0x333   :  { %6446 = vmatpush1.bf16.msra.mxu1 %v6445_v23  ;;  %6256 = vmatprep.subr.bf16.mxu0 %v6255_v24  ;;  %v789_v23 = vld [vmem:[#allocation5 + $0x1368] sm:$0xff]  ;;  %v6461_v42 = vpack.c.bf16 %v774_v38, %v758_v37 }
 0x334   :  { %6448 = vmatprep.subr.bf16.mxu1 %v6447_v41  ;;  %v805_v24 = vld [vmem:[#allocation5 + $0x13e8] sm:$0xff]  ;;  %v6269_v41 = vpack.c.bf16 %v772_v18, %v756_v15  ;;  %v887_v15 = vld [vmem:[#allocation5 + $0x1678] sm:$0xff] }
 0x335   :  { %v6271_v43 = vpack.c.bf16 %v805_v24, %v789_v23  ;;  %v903_v18 = vld [vmem:[#allocation5 + $0x16f8] sm:$0xff]  ;;  %v884_v23 = vld [vmem:[#allocation5 + $0x1660] sm:$0xff] }
 0x336   :  { %6258 = vmatpush1.bf16.msra.mxu0 %v6257_v47  ;;  %v6463_v47 = vpack.c.bf16 %v807_v33, %v791_v27  ;;  %v900_v24 = vld [vmem:[#allocation5 + $0x16e0] sm:$0xff]  ;;  %v6475_v27 = vpack.c.bf16 %v903_v18, %v887_v15  ;;  %v902_v33 = vld [vmem:[#allocation5 + $0x16f0] sm:$0xff] }
 0x337   :  { %6450 = vmatpush1.bf16.msra.mxu1 %v6449_v48  ;;  %6260 = vmatprep.subr.bf16.mxu0 %v6259_v51  ;;  %v806_v48 = vld [vmem:[#allocation5 + $0x13f0] sm:$0xff]  ;;  %v821_v51 = vld [vmem:[#allocation5 + $0x1468] sm:$0xff] }
 0x338   :  { %6452 = vmatprep.subr.bf16.mxu1 %v6451_v56  ;;  %v6273_v56 = vpack.c.bf16 %v804_v45, %v788_v44  ;;  %v6465_v16 = vpack.c.bf16 %v806_v48, %v790_v46  ;;  %v6275_v57 = vpack.c.bf16 %v837_v52, %v821_v51  ;;  %v935_v44 = vld [vmem:[#allocation5 + $0x17f8] sm:$0xff]  ;;  %v6285_v45 = vpack.c.bf16 %v900_v24, %v884_v23  ;;  %v916_v48 = vld [vmem:[#allocation5 + $0x1760] sm:$0xff]  ;;  %v918_v52 = vld [vmem:[#allocation5 + $0x1770] sm:$0xff] }
 0x339   :  { %3131 = vmatmul.mubr.f32.vlgmr.msra.gmra.mrb[6].mxu0 %v7130_v7  ;;  %v932_v51 = vld [vmem:[#allocation5 + $0x17e0] sm:$0xff]  ;;  %v998_v18 = vld [vmem:[#allocation5 + $0x19f0] sm:$0xff]  ;;  %v1031_v23 = vld [vmem:[#allocation5 + $0x1af8] sm:$0xff] }
 0x33a   :  { %6262 = vmatpush1.bf16.msra.mxu0 %v6261_v61  ;;  %3344 = vmatmul.mubr.f32.vlgmr.msra.gmra.mrb[6].mxu1 %v7130_v7  ;;  %v6467_v61 = vpack.c.bf16 %v839_v54, %v823_v53  ;;  %v868_v7 = vld [vmem:[#allocation5 + $0x15e0] sm:$0xff]  ;;  %v934_v54 = vld [vmem:[#allocation5 + $0x17f0] sm:$0xff] }
 0x33b   :  { %6454 = vmatpush1.bf16.msra.mxu1 %v6453_v63  ;;  %6264 = vmatprep.subr.bf16.mxu0 %v6263_v0  ;;  %v838_v63 = vld [vmem:[#allocation5 + $0x14f0] sm:$0xff]  ;;  %v853_v0 = vld [vmem:[#allocation5 + $0x1568] sm:$0xff]  ;;  %v6281_v37 = vpack.c.bf16 %v868_v7, %v852_v6  ;;  %v999_v6 = vld [vmem:[#allocation5 + $0x19f8] sm:$0xff] }
 0x33c   :  { %6456 = vmatprep.subr.bf16.mxu1 %v6455_v3  ;;  %3201 = vmatprep.mubr.f32.mxu0 %v7131_v26  ;;  %v6277_v3 = vpack.c.bf16 %v836_v29, %v820_v58  ;;  %v6469_v4 = vpack.c.bf16 %v838_v63, %v822_v59  ;;  %v6279_v5 = vpack.c.bf16 %v869_v34, %v853_v0  ;;  %v967_v58 = vld [vmem:[#allocation5 + $0x18f8] sm:$0xff]  ;;  %v948_v63 = vld [vmem:[#allocation5 + $0x1860] sm:$0xff]  ;;  %v950_v34 = vld [vmem:[#allocation5 + $0x1870] sm:$0xff] }
 0x33d   :  { %3414 = vmatprep.mubr.f32.mxu1 %v7131_v26  ;;  %v886_v26 = vld [vmem:[#allocation5 + $0x1670] sm:$0xff]  ;;  %v6289_v29 = vpack.c.bf16 %v932_v51, %v916_v48  ;;  %v6481_v59 = vpack.c.bf16 %v934_v54, %v918_v52  ;;  %v964_v0 = vld [vmem:[#allocation5 + $0x18e0] sm:$0xff]  ;;  %v1063_v48 = vld [vmem:[#allocation5 + $0x1bf8] sm:$0xff] }
 0x33e   :  { %6266 = vmatpush1.bf16.msra.mxu0 %v6265_v10  ;;  %v870_v10 = vld [vmem:[#allocation5 + $0x15f0] sm:$0xff]  ;;  %v6477_v46 = vpack.c.bf16 %v902_v33, %v886_v26  ;;  %v6293_v7 = vpack.c.bf16 %v964_v0, %v948_v63  ;;  %v1012_v33 = vld [vmem:[#allocation5 + $0x1a60] sm:$0xff]  ;;  %v1095_v63 = vld [vmem:[#allocation5 + $0x1cf8] sm:$0xff] }
 0x33f   :  { %6458 = vmatpush1.bf16.msra.mxu1 %v6457_v12  ;;  %6268 = vmatprep.subr.bf16.mxu0 %v6267_v14  ;;  %v885_v12 = vld [vmem:[#allocation5 + $0x1668] sm:$0xff]  ;;  %v1044_v54 = vld [vmem:[#allocation5 + $0x1b60] sm:$0xff] }
 0x340   :  { %6460 = vmatprep.subr.bf16.mxu1 %v6459_v21  ;;  %v901_v14 = vld [vmem:[#allocation5 + $0x16e8] sm:$0xff]  ;;  %v6473_v21 = vpack.c.bf16 %v870_v10, %v854_v8  ;;  %v6485_v8 = vpack.c.bf16 %v966_v2, %v950_v34  ;;  %v980_v10 = vld [vmem:[#allocation5 + $0x1960] sm:$0xff] }
 0x341   :  { %v6283_v38 = vpack.c.bf16 %v901_v14, %v885_v12  ;;  %v996_v12 = vld [vmem:[#allocation5 + $0x19e0] sm:$0xff]  ;;  %v982_v14 = vld [vmem:[#allocation5 + $0x1970] sm:$0xff] }
 0x342   :  { %6270 = vmatpush1.bf16.msra.mxu0 %v6269_v41  ;;  %v917_v41 = vld [vmem:[#allocation5 + $0x1768] sm:$0xff]  ;;  %v6297_v24 = vpack.c.bf16 %v996_v12, %v980_v10  ;;  %v6489_v26 = vpack.c.bf16 %v998_v18, %v982_v14  ;;  %v1076_v2 = vld [vmem:[#allocation5 + $0x1c60] sm:$0xff]  ;;  %v1127_v10 = vld [vmem:[#allocation5 + $0x1df8] sm:$0xff] }
 0x343   :  { %6462 = vmatpush1.bf16.msra.mxu1 %v6461_v42  ;;  %6272 = vmatprep.subr.bf16.mxu0 %v6271_v43  ;;  %v933_v42 = vld [vmem:[#allocation5 + $0x17e8] sm:$0xff]  ;;  %v919_v43 = vld [vmem:[#allocation5 + $0x1778] sm:$0xff]  ;;  %v1108_v18 = vld [vmem:[#allocation5 + $0x1d60] sm:$0xff] }
 0x344   :  { %6464 = vmatprep.subr.bf16.mxu1 %v6463_v47  ;;  %v6287_v47 = vpack.c.bf16 %v933_v42, %v917_v41  ;;  %v6479_v53 = vpack.c.bf16 %v935_v44, %v919_v43  ;;  %v1028_v41 = vld [vmem:[#allocation5 + $0x1ae0] sm:$0xff]  ;;  %v1014_v42 = vld [vmem:[#allocation5 + $0x1a70] sm:$0xff] }
 0x345   :  { %v1030_v44 = vld [vmem:[#allocation5 + $0x1af0] sm:$0xff]  ;;  %v6301_v51 = vpack.c.bf16 %v1028_v41, %v1012_v33  ;;  %v1159_v33 = vld [vmem:[#allocation5 + $0x1ef8] sm:$0xff] }
 0x346   :  { %6274 = vmatpush1.bf16.msra.mxu0 %v6273_v56  ;;  %v949_v56 = vld [vmem:[#allocation5 + $0x1868] sm:$0xff]  ;;  %v6493_v52 = vpack.c.bf16 %v1030_v44, %v1014_v42  ;;  %v1140_v44 = vld [vmem:[#allocation5 + $0x1e60] sm:$0xff] }
 0x347   :  { %6466 = vmatpush1.bf16.msra.mxu1 %v6465_v16  ;;  %6276 = vmatprep.subr.bf16.mxu0 %v6275_v57  ;;  %v965_v16 = vld [vmem:[#allocation5 + $0x18e8] sm:$0xff]  ;;  %v951_v57 = vld [vmem:[#allocation5 + $0x1878] sm:$0xff] }
 0x348   :  { %6468 = vmatprep.subr.bf16.mxu1 %v6467_v61  ;;  %v6291_v61 = vpack.c.bf16 %v965_v16, %v949_v56  ;;  %v6483_v1 = vpack.c.bf16 %v967_v58, %v951_v57  ;;  %v1060_v56 = vld [vmem:[#allocation5 + $0x1be0] sm:$0xff]  ;;  %v1046_v16 = vld [vmem:[#allocation5 + $0x1b70] sm:$0xff] }
 0x349   :  { %v1062_v58 = vld [vmem:[#allocation5 + $0x1bf0] sm:$0xff]  ;;  %v6305_v0 = vpack.c.bf16 %v1060_v56, %v1044_v54  ;;  %v1191_v54 = vld [vmem:[#allocation5 + $0x1ff8] sm:$0xff] }
 0x34a   :  { %6278 = vmatpush1.bf16.msra.mxu0 %v6277_v3  ;;  %v981_v3 = vld [vmem:[#allocation5 + $0x1968] sm:$0xff]  ;;  %v6497_v34 = vpack.c.bf16 %v1062_v58, %v1046_v16  ;;  %v1172_v58 = vld [vmem:[#allocation5 + $0x1f60] sm:$0xff] }
 0x34b   :  { %6470 = vmatpush1.bf16.msra.mxu1 %v6469_v4  ;;  %6280 = vmatprep.subr.bf16.mxu0 %v6279_v5  ;;  %v997_v4 = vld [vmem:[#allocation5 + $0x19e8] sm:$0xff]  ;;  %v983_v5 = vld [vmem:[#allocation5 + $0x1978] sm:$0xff] }
 0x34c   :  { %6472 = vmatprep.subr.bf16.mxu1 %v6471_v9  ;;  %v6295_v9 = vpack.c.bf16 %v997_v4, %v981_v3  ;;  %v6487_v15 = vpack.c.bf16 %v999_v6, %v983_v5  ;;  %v1092_v3 = vld [vmem:[#allocation5 + $0x1ce0] sm:$0xff]  ;;  %v1078_v4 = vld [vmem:[#allocation5 + $0x1c70] sm:$0xff] }
 0x34d   :  { %v1094_v6 = vld [vmem:[#allocation5 + $0x1cf0] sm:$0xff]  ;;  %v6309_v12 = vpack.c.bf16 %v1092_v3, %v1076_v2  ;;  %v1223_v2 = vld [vmem:[#allocation5 + $0x20f8] sm:$0xff] }
 0x34e   :  { %6282 = vmatpush1.bf16.msra.mxu0 %v6281_v37  ;;  %v1013_v37 = vld [vmem:[#allocation5 + $0x1a68] sm:$0xff]  ;;  %v6501_v14 = vpack.c.bf16 %v1094_v6, %v1078_v4  ;;  %v1204_v6 = vld [vmem:[#allocation5 + $0x2060] sm:$0xff] }
 0x34f   :  { %6474 = vmatpush1.bf16.msra.mxu1 %v6473_v21  ;;  %6284 = vmatprep.subr.bf16.mxu0 %v6283_v38  ;;  %v1029_v21 = vld [vmem:[#allocation5 + $0x1ae8] sm:$0xff]  ;;  %v1015_v38 = vld [vmem:[#allocation5 + $0x1a78] sm:$0xff] }
 0x350   :  { %6476 = vmatprep.subr.bf16.mxu1 %v6475_v27  ;;  %v6299_v27 = vpack.c.bf16 %v1029_v21, %v1013_v37  ;;  %v6491_v43 = vpack.c.bf16 %v1031_v23, %v1015_v38  ;;  %v1124_v37 = vld [vmem:[#allocation5 + $0x1de0] sm:$0xff]  ;;  %v1110_v21 = vld [vmem:[#allocation5 + $0x1d70] sm:$0xff] }
 0x351   :  { %v1126_v23 = vld [vmem:[#allocation5 + $0x1df0] sm:$0xff]  ;;  %v6313_v41 = vpack.c.bf16 %v1124_v37, %v1108_v18  ;;  %v1255_v18 = vld [vmem:[#allocation5 + $0x21f8] sm:$0xff] }
 0x352   :  { %6286 = vmatpush1.bf16.msra.mxu0 %v6285_v45  ;;  %v1045_v45 = vld [vmem:[#allocation5 + $0x1b68] sm:$0xff]  ;;  %v6505_v42 = vpack.c.bf16 %v1126_v23, %v1110_v21  ;;  %v1236_v23 = vld [vmem:[#allocation5 + $0x2160] sm:$0xff] }
 0x353   :  { %6478 = vmatpush1.bf16.msra.mxu1 %v6477_v46  ;;  %6288 = vmatprep.subr.bf16.mxu0 %v6287_v47  ;;  %v1061_v46 = vld [vmem:[#allocation5 + $0x1be8] sm:$0xff]  ;;  %v1047_v47 = vld [vmem:[#allocation5 + $0x1b78] sm:$0xff] }
 0x354   :  { %6480 = vmatprep.subr.bf16.mxu1 %v6479_v53  ;;  %v6303_v53 = vpack.c.bf16 %v1061_v46, %v1045_v45  ;;  %v6495_v57 = vpack.c.bf16 %v1063_v48, %v1047_v47  ;;  %v1156_v45 = vld [vmem:[#allocation5 + $0x1ee0] sm:$0xff]  ;;  %v1142_v46 = vld [vmem:[#allocation5 + $0x1e70] sm:$0xff] }
 0x355   :  { %v1158_v48 = vld [vmem:[#allocation5 + $0x1ef0] sm:$0xff]  ;;  %v6317_v56 = vpack.c.bf16 %v1156_v45, %v1140_v44  ;;  %v1271_v44 = vld [vmem:[#allocation5 + $0x2278] sm:$0xff] }
 0x356   :  { %6290 = vmatpush1.bf16.msra.mxu0 %v6289_v29  ;;  %v1077_v29 = vld [vmem:[#allocation5 + $0x1c68] sm:$0xff]  ;;  %v6509_v16 = vpack.c.bf16 %v1158_v48, %v1142_v46  ;;  %v1287_v45 = vld [vmem:[#allocation5 + $0x22f8] sm:$0xff] }
 0x357   :  { %6482 = vmatpush1.bf16.msra.mxu1 %v6481_v59  ;;  %6292 = vmatprep.subr.bf16.mxu0 %v6291_v61  ;;  %v1093_v59 = vld [vmem:[#allocation5 + $0x1ce8] sm:$0xff]  ;;  %v1079_v61 = vld [vmem:[#allocation5 + $0x1c78] sm:$0xff] }
 0x358   :  { %6484 = vmatprep.subr.bf16.mxu1 %v6483_v1  ;;  %v6307_v1 = vpack.c.bf16 %v1093_v59, %v1077_v29  ;;  %v6499_v5 = vpack.c.bf16 %v1095_v63, %v1079_v61  ;;  %v1188_v29 = vld [vmem:[#allocation5 + $0x1fe0] sm:$0xff]  ;;  %v1174_v59 = vld [vmem:[#allocation5 + $0x1f70] sm:$0xff] }
 0x359   :  { %v1190_v63 = vld [vmem:[#allocation5 + $0x1ff0] sm:$0xff]  ;;  %v6321_v3 = vpack.c.bf16 %v1188_v29, %v1172_v58  ;;  %v7133_v58 = vld [vmem:[#allocation2 + $0x28] sm:$0xff] }
 0x35a   :  { %6294 = vmatpush1.bf16.msra.mxu0 %v6293_v7  ;;  %v1109_v7 = vld [vmem:[#allocation5 + $0x1d68] sm:$0xff]  ;;  %v6513_v4 = vpack.c.bf16 %v1190_v63, %v1174_v59  ;;  %v1303_v29 = vld [vmem:[#allocation5 + $0x2378] sm:$0xff] }
 0x35b   :  { %6486 = vmatpush1.bf16.msra.mxu1 %v6485_v8  ;;  %6296 = vmatprep.subr.bf16.mxu0 %v6295_v9  ;;  %v1125_v8 = vld [vmem:[#allocation5 + $0x1de8] sm:$0xff]  ;;  %v1111_v9 = vld [vmem:[#allocation5 + $0x1d78] sm:$0xff] }
 0x35c   :  { %6488 = vmatprep.subr.bf16.mxu1 %v6487_v15  ;;  %v6311_v15 = vpack.c.bf16 %v1125_v8, %v1109_v7  ;;  %v6503_v38 = vpack.c.bf16 %v1127_v10, %v1111_v9  ;;  %v1220_v7 = vld [vmem:[#allocation5 + $0x20e0] sm:$0xff]  ;;  %v1206_v8 = vld [vmem:[#allocation5 + $0x2070] sm:$0xff]  ;;  %v1319_v59 = vld [vmem:[#allocation5 + $0x23f8] sm:$0xff] }
 0x35d   :  { %v1222_v10 = vld [vmem:[#allocation5 + $0x20f0] sm:$0xff]  ;;  %v6325_v37 = vpack.c.bf16 %v1220_v7, %v1204_v6  ;;  %v1349_v6 = vld [vmem:[#allocation5 + $0x24e8] sm:$0xff]  ;;  %v1335_v7 = vld [vmem:[#allocation5 + $0x2478] sm:$0xff] }
 0x35e   :  { %6298 = vmatpush1.bf16.msra.mxu0 %v6297_v24  ;;  %v1141_v24 = vld [vmem:[#allocation5 + $0x1e68] sm:$0xff]  ;;  %v6517_v21 = vpack.c.bf16 %v1222_v10, %v1206_v8  ;;  %v1351_v8 = vld [vmem:[#allocation5 + $0x24f8] sm:$0xff] }
 0x35f   :  { %6490 = vmatpush1.bf16.msra.mxu1 %v6489_v26  ;;  %6300 = vmatprep.subr.bf16.mxu0 %v6299_v27  ;;  %v1157_v26 = vld [vmem:[#allocation5 + $0x1ee8] sm:$0xff]  ;;  %v1143_v27 = vld [vmem:[#allocation5 + $0x1e78] sm:$0xff] }
 0x360   :  { %6492 = vmatprep.subr.bf16.mxu1 %v6491_v43  ;;  %v6315_v43 = vpack.c.bf16 %v1157_v26, %v1141_v24  ;;  %v6507_v47 = vpack.c.bf16 %v1159_v33, %v1143_v27  ;;  %v1252_v24 = vld [vmem:[#allocation5 + $0x21e0] sm:$0xff]  ;;  %v1238_v26 = vld [vmem:[#allocation5 + $0x2170] sm:$0xff] }
 0x361   :  { %v1254_v33 = vld [vmem:[#allocation5 + $0x21f0] sm:$0xff]  ;;  %v6329_v46 = vpack.c.bf16 %v1252_v24, %v1236_v23  ;;  %v1381_v23 = vld [vmem:[#allocation5 + $0x25e8] sm:$0xff]  ;;  %v1367_v24 = vld [vmem:[#allocation5 + $0x2578] sm:$0xff] }
 0x362   :  { %6302 = vmatpush1.bf16.msra.mxu0 %v6301_v51  ;;  %v1173_v51 = vld [vmem:[#allocation5 + $0x1f68] sm:$0xff] }
 0x363   :  { %6494 = vmatpush1.bf16.msra.mxu1 %v6493_v52  ;;  %6304 = vmatprep.subr.bf16.mxu0 %v6303_v53  ;;  %v1189_v52 = vld [vmem:[#allocation5 + $0x1fe8] sm:$0xff]  ;;  %v1175_v53 = vld [vmem:[#allocation5 + $0x1f78] sm:$0xff] }
 0x364   :  { %6496 = vmatprep.subr.bf16.mxu1 %v6495_v57  ;;  %v6319_v57 = vpack.c.bf16 %v1189_v52, %v1173_v51  ;;  %v6511_v61 = vpack.c.bf16 %v1191_v54, %v1175_v53  ;;  %v1268_v51 = vld [vmem:[#allocation5 + $0x2260] sm:$0xff]  ;;  %v1270_v53 = vld [vmem:[#allocation5 + $0x2270] sm:$0xff]  ;;  %v6523_v54 = vpack.c.bf16 %v1287_v45, %v1271_v44 }
 0x365   :  { %v1284_v52 = vld [vmem:[#allocation5 + $0x22e0] sm:$0xff]  ;;  %v1366_v44 = vld [vmem:[#allocation5 + $0x2570] sm:$0xff] }
 0x366   :  { %6306 = vmatpush1.bf16.msra.mxu0 %v6305_v0  ;;  %v1205_v0 = vld [vmem:[#allocation5 + $0x2068] sm:$0xff] }
 0x367   :  { %6498 = vmatpush1.bf16.msra.mxu1 %v6497_v34  ;;  %6308 = vmatprep.subr.bf16.mxu0 %v6307_v1  ;;  %v1221_v34 = vld [vmem:[#allocation5 + $0x20e8] sm:$0xff]  ;;  %v1207_v1 = vld [vmem:[#allocation5 + $0x2078] sm:$0xff] }
 0x368   :  { %6500 = vmatprep.subr.bf16.mxu1 %v6499_v5  ;;  %v6323_v5 = vpack.c.bf16 %v1221_v34, %v1205_v0  ;;  %v6515_v9 = vpack.c.bf16 %v1223_v2, %v1207_v1  ;;  %v1300_v34 = vld [vmem:[#allocation5 + $0x2360] sm:$0xff]  ;;  %v1302_v2 = vld [vmem:[#allocation5 + $0x2370] sm:$0xff] }
 0x369   :  { %v1316_v1 = vld [vmem:[#allocation5 + $0x23e0] sm:$0xff] }
 0x36a   :  { %6310 = vmatpush1.bf16.msra.mxu0 %v6309_v12  ;;  %v1237_v12 = vld [vmem:[#allocation5 + $0x2168] sm:$0xff] }
 0x36b   :  { %6502 = vmatpush1.bf16.msra.mxu1 %v6501_v14  ;;  %6312 = vmatprep.subr.bf16.mxu0 %v6311_v15  ;;  %v1253_v14 = vld [vmem:[#allocation5 + $0x21e8] sm:$0xff]  ;;  %v1239_v15 = vld [vmem:[#allocation5 + $0x2178] sm:$0xff] }
 0x36c   :  { %6504 = vmatprep.subr.bf16.mxu1 %v6503_v38  ;;  %v6327_v38 = vpack.c.bf16 %v1253_v14, %v1237_v12  ;;  %v6519_v27 = vpack.c.bf16 %v1255_v18, %v1239_v15  ;;  %v1332_v14 = vld [vmem:[#allocation5 + $0x2460] sm:$0xff]  ;;  %v1334_v18 = vld [vmem:[#allocation5 + $0x2470] sm:$0xff] }
 0x36d   :  { %v1348_v15 = vld [vmem:[#allocation5 + $0x24e0] sm:$0xff] }
 0x36e   :  { %6314 = vmatpush1.bf16.msra.mxu0 %v6313_v41  ;;  %v1269_v41 = vld [vmem:[#allocation5 + $0x2268] sm:$0xff] }
 0x36f   :  { %6506 = vmatpush1.bf16.msra.mxu1 %v6505_v42  ;;  %6316 = vmatprep.subr.bf16.mxu0 %v6315_v43  ;;  %v1285_v42 = vld [vmem:[#allocation5 + $0x22e8] sm:$0xff]  ;;  %v7132_v43 = vld [vmem:[#allocation2 + $0x10] sm:$0xff] }
 0x370   :  { %6508 = vmatprep.subr.bf16.mxu1 %v6507_v47  ;;  %v6521_v47 = vpack.c.bf16 %v1254_v33, %v1238_v26  ;;  %v6331_v48 = vpack.c.bf16 %v1285_v42, %v1269_v41  ;;  %v1383_v26 = vld [vmem:[#allocation5 + $0x25f8] sm:$0xff]  ;;  %v1364_v42 = vld [vmem:[#allocation5 + $0x2560] sm:$0xff] }
 0x371   :  { %v6535_v45 = vpack.c.bf16 %v1383_v26, %v1367_v24  ;;  %v1478_v26 = vld [vmem:[#allocation5 + $0x28f0] sm:$0xff] }
 0x372   :  { %6318 = vmatpush1.bf16.msra.mxu0 %v6317_v56  ;;  %v1286_v56 = vld [vmem:[#allocation5 + $0x22f0] sm:$0xff] }
 0x373   :  { %6510 = vmatpush1.bf16.msra.mxu1 %v6509_v16  ;;  %6320 = vmatprep.subr.bf16.mxu0 %v6319_v57  ;;  %v1301_v16 = vld [vmem:[#allocation5 + $0x2368] sm:$0xff]  ;;  %v6525_v63 = vpack.c.bf16 %v1286_v56, %v1270_v53 }
 0x374   :  { %6512 = vmatprep.subr.bf16.mxu1 %v6511_v61  ;;  %v1317_v57 = vld [vmem:[#allocation5 + $0x23e8] sm:$0xff]  ;;  %v6333_v61 = vpack.c.bf16 %v1284_v52, %v1268_v51  ;;  %v1399_v51 = vld [vmem:[#allocation5 + $0x2678] sm:$0xff] }
 0x375   :  { %v6335_v0 = vpack.c.bf16 %v1317_v57, %v1301_v16  ;;  %v1415_v52 = vld [vmem:[#allocation5 + $0x26f8] sm:$0xff]  ;;  %v1396_v16 = vld [vmem:[#allocation5 + $0x2660] sm:$0xff] }
 0x376   :  { %6322 = vmatpush1.bf16.msra.mxu0 %v6321_v3  ;;  %v6527_v3 = vpack.c.bf16 %v1319_v59, %v1303_v29  ;;  %v1412_v57 = vld [vmem:[#allocation5 + $0x26e0] sm:$0xff]  ;;  %v6539_v29 = vpack.c.bf16 %v1415_v52, %v1399_v51  ;;  %v1414_v59 = vld [vmem:[#allocation5 + $0x26f0] sm:$0xff] }
 0x377   :  { %6514 = vmatpush1.bf16.msra.mxu1 %v6513_v4  ;;  %6324 = vmatprep.subr.bf16.mxu0 %v6323_v5  ;;  %v1318_v4 = vld [vmem:[#allocation5 + $0x23f0] sm:$0xff]  ;;  %v1333_v5 = vld [vmem:[#allocation5 + $0x2468] sm:$0xff] }
 0x378   :  { %6516 = vmatprep.subr.bf16.mxu1 %v6515_v9  ;;  %v6337_v9 = vpack.c.bf16 %v1316_v1, %v1300_v34  ;;  %v6529_v10 = vpack.c.bf16 %v1318_v4, %v1302_v2  ;;  %v6339_v12 = vpack.c.bf16 %v1349_v6, %v1333_v5  ;;  %v1447_v34 = vld [vmem:[#allocation5 + $0x27f8] sm:$0xff]  ;;  %v6349_v1 = vpack.c.bf16 %v1412_v57, %v1396_v16  ;;  %v1428_v4 = vld [vmem:[#allocation5 + $0x2760] sm:$0xff]  ;;  %v1430_v6 = vld [vmem:[#allocation5 + $0x2770] sm:$0xff] }
 0x379   :  { %3202 = vmatmul.mubr.f32.vlgmr.msra.gmra.mrb[6].mxu0 %v7132_v43  ;;  %v1444_v5 = vld [vmem:[#allocation5 + $0x27e0] sm:$0xff]  ;;  %v1510_v52 = vld [vmem:[#allocation5 + $0x29f0] sm:$0xff]  ;;  %v1543_v16 = vld [vmem:[#allocation5 + $0x2af8] sm:$0xff] }
 0x37a   :  { %6326 = vmatpush1.bf16.msra.mxu0 %v6325_v37  ;;  %3415 = vmatmul.mubr.f32.vlgmr.msra.gmra.mrb[6].mxu1 %v7132_v43  ;;  %v6531_v37 = vpack.c.bf16 %v1351_v8, %v1335_v7  ;;  %v1380_v43 = vld [vmem:[#allocation5 + $0x25e0] sm:$0xff]  ;;  %v1446_v8 = vld [vmem:[#allocation5 + $0x27f0] sm:$0xff] }
 0x37b   :  { %6518 = vmatpush1.bf16.msra.mxu1 %v6517_v21  ;;  %6328 = vmatprep.subr.bf16.mxu0 %v6327_v38  ;;  %v1350_v21 = vld [vmem:[#allocation5 + $0x24f0] sm:$0xff]  ;;  %v1365_v38 = vld [vmem:[#allocation5 + $0x2568] sm:$0xff]  ;;  %v6345_v53 = vpack.c.bf16 %v1380_v43, %v1364_v42  ;;  %v1511_v42 = vld [vmem:[#allocation5 + $0x29f8] sm:$0xff] }
 0x37c   :  { %6520 = vmatprep.subr.bf16.mxu1 %v6519_v27  ;;  %3272 = vmatprep.mubr.f32.mxu0 %v7133_v58  ;;  %v6341_v27 = vpack.c.bf16 %v1348_v15, %v1332_v14  ;;  %v6533_v33 = vpack.c.bf16 %v1350_v21, %v1334_v18  ;;  %v6343_v41 = vpack.c.bf16 %v1381_v23, %v1365_v38  ;;  %v1479_v14 = vld [vmem:[#allocation5 + $0x28f8] sm:$0xff]  ;;  %v1460_v21 = vld [vmem:[#allocation5 + $0x2860] sm:$0xff]  ;;  %v1462_v23 = vld [vmem:[#allocation5 + $0x2870] sm:$0xff] }
 0x37d   :  { %3485 = vmatprep.mubr.f32.mxu1 %v7133_v58  ;;  %v1398_v58 = vld [vmem:[#allocation5 + $0x2670] sm:$0xff]  ;;  %v6353_v15 = vpack.c.bf16 %v1444_v5, %v1428_v4  ;;  %v6545_v18 = vpack.c.bf16 %v1446_v8, %v1430_v6  ;;  %v1476_v38 = vld [vmem:[#allocation5 + $0x28e0] sm:$0xff]  ;;  %v1575_v4 = vld [vmem:[#allocation5 + $0x2bf8] sm:$0xff] }
 0x37e   :  { %6330 = vmatpush1.bf16.msra.mxu0 %v6329_v46  ;;  %v1382_v46 = vld [vmem:[#allocation5 + $0x25f0] sm:$0xff]  ;;  %v6541_v2 = vpack.c.bf16 %v1414_v59, %v1398_v58  ;;  %v6357_v43 = vpack.c.bf16 %v1476_v38, %v1460_v21  ;;  %v1524_v59 = vld [vmem:[#allocation5 + $0x2a60] sm:$0xff]  ;;  %v1607_v21 = vld [vmem:[#allocation5 + $0x2cf8] sm:$0xff] }
 0x37f   :  { %6522 = vmatpush1.bf16.msra.mxu1 %v6521_v47  ;;  %6332 = vmatprep.subr.bf16.mxu0 %v6331_v48  ;;  %v1397_v47 = vld [vmem:[#allocation5 + $0x2668] sm:$0xff]  ;;  %v1556_v8 = vld [vmem:[#allocation5 + $0x2b60] sm:$0xff] }
 0x380   :  { %6524 = vmatprep.subr.bf16.mxu1 %v6523_v54  ;;  %v1413_v48 = vld [vmem:[#allocation5 + $0x26e8] sm:$0xff]  ;;  %v6537_v54 = vpack.c.bf16 %v1382_v46, %v1366_v44  ;;  %v6549_v44 = vpack.c.bf16 %v1478_v26, %v1462_v23  ;;  %v1492_v46 = vld [vmem:[#allocation5 + $0x2960] sm:$0xff] }
 0x381   :  { %v6347_v56 = vpack.c.bf16 %v1413_v48, %v1397_v47  ;;  %v1508_v47 = vld [vmem:[#allocation5 + $0x29e0] sm:$0xff]  ;;  %v1494_v48 = vld [vmem:[#allocation5 + $0x2970] sm:$0xff] }
 0x382   :  { %6334 = vmatpush1.bf16.msra.mxu0 %v6333_v61  ;;  %v1429_v61 = vld [vmem:[#allocation5 + $0x2768] sm:$0xff]  ;;  %v6361_v57 = vpack.c.bf16 %v1508_v47, %v1492_v46  ;;  %v6553_v58 = vpack.c.bf16 %v1510_v52, %v1494_v48  ;;  %v1588_v26 = vld [vmem:[#allocation5 + $0x2c60] sm:$0xff]  ;;  %v1639_v46 = vld [vmem:[#allocation5 + $0x2df8] sm:$0xff] }
 0x383   :  { %6526 = vmatpush1.bf16.msra.mxu1 %v6525_v63  ;;  %6336 = vmatprep.subr.bf16.mxu0 %v6335_v0  ;;  %v1445_v63 = vld [vmem:[#allocation5 + $0x27e8] sm:$0xff]  ;;  %v1431_v0 = vld [vmem:[#allocation5 + $0x2778] sm:$0xff]  ;;  %v1620_v52 = vld [vmem:[#allocation5 + $0x2d60] sm:$0xff] }
 0x384   :  { %6528 = vmatprep.subr.bf16.mxu1 %v6527_v3  ;;  %v6351_v3 = vpack.c.bf16 %v1445_v63, %v1429_v61  ;;  %v6543_v7 = vpack.c.bf16 %v1447_v34, %v1431_v0  ;;  %v1540_v61 = vld [vmem:[#allocation5 + $0x2ae0] sm:$0xff]  ;;  %v1526_v63 = vld [vmem:[#allocation5 + $0x2a70] sm:$0xff] }
 0x385   :  { %v1542_v34 = vld [vmem:[#allocation5 + $0x2af0] sm:$0xff]  ;;  %v6365_v5 = vpack.c.bf16 %v1540_v61, %v1524_v59  ;;  %v1671_v59 = vld [vmem:[#allocation5 + $0x2ef8] sm:$0xff] }
 0x386   :  { %6338 = vmatpush1.bf16.msra.mxu0 %v6337_v9  ;;  %v1461_v9 = vld [vmem:[#allocation5 + $0x2868] sm:$0xff]  ;;  %v6557_v6 = vpack.c.bf16 %v1542_v34, %v1526_v63  ;;  %v1652_v34 = vld [vmem:[#allocation5 + $0x2e60] sm:$0xff] }
 0x387   :  { %6530 = vmatpush1.bf16.msra.mxu1 %v6529_v10  ;;  %6340 = vmatprep.subr.bf16.mxu0 %v6339_v12  ;;  %v1477_v10 = vld [vmem:[#allocation5 + $0x28e8] sm:$0xff]  ;;  %v1463_v12 = vld [vmem:[#allocation5 + $0x2878] sm:$0xff] }
 0x388   :  { %6532 = vmatprep.subr.bf16.mxu1 %v6531_v37  ;;  %v6355_v37 = vpack.c.bf16 %v1477_v10, %v1461_v9  ;;  %v6547_v24 = vpack.c.bf16 %v1479_v14, %v1463_v12  ;;  %v1572_v9 = vld [vmem:[#allocation5 + $0x2be0] sm:$0xff]  ;;  %v1558_v10 = vld [vmem:[#allocation5 + $0x2b70] sm:$0xff] }
 0x389   :  { %v1574_v14 = vld [vmem:[#allocation5 + $0x2bf0] sm:$0xff]  ;;  %v6369_v38 = vpack.c.bf16 %v1572_v9, %v1556_v8  ;;  %v1703_v8 = vld [vmem:[#allocation5 + $0x2ff8] sm:$0xff] }
 0x38a   :  { %6342 = vmatpush1.bf16.msra.mxu0 %v6341_v27  ;;  %v1493_v27 = vld [vmem:[#allocation5 + $0x2968] sm:$0xff]  ;;  %v6561_v23 = vpack.c.bf16 %v1574_v14, %v1558_v10  ;;  %v1684_v14 = vld [vmem:[#allocation5 + $0x2f60] sm:$0xff] }
 0x38b   :  { %6534 = vmatpush1.bf16.msra.mxu1 %v6533_v33  ;;  %6344 = vmatprep.subr.bf16.mxu0 %v6343_v41  ;;  %v1509_v33 = vld [vmem:[#allocation5 + $0x29e8] sm:$0xff]  ;;  %v1495_v41 = vld [vmem:[#allocation5 + $0x2978] sm:$0xff] }
 0x38c   :  { %6536 = vmatprep.subr.bf16.mxu1 %v6535_v45  ;;  %v6359_v45 = vpack.c.bf16 %v1509_v33, %v1493_v27  ;;  %v6551_v51 = vpack.c.bf16 %v1511_v42, %v1495_v41  ;;  %v1604_v27 = vld [vmem:[#allocation5 + $0x2ce0] sm:$0xff]  ;;  %v1590_v33 = vld [vmem:[#allocation5 + $0x2c70] sm:$0xff] }
 0x38d   :  { %v1606_v42 = vld [vmem:[#allocation5 + $0x2cf0] sm:$0xff]  ;;  %v6373_v47 = vpack.c.bf16 %v1604_v27, %v1588_v26  ;;  %v3643_v26 = vld [vmem:[%s9023_s4 + $0x38] sm:$0xff] }
 0x38e   :  { %6346 = vmatpush1.bf16.msra.mxu0 %v6345_v53  ;;  %v1525_v53 = vld [vmem:[#allocation5 + $0x2a68] sm:$0xff]  ;;  %v6565_v48 = vpack.c.bf16 %v1606_v42, %v1590_v33  ;;  %v3636_v42 = vld [vmem:[%s9023_s4] sm:$0xff] }
 0x38f   :  { %6538 = vmatpush1.bf16.msra.mxu1 %v6537_v54  ;;  %6348 = vmatprep.subr.bf16.mxu0 %v6347_v56  ;;  %v1541_v54 = vld [vmem:[#allocation5 + $0x2ae8] sm:$0xff]  ;;  %v1527_v56 = vld [vmem:[#allocation5 + $0x2a78] sm:$0xff] }
 0x390   :  { %6540 = vmatprep.subr.bf16.mxu1 %v6539_v29  ;;  %v6363_v29 = vpack.c.bf16 %v1541_v54, %v1525_v53  ;;  %v6555_v0 = vpack.c.bf16 %v1543_v16, %v1527_v56  ;;  %v1636_v53 = vld [vmem:[#allocation5 + $0x2de0] sm:$0xff]  ;;  %v1622_v54 = vld [vmem:[#allocation5 + $0x2d70] sm:$0xff] }
 0x391   :  { %v1638_v16 = vld [vmem:[#allocation5 + $0x2df0] sm:$0xff]  ;;  %v6377_v61 = vpack.c.bf16 %v1636_v53, %v1620_v52  ;;  %v3651_v52 = vld [vmem:[%s9023_s4 + $0x78] sm:$0xff] }
 0x392   :  { %6350 = vmatpush1.bf16.msra.mxu0 %v6349_v1  ;;  %v1557_v1 = vld [vmem:[#allocation5 + $0x2b68] sm:$0xff]  ;;  %v6569_v63 = vpack.c.bf16 %v1638_v16, %v1622_v54  ;;  %v3644_v16 = vld [vmem:[%s9023_s4 + $0x40] sm:$0xff] }
 0x393   :  { %6542 = vmatpush1.bf16.msra.mxu1 %v6541_v2  ;;  %6352 = vmatprep.subr.bf16.mxu0 %v6351_v3  ;;  %v1573_v2 = vld [vmem:[#allocation5 + $0x2be8] sm:$0xff]  ;;  %v1559_v3 = vld [vmem:[#allocation5 + $0x2b78] sm:$0xff] }
 0x394   :  { %6544 = vmatprep.subr.bf16.mxu1 %v6543_v7  ;;  %v6367_v7 = vpack.c.bf16 %v1573_v2, %v1557_v1  ;;  %v6559_v12 = vpack.c.bf16 %v1575_v4, %v1559_v3  ;;  %v1668_v1 = vld [vmem:[#allocation5 + $0x2ee0] sm:$0xff]  ;;  %v1654_v2 = vld [vmem:[#allocation5 + $0x2e70] sm:$0xff] }
 0x395   :  { %v1670_v4 = vld [vmem:[#allocation5 + $0x2ef0] sm:$0xff]  ;;  %v6381_v9 = vpack.c.bf16 %v1668_v1, %v1652_v34  ;;  %v3655_v34 = vld [vmem:[%s9023_s4 + $0x98] sm:$0xff] }
 0x396   :  { %6354 = vmatpush1.bf16.msra.mxu0 %v6353_v15  ;;  %v1589_v15 = vld [vmem:[#allocation5 + $0x2c68] sm:$0xff]  ;;  %v6573_v10 = vpack.c.bf16 %v1670_v4, %v1654_v2 }
 0x397   :  { %6546 = vmatpush1.bf16.msra.mxu1 %v6545_v18  ;;  %6356 = vmatprep.subr.bf16.mxu0 %v6355_v37  ;;  %v1605_v18 = vld [vmem:[#allocation5 + $0x2ce8] sm:$0xff]  ;;  %v1591_v37 = vld [vmem:[#allocation5 + $0x2c78] sm:$0xff] }
 0x398   :  { %6548 = vmatprep.subr.bf16.mxu1 %v6547_v24  ;;  %v6371_v24 = vpack.c.bf16 %v1605_v18, %v1589_v15  ;;  %v6563_v41 = vpack.c.bf16 %v1607_v21, %v1591_v37  ;;  %v1700_v15 = vld [vmem:[#allocation5 + $0x2fe0] sm:$0xff]  ;;  %v1686_v18 = vld [vmem:[#allocation5 + $0x2f70] sm:$0xff]  ;;  %v3659_v1 = vld [vmem:[%s9023_s4 + $0xb8] sm:$0xff] }
 0x399   :  { %v1702_v21 = vld [vmem:[#allocation5 + $0x2ff0] sm:$0xff]  ;;  %v6385_v27 = vpack.c.bf16 %v1700_v15, %v1684_v14  ;;  %v3663_v14 = vld [vmem:[%s9023_s4 + $0xd8] sm:$0xff] }
 0x39a   :  { %6358 = vmatpush1.bf16.msra.mxu0 %v6357_v43  ;;  %v1621_v43 = vld [vmem:[#allocation5 + $0x2d68] sm:$0xff]  ;;  %v6577_v33 = vpack.c.bf16 %v1702_v21, %v1686_v18 }
 0x39b   :  { %6550 = vmatpush1.bf16.msra.mxu1 %v6549_v44  ;;  %6360 = vmatprep.subr.bf16.mxu0 %v6359_v45  ;;  %v1637_v44 = vld [vmem:[#allocation5 + $0x2de8] sm:$0xff]  ;;  %v1623_v45 = vld [vmem:[#allocation5 + $0x2d78] sm:$0xff] }
 0x39c   :  { %6552 = vmatprep.subr.bf16.mxu1 %v6551_v51  ;;  %v6375_v51 = vpack.c.bf16 %v1637_v44, %v1621_v43  ;;  %v6567_v56 = vpack.c.bf16 %v1639_v46, %v1623_v45  ;;  %v3640_v43 = vld [vmem:[%s9023_s4 + $0x20] sm:$0xff]  ;;  %v3638_v44 = vld [vmem:[%s9023_s4 + $0x10] sm:$0xff]  ;;  %v3667_v15 = vld [vmem:[%s9023_s4 + $0xf8] sm:$0xff] }
 0x39d   :  { %v3642_v46 = vld [vmem:[%s9023_s4 + $0x30] sm:$0xff]  ;;  %v6581_v53 = vpack.c.bf16 %v3640_v43, %v3636_v42  ;;  %v3671_v42 = vld [vmem:[%s9023_s4 + $0x118] sm:$0xff] }
 0x39e   :  { %6362 = vmatpush1.bf16.msra.mxu0 %v6361_v57  ;;  %v1653_v57 = vld [vmem:[#allocation5 + $0x2e68] sm:$0xff]  ;;  %v6709_v54 = vpack.c.bf16 %v3642_v46, %v3638_v44 }
 0x39f   :  { %6554 = vmatpush1.bf16.msra.mxu1 %v6553_v58  ;;  %6364 = vmatprep.subr.bf16.mxu0 %v6363_v29  ;;  %v1669_v58 = vld [vmem:[#allocation5 + $0x2ee8] sm:$0xff]  ;;  %v1655_v29 = vld [vmem:[#allocation5 + $0x2e78] sm:$0xff] }
 0x3a0   :  { %6556 = vmatprep.subr.bf16.mxu1 %v6555_v0  ;;  %v6379_v0 = vpack.c.bf16 %v1669_v58, %v1653_v57  ;;  %v6571_v3 = vpack.c.bf16 %v1671_v59, %v1655_v29  ;;  %v3648_v57 = vld [vmem:[%s9023_s4 + $0x60] sm:$0xff]  ;;  %v3646_v58 = vld [vmem:[%s9023_s4 + $0x50] sm:$0xff]  ;;  %v3675_v43 = vld [vmem:[%s9023_s4 + $0x138] sm:$0xff] }
 0x3a1   :  { %v3650_v59 = vld [vmem:[%s9023_s4 + $0x70] sm:$0xff]  ;;  %v6585_v2 = vpack.c.bf16 %v3648_v57, %v3644_v16  ;;  %v3679_v16 = vld [vmem:[%s9023_s4 + $0x158] sm:$0xff] }
 0x3a2   :  { %6366 = vmatpush1.bf16.msra.mxu0 %v6365_v5  ;;  %v1685_v5 = vld [vmem:[#allocation5 + $0x2f68] sm:$0xff] }
 0x3a3   :  { %6558 = vmatpush1.bf16.msra.mxu1 %v6557_v6  ;;  %6368 = vmatprep.subr.bf16.mxu0 %v6367_v7  ;;  %v1701_v6 = vld [vmem:[#allocation5 + $0x2fe8] sm:$0xff]  ;;  %v1687_v7 = vld [vmem:[#allocation5 + $0x2f78] sm:$0xff] }
 0x3a4   :  { %6560 = vmatprep.subr.bf16.mxu1 %v6559_v12  ;;  %v6383_v12 = vpack.c.bf16 %v1701_v6, %v1685_v5  ;;  %v6575_v37 = vpack.c.bf16 %v1703_v8, %v1687_v7  ;;  %v3652_v5 = vld [vmem:[%s9023_s4 + $0x80] sm:$0xff]  ;;  %v3654_v7 = vld [vmem:[%s9023_s4 + $0x90] sm:$0xff]  ;;  %v6715_v8 = vpack.c.bf16 %v3659_v1, %v3655_v34  ;;  %v3683_v57 = vld [vmem:[%s9023_s4 + $0x178] sm:$0xff] }
 0x3a5   :  { %v3656_v6 = vld [vmem:[%s9023_s4 + $0xa0] sm:$0xff]  ;;  %v6727_v34 = vpack.c.bf16 %v3683_v57, %v3679_v16  ;;  %v3682_v1 = vld [vmem:[%s9023_s4 + $0x170] sm:$0xff] }
 0x3a6   :  { %6370 = vmatpush1.bf16.msra.mxu0 %v6369_v38  ;;  %v3637_v38 = vld [vmem:[%s9023_s4 + $0x8] sm:$0xff]  ;;  %v6589_v18 = vpack.c.bf16 %v3656_v6, %v3652_v5  ;;  %v3691_v5 = vld [vmem:[%s9023_s4 + $0x1b8] sm:$0xff]  ;;  %v3700_v57 = vld [vmem:[%s9023_s4 + $0x200] sm:$0xff] }
 0x3a7   :  { %6562 = vmatpush1.bf16.msra.mxu1 %v6561_v23  ;;  %6372 = vmatprep.subr.bf16.mxu0 %v6371_v24  ;;  %v3641_v23 = vld [vmem:[%s9023_s4 + $0x28] sm:$0xff]  ;;  %v3639_v24 = vld [vmem:[%s9023_s4 + $0x18] sm:$0xff] }
 0x3a8   :  { %6564 = vmatprep.subr.bf16.mxu1 %v6563_v41  ;;  %v6579_v41 = vpack.c.bf16 %v3641_v23, %v3637_v38  ;;  %v6707_v45 = vpack.c.bf16 %v3643_v26, %v3639_v24  ;;  %v3660_v38 = vld [vmem:[%s9023_s4 + $0xc0] sm:$0xff]  ;;  %v3662_v24 = vld [vmem:[%s9023_s4 + $0xd0] sm:$0xff]  ;;  %v6719_v26 = vpack.c.bf16 %v3667_v15, %v3663_v14 }
 0x3a9   :  { %v3664_v23 = vld [vmem:[%s9023_s4 + $0xe0] sm:$0xff] }
 0x3aa   :  { %6374 = vmatpush1.bf16.msra.mxu0 %v6373_v47  ;;  %v3645_v47 = vld [vmem:[%s9023_s4 + $0x48] sm:$0xff]  ;;  %v6593_v44 = vpack.c.bf16 %v3664_v23, %v3660_v38 }
 0x3ab   :  { %6566 = vmatpush1.bf16.msra.mxu1 %v6565_v48  ;;  %6376 = vmatprep.subr.bf16.mxu0 %v6375_v51  ;;  %v3649_v48 = vld [vmem:[%s9023_s4 + $0x68] sm:$0xff]  ;;  %v3647_v51 = vld [vmem:[%s9023_s4 + $0x58] sm:$0xff] }
 0x3ac   :  { %6568 = vmatprep.subr.bf16.mxu1 %v6567_v56  ;;  %v6583_v56 = vpack.c.bf16 %v3649_v48, %v3645_v47  ;;  %v6711_v29 = vpack.c.bf16 %v3651_v52, %v3647_v51  ;;  %v3668_v47 = vld [vmem:[%s9023_s4 + $0x100] sm:$0xff]  ;;  %v3670_v51 = vld [vmem:[%s9023_s4 + $0x110] sm:$0xff]  ;;  %v6723_v52 = vpack.c.bf16 %v3675_v43, %v3671_v42 }
 0x3ad   :  { %v3672_v48 = vld [vmem:[%s9023_s4 + $0x120] sm:$0xff] }
 0x3ae   :  { %6378 = vmatpush1.bf16.msra.mxu0 %v6377_v61  ;;  %v3653_v61 = vld [vmem:[%s9023_s4 + $0x88] sm:$0xff]  ;;  %v3692_v43 = vld [vmem:[%s9023_s4 + $0x1c0] sm:$0xff] }
 0x3af   :  { %6570 = vmatpush1.bf16.msra.mxu1 %v6569_v63  ;;  %6380 = vmatprep.subr.bf16.mxu0 %v6379_v0  ;;  %v3657_v63 = vld [vmem:[%s9023_s4 + $0xa8] sm:$0xff]  ;;  %v7134_v0 = vld [vmem:[#allocation2 + $0x20] sm:$0xff] }
 0x3b0   :  { %6572 = vmatprep.subr.bf16.mxu1 %v6571_v3  ;;  %v6713_v3 = vpack.c.bf16 %v3650_v59, %v3646_v58  ;;  %v6587_v4 = vpack.c.bf16 %v3657_v63, %v3653_v61  ;;  %v6597_v58 = vpack.c.bf16 %v3672_v48, %v3668_v47  ;;  %v3676_v61 = vld [vmem:[%s9023_s4 + $0x140] sm:$0xff]  ;;  %v3698_v47 = vld [vmem:[%s9023_s4 + $0x1f0] sm:$0xff]  ;;  %v3701_v48 = vld [vmem:[%s9023_s4 + $0x208] sm:$0xff] }
 0x3b1   :  { %v3680_v63 = vld [vmem:[%s9023_s4 + $0x160] sm:$0xff] }
 0x3b2   :  { %6382 = vmatpush1.bf16.msra.mxu0 %v6381_v9  ;;  %v3658_v9 = vld [vmem:[%s9023_s4 + $0xb0] sm:$0xff]  ;;  %v6601_v6 = vpack.c.bf16 %v3680_v63, %v3676_v61  ;;  %v3709_v63 = vld [vmem:[%s9023_s4 + $0x248] sm:$0xff] }
 0x3b3   :  { %6574 = vmatpush1.bf16.msra.mxu1 %v6573_v10  ;;  %6384 = vmatprep.subr.bf16.mxu0 %v6383_v12  ;;  %v3661_v10 = vld [vmem:[%s9023_s4 + $0xc8] sm:$0xff]  ;;  %v3706_v61 = vld [vmem:[%s9023_s4 + $0x230] sm:$0xff] }
 0x3b4   :  { %6576 = vmatprep.subr.bf16.mxu1 %v6575_v37  ;;  %v3665_v12 = vld [vmem:[%s9023_s4 + $0xe8] sm:$0xff]  ;;  %v6717_v37 = vpack.c.bf16 %v3658_v9, %v3654_v7  ;;  %v3684_v9 = vld [vmem:[%s9023_s4 + $0x180] sm:$0xff] }
 0x3b5   :  { %v6591_v21 = vpack.c.bf16 %v3665_v12, %v3661_v10  ;;  %v3688_v10 = vld [vmem:[%s9023_s4 + $0x1a0] sm:$0xff]  ;;  %v3686_v12 = vld [vmem:[%s9023_s4 + $0x190] sm:$0xff] }
 0x3b6   :  { %6386 = vmatpush1.bf16.msra.mxu0 %v6385_v27  ;;  %v3666_v27 = vld [vmem:[%s9023_s4 + $0xf0] sm:$0xff] }
 0x3b7   :  { %6578 = vmatpush1.bf16.msra.mxu1 %v6577_v33  ;;  %6580 = vmatprep.subr.bf16.mxu0 %v6579_v41  ;;  %v3669_v33 = vld [vmem:[%s9023_s4 + $0x108] sm:$0xff] }
 0x3b8   :  { %6708 = vmatprep.subr.bf16.mxu1 %v6707_v45  ;;  %v3673_v41 = vld [vmem:[%s9023_s4 + $0x128] sm:$0xff]  ;;  %v6721_v45 = vpack.c.bf16 %v3666_v27, %v3662_v24  ;;  %v3695_v24 = vld [vmem:[%s9023_s4 + $0x1d8] sm:$0xff] }
 0x3b9   :  { %3273 = vmatmul.mubr.f32.vlgmr.msra.gmra.mrb[6].mxu0 %v7134_v0  ;;  %v6595_v46 = vpack.c.bf16 %v3673_v41, %v3669_v33  ;;  %v6605_v33 = vpack.c.bf16 %v3688_v10, %v3684_v9  ;;  %v3714_v9 = vld [vmem:[%s9023_s4 + $0x270] sm:$0xff]  ;;  %v3717_v10 = vld [vmem:[%s9023_s4 + $0x288] sm:$0xff] }
 0x3ba   :  { %3486 = vmatmul.mubr.f32.vlgmr.msra.gmra.mrb[6].mxu1 %v7134_v0  ;;  %6582 = vmatpush1.bf16.msra.mxu0 %v6581_v53  ;;  %v3674_v53 = vld [vmem:[%s9023_s4 + $0x130] sm:$0xff] }
 0x3bb   :  { %6710 = vmatpush1.bf16.msra.mxu1 %v6709_v54  ;;  %6584 = vmatprep.subr.bf16.mxu0 %v6583_v56  ;;  %v3677_v54 = vld [vmem:[%s9023_s4 + $0x148] sm:$0xff]  ;;  %v3678_v0 = vld [vmem:[%s9023_s4 + $0x150] sm:$0xff] }
 0x3bc   :  { %6712 = vmatprep.subr.bf16.mxu1 %v6711_v29  ;;  %v3681_v56 = vld [vmem:[%s9023_s4 + $0x168] sm:$0xff]  ;;  %v6725_v29 = vpack.c.bf16 %v3674_v53, %v3670_v51  ;;  %v6729_v7 = vpack.c.bf16 %v3682_v1, %v3678_v0  ;;  %v3707_v53 = vld [vmem:[%s9023_s4 + $0x238] sm:$0xff] }
 0x3bd   :  { %v6599_v59 = vpack.c.bf16 %v3681_v56, %v3677_v54  ;;  %v3705_v51 = vld [vmem:[%s9023_s4 + $0x228] sm:$0xff]  ;;  %v3715_v1 = vld [vmem:[%s9023_s4 + $0x278] sm:$0xff] }
 0x3be   :  { %6586 = vmatpush1.bf16.msra.mxu0 %v6585_v2  ;;  %v3685_v2 = vld [vmem:[%s9023_s4 + $0x188] sm:$0xff]  ;;  %v6611_v16 = vpack.c.bf16 %v3705_v51, %v3701_v48 }
 0x3bf   :  { %6714 = vmatpush1.bf16.msra.mxu1 %v6713_v3  ;;  %6588 = vmatprep.subr.bf16.mxu0 %v6587_v4  ;;  %v3689_v3 = vld [vmem:[%s9023_s4 + $0x1a8] sm:$0xff]  ;;  %v3687_v4 = vld [vmem:[%s9023_s4 + $0x198] sm:$0xff] }
 0x3c0   :  { %6716 = vmatprep.subr.bf16.mxu1 %v6715_v8  ;;  %v6603_v8 = vpack.c.bf16 %v3689_v3, %v3685_v2  ;;  %v6731_v15 = vpack.c.bf16 %v3691_v5, %v3687_v4  ;;  %v3713_v0 = vld [vmem:[%s9023_s4 + $0x268] sm:$0xff]  ;;  %v3708_v5 = vld [vmem:[%s9023_s4 + $0x240] sm:$0xff] }
 0x3c1   :  { %v6615_v4 = vpack.c.bf16 %v3713_v0, %v3709_v63 }
 0x3c2   :  { %6590 = vmatpush1.bf16.msra.mxu0 %v6589_v18  ;;  %v3690_v18 = vld [vmem:[%s9023_s4 + $0x1b0] sm:$0xff] }
 0x3c3   :  { %6718 = vmatpush1.bf16.msra.mxu1 %v6717_v37  ;;  %6592 = vmatprep.subr.bf16.mxu0 %v6591_v21  ;;  %v3693_v37 = vld [vmem:[%s9023_s4 + $0x1c8] sm:$0xff]  ;;  %v6733_v41 = vpack.c.bf16 %v3690_v18, %v3686_v12  ;;  %v3723_v18 = vld [vmem:[%s9023_s4 + $0x2b8] sm:$0xff] }
 0x3c4   :  { %6720 = vmatprep.subr.bf16.mxu1 %v6719_v26  ;;  %v3697_v21 = vld [vmem:[%s9023_s4 + $0x1e8] sm:$0xff]  ;;  %v3699_v26 = vld [vmem:[%s9023_s4 + $0x1f8] sm:$0xff] }
 0x3c5   :  { %v6607_v42 = vpack.c.bf16 %v3697_v21, %v3693_v37  ;;  %v3721_v12 = vld [vmem:[%s9023_s4 + $0x2a8] sm:$0xff] }
 0x3c6   :  { %6594 = vmatpush1.bf16.msra.mxu0 %v6593_v44  ;;  %v3696_v44 = vld [vmem:[%s9023_s4 + $0x1e0] sm:$0xff] }
 0x3c7   :  { %6722 = vmatpush1.bf16.msra.mxu1 %v6721_v45  ;;  %6596 = vmatprep.subr.bf16.mxu0 %v6595_v46  ;;  %v3694_v45 = vld [vmem:[%s9023_s4 + $0x1d0] sm:$0xff]  ;;  %v6735_v46 = vpack.c.bf16 %v3699_v26, %v3695_v24  ;;  %v6609_v54 = vpack.c.bf16 %v3696_v44, %v3692_v43  ;;  %v6619_v24 = vpack.c.bf16 %v3721_v12, %v3717_v10  ;;  %v3716_v26 = vld [vmem:[%s9023_s4 + $0x280] sm:$0xff]  ;;  %v3725_v44 = vld [vmem:[%s9023_s4 + $0x2c8] sm:$0xff] }
 0x3c8   :  { %6724 = vmatprep.subr.bf16.mxu1 %v6723_v52  ;;  %v3703_v52 = vld [vmem:[%s9023_s4 + $0x218] sm:$0xff]  ;;  %v6737_v56 = vpack.c.bf16 %v3698_v47, %v3694_v45  ;;  %v3722_v43 = vld [vmem:[%s9023_s4 + $0x2b0] sm:$0xff]  ;;  %v3729_v45 = vld [vmem:[%s9023_s4 + $0x2e8] sm:$0xff] }
 0x3c9   :  { %v3731_v47 = vld [vmem:[%s9023_s4 + $0x2f8] sm:$0xff] }
 0x3ca   :  { %6598 = vmatpush1.bf16.msra.mxu0 %v6597_v58  ;;  %v3704_v58 = vld [vmem:[%s9023_s4 + $0x220] sm:$0xff] }
 0x3cb   :  { %6726 = vmatpush1.bf16.msra.mxu1 %v6725_v29  ;;  %6600 = vmatprep.subr.bf16.mxu0 %v6599_v59  ;;  %v3702_v29 = vld [vmem:[%s9023_s4 + $0x210] sm:$0xff]  ;;  %v6739_v59 = vpack.c.bf16 %v3707_v53, %v3703_v52  ;;  %v6613_v2 = vpack.c.bf16 %v3704_v58, %v3700_v57  ;;  %v6623_v52 = vpack.c.bf16 %v3729_v45, %v3725_v44  ;;  %v3724_v53 = vld [vmem:[%s9023_s4 + $0x2c0] sm:$0xff]  ;;  %v3733_v58 = vld [vmem:[%s9023_s4 + $0x308] sm:$0xff] }
 0x3cc   :  { %v7865_v14 = vpop.f32.mrb[4].mxu0  ;;  %6728 = vmatprep.subr.bf16.mxu1 %v6727_v34  ;;  %v3711_v34 = vld [vmem:[%s9023_s4 + $0x258] sm:$0xff]  ;;  %v6741_v3 = vpack.c.bf16 %v3706_v61, %v3702_v29  ;;  %v3730_v57 = vld [vmem:[%s9023_s4 + $0x2f0] sm:$0xff]  ;;  %v3737_v29 = vld [vmem:[%s9023_s4 + $0x328] sm:$0xff] }
 0x3cd   :  { %v7876_v38 = vpop.f32.mrb[4].mxu1  ;;  %v7878_v23 = vpop.f32.mrb[5].mxu0  ;;  %v3739_v61 = vld [vmem:[%s9023_s4 + $0x338] sm:$0xff] }
 0x3ce   :  { %v7886_v27 = vpop.f32.mrb[5].mxu1  ;;  %6602 = vmatpush1.bf16.msra.mxu0 %v6601_v6  ;;  %v3712_v6 = vld [vmem:[%s9023_s4 + $0x260] sm:$0xff]  ;;  %v3751_v44 = vld [vmem:[%s9023_s4 + $0x398] sm:$0xff] }
 0x3cf   :  { %6730 = vmatpush1.bf16.msra.mxu1 %v6729_v7  ;;  %6604 = vmatprep.subr.bf16.mxu0 %v6603_v8  ;;  %v3710_v7 = vld [vmem:[%s9023_s4 + $0x250] sm:$0xff]  ;;  %v6743_v8 = vpack.c.bf16 %v3715_v1, %v3711_v34  ;;  %v6617_v37 = vpack.c.bf16 %v3712_v6, %v3708_v5  ;;  %v6627_v34 = vpack.c.bf16 %v3737_v29, %v3733_v58  ;;  %v3732_v1 = vld [vmem:[%s9023_s4 + $0x300] sm:$0xff]  ;;  %v3741_v6 = vld [vmem:[%s9023_s4 + $0x348] sm:$0xff] }
 0x3d0   :  { %6732 = vmatprep.subr.bf16.mxu1 %v6731_v15  ;;  %v3719_v15 = vld [vmem:[%s9023_s4 + $0x298] sm:$0xff]  ;;  %v6745_v21 = vpack.c.bf16 %v3714_v9, %v3710_v7  ;;  %v3738_v5 = vld [vmem:[%s9023_s4 + $0x330] sm:$0xff]  ;;  %v3745_v7 = vld [vmem:[%s9023_s4 + $0x368] sm:$0xff] }
 0x3d1   :  { %v3747_v9 = vld [vmem:[%s9023_s4 + $0x378] sm:$0xff] }
 0x3d2   :  { %6606 = vmatpush1.bf16.msra.mxu0 %v6605_v33  ;;  %v3720_v33 = vld [vmem:[%s9023_s4 + $0x2a0] sm:$0xff]  ;;  %v3759_v58 = vld [vmem:[%s9023_s4 + $0x3d8] sm:$0xff] }
 0x3d3   :  { %6734 = vmatpush1.bf16.msra.mxu1 %v6733_v41  ;;  %6608 = vmatprep.subr.bf16.mxu0 %v6607_v42  ;;  %v3718_v41 = vld [vmem:[%s9023_s4 + $0x290] sm:$0xff]  ;;  %v6747_v42 = vpack.c.bf16 %v3723_v18, %v3719_v15  ;;  %v6621_v48 = vpack.c.bf16 %v3720_v33, %v3716_v26  ;;  %v6631_v15 = vpack.c.bf16 %v3745_v7, %v3741_v6  ;;  %v3767_v6 = vld [vmem:[%s9023_s4 + $0x418] sm:$0xff] }
 0x3d4   :  { %6736 = vmatprep.subr.bf16.mxu1 %v6735_v46  ;;  %v3727_v46 = vld [vmem:[%s9023_s4 + $0x2d8] sm:$0xff]  ;;  %v6749_v51 = vpack.c.bf16 %v3722_v43, %v3718_v41  ;;  %v3746_v33 = vld [vmem:[%s9023_s4 + $0x370] sm:$0xff]  ;;  %v3753_v43 = vld [vmem:[%s9023_s4 + $0x3a8] sm:$0xff] }
 0x3d6   :  { %6610 = vmatpush1.bf16.msra.mxu0 %v6609_v54  ;;  %v3728_v54 = vld [vmem:[%s9023_s4 + $0x2e0] sm:$0xff] }
 0x3d7   :  { %6738 = vmatpush1.bf16.msra.mxu1 %v6737_v56  ;;  %6612 = vmatprep.subr.bf16.mxu0 %v6611_v16  ;;  %v3726_v56 = vld [vmem:[%s9023_s4 + $0x2d0] sm:$0xff]  ;;  %v6751_v16 = vpack.c.bf16 %v3731_v47, %v3727_v46  ;;  %v6625_v63 = vpack.c.bf16 %v3728_v54, %v3724_v53  ;;  %v3755_v46 = vld [vmem:[%s9023_s4 + $0x3b8] sm:$0xff]  ;;  %v3748_v47 = vld [vmem:[%s9023_s4 + $0x380] sm:$0xff] }
 0x3d8   :  { %6740 = vmatprep.subr.bf16.mxu1 %v6739_v59  ;;  %v3735_v59 = vld [vmem:[%s9023_s4 + $0x318] sm:$0xff]  ;;  %v6753_v0 = vpack.c.bf16 %v3730_v57, %v3726_v56  ;;  %v3750_v53 = vld [vmem:[%s9023_s4 + $0x390] sm:$0xff]  ;;  %v3761_v57 = vld [vmem:[%s9023_s4 + $0x3e8] sm:$0xff] }
 0x3d9   :  { %v3754_v54 = vld [vmem:[%s9023_s4 + $0x3b0] sm:$0xff] }
 0x3da   :  { %6614 = vmatpush1.bf16.msra.mxu0 %v6613_v2  ;;  %v3736_v2 = vld [vmem:[%s9023_s4 + $0x320] sm:$0xff]  ;;  %v6765_v56 = vpack.c.bf16 %v3754_v54, %v3750_v53 }
 0x3db   :  { %6742 = vmatpush1.bf16.msra.mxu1 %v6741_v3  ;;  %6616 = vmatprep.subr.bf16.mxu0 %v6615_v4  ;;  %v3734_v3 = vld [vmem:[%s9023_s4 + $0x310] sm:$0xff]  ;;  %v6755_v4 = vpack.c.bf16 %v3739_v61, %v3735_v59  ;;  %v6629_v10 = vpack.c.bf16 %v3736_v2, %v3732_v1  ;;  %v3763_v59 = vld [vmem:[%s9023_s4 + $0x3f8] sm:$0xff]  ;;  %v3756_v61 = vld [vmem:[%s9023_s4 + $0x3c0] sm:$0xff] }
 0x3dc   :  { %6744 = vmatprep.subr.bf16.mxu1 %v6743_v8  ;;  %v3743_v8 = vld [vmem:[%s9023_s4 + $0x358] sm:$0xff]  ;;  %v6757_v12 = vpack.c.bf16 %v3738_v5, %v3734_v3  ;;  %v3758_v1 = vld [vmem:[%s9023_s4 + $0x3d0] sm:$0xff]  ;;  %v3769_v5 = vld [vmem:[%s9023_s4 + $0x428] sm:$0xff] }
 0x3dd   :  { %v6759_v18 = vpack.c.bf16 %v3747_v9, %v3743_v8  ;;  %v3762_v2 = vld [vmem:[%s9023_s4 + $0x3f0] sm:$0xff]  ;;  %v3771_v8 = vld [vmem:[%s9023_s4 + $0x438] sm:$0xff] }
 0x3de   :  { %6618 = vmatpush1.bf16.msra.mxu0 %v6617_v37  ;;  %v3740_v37 = vld [vmem:[%s9023_s4 + $0x340] sm:$0xff]  ;;  %v6769_v3 = vpack.c.bf16 %v3762_v2, %v3758_v1  ;;  %v6771_v9 = vpack.c.bf16 %v3771_v8, %v3767_v6 }
 0x3df   :  { %6746 = vmatpush1.bf16.msra.mxu1 %v6745_v21  ;;  %6620 = vmatprep.subr.bf16.mxu0 %v6619_v24  ;;  %v3744_v21 = vld [vmem:[%s9023_s4 + $0x360] sm:$0xff]  ;;  %v3742_v24 = vld [vmem:[%s9023_s4 + $0x350] sm:$0xff] }
 0x3e0   :  { %6748 = vmatprep.subr.bf16.mxu1 %v6747_v42  ;;  %v6633_v26 = vpack.c.bf16 %v3744_v21, %v3740_v37  ;;  %v6761_v41 = vpack.c.bf16 %v3746_v33, %v3742_v24  ;;  %v3749_v42 = vld [vmem:[%s9023_s4 + $0x388] sm:$0xff]  ;;  %v3768_v8 = vld [vmem:[%s9023_s4 + $0x420] sm:$0xff] }
 0x3e1   :  { %v6635_v45 = vpack.c.bf16 %v3753_v43, %v3749_v42 }
 0x3e2   :  { %6622 = vmatpush1.bf16.msra.mxu0 %v6621_v48  ;;  %v3752_v48 = vld [vmem:[%s9023_s4 + $0x3a0] sm:$0xff] }
 0x3e3   :  { %6750 = vmatpush1.bf16.msra.mxu1 %v6749_v51  ;;  %6624 = vmatprep.subr.bf16.mxu0 %v6623_v52  ;;  %v6763_v51 = vpack.c.bf16 %v3755_v46, %v3751_v44  ;;  %v6637_v52 = vpack.c.bf16 %v3752_v48, %v3748_v47 }
 0x3e4   :  { %6752 = vmatprep.subr.bf16.mxu1 %v6751_v16  ;;  %v3757_v16 = vld [vmem:[%s9023_s4 + $0x3c8] sm:$0xff] }
 0x3e5   :  { %v6639_v29 = vpack.c.bf16 %v3761_v57, %v3757_v16 }
 0x3e6   :  { %6626 = vmatpush1.bf16.msra.mxu0 %v6625_v63  ;;  %v3760_v63 = vld [vmem:[%s9023_s4 + $0x3e0] sm:$0xff] }
 0x3e7   :  { %6754 = vmatpush1.bf16.msra.mxu1 %v6753_v0  ;;  %6628 = vmatprep.subr.bf16.mxu0 %v6627_v34  ;;  %v6767_v0 = vpack.c.bf16 %v3763_v59, %v3759_v58  ;;  %v6641_v34 = vpack.c.bf16 %v3760_v63, %v3756_v61 }
 0x3e8   :  { %6756 = vmatprep.subr.bf16.mxu1 %v6755_v4  ;;  %v3765_v4 = vld [vmem:[%s9023_s4 + $0x408] sm:$0xff] }
 0x3e9   :  { %v6643_v7 = vpack.c.bf16 %v3769_v5, %v3765_v4 }
 0x3ea   :  { %6630 = vmatpush1.bf16.msra.mxu0 %v6629_v10  ;;  %v1705_v10 = vld [vmem:[#allocation7 + $0x8] sm:$0xff] }
 0x3eb   :  { %6758 = vmatpush1.bf16.msra.mxu1 %v6757_v12  ;;  %6632 = vmatprep.subr.bf16.mxu0 %v6631_v15  ;;  %v1743_v12 = vrot.slane %v1705_v10, %v7609_v11  ;;  %v3509_v15 = vld [vmem:[#allocation8 + $0x8] sm:$0xff]  ;;  %v1747_v37 = vrot.slane %v1705_v10, %v7619_v28  ;;  %v1759_v44 = vrot.slane %v1705_v10, %v7645_v13 }
 0x3ec   :  { %6760 = vmatprep.subr.bf16.mxu1 %v6759_v18  ;;  %v1751_v18 = vrot.slane %v1705_v10, %v7614_v17  ;;  %v3547_v24 = vrot.slane %v3509_v15, %v7609_v11  ;;  %v3551_v43 = vrot.slane %v3509_v15, %v7619_v28  ;;  %v1767_v47 = vrot.slane %v1705_v10, %v7648_v19 }
 0x3ed   :  { %v7040_v21 = vadd.f32 %v7865_v14, %v1743_v12  ;;  %v7041_v42 = vadd.f32 %v7878_v23, %v1747_v37  ;;  %v1763_v14 = vrot.slane %v1705_v10, %v7651_v35  ;;  %v3559_v48 = vrot.slane %v3509_v15, %v7626_v40 }
 0x3ee   :  { %6634 = vmatpush1.bf16.msra.mxu0 %v6633_v26  ;;  %v1755_v26 = vrot.slane %v1705_v10, %v7626_v40  ;;  %v7042_v33 = vadd.f32 %v7876_v38, %v1751_v18  ;;  %v3563_v38 = vrot.slane %v3509_v15, %v7645_v13  ;;  %v3571_v53 = vrot.slane %v3509_v15, %v7648_v19 }
 0x3ef   :  { %6762 = vmatpush1.bf16.msra.mxu1 %v6761_v41  ;;  %6636 = vmatprep.subr.bf16.mxu0 %v6635_v45  ;;  %v3555_v41 = vrot.slane %v3509_v15, %v7614_v17  ;;  %v3600_v45 = vmul.f32 %v7040_v21, %v3547_v24  ;;  %vm3500_vm8 = vcmp.ge.f32.partialorder %v7040_v21, 0.0  ;;  %v3567_v54 = vrot.slane %v3509_v15, %v7651_v35 }
 0x3f0   :  { %6764 = vmatprep.subr.bf16.mxu1 %v6763_v51  ;;  %v7043_v46 = vadd.f32 %v7886_v27, %v1755_v26  ;;  %v1771_v51 = vrot.slane %v1705_v10, %v7654_v20  ;;  %vm3502_vm9 = vcmp.ge.f32.partialorder %v7042_v33, 0.0  ;;  %vm3501_vm10 = vcmp.ge.f32.partialorder %v7041_v42, 0.0  ;;  %v3770_v10 = vld [vmem:[%s9023_s4 + $0x430] sm:$0xff] }
 0x3f1   :  { %v3602_v23 = vmul.f32 %v7042_v33, %v3555_v41  ;;  %v3601_v27 = vmul.f32 %v7041_v42, %v3551_v43  ;;  %v3575_v58 = vrot.slane %v3509_v15, %v7654_v20  ;;  %v3764_v20 = vld [vmem:[%s9023_s4 + $0x400] sm:$0xff]  ;;  %v3775_v41 = vld [vmem:[%s9023_s4 + $0x458] sm:$0xff] }
 0x3f2   :  { %6638 = vmatpush1.bf16.msra.mxu0 %v6637_v52  ;;  %vm3503_vm11 = vcmp.ge.f32.partialorder %v7043_v46, 0.0  ;;  %v3603_v63 = vmul.f32 %v7043_v46, %v3559_v48  ;;  %v3784_v48 = vld [vmem:[%s9023_s4 + $0x4a0] sm:$0xff] }
 0x3f3   :  { %6766 = vmatpush1.bf16.msra.mxu1 %v6765_v56  ;;  %6640 = vmatprep.subr.bf16.mxu0 %v6639_v29  ;;  %v3616_v29 = vsel %vm3500_vm8, %v7040_v21, %v3600_v45  ;;  %v3618_v1 = vsel %vm3502_vm9, %v7042_v33, %v3602_v23  ;;  %v3617_v4 = vsel %vm3501_vm10, %v7041_v42, %v3601_v27  ;;  %v3773_v21 = vld [vmem:[%s9023_s4 + $0x448] sm:$0xff]  ;;  %v3779_v42 = vld [vmem:[%s9023_s4 + $0x478] sm:$0xff]  ;;  %v3782_v23 = vld [vmem:[%s9023_s4 + $0x490] sm:$0xff]  ;;  %vm4924_vm10 = vcmask 72704  }
 0x3f4   :  { %6768 = vmatprep.subr.bf16.mxu1 %v6767_v0  ;;  %v3619_v12 = vsel %vm3503_vm11, %v7043_v46, %v3603_v63  ;;  %v3777_v33 = vld [vmem:[%s9023_s4 + $0x468] sm:$0xff]  ;;  %v6775_v31 = vpack.c.bf16 %v3779_v42, %v3775_v41  ;;  %v3791_v27 = vld [vmem:[%s9023_s4 + $0x4d8] sm:$0xff]  ;;  %v3794_v63 = vld [vmem:[%s9023_s4 + $0x4f0] sm:$0xff]  ;;  %vm4931_vm11 = vcmask 146504  }
 0x3f5   :  { %v3781_v46 = vld [vmem:[%s9023_s4 + $0x488] sm:$0xff]  ;;  %v6647_v62 = vpack.c.bf16 %v3777_v33, %v3773_v21  ;;  %v3808_v21 = vld [vmem:[%s9023_s4 + $0x560] sm:$0xff]  ;;  %v3806_v33 = vld [vmem:[%s9023_s4 + $0x550] sm:$0xff] }
 0x3f6   :  { %6642 = vmatpush1.bf16.msra.mxu0 %v6641_v34  ;;  %v3810_v41 = vld [vmem:[%s9023_s4 + $0x570] sm:$0xff]  ;;  %v3813_v42 = vld [vmem:[%s9023_s4 + $0x588] sm:$0xff] }
 0x3f7   :  { %6770 = vmatpush1.bf16.msra.mxu1 %v6769_v3  ;;  %6644 = vmatprep.subr.bf16.mxu0 %v6643_v7 }
 0x3f8   :  { %6772 = vmatprep.subr.bf16.mxu1 %v6771_v9  ;;  %v3766_v9 = vld [vmem:[%s9023_s4 + $0x410] sm:$0xff] }
 0x3f9   :  { %v6773_v25 = vpack.c.bf16 %v3770_v10, %v3766_v9  ;;  %v3809_v9 = vld [vmem:[%s9023_s4 + $0x568] sm:$0xff]  ;;  %v3807_v10 = vld [vmem:[%s9023_s4 + $0x558] sm:$0xff] }
 0x48c   :  { %v3274_v52 = vpop.f32.mrb[6].mxu0 }
 0x48d   :  { %v7044_v56 = vadd.f32 %v3274_v52, %v1759_v44  ;;  %v3487_v16 = vpop.f32.mrb[6].mxu1  ;;  %v3276_v57 = vpop.f32.mrb[7].mxu0  ;;  %v6645_v44 = vpack.c.bf16 %v3768_v8, %v3764_v20  ;;  %v3786_v52 = vld [vmem:[%s9023_s4 + $0x4b0] sm:$0xff]  ;;  %v3800_v20 = vld [vmem:[%s9023_s4 + $0x520] sm:$0xff]  ;;  %v3805_v8 = vld [vmem:[%s9023_s4 + $0x548] sm:$0xff] }
 0x48e   :  { %v7046_v59 = vadd.f32 %v3487_v16, %v1767_v47  ;;  %v7045_v13 = vadd.f32 %v3276_v57, %v1763_v14  ;;  %v3489_v61 = vpop.f32.mrb[7].mxu1  ;;  %v3780_v14 = vld [vmem:[%s9023_s4 + $0x480] sm:$0xff]  ;;  %v6781_v57 = vpack.c.bf16 %v3786_v52, %v3782_v23  ;;  %v3822_v52 = vld [vmem:[%s9023_s4 + $0x5d0] sm:$0xff] }
 0x48f   :  { %vm3504_vm12 = vcmp.ge.f32.partialorder %v7044_v56, 0.0  ;;  %v3604_v0 = vmul.f32 %v7044_v56, %v3563_v38  ;;  %v7047_v34 = vadd.f32 %v3489_v61, %v1771_v51  ;;  %v6651_v38 = vpack.c.bf16 %v3785_v60, %v3781_v46  ;;  %v3790_v61 = vld [vmem:[%s9023_s4 + $0x4d0] sm:$0xff]  ;;  %v3821_v60 = vld [vmem:[%s9023_s4 + $0x5c8] sm:$0xff] }
 0x490   :  { %vm3506_vm13 = vcmp.ge.f32.partialorder %v7046_v59, 0.0  ;;  %v3606_v19 = vmul.f32 %v7046_v59, %v3571_v53  ;;  %vm3505_vm14 = vcmp.ge.f32.partialorder %v7045_v13, 0.0  ;;  %v3605_v35 = vmul.f32 %v7045_v13, %v3567_v54  ;;  %v3789_v53 = vld [vmem:[%s9023_s4 + $0x4c8] sm:$0xff] }
 0x491   :  { %v3620_v2 = vsel %vm3504_vm12, %v7044_v56, %v3604_v0  ;;  %vm3507_vm15 = vcmp.ge.f32.partialorder %v7047_v34, 0.0  ;;  %v3607_v3 = vmul.f32 %v7047_v34, %v3575_v58  ;;  %v3793_v54 = vld [vmem:[%s9023_s4 + $0x4e8] sm:$0xff]  ;;  %v3795_v56 = vld [vmem:[%s9023_s4 + $0x4f8] sm:$0xff]  ;;  %v6653_v16 = vpack.c.bf16 %v3784_v48, %v3780_v14  ;;  %v3788_v58 = vld [vmem:[%s9023_s4 + $0x4c0] sm:$0xff] }
 0x492   :  { %v3628_v5 = vmax.f32 %v3616_v29, %v3620_v2  ;;  %v3622_v6 = vsel %vm3506_vm13, %v7046_v59, %v3606_v19  ;;  %v3621_v7 = vsel %vm3505_vm14, %v7045_v13, %v3605_v35  ;;  %v3792_v29 = vld [vmem:[%s9023_s4 + $0x4e0] sm:$0xff]  ;;  %v6655_v59 = vpack.c.bf16 %v3793_v54, %v3789_v53  ;;  %v3797_v0 = vld [vmem:[%s9023_s4 + $0x508] sm:$0xff]  ;;  %v3799_v19 = vld [vmem:[%s9023_s4 + $0x518] sm:$0xff] }
 0x493   :  { %v3630_v15 = vmax.f32 %v3618_v1, %v3622_v6  ;;  %v3623_v18 = vsel %vm3507_vm15, %v7047_v34, %v3607_v3  ;;  %v3629_v37 = vmax.f32 %v3617_v4, %v3621_v7  ;;  %v6783_v13 = vpack.c.bf16 %v3795_v56, %v3791_v27  ;;  %v3801_v34 = vld [vmem:[%s9023_s4 + $0x528] sm:$0xff]  ;;  %v3803_v35 = vld [vmem:[%s9023_s4 + $0x538] sm:$0xff]  ;;  %v3796_v3 = vld [vmem:[%s9023_s4 + $0x500] sm:$0xff] }
 0x494   :  { %v3632_v24 = vmax.f32 %v3624_v30, %v3628_v5  ;;  %v3631_v26 = vmax.f32 %v3619_v12, %v3623_v18  ;;  %v3776_v30 = vld [vmem:[%s9023_s4 + $0x460] sm:$0xff]  ;;  %v6657_v1 = vpack.c.bf16 %v3792_v29, %v3788_v58  ;;  %v6785_v2 = vpack.c.bf16 %v3794_v63, %v3790_v61  ;;  %v3798_v6 = vld [vmem:[%s9023_s4 + $0x510] sm:$0xff]  ;;  %v3811_v12 = vld [vmem:[%s9023_s4 + $0x578] sm:$0xff] }
 0x495   :  { %v3633_v43 = vmax.f32 %v3625_v49, %v3629_v37  ;;  %v8166_v45 = vmax.f32 %v3626_v36, %v3630_v15  ;;  %v3778_v49 = vld [vmem:[%s9023_s4 + $0x470] sm:$0xff]  ;;  %v3783_v36 = vld [vmem:[%s9023_s4 + $0x498] sm:$0xff]  ;;  %v6659_v4 = vpack.c.bf16 %v3801_v34, %v3797_v0  ;;  %v6787_v5 = vpack.c.bf16 %v3803_v35, %v3799_v19  ;;  %v3804_v37 = vld [vmem:[%s9023_s4 + $0x540] sm:$0xff] }
 0x496   :  { %v3635_v55 = vmax.f32 %v3627_v50, %v3631_v26  ;;  %v6649_v50 = vpack.c.bf16 %v3776_v30, %v3772_v22  ;;  %v6777_v47 = vpack.c.bf16 %v3778_v49, %v3774_v32  ;;  %v6779_v51 = vpack.c.bf16 %v3787_v39, %v3783_v36  ;;  %v3802_v7 = vld [vmem:[%s9023_s4 + $0x530] sm:$0xff]  ;;  %v3816_v32 = vld [vmem:[%s9023_s4 + $0x5a0] sm:$0xff]  ;;  %v3825_v36 = vld [vmem:[%s9023_s4 + $0x5e8] sm:$0xff] }
 0x497   :  { %3978 = vmatprep.mubr.f32.mxu0 %v3633_v43  ;;  %4120 = vmatprep.mubr.f32.mxu1 %v3633_v43  ;;  %v6661_v15 = vpack.c.bf16 %v3800_v20, %v3796_v3  ;;  %v6789_v18 = vpack.c.bf16 %v3802_v7, %v3798_v6  ;;  %v6791_v26 = vpack.c.bf16 %v3811_v12, %v3807_v10  ;;  %v3817_v43 = vld [vmem:[%s9023_s4 + $0x5a8] sm:$0xff]  ;;  %v3823_v39 = vld [vmem:[%s9023_s4 + $0x5d8] sm:$0xff]  ;;  %v3820_v48 = vld [vmem:[%s9023_s4 + $0x5c0] sm:$0xff] }
 0x498   :  { %3979 = vmatmul.mubr.f32.vlgmr.msra.gmra.mrb[8].mxu0 %v3632_v24  ;;  %4121 = vmatmul.mubr.f32.vlgmr.msra.gmra.mrb[8].mxu1 %v3632_v24  ;;  %v6663_v24 = vpack.c.bf16 %v3809_v9, %v3805_v8  ;;  %v6665_v22 = vpack.c.bf16 %v3808_v21, %v3804_v37  ;;  %v6793_v30 = vpack.c.bf16 %v3810_v41, %v3806_v33  ;;  %v3826_v53 = vld [vmem:[%s9023_s4 + $0x5f0] sm:$0xff]  ;;  %v3829_v54 = vld [vmem:[%s9023_s4 + $0x608] sm:$0xff]  ;;  %v3831_v56 = vld [vmem:[%s9023_s4 + $0x618] sm:$0xff] }
 0x499   :  { %6646 = vmatpush1.bf16.msra.mxu0 %v6645_v44  ;;  %6774 = vmatpush1.bf16.msra.mxu1 %v6773_v25  ;;  %v3815_v44 = vld [vmem:[%s9023_s4 + $0x598] sm:$0xff]  ;;  %v6667_v49 = vpack.c.bf16 %v3817_v43, %v3813_v42  ;;  %v3833_v27 = vld [vmem:[%s9023_s4 + $0x628] sm:$0xff]  ;;  %v6801_v58 = vpack.c.bf16 %v3826_v53, %v3822_v52  ;;  %v3828_v29 = vld [vmem:[%s9023_s4 + $0x600] sm:$0xff] }
 0x49a   :  { %4049 = vmatprep.mubr.f32.mxu0 %v3635_v55  ;;  %4191 = vmatprep.mubr.f32.mxu1 %v3635_v55  ;;  %v3819_v25 = vld [vmem:[%s9023_s4 + $0x5b8] sm:$0xff]  ;;  %v3812_v55 = vld [vmem:[%s9023_s4 + $0x580] sm:$0xff]  ;;  %v3830_v63 = vld [vmem:[%s9023_s4 + $0x610] sm:$0xff] }
 0x49b   :  { %6648 = vmatprep.subr.bf16.mxu0 %v6647_v62  ;;  %6776 = vmatprep.subr.bf16.mxu1 %v6775_v31  ;;  %v6795_v46 = vpack.c.bf16 %v3819_v25, %v3815_v44  ;;  %v3814_v62 = vld [vmem:[%s9023_s4 + $0x590] sm:$0xff]  ;;  %v3837_v34 = vld [vmem:[%s9023_s4 + $0x648] sm:$0xff]  ;;  %v3839_v35 = vld [vmem:[%s9023_s4 + $0x658] sm:$0xff] }
 0x49c   :  { %v3818_v31 = vld [vmem:[%s9023_s4 + $0x5b0] sm:$0xff]  ;;  %v3841_v19 = vld [vmem:[%s9023_s4 + $0x668] sm:$0xff]  ;;  %v3836_v20 = vld [vmem:[%s9023_s4 + $0x640] sm:$0xff] }
 0x49d   :  { %6650 = vmatpush1.bf16.msra.mxu0 %v6649_v50  ;;  %6778 = vmatpush1.bf16.msra.mxu1 %v6777_v47  ;;  %v3827_v50 = vld [vmem:[%s9023_s4 + $0x5f8] sm:$0xff]  ;;  %v6669_v47 = vpack.c.bf16 %v3816_v32, %v3812_v55  ;;  %v6797_v14 = vpack.c.bf16 %v3818_v31, %v3814_v62  ;;  %v3834_v0 = vld [vmem:[%s9023_s4 + $0x630] sm:$0xff]  ;;  %v3845_v9 = vld [vmem:[%s9023_s4 + $0x688] sm:$0xff] }
 0x49e   :  { %6652 = vmatprep.subr.bf16.mxu0 %v6651_v38  ;;  %6780 = vmatprep.subr.bf16.mxu1 %v6779_v51  ;;  %v3824_v38 = vld [vmem:[%s9023_s4 + $0x5e0] sm:$0xff]  ;;  %v6671_v51 = vpack.c.bf16 %v3825_v36, %v3821_v60  ;;  %v6799_v23 = vpack.c.bf16 %v3827_v50, %v3823_v39  ;;  %v6805_v3 = vpack.c.bf16 %v3834_v0, %v3830_v63  ;;  %v3838_v7 = vld [vmem:[%s9023_s4 + $0x650] sm:$0xff]  ;;  %v3849_v10 = vld [vmem:[%s9023_s4 + $0x6a8] sm:$0xff] }
 0x49f   :  { %v3842_v8 = vld [vmem:[%s9023_s4 + $0x670] sm:$0xff]  ;;  %v3847_v12 = vld [vmem:[%s9023_s4 + $0x698] sm:$0xff]  ;;  %v3844_v21 = vld [vmem:[%s9023_s4 + $0x680] sm:$0xff] }
 0x4a0   :  { %v6809_v37 = vpack.c.bf16 %v3842_v8, %v3838_v7  ;;  %v3846_v41 = vld [vmem:[%s9023_s4 + $0x690] sm:$0xff]  ;;  %v3853_v43 = vld [vmem:[%s9023_s4 + $0x6c8] sm:$0xff]  ;;  %v3855_v25 = vld [vmem:[%s9023_s4 + $0x6d8] sm:$0xff] }
 0x4a1   :  { %6654 = vmatpush1.bf16.msra.mxu0 %v6653_v16  ;;  %6782 = vmatpush1.bf16.msra.mxu1 %v6781_v57  ;;  %v3835_v16 = vld [vmem:[%s9023_s4 + $0x638] sm:$0xff]  ;;  %v6673_v57 = vpack.c.bf16 %v3824_v38, %v3820_v48  ;;  %v3850_v42 = vld [vmem:[%s9023_s4 + $0x6b0] sm:$0xff]  ;;  %v3857_v44 = vld [vmem:[%s9023_s4 + $0x6e8] sm:$0xff] }
 0x4a2   :  { %6656 = vmatprep.subr.bf16.mxu0 %v6655_v59  ;;  %6784 = vmatprep.subr.bf16.mxu1 %v6783_v13  ;;  %v3832_v59 = vld [vmem:[%s9023_s4 + $0x620] sm:$0xff]  ;;  %v6675_v13 = vpack.c.bf16 %v3833_v27, %v3829_v54  ;;  %v6803_v61 = vpack.c.bf16 %v3835_v16, %v3831_v56  ;;  %v6813_v55 = vpack.c.bf16 %v3850_v42, %v3846_v41  ;;  %v3854_v31 = vld [vmem:[%s9023_s4 + $0x6d0] sm:$0xff]  ;;  %v3861_v36 = vld [vmem:[%s9023_s4 + $0x708] sm:$0xff] }
 0x4a3   :  { %v3852_v32 = vld [vmem:[%s9023_s4 + $0x6c0] sm:$0xff]  ;;  %v3858_v60 = vld [vmem:[%s9023_s4 + $0x6f0] sm:$0xff]  ;;  %v3865_v39 = vld [vmem:[%s9023_s4 + $0x728] sm:$0xff] }
 0x4a4   :  { %v3863_v50 = vld [vmem:[%s9023_s4 + $0x718] sm:$0xff]  ;;  %v6817_v48 = vpack.c.bf16 %v3858_v60, %v3854_v31  ;;  %v3860_v38 = vld [vmem:[%s9023_s4 + $0x700] sm:$0xff]  ;;  %v3862_v53 = vld [vmem:[%s9023_s4 + $0x710] sm:$0xff] }
 0x4a5   :  { %6658 = vmatpush1.bf16.msra.mxu0 %v6657_v1  ;;  %6786 = vmatpush1.bf16.msra.mxu1 %v6785_v2  ;;  %v3843_v1 = vld [vmem:[%s9023_s4 + $0x678] sm:$0xff]  ;;  %v6677_v2 = vpack.c.bf16 %v3832_v59, %v3828_v29  ;;  %v3866_v54 = vld [vmem:[%s9023_s4 + $0x730] sm:$0xff]  ;;  %v3869_v27 = vld [vmem:[%s9023_s4 + $0x748] sm:$0xff] }
 0x4a6   :  { %6660 = vmatprep.subr.bf16.mxu0 %v6659_v4  ;;  %6788 = vmatprep.subr.bf16.mxu1 %v6787_v5  ;;  %v3840_v4 = vld [vmem:[%s9023_s4 + $0x660] sm:$0xff]  ;;  %v6679_v5 = vpack.c.bf16 %v3841_v19, %v3837_v34  ;;  %v6807_v6 = vpack.c.bf16 %v3843_v1, %v3839_v35  ;;  %v3873_v56 = vld [vmem:[%s9023_s4 + $0x768] sm:$0xff]  ;;  %v3871_v16 = vld [vmem:[%s9023_s4 + $0x758] sm:$0xff]  ;;  %v6821_v29 = vpack.c.bf16 %v3866_v54, %v3862_v53 }
 0x4a7   :  { %v3868_v59 = vld [vmem:[%s9023_s4 + $0x740] sm:$0xff]  ;;  %v3870_v0 = vld [vmem:[%s9023_s4 + $0x750] sm:$0xff]  ;;  %v3877_v19 = vld [vmem:[%s9023_s4 + $0x788] sm:$0xff] }
 0x4a8   :  { %v3874_v34 = vld [vmem:[%s9023_s4 + $0x770] sm:$0xff]  ;;  %v3881_v35 = vld [vmem:[%s9023_s4 + $0x7a8] sm:$0xff]  ;;  %v3879_v1 = vld [vmem:[%s9023_s4 + $0x798] sm:$0xff] }
 0x4a9   :  { %6662 = vmatpush1.bf16.msra.mxu0 %v6661_v15  ;;  %6790 = vmatpush1.bf16.msra.mxu1 %v6789_v18  ;;  %v3851_v15 = vld [vmem:[%s9023_s4 + $0x6b8] sm:$0xff]  ;;  %v6681_v18 = vpack.c.bf16 %v3840_v4, %v3836_v20  ;;  %v6825_v20 = vpack.c.bf16 %v3874_v34, %v3870_v0  ;;  %v3876_v4 = vld [vmem:[%s9023_s4 + $0x780] sm:$0xff]  ;;  %v3878_v8 = vld [vmem:[%s9023_s4 + $0x790] sm:$0xff] }
 0x4aa   :  { %6664 = vmatprep.subr.bf16.mxu0 %v6663_v24  ;;  %6792 = vmatprep.subr.bf16.mxu1 %v6791_v26  ;;  %v3848_v24 = vld [vmem:[%s9023_s4 + $0x6a0] sm:$0xff]  ;;  %v6683_v26 = vpack.c.bf16 %v3849_v10, %v3845_v9  ;;  %v6811_v33 = vpack.c.bf16 %v3851_v15, %v3847_v12  ;;  %v3882_v9 = vld [vmem:[%s9023_s4 + $0x7b0] sm:$0xff]  ;;  %v3885_v10 = vld [vmem:[%s9023_s4 + $0x7c8] sm:$0xff] }
 0x4ab   :  { %v3889_v12 = vld [vmem:[%s9023_s4 + $0x7e8] sm:$0xff]  ;;  %v3887_v15 = vld [vmem:[%s9023_s4 + $0x7d8] sm:$0xff]  ;;  %v3886_v42 = vld [vmem:[%s9023_s4 + $0x7d0] sm:$0xff] }
 0x4ac   :  { %v4239_v31 = vld [vmem:[%s9026_s7 + $0x38] sm:$0xff]  ;;  %v4245_v53 = vld [vmem:[%s9026_s7 + $0x68] sm:$0xff]  ;;  %v4246_v34 = vld [vmem:[%s9026_s7 + $0x70] sm:$0xff] }
 0x4ad   :  { %6666 = vmatpush1.bf16.msra.mxu0 %v6665_v22  ;;  %6794 = vmatpush1.bf16.msra.mxu1 %v6793_v30  ;;  %v3859_v22 = vld [vmem:[%s9023_s4 + $0x6f8] sm:$0xff]  ;;  %v6685_v30 = vpack.c.bf16 %v3848_v24, %v3844_v21  ;;  %v6829_v21 = vpack.c.bf16 %v3882_v9, %v3878_v8  ;;  %v3884_v24 = vld [vmem:[%s9023_s4 + $0x7c0] sm:$0xff] }
 0x4ae   :  { %6668 = vmatprep.subr.bf16.mxu0 %v6667_v49  ;;  %6796 = vmatprep.subr.bf16.mxu1 %v6795_v46  ;;  %v3856_v49 = vld [vmem:[%s9023_s4 + $0x6e0] sm:$0xff]  ;;  %v6687_v46 = vpack.c.bf16 %v3857_v44, %v3853_v43  ;;  %v6815_v62 = vpack.c.bf16 %v3859_v22, %v3855_v25  ;;  %v3890_v43 = vld [vmem:[%s9023_s4 + $0x7f0] sm:$0xff]  ;;  %v4233_v44 = vld [vmem:[%s9026_s7 + $0x8] sm:$0xff] }
 0x4af   :  { %v4236_v25 = vld [vmem:[%s9026_s7 + $0x20] sm:$0xff]  ;;  %v4282_v22 = vld [vmem:[%s9026_s7 + $0x190] sm:$0xff]  ;;  %v4251_v0 = vld [vmem:[%s9026_s7 + $0x98] sm:$0xff] }
 0x4b0   :  { %v4252_v9 = vld [vmem:[%s9026_s7 + $0xa0] sm:$0xff] }
 0x4b1   :  { %6670 = vmatpush1.bf16.msra.mxu0 %v6669_v47  ;;  %6798 = vmatpush1.bf16.msra.mxu1 %v6797_v14  ;;  %v3867_v47 = vld [vmem:[%s9023_s4 + $0x738] sm:$0xff]  ;;  %v6689_v14 = vpack.c.bf16 %v3856_v49, %v3852_v32  ;;  %v6833_v32 = vpack.c.bf16 %v3890_v43, %v3886_v42  ;;  %v4232_v49 = vld [vmem:[%s9026_s7] sm:$0xff]  ;;  %v4258_v43 = vld [vmem:[%s9026_s7 + $0xd0] sm:$0xff] }
 0x4b2   :  { %6672 = vmatprep.subr.bf16.mxu0 %v6671_v51  ;;  %6800 = vmatprep.subr.bf16.mxu1 %v6799_v23  ;;  %v3864_v51 = vld [vmem:[%s9023_s4 + $0x720] sm:$0xff]  ;;  %v6691_v23 = vpack.c.bf16 %v3865_v39, %v3861_v36  ;;  %v6819_v52 = vpack.c.bf16 %v3867_v47, %v3863_v50  ;;  %v4234_v36 = vld [vmem:[%s9026_s7 + $0x10] sm:$0xff]  ;;  %v4237_v39 = vld [vmem:[%s9026_s7 + $0x28] sm:$0xff] }
 0x4b3   :  { %v4242_v50 = vld [vmem:[%s9026_s7 + $0x50] sm:$0xff]  ;;  %v4288_v47 = vld [vmem:[%s9026_s7 + $0x1c0] sm:$0xff] }
 0x4b5   :  { %6674 = vmatpush1.bf16.msra.mxu0 %v6673_v57  ;;  %6802 = vmatpush1.bf16.msra.mxu1 %v6801_v58  ;;  %v3875_v57 = vld [vmem:[%s9023_s4 + $0x778] sm:$0xff]  ;;  %v6693_v58 = vpack.c.bf16 %v3864_v51, %v3860_v38  ;;  %v4238_v38 = vld [vmem:[%s9026_s7 + $0x30] sm:$0xff]  ;;  %v4241_v51 = vld [vmem:[%s9026_s7 + $0x48] sm:$0xff] }
 0x4b6   :  { %6676 = vmatprep.subr.bf16.mxu0 %v6675_v13  ;;  %6804 = vmatprep.subr.bf16.mxu1 %v6803_v61  ;;  %v3872_v13 = vld [vmem:[%s9023_s4 + $0x760] sm:$0xff]  ;;  %v6695_v61 = vpack.c.bf16 %v3873_v56, %v3869_v27  ;;  %v6823_v63 = vpack.c.bf16 %v3875_v57, %v3871_v16  ;;  %v4243_v56 = vld [vmem:[%s9026_s7 + $0x58] sm:$0xff]  ;;  %v4294_v57 = vld [vmem:[%s9026_s7 + $0x1f0] sm:$0xff] }
 0x4b7   :  { %v4240_v27 = vld [vmem:[%s9026_s7 + $0x40] sm:$0xff] }
 0x4b8   :  { %v4248_v16 = vld [vmem:[%s9026_s7 + $0x80] sm:$0xff] }
 0x4b9   :  { %6678 = vmatpush1.bf16.msra.mxu0 %v6677_v2  ;;  %6806 = vmatpush1.bf16.msra.mxu1 %v6805_v3  ;;  %v3883_v2 = vld [vmem:[%s9023_s4 + $0x7b8] sm:$0xff]  ;;  %v6697_v3 = vpack.c.bf16 %v3872_v13, %v3868_v59  ;;  %v4244_v59 = vld [vmem:[%s9026_s7 + $0x60] sm:$0xff] }
 0x4ba   :  { %6680 = vmatprep.subr.bf16.mxu0 %v6679_v5  ;;  %6808 = vmatprep.subr.bf16.mxu1 %v6807_v6  ;;  %v3880_v5 = vld [vmem:[%s9023_s4 + $0x7a0] sm:$0xff]  ;;  %v6699_v6 = vpack.c.bf16 %v3881_v35, %v3877_v19  ;;  %v6827_v7 = vpack.c.bf16 %v3883_v2, %v3879_v1  ;;  %v4247_v13 = vld [vmem:[%s9026_s7 + $0x78] sm:$0xff]  ;;  %v4249_v19 = vld [vmem:[%s9026_s7 + $0x88] sm:$0xff] }
 0x4bb   :  { %v4254_v35 = vld [vmem:[%s9026_s7 + $0xb0] sm:$0xff]  ;;  %v4300_v1 = vld [vmem:[%s9026_s7 + $0x220] sm:$0xff]  ;;  %v4303_v2 = vld [vmem:[%s9026_s7 + $0x238] sm:$0xff] }
 0x4bc   :  { %v6947_v8 = vpack.c.bf16 %v4303_v2, %v4300_v1  ;;  %v4286_v1 = vld [vmem:[%s9026_s7 + $0x1b0] sm:$0xff]  ;;  %v4289_v2 = vld [vmem:[%s9026_s7 + $0x1c8] sm:$0xff] }
 0x4bd   :  { %6682 = vmatpush1.bf16.msra.mxu0 %v6681_v18  ;;  %6810 = vmatpush1.bf16.msra.mxu1 %v6809_v37  ;;  %v3891_v18 = vld [vmem:[%s9023_s4 + $0x7f8] sm:$0xff]  ;;  %v6701_v37 = vpack.c.bf16 %v3880_v5, %v3876_v4  ;;  %v4253_v4 = vld [vmem:[%s9026_s7 + $0xa8] sm:$0xff]  ;;  %v6945_v5 = vpack.c.bf16 %v4249_v19, %v4246_v34  ;;  %v4290_v34 = vld [vmem:[%s9026_s7 + $0x1d0] sm:$0xff] }
 0x4be   :  { %6684 = vmatprep.subr.bf16.mxu0 %v6683_v26  ;;  %6812 = vmatprep.subr.bf16.mxu1 %v6811_v33  ;;  %v3888_v26 = vld [vmem:[%s9023_s4 + $0x7e0] sm:$0xff]  ;;  %v6703_v33 = vpack.c.bf16 %v3889_v12, %v3885_v10  ;;  %v6831_v41 = vpack.c.bf16 %v3891_v18, %v3887_v15  ;;  %v4255_v10 = vld [vmem:[%s9026_s7 + $0xb8] sm:$0xff]  ;;  %v4306_v15 = vld [vmem:[%s9026_s7 + $0x250] sm:$0xff] }
 0x4bf   :  { %v4260_v12 = vld [vmem:[%s9026_s7 + $0xe0] sm:$0xff]  ;;  %v4309_v18 = vld [vmem:[%s9026_s7 + $0x268] sm:$0xff] }
 0x4c0   :  { %v6951_v42 = vpack.c.bf16 %v4309_v18, %v4306_v15  ;;  %v4298_v15 = vld [vmem:[%s9026_s7 + $0x210] sm:$0xff]  ;;  %v4301_v18 = vld [vmem:[%s9026_s7 + $0x228] sm:$0xff] }
 0x4c1   :  { %6686 = vmatpush1.bf16.msra.mxu0 %v6685_v30  ;;  %6814 = vmatpush1.bf16.msra.mxu1 %v6813_v55  ;;  %v4285_v30 = vld [vmem:[%s9026_s7 + $0x1a8] sm:$0xff]  ;;  %v6705_v55 = vpack.c.bf16 %v3888_v26, %v3884_v24  ;;  %v4259_v24 = vld [vmem:[%s9026_s7 + $0xd8] sm:$0xff]  ;;  %v6949_v26 = vpack.c.bf16 %v4255_v10, %v4252_v9  ;;  %v4302_v9 = vld [vmem:[%s9026_s7 + $0x230] sm:$0xff] }
 0x4c2   :  { %6688 = vmatprep.subr.bf16.mxu0 %v6687_v46  ;;  %6816 = vmatprep.subr.bf16.mxu1 %v6815_v62  ;;  %v4235_v46 = vld [vmem:[%s9026_s7 + $0x18] sm:$0xff]  ;;  %v6835_v62 = vpack.c.bf16 %v4236_v25, %v4233_v44  ;;  %v6935_v60 = vpack.c.bf16 %v4285_v30, %v4282_v22  ;;  %v4261_v44 = vld [vmem:[%s9026_s7 + $0xe8] sm:$0xff]  ;;  %v4266_v25 = vld [vmem:[%s9026_s7 + $0x110] sm:$0xff] }
 0x4c3   :  { %v4312_v22 = vld [vmem:[%s9026_s7 + $0x280] sm:$0xff]  ;;  %v4315_v30 = vld [vmem:[%s9026_s7 + $0x298] sm:$0xff] }
 0x4c5   :  { %6690 = vmatpush1.bf16.msra.mxu0 %v6689_v14  ;;  %6818 = vmatpush1.bf16.msra.mxu1 %v6817_v48  ;;  %v4291_v14 = vld [vmem:[%s9026_s7 + $0x1d8] sm:$0xff]  ;;  %v6837_v48 = vpack.c.bf16 %v4235_v46, %v4232_v49  ;;  %v4265_v49 = vld [vmem:[%s9026_s7 + $0x108] sm:$0xff]  ;;  %v6953_v46 = vpack.c.bf16 %v4261_v44, %v4258_v43  ;;  %v4314_v43 = vld [vmem:[%s9026_s7 + $0x290] sm:$0xff] }
 0x4c6   :  { %6692 = vmatprep.subr.bf16.mxu0 %v6691_v23  ;;  %6820 = vmatprep.subr.bf16.mxu1 %v6819_v52  ;;  %v6937_v23 = vpack.c.bf16 %v4237_v39, %v4234_v36  ;;  %v6839_v52 = vpack.c.bf16 %v4242_v50, %v4239_v31  ;;  %v6939_v54 = vpack.c.bf16 %v4291_v14, %v4288_v47  ;;  %v4269_v31 = vld [vmem:[%s9026_s7 + $0x128] sm:$0xff]  ;;  %v4264_v36 = vld [vmem:[%s9026_s7 + $0x100] sm:$0xff]  ;;  %v4267_v39 = vld [vmem:[%s9026_s7 + $0x118] sm:$0xff] }
 0x4c7   :  { %v4272_v50 = vld [vmem:[%s9026_s7 + $0x140] sm:$0xff]  ;;  %v4318_v47 = vld [vmem:[%s9026_s7 + $0x2b0] sm:$0xff]  ;;  %v4321_v14 = vld [vmem:[%s9026_s7 + $0x2c8] sm:$0xff] }
 0x4c9   :  { %6694 = vmatpush1.bf16.msra.mxu0 %v6693_v58  ;;  %6822 = vmatpush1.bf16.msra.mxu1 %v6821_v29  ;;  %v4297_v58 = vld [vmem:[%s9026_s7 + $0x208] sm:$0xff]  ;;  %v6841_v29 = vpack.c.bf16 %v4241_v51, %v4238_v38  ;;  %v6957_v38 = vpack.c.bf16 %v4267_v39, %v4264_v36  ;;  %v6859_v51 = vpack.c.bf16 %v4272_v50, %v4269_v31  ;;  %v4319_v31 = vld [vmem:[%s9026_s7 + $0x2b8] sm:$0xff] }
 0x4ca   :  { %6696 = vmatprep.subr.bf16.mxu0 %v6695_v61  ;;  %6824 = vmatprep.subr.bf16.mxu1 %v6823_v63  ;;  %v6941_v61 = vpack.c.bf16 %v4243_v56, %v4240_v27  ;;  %v6843_v63 = vpack.c.bf16 %v4248_v16, %v4245_v53  ;;  %v6959_v53 = vpack.c.bf16 %v4321_v14, %v4318_v47  ;;  %v4278_v27 = vld [vmem:[%s9026_s7 + $0x170] sm:$0xff]  ;;  %v4273_v39 = vld [vmem:[%s9026_s7 + $0x148] sm:$0xff]  ;;  %v4323_v47 = vld [vmem:[%s9026_s7 + $0x2d8] sm:$0xff] }
 0x4cb   :  { %v4326_v14 = vld [vmem:[%s9026_s7 + $0x2f0] sm:$0xff] }
 0x4cd   :  { %6698 = vmatpush1.bf16.msra.mxu0 %v6697_v3  ;;  %6826 = vmatpush1.bf16.msra.mxu1 %v6825_v20  ;;  %v6845_v3 = vpack.c.bf16 %v4247_v13, %v4244_v59  ;;  %v4250_v20 = vld [vmem:[%s9026_s7 + $0x90] sm:$0xff]  ;;  %v4284_v59 = vld [vmem:[%s9026_s7 + $0x1a0] sm:$0xff] }
 0x4ce   :  { %6700 = vmatprep.subr.bf16.mxu0 %v6699_v6  ;;  %6828 = vmatprep.subr.bf16.mxu1 %v6827_v7  ;;  %v6847_v6 = vpack.c.bf16 %v4254_v35, %v4251_v0  ;;  %v4257_v7 = vld [vmem:[%s9026_s7 + $0xc8] sm:$0xff]  ;;  %v4283_v0 = vld [vmem:[%s9026_s7 + $0x198] sm:$0xff] }
 0x4d1   :  { %6702 = vmatpush1.bf16.msra.mxu0 %v6701_v37  ;;  %6830 = vmatpush1.bf16.msra.mxu1 %v6829_v21  ;;  %v6849_v37 = vpack.c.bf16 %v4253_v4, %v4250_v20  ;;  %v4256_v21 = vld [vmem:[%s9026_s7 + $0xc0] sm:$0xff]  ;;  %v6873_v4 = vpack.c.bf16 %v4289_v2, %v4286_v1 }
 0x4d2   :  { %6704 = vmatprep.subr.bf16.mxu0 %v6703_v33  ;;  %6832 = vmatprep.subr.bf16.mxu1 %v6831_v41  ;;  %v6851_v33 = vpack.c.bf16 %v4260_v12, %v4257_v7  ;;  %v4263_v41 = vld [vmem:[%s9026_s7 + $0xf8] sm:$0xff]  ;;  %v4296_v20 = vld [vmem:[%s9026_s7 + $0x200] sm:$0xff] }
 0x4d3   :  { %v4295_v7 = vld [vmem:[%s9026_s7 + $0x1f8] sm:$0xff] }
 0x4d5   :  { %6706 = vmatpush1.bf16.msra.mxu0 %v6705_v55  ;;  %6834 = vmatpush1.bf16.msra.mxu1 %v6833_v32  ;;  %v6853_v55 = vpack.c.bf16 %v4259_v24, %v4256_v21  ;;  %v4262_v32 = vld [vmem:[%s9026_s7 + $0xf0] sm:$0xff]  ;;  %v4308_v21 = vld [vmem:[%s9026_s7 + $0x260] sm:$0xff]  ;;  %v6881_v24 = vpack.c.bf16 %v4301_v18, %v4298_v15  ;;  %v4335_v15 = vld [vmem:[%s9026_s7 + $0x338] sm:$0xff] }
 0x4d6   :  { %6836 = vmatprep.subr.bf16.mxu0 %v6835_v62  ;;  %6936 = vmatprep.subr.bf16.mxu1 %v6935_v60  ;;  %v6855_v62 = vpack.c.bf16 %v4266_v25, %v4263_v41  ;;  %v6955_v60 = vpack.c.bf16 %v4315_v30, %v4312_v22  ;;  %v4307_v41 = vld [vmem:[%s9026_s7 + $0x258] sm:$0xff]  ;;  %v4310_v22 = vld [vmem:[%s9026_s7 + $0x270] sm:$0xff]  ;;  %v4313_v30 = vld [vmem:[%s9026_s7 + $0x288] sm:$0xff] }
 0x4d7   :  { %v4338_v18 = vld [vmem:[%s9026_s7 + $0x350] sm:$0xff] }
 0x4d8   :  { %4050 = vmatmul.mubr.f32.vlgmr.msra.gmra.mrb[8].mxu0 %v8166_v45  ;;  %4192 = vmatmul.mubr.f32.vlgmr.msra.gmra.mrb[8].mxu1 %v8166_v45  ;;  %v6943_v45 = vpack.c.bf16 %v4297_v58, %v4294_v57  ;;  %v4274_v57 = vld [vmem:[%s9026_s7 + $0x150] sm:$0xff]  ;;  %v4277_v58 = vld [vmem:[%s9026_s7 + $0x168] sm:$0xff] }
 0x4d9   :  { %6838 = vmatpush1.bf16.msra.mxu0 %v6837_v48  ;;  %6938 = vmatpush3.bf16.msra.mxu1 %v6937_v23  ;;  %v6857_v48 = vpack.c.bf16 %v4265_v49, %v4262_v32  ;;  %v4268_v23 = vld [vmem:[%s9026_s7 + $0x120] sm:$0xff]  ;;  %v6865_v13 = vpack.c.bf16 %v4277_v58, %v4274_v57  ;;  %v6889_v49 = vpack.c.bf16 %v4313_v30, %v4310_v22  ;;  %v4329_v57 = vld [vmem:[%s9026_s7 + $0x308] sm:$0xff] }
 0x4da   :  { %6840 = vmatprep.subr.bf16.mxu0 %v6839_v52  ;;  %6940 = vmatprep.subr.bf16.mxu1 %v6939_v54  ;;  %v4271_v52 = vld [vmem:[%s9026_s7 + $0x138] sm:$0xff]  ;;  %v4320_v32 = vld [vmem:[%s9026_s7 + $0x2c0] sm:$0xff]  ;;  %v4341_v22 = vld [vmem:[%s9026_s7 + $0x368] sm:$0xff] }
 0x4db   :  { %v4275_v54 = vld [vmem:[%s9026_s7 + $0x158] sm:$0xff]  ;;  %v6861_v56 = vpack.c.bf16 %v4271_v52, %v4268_v23  ;;  %v4322_v23 = vld [vmem:[%s9026_s7 + $0x2d0] sm:$0xff]  ;;  %v4332_v58 = vld [vmem:[%s9026_s7 + $0x320] sm:$0xff] }
 0x4dc   :  { %v6863_v16 = vpack.c.bf16 %v4278_v27, %v4275_v54  ;;  %v4276_v54 = vld [vmem:[%s9026_s7 + $0x160] sm:$0xff]  ;;  %v4279_v27 = vld [vmem:[%s9026_s7 + $0x178] sm:$0xff] }
 0x4dd   :  { %6842 = vmatpush1.bf16.msra.mxu0 %v6841_v29  ;;  %6942 = vmatpush3.bf16.msra.mxu1 %v6941_v61  ;;  %v4281_v29 = vld [vmem:[%s9026_s7 + $0x188] sm:$0xff]  ;;  %v4344_v30 = vld [vmem:[%s9026_s7 + $0x380] sm:$0xff] }
 0x4de   :  { %6844 = vmatprep.subr.bf16.mxu0 %v6843_v63  ;;  %6944 = vmatprep.subr.bf16.mxu1 %v6943_v45  ;;  %v6867_v61 = vpack.c.bf16 %v4284_v59, %v4281_v29  ;;  %v4280_v63 = vld [vmem:[%s9026_s7 + $0x180] sm:$0xff]  ;;  %v4287_v45 = vld [vmem:[%s9026_s7 + $0x1b8] sm:$0xff]  ;;  %v6899_v29 = vpack.c.bf16 %v4332_v58, %v4329_v57  ;;  %v7404_v59 = vmov 0.0|0.0  }
 0x4df   :  { %v6869_v19 = vpack.c.bf16 %v4283_v0, %v4280_v63  ;;  %v6871_v35 = vpack.c.bf16 %v4290_v34, %v4287_v45  ;;  %v4355_v58 = vld [vmem:[%s9026_s7 + $0x3d8] sm:$0xff] }
 0x4e1   :  { %6846 = vmatpush1.bf16.msra.mxu0 %v6845_v3  ;;  %6946 = vmatpush3.bf16.msra.mxu1 %v6945_v5  ;;  %v4293_v3 = vld [vmem:[%s9026_s7 + $0x1e8] sm:$0xff] }
 0x4e2   :  { %6848 = vmatprep.subr.bf16.mxu0 %v6847_v6  ;;  %6948 = vmatprep.subr.bf16.mxu1 %v6947_v8  ;;  %v6875_v5 = vpack.c.bf16 %v4296_v20, %v4293_v3  ;;  %v4292_v6 = vld [vmem:[%s9026_s7 + $0x1e0] sm:$0xff]  ;;  %v4299_v8 = vld [vmem:[%s9026_s7 + $0x218] sm:$0xff] }
 0x4e3   :  { %v6877_v10 = vpack.c.bf16 %v4295_v7, %v4292_v6  ;;  %v6879_v12 = vpack.c.bf16 %v4302_v9, %v4299_v8  ;;  %v4331_v8 = vld [vmem:[%s9026_s7 + $0x318] sm:$0xff]  ;;  %v4330_v9 = vld [vmem:[%s9026_s7 + $0x310] sm:$0xff] }
 0x4e5   :  { %6850 = vmatpush1.bf16.msra.mxu0 %v6849_v37  ;;  %6950 = vmatpush3.bf16.msra.mxu1 %v6949_v26  ;;  %v4305_v37 = vld [vmem:[%s9026_s7 + $0x248] sm:$0xff] }
 0x4e6   :  { %6852 = vmatprep.subr.bf16.mxu0 %v6851_v33  ;;  %6952 = vmatprep.subr.bf16.mxu1 %v6951_v42  ;;  %v6883_v26 = vpack.c.bf16 %v4308_v21, %v4305_v37  ;;  %v4304_v33 = vld [vmem:[%s9026_s7 + $0x240] sm:$0xff]  ;;  %v4311_v42 = vld [vmem:[%s9026_s7 + $0x278] sm:$0xff] }
 0x4e7   :  { %v6885_v44 = vpack.c.bf16 %v4307_v41, %v4304_v33  ;;  %v6887_v25 = vpack.c.bf16 %v4314_v43, %v4311_v42  ;;  %v4337_v41 = vld [vmem:[%s9026_s7 + $0x348] sm:$0xff]  ;;  %v4336_v42 = vld [vmem:[%s9026_s7 + $0x340] sm:$0xff]  ;;  %v4339_v43 = vld [vmem:[%s9026_s7 + $0x358] sm:$0xff] }
 0x4e9   :  { %6854 = vmatpush1.bf16.msra.mxu0 %v6853_v55  ;;  %6954 = vmatpush3.bf16.msra.mxu1 %v6953_v46  ;;  %v4317_v55 = vld [vmem:[%s9026_s7 + $0x2a8] sm:$0xff] }
 0x4ea   :  { %6856 = vmatprep.subr.bf16.mxu0 %v6855_v62  ;;  %6956 = vmatprep.subr.bf16.mxu1 %v6955_v60  ;;  %v6891_v46 = vpack.c.bf16 %v4320_v32, %v4317_v55  ;;  %v4316_v62 = vld [vmem:[%s9026_s7 + $0x2a0] sm:$0xff]  ;;  %v4270_v60 = vld [vmem:[%s9026_s7 + $0x130] sm:$0xff] }
 0x4eb   :  { %v6893_v36 = vpack.c.bf16 %v4319_v31, %v4316_v62  ;;  %v6961_v50 = vpack.c.bf16 %v4273_v39, %v4270_v60  ;;  %v6907_v62 = vpack.c.bf16 %v4344_v30, %v4341_v22  ;;  %v4343_v31 = vld [vmem:[%s9026_s7 + $0x378] sm:$0xff]  ;;  %v4342_v60 = vld [vmem:[%s9026_s7 + $0x370] sm:$0xff]  ;;  %v4380_v22 = vld [vmem:[%s9026_s7 + $0x4a0] sm:$0xff] }
 0x4ec   :  { %v4347_v39 = vld [vmem:[%s9026_s7 + $0x398] sm:$0xff] }
 0x4ed   :  { %6858 = vmatpush1.bf16.msra.mxu0 %v6857_v48  ;;  %6958 = vmatpush3.bf16.msra.mxu1 %v6957_v38  ;;  %v6895_v48 = vpack.c.bf16 %v4326_v14, %v4323_v47  ;;  %v4324_v38 = vld [vmem:[%s9026_s7 + $0x2e0] sm:$0xff] }
 0x4ee   :  { %6860 = vmatprep.subr.bf16.mxu0 %v6859_v51  ;;  %6960 = vmatprep.subr.bf16.mxu1 %v6959_v53  ;;  %v4327_v51 = vld [vmem:[%s9026_s7 + $0x2f8] sm:$0xff]  ;;  %v4325_v53 = vld [vmem:[%s9026_s7 + $0x2e8] sm:$0xff] }
 0x4ef   :  { %v6963_v52 = vpack.c.bf16 %v4327_v51, %v4324_v38  ;;  %v4349_v51 = vld [vmem:[%s9026_s7 + $0x3a8] sm:$0xff] }
 0x4f1   :  { %6862 = vmatpush1.bf16.msra.mxu0 %v6861_v56  ;;  %6962 = vmatpush3.bf16.msra.mxu1 %v6961_v50  ;;  %v6897_v56 = vpack.c.bf16 %v4325_v53, %v4322_v23  ;;  %v4350_v50 = vld [vmem:[%s9026_s7 + $0x3b0] sm:$0xff]  ;;  %v4348_v23 = vld [vmem:[%s9026_s7 + $0x3a0] sm:$0xff]  ;;  %v4353_v53 = vld [vmem:[%s9026_s7 + $0x3c8] sm:$0xff] }
 0x4f2   :  { %6864 = vmatprep.subr.bf16.mxu0 %v6863_v16  ;;  %v6965_v16 = vpack.c.bf16 %v4279_v27, %v4276_v54  ;;  %6964 = vmatprep.subr.bf16.mxu1 %v6963_v52  ;;  %v6911_v38 = vpack.c.bf16 %v4350_v50, %v4347_v39  ;;  %v4351_v52 = vld [vmem:[%s9026_s7 + $0x3b8] sm:$0xff]  ;;  %v4356_v54 = vld [vmem:[%s9026_s7 + $0x3e0] sm:$0xff] }
 0x4f3   :  { %v6915_v57 = vpack.c.bf16 %v4356_v54, %v4353_v53  ;;  %v4713_v54 = vld [vmem:[#allocation16 + $0x10] sm:$0xff] }
 0x4f5   :  { %6866 = vmatpush1.bf16.msra.mxu0 %v6865_v13  ;;  %6966 = vmatpush3.bf16.msra.mxu1 %v6965_v16  ;;  %v8810_v13 = vld [vmem:[#allocation10] sm:$0xf]  ;;  %v4352_v16 = vld [vmem:[%s9026_s7 + $0x3c0] sm:$0xff] }
 0x4f6   :  { %6868 = vmatprep.subr.bf16.mxu0 %v6867_v61  ;;  %6967 = vmatprep.subr.bf16.mxu1 %v7404_v59  ;;  %v8812_v61 = vld [vmem:[#allocation11] sm:$0xf]  ;;  %v3897_v63 = vrot.slane %v8810_v13, %v7609_v11  ;;  %v3901_v0 = vrot.slane %v8810_v13, %v7619_v28  ;;  %v3909_v45 = vrot.slane %v8810_v13, %v7626_v40 }
 0x4f7   :  { %v4207_v34 = vrot.slane %v8812_v61, %v7609_v11  ;;  %v4211_v1 = vrot.slane %v8812_v61, %v7619_v28 }
 0x4f9   :  { %6870 = vmatpush1.bf16.msra.mxu0 %v6869_v19 }
 0x4fa   :  { %6872 = vmatprep.subr.bf16.mxu0 %v6871_v35 }
 0x4fd   :  { %6874 = vmatpush1.bf16.msra.mxu0 %v6873_v4  ;;  %v4219_v4 = vrot.slane %v8812_v61, %v7626_v40 }
 0x4fe   :  { %6876 = vmatprep.subr.bf16.mxu0 %v6875_v5  ;;  %v4328_v5 = vld [vmem:[%s9026_s7 + $0x300] sm:$0xff] }
 0x4ff   :  { %v6901_v21 = vpack.c.bf16 %v4331_v8, %v4328_v5  ;;  %v4365_v5 = vld [vmem:[%s9026_s7 + $0x428] sm:$0xff] }
 0x501   :  { %6878 = vmatpush1.bf16.msra.mxu0 %v6877_v10  ;;  %v4333_v10 = vld [vmem:[%s9026_s7 + $0x328] sm:$0xff] }
 0x502   :  { %6880 = vmatprep.subr.bf16.mxu0 %v6879_v12 }
 0x505   :  { %6882 = vmatpush1.bf16.msra.mxu0 %v6881_v24  ;;  %v6968_v24 = vpack.c.bf16 %v4333_v10, %v4330_v9  ;;  %v4364_v9 = vld [vmem:[%s9026_s7 + $0x420] sm:$0xff] }
 0x506   :  { %6884 = vmatprep.subr.bf16.mxu0 %v6883_v26  ;;  %v4334_v26 = vld [vmem:[%s9026_s7 + $0x330] sm:$0xff] }
 0x507   :  { %v6905_v32 = vpack.c.bf16 %v4337_v41, %v4334_v26  ;;  %v4370_v26 = vld [vmem:[%s9026_s7 + $0x450] sm:$0xff]  ;;  %v4373_v41 = vld [vmem:[%s9026_s7 + $0x468] sm:$0xff] }
 0x508   :  { %v6929_v30 = vpack.c.bf16 %v4373_v41, %v4370_v26  ;;  %v4739_v26 = vld [vmem:[#allocation16 + $0xe0] sm:$0xff] }
 0x509   :  { %6886 = vmatpush1.bf16.msra.mxu0 %v6885_v44 }
 0x50a   :  { %6888 = vmatprep.subr.bf16.mxu0 %v6887_v25  ;;  %v6903_v25 = vpack.c.bf16 %v4338_v18, %v4335_v15  ;;  %v4369_v15 = vld [vmem:[%s9026_s7 + $0x448] sm:$0xff]  ;;  %v4371_v18 = vld [vmem:[%s9026_s7 + $0x458] sm:$0xff] }
 0x50d   :  { %6890 = vmatpush1.bf16.msra.mxu0 %v6889_v49  ;;  %v6971_v49 = vpack.c.bf16 %v4339_v43, %v4336_v42  ;;  %v4372_v42 = vld [vmem:[%s9026_s7 + $0x460] sm:$0xff]  ;;  %v4375_v43 = vld [vmem:[%s9026_s7 + $0x478] sm:$0xff] }
 0x50e   :  { %6892 = vmatprep.subr.bf16.mxu0 %v6891_v46  ;;  %v4340_v46 = vld [vmem:[%s9026_s7 + $0x360] sm:$0xff] }
 0x50f   :  { %v6909_v47 = vpack.c.bf16 %v4343_v31, %v4340_v46  ;;  %v4378_v46 = vld [vmem:[%s9026_s7 + $0x490] sm:$0xff] }
 0x511   :  { %6894 = vmatpush1.bf16.msra.mxu0 %v6893_v36  ;;  %v4345_v36 = vld [vmem:[%s9026_s7 + $0x388] sm:$0xff] }
 0x512   :  { %6896 = vmatprep.subr.bf16.mxu0 %v6895_v48  ;;  %v6974_v14 = vpack.c.bf16 %v4345_v36, %v4342_v60  ;;  %v4346_v48 = vld [vmem:[%s9026_s7 + $0x390] sm:$0xff]  ;;  %v4215_v60 = vrot.slane %v8812_v61, %v7614_v17 }
 0x513   :  { %v6913_v27 = vpack.c.bf16 %v4349_v51, %v4346_v48  ;;  %v4711_v48 = vld [vmem:[#allocation16] sm:$0xff]  ;;  %v4729_v51 = vld [vmem:[#allocation16 + $0x90] sm:$0xff] }
 0x515   :  { %6898 = vmatpush1.bf16.msra.mxu0 %v6897_v56  ;;  %v6977_v56 = vpack.c.bf16 %v4351_v52, %v4348_v23  ;;  %v4730_v23 = vld [vmem:[#allocation16 + $0x98] sm:$0xff] }
 0x516   :  { %6900 = vmatprep.subr.bf16.mxu0 %v6899_v29  ;;  %v4354_v29 = vld [vmem:[%s9026_s7 + $0x3d0] sm:$0xff]  ;;  %v6998_v53 = vpack.c.bf16 %v4730_v23, %v4729_v51 }
 0x5ab   :  { %v4051_v19 = vpop.f32.mrb[8].mxu0  ;;  %v8822_v35 = vpop.f32.mrb[8].mxu1 }
 0x5ac   :  { %v7048_v2 = vadd.f32 %v4051_v19, %v3897_v63  ;;  %v4053_v3 = vpop.f32.mrb[9].mxu0  ;;  %v4195_v20 = vpop.f32.mrb[9].mxu1  ;;  %v4357_v63 = vld [vmem:[%s9026_s7 + $0x3e8] sm:$0xff] }
 0x5ad   :  { %v7049_v6 = vadd.f32 %v4053_v3, %v3901_v0  ;;  %v7051_v7 = vadd.f32 %v4195_v20, %v3909_v45  ;;  %v4359_v0 = vld [vmem:[%s9026_s7 + $0x3f8] sm:$0xff]  ;;  %v4362_v45 = vld [vmem:[%s9026_s7 + $0x410] sm:$0xff]  ;;  %v6980_v19 = vpack.c.bf16 %v4357_v63, %v4354_v29  ;;  %v4361_v3 = vld [vmem:[%s9026_s7 + $0x408] sm:$0xff] }
 0x5ae   :  { %v4224_v12 = vmul.f32 %v7048_v2, %v4207_v34  ;;  %vm4198_vm0 = vcmp.ge.f32.partialorder %v7048_v2, 0.0  ;;  %v6917_v34 = vpack.c.bf16 %v4355_v58, %v4352_v16  ;;  %v4360_v20 = vld [vmem:[%s9026_s7 + $0x400] sm:$0xff]  ;;  %v4732_v16 = vld [vmem:[#allocation16 + $0xa8] sm:$0xff] }
 0x5af   :  { %v4225_v40 = vmul.f32 %v7049_v6, %v4211_v1  ;;  %vm4199_vm1 = vcmp.ge.f32.partialorder %v7049_v6, 0.0  ;;  %v4227_v37 = vmul.f32 %v7051_v7, %v4219_v4  ;;  %vm4201_vm2 = vcmp.ge.f32.partialorder %v7051_v7, 0.0  ;;  %v4358_v1 = vld [vmem:[%s9026_s7 + $0x3f0] sm:$0xff]  ;;  %v4363_v4 = vld [vmem:[%s9026_s7 + $0x418] sm:$0xff]  ;;  %v4715_v29 = vld [vmem:[#allocation16 + $0x20] sm:$0xff] }
 0x5b0   :  { %v4228_v44 = vsel %vm4198_vm0, %v7048_v2, %v4224_v12  ;;  %v6919_v2 = vpack.c.bf16 %v4362_v45, %v4359_v0  ;;  %v6983_v8 = vpack.c.bf16 %v4363_v4, %v4360_v20  ;;  %v4367_v12 = vld [vmem:[%s9026_s7 + $0x438] sm:$0xff]  ;;  %v4716_v63 = vld [vmem:[#allocation16 + $0x28] sm:$0xff]  ;;  %v4733_v0 = vld [vmem:[#allocation16 + $0xb0] sm:$0xff] }
 0x5b1   :  { %v4229_v33 = vsel %vm4199_vm1, %v7049_v6, %v4225_v40  ;;  %v4231_v55 = vsel %vm4201_vm2, %v7051_v7, %v4227_v37  ;;  %v4368_v6 = vld [vmem:[%s9026_s7 + $0x440] sm:$0xff]  ;;  %v6921_v7 = vpack.c.bf16 %v4361_v3, %v4358_v1  ;;  %v4366_v40 = vld [vmem:[%s9026_s7 + $0x430] sm:$0xff]  ;;  %v4734_v45 = vld [vmem:[#allocation16 + $0xb8] sm:$0xff] }
 0x5b2   :  { %4467 = vmatprep.mubr.f32.mxu0 %v4229_v33  ;;  %4609 = vmatprep.mubr.f32.mxu1 %v4229_v33  ;;  %v6923_v10 = vpack.c.bf16 %v4368_v6, %v4365_v5  ;;  %v4374_v37 = vld [vmem:[%s9026_s7 + $0x470] sm:$0xff]  ;;  %v4744_v1 = vld [vmem:[#allocation16 + $0x108] sm:$0xff]  ;;  %v4718_v20 = vld [vmem:[#allocation16 + $0x38] sm:$0xff] }
 0x5b3   :  { %4468 = vmatmul.mubr.f32.vlgmr.msra.gmra.mrb[10].mxu0 %v4228_v44  ;;  %4610 = vmatmul.mubr.f32.vlgmr.msra.gmra.mrb[10].mxu1 %v4228_v44  ;;  %v6927_v33 = vpack.c.bf16 %v4374_v37, %v4371_v18  ;;  %v3905_v44 = vrot.slane %v8810_v13, %v7614_v17  ;;  %v4717_v3 = vld [vmem:[#allocation16 + $0x30] sm:$0xff]  ;;  %v4735_v5 = vld [vmem:[#allocation16 + $0xc0] sm:$0xff]  ;;  %v4736_v6 = vld [vmem:[#allocation16 + $0xc8] sm:$0xff] }
 0x5b4   :  { %6902 = vmatpush1.bf16.msra.mxu0 %v6901_v21  ;;  %6969 = vmatpush1.bf16.msra.mxu1 %v6968_v24  ;;  %v6925_v21 = vpack.c.bf16 %v4367_v12, %v4364_v9  ;;  %v6986_v24 = vpack.c.bf16 %v4369_v15, %v4366_v40  ;;  %v4719_v9 = vld [vmem:[#allocation16 + $0x40] sm:$0xff]  ;;  %v4737_v12 = vld [vmem:[#allocation16 + $0xd0] sm:$0xff]  ;;  %v4738_v40 = vld [vmem:[#allocation16 + $0xd8] sm:$0xff] }
 0x5b5   :  { %4953 = vmatprep.mubr.msk.f32.mxu0 %vm4399_vm3, %v4231_v55  ;;  %4954 = vmatprep.mubr.msk.f32.mxu1 %vm4399_vm3, %v4231_v55  ;;  %v6989_v55 = vpack.c.bf16 %v4375_v43, %v4372_v42  ;;  %v7050_v31 = vadd.f32 %v8822_v35, %v3905_v44  ;;  %v4727_v35 = vld [vmem:[#allocation16 + $0x80] sm:$0xff]  ;;  %v7014_v18 = vpack.c.bf16 %v4738_v40, %v4737_v12  ;;  %v4721_v37 = vld [vmem:[#allocation16 + $0x50] sm:$0xff]  ;;  %v4724_v42 = vld [vmem:[#allocation16 + $0x68] sm:$0xff] }
 0x5b6   :  { %6904 = vmatprep.subr.bf16.mxu0 %v6903_v25  ;;  %6970 = vmatprep.subr.bf16.mxu1 %v7404_v59  ;;  %v4377_v25 = vld [vmem:[%s9026_s7 + $0x488] sm:$0xff]  ;;  %v4745_v44 = vld [vmem:[#allocation16 + $0x110] sm:$0xff] }
 0x5b7   :  { %v6931_v13 = vpack.c.bf16 %v4380_v22, %v4377_v25  ;;  %v4226_v50 = vmul.f32 %v7050_v31, %v4215_v60  ;;  %vm4200_vm4 = vcmp.ge.f32.partialorder %v7050_v31, 0.0  ;;  %v4746_v25 = vld [vmem:[#allocation16 + $0x118] sm:$0xff] }
 0x5b8   :  { %6906 = vmatpush1.bf16.msra.mxu0 %v6905_v32  ;;  %6972 = vmatpush1.bf16.msra.mxu1 %v6971_v49  ;;  %v4376_v32 = vld [vmem:[%s9026_s7 + $0x480] sm:$0xff]  ;;  %v4379_v49 = vld [vmem:[%s9026_s7 + $0x498] sm:$0xff]  ;;  %v7030_v22 = vpack.c.bf16 %v4746_v25, %v4745_v44 }
 0x5b9   :  { %6908 = vmatprep.subr.bf16.mxu0 %v6907_v62  ;;  %6973 = vmatprep.subr.bf16.mxu1 %v7404_v59  ;;  %v4381_v62 = vld [vmem:[%s9026_s7 + $0x4a8] sm:$0xff]  ;;  %v6933_v36 = vpack.c.bf16 %v4379_v49, %v4376_v32  ;;  %v4726_v49 = vld [vmem:[#allocation16 + $0x78] sm:$0xff]  ;;  %s7407_s7 = smov 119  }
 0x5ba   :  { %v6992_v39 = vpack.c.bf16 %v4381_v62, %v4378_v46  ;;  %v7406_v62 = vmov 0.0  }
 0x5bc   :  { %6910 = vmatpush1.bf16.msra.mxu0 %v6909_v47  ;;  %6975 = vmatpush1.bf16.msra.mxu1 %v6974_v14  ;;  %v4230_v47 = vsel %vm4200_vm4, %v7050_v31, %v4226_v50  ;;  %v4728_v14 = vld [vmem:[#allocation16 + $0x88] sm:$0xff] }
 0x5bd   :  { %6912 = vmatprep.subr.bf16.mxu0 %v6911_v38  ;;  %6976 = vmatprep.subr.bf16.mxu1 %v7404_v59  ;;  %v6994_v61 = vpack.c.bf16 %v4728_v14, %v4727_v35  ;;  %v4712_v38 = vld [vmem:[#allocation16 + $0x8] sm:$0xff] }
 0x5be   :  { %v6996_v52 = vpack.c.bf16 %v4712_v38, %v4711_v48 }
 0x5c0   :  { %6914 = vmatpush1.bf16.msra.mxu0 %v6913_v27  ;;  %6978 = vmatpush1.bf16.msra.mxu1 %v6977_v56  ;;  %v4714_v27 = vld [vmem:[#allocation16 + $0x18] sm:$0xff]  ;;  %v4731_v56 = vld [vmem:[#allocation16 + $0xa0] sm:$0xff] }
 0x5c1   :  { %6916 = vmatprep.subr.bf16.mxu0 %v6915_v57  ;;  %6979 = vmatprep.subr.bf16.mxu1 %v7404_v59  ;;  %v7000_v57 = vpack.c.bf16 %v4714_v27, %v4713_v54  ;;  %v7002_v58 = vpack.c.bf16 %v4732_v16, %v4731_v56 }
 0x5c4   :  { %6918 = vmatpush1.bf16.msra.mxu0 %v6917_v34  ;;  %6981 = vmatpush1.bf16.msra.mxu1 %v6980_v19  ;;  %v7004_v34 = vpack.c.bf16 %v4716_v63, %v4715_v29  ;;  %v4743_v19 = vld [vmem:[#allocation16 + $0x100] sm:$0xff] }
 0x5c5   :  { %6920 = vmatprep.subr.bf16.mxu0 %v6919_v2  ;;  %6982 = vmatprep.subr.bf16.mxu1 %v7404_v59  ;;  %v7006_v2 = vpack.c.bf16 %v4734_v45, %v4733_v0  ;;  %v7027_v4 = vpack.c.bf16 %v4744_v1, %v4743_v19 }
 0x5c8   :  { %6922 = vmatpush1.bf16.msra.mxu0 %v6921_v7  ;;  %6984 = vmatpush1.bf16.msra.mxu1 %v6983_v8  ;;  %v7008_v7 = vpack.c.bf16 %v4718_v20, %v4717_v3  ;;  %v7010_v8 = vpack.c.bf16 %v4736_v6, %v4735_v5 }
 0x5c9   :  { %6924 = vmatprep.subr.bf16.mxu0 %v6923_v10  ;;  %6985 = vmatprep.subr.bf16.mxu1 %v7404_v59  ;;  %v4720_v10 = vld [vmem:[#allocation16 + $0x48] sm:$0xff] }
 0x5ca   :  { %v7012_v15 = vpack.c.bf16 %v4720_v10, %v4719_v9 }
 0x5cc   :  { %6926 = vmatpush1.bf16.msra.mxu0 %v6925_v21  ;;  %6987 = vmatpush1.bf16.msra.mxu1 %v6986_v24  ;;  %v4722_v21 = vld [vmem:[#allocation16 + $0x58] sm:$0xff] }
 0x5cd   :  { %6928 = vmatprep.subr.bf16.mxu0 %v6927_v33  ;;  %6988 = vmatprep.subr.bf16.mxu1 %v7404_v59  ;;  %v7016_v24 = vpack.c.bf16 %v4722_v21, %v4721_v37  ;;  %v4740_v33 = vld [vmem:[#allocation16 + $0xe8] sm:$0xff] }
 0x5ce   :  { %v7018_v41 = vpack.c.bf16 %v4740_v33, %v4739_v26 }
 0x5d0   :  { %6930 = vmatpush1.bf16.msra.mxu0 %v6929_v30  ;;  %6990 = vmatpush1.bf16.msra.mxu1 %v6989_v55  ;;  %v4741_v30 = vld [vmem:[#allocation16 + $0xf0] sm:$0xff]  ;;  %v4742_v55 = vld [vmem:[#allocation16 + $0xf8] sm:$0xff] }
 0x5d1   :  { %6932 = vmatprep.subr.bf16.mxu0 %v6931_v13  ;;  %6991 = vmatprep.subr.bf16.mxu1 %v7404_v59  ;;  %v7022_v32 = vpack.c.bf16 %v4742_v55, %v4741_v30  ;;  %v4725_v13 = vld [vmem:[#allocation16 + $0x70] sm:$0xff] }
 0x5d2   :  { %v7024_v46 = vpack.c.bf16 %v4726_v49, %v4725_v13 }
 0x5d4   :  { %6934 = vmatpush1.bf16.msra.mxu0 %v6933_v36  ;;  %6993 = vmatpush1.bf16.msra.mxu1 %v6992_v39  ;;  %v4382_v39 = vld [vmem:[#allocation13] sm:$0x7] }
 0x5d5   :  { %7026 = vmatprep.subr.bf16.mxu0 %v7404_v59  ;;  %6995 = vmatprep.subr.bf16.mxu1 %v6994_v61  ;;  %v4395_v50 = vrot.slane %v4382_v39, %v7614_v17  ;;  %v4387_v35 = vrot.slane %v4382_v39, %v7609_v11  ;;  %v4391_v14 = vrot.slane %v4382_v39, %v7619_v28 }
 0x5d7   :  { %4539 = vmatmul.mubr.f32.vlgmr.msra.gmra.mrb[10].mxu0 %v4230_v47  ;;  %4680 = vmatmul.mubr.f32.vlgmr.msra.gmra.mrb[12].mxu1 %v4230_v47  ;;  %v4688_v47 = vld [vmem:[#allocation14] sm:$0x7] }
 0x5d8   :  { %6997 = vmatpush3.bf16.msra.mxu1 %v6996_v52  ;;  %7028 = vmatpush3.bf16.msra.mxu0 %v7027_v4  ;;  %v4693_v48 = vrot.slane %v4688_v47, %v7609_v11  ;;  %v4701_v38 = vrot.slane %v4688_v47, %v7614_v17  ;;  %v4697_v52 = vrot.slane %v4688_v47, %v7619_v28 }
 0x5d9   :  { %6999 = vmatprep.subr.bf16.mxu1 %v6998_v53  ;;  %7029 = vmatprep.subr.bf16.mxu0 %v7404_v59  ;;  %v4723_v59 = vld [vmem:[#allocation16 + $0x60] sm:$0xff] }
 0x5da   :  { %v7020_v43 = vpack.c.bf16 %v4724_v42, %v4723_v59  ;;  %5040 = vmatprep.mubr.msk.f32.mxu0 %vm7405_vm5, %v7406_v62 }
 0x5dc   :  { %7001 = vmatpush3.bf16.msra.mxu1 %v7000_v57  ;;  %7031 = vmatpush3.bf16.msra.mxu0 %v7030_v22 }
 0x5dd   :  { %7003 = vmatprep.subr.bf16.mxu1 %v7002_v58 }
 0x5e0   :  { %7005 = vmatpush3.bf16.msra.mxu1 %v7004_v34  ;;  %v4955_v34 = vld [vmem:[#allocation17] ss:$0 sm:$0xff] }
 0x5e1   :  { %7007 = vmatprep.subr.bf16.mxu1 %v7006_v2 }
 0x5e4   :  { %7009 = vmatpush3.bf16.msra.mxu1 %v7008_v7 }
 0x5e5   :  { %7011 = vmatprep.subr.bf16.mxu1 %v7010_v8 }
 0x5e8   :  { %7013 = vmatpush3.bf16.msra.mxu1 %v7012_v15 }
 0x5e9   :  { %7015 = vmatprep.subr.bf16.mxu1 %v7014_v18 }
 0x5ec   :  { %7017 = vmatpush3.bf16.msra.mxu1 %v7016_v24 }
 0x5ed   :  { %7019 = vmatprep.subr.bf16.mxu1 %v7018_v41 }
 0x5f0   :  { %7021 = vmatpush3.bf16.msra.mxu1 %v7020_v43 }
 0x5f1   :  { %7023 = vmatprep.subr.bf16.mxu1 %v7022_v32 }
 0x5f4   :  { %7025 = vmatpush3.bf16.msra.mxu1 %v7024_v46 }
 0x686   :  { %v4989_v31 = vpop.f32.mrb[10].mxu1 }
 0x687   :  { %v4990_v60 = vpop.f32.mrb[11].mxu1 }
 0x688   :  { %v4991_v36 = vadd.f32 %v4990_v60, %v4989_v31 }
 0x68a   :  { %v4612_v61 = vadd.f32 %v4991_v36, %v4395_v50 }
 0x6aa   :  { %v4540_v51 = vpop.f32.mrb[10].mxu0  ;;  %v4681_v23 = vpop.f32.mrb[12].mxu1 }
 0x6ab   :  { %v7052_v53 = vadd.f32 %v4540_v51, %v4387_v35  ;;  %v4682_v54 = vadd.f32 %v4681_v23, %v4612_v61  ;;  %v4542_v27 = vpop.f32.mrb[11].mxu0  ;;  %v4683_v56 = vpop.f32.mrb[13].mxu1 }
 0x6ac   :  { %v7053_v16 = vadd.f32 %v4542_v27, %v4391_v14 }
 0x6ad   :  { %v4705_v57 = vmul.f32 %v7052_v53, %v4693_v48  ;;  %vm4687_vm6 = vcmp.ge.f32.partialorder %v4682_v54, 0.0  ;;  %v4707_v58 = vmul.f32 %v4701_v38, %v4682_v54  ;;  %vm4685_vm8 = vcmp.ge.f32.partialorder %v7052_v53, 0.0 }
 0x6ae   :  { %v4706_v29 = vmul.f32 %v7053_v16, %v4697_v52  ;;  %vm4686_vm9 = vcmp.ge.f32.partialorder %v7053_v16, 0.0 }
 0x6af   :  { %v4710_v11 = vsel %vm4687_vm6, %v4682_v54, %v4707_v58  ;;  %v4708_v17 = vsel %vm4685_vm8, %v7052_v53, %v4705_v57 }
 0x6b0   :  { %5041 = vmatmul.mubr.msk.f32.vlgmr.msra.gmra.mrb[12].mxu0 %vm4754_vm7, %v4710_v11  ;;  %v4709_v63 = vsel %vm4686_vm9, %v7053_v16, %v4706_v29 }
 0x6b1   :  { %4822 = vmatprep.mubr.f32.mxu1 %v4709_v63 }
 0x6b2   :  { %4823 = vmatmul.mubr.f32.vlgmr.msra.gmra.mrb[14].mxu1 %v4708_v17 }
 0x783   :  { %v4894_v0 = vpop.f32.mrb[12].mxu0 }
 0x784   :  { %v5042_v28 = vpop.f32.mrb[13].mxu0 }
 0x785   :  { %v5024_v45 = vpop.f32.mrb[14].mxu1 }
 0x786   :  { %v5025_v19 = vpop.f32.mrb[15].mxu1 }
 0x787   :  { %v5026_v1 = vadd.f32 %v5025_v19, %v5024_v45 }
 0x789   :  { %v4825_v2 = vadd.f32 %v5026_v1, %v4955_v34 }
 0x78b   :  { %v4895_v3 = vadd.f32 %v4894_v0, %v4825_v2 }
 0x78d   :  { %4922 = vst [vmem:[#allocation19] sm:$0xff] %v4895_v3  ;;  %4899 = vrot.lane.b32.xlu0 %v4895_v3, %s7407_s7 }
 0x7ff   :  { %v4900_v20 = vpop.permute.xlu0 %4899 }
 0x800   :  { %v4902_v4 = vmax.f32 %v4895_v3, %v4900_v20 }
 0x802   :  { %4907 = vrot.lane.b32.xlu0 %v4902_v4, %s7408_s6  ;;  %v4903_v9 = vsub.f32 %v4895_v3, %v4902_v4 }
 0x804   :  { %v4904_v10 = vmul.f32 1.442695, %v4903_v9 }
 0x874   :  { %v4908_v5 = vpop.permute.xlu0 %4907 }
 0x875   :  { %v4910_v6 = vsub.f32 %v4895_v3, %v4908_v5 }
 0x877   :  { %v4911_v7 = vmul.f32 1.442695, %v4910_v6 }
 0x879   :  { %7111 = vpow2.f32 %v4911_v7 }
 0x87a   :  { %7113 = vpow2.f32 %v4904_v10 }
 0x883   :  { %v7112_v8 = vpop.eup %7111 }
 0x884   :  { %4914 = vrot.lane.b32.xlu1 %v7112_v8, %s7407_s7  ;;  %v7114_v12 = vpop.eup %7113 }
 0x8f6   :  { %v4915_v40 = vpop.permute.xlu1 %4914 }
 0x8f7   :  { %v4917_v15 = vadd.f32 %v7114_v12, %v4915_v40 }
 0x8f9   :  { %7115 = vrcp.f32 %v4917_v15 }
 0x903   :  { %v7116_v18 = vpop.eup %7115 }
 0x904   :  { %v4919_v37 = vmul.f32 %v7116_v18, %v4917_v15 }
 0x906   :  { %v4920_v21 = vsub.f32 2.0, %v4919_v37 }
 0x908   :  { %v4921_v24 = vmul.f32 %v7116_v18, %v4920_v21 }
 0x90a   :  { %4927 = vrot.lane.b32.xlu1 %v4921_v24, %s7408_s6  ;;  %v4923_v26 = vmul.f32 %v7114_v12, %v4921_v24 }
 0x90c   :  { %4925 = vst.msk [vmem:[#allocation19] sm:$0xff] %vm4924_vm10, %v4923_v26 }
 0x97c   :  { %v4928_v33 = vpop.permute.xlu1 %4927 }
 0x97d   :  { %v4930_v41 = vmul.f32 %v7112_v8, %v4928_v33 }
 0x97f   :  { %4932 = vst.msk [vmem:[#allocation19] sm:$0xff] %vm4931_vm11, %v4930_v41 }
 0x980   :  { %7366 = shalt.err (!%p7363_p0)
}
 0x981   :  { %s7367_s27 = scalar_lea.hbm %s9031_s12, 128 }
 0x982   :  { %p7368_p1 = scmp.ne.s32.totalorder %s9031_s12, %s7367_s27  ;;  %p7371_p2 = scmp.lt.u32.totalorder %s7367_s27, %s9031_s12 }
 0x984   :  { %p7373_p3 = pnand %p7371_p2, %p7368_p1 }
 0x986   :  { %7376 = shalt.err (!%p7373_p3)
}
 0x987   :  { %4942 = dma.vmem_to_hbm [thread:$0]  %s4940_s16, 128, %s9031_s12, [#allocation4]  }
 0x988   :  { %7389 = dma.done.wait [#allocation4], 128  }
 0x989   :  { %7390 = vsyncadd [#allocation4], 4294967168 }
 0x98a   :  { %4946 = vsyncpa [#allocation3], 1 }
 0x98b   :  { %4947 = vsyncpa [#allocation6], 1 }
 0x98c   :  { %4948 = vsyncpa [#allocation9], 1 }
 0x98d   :  { %4949 = vsyncpa [#allocation12], 1 }
 0x98e   :  { %4950 = vsyncpa [#allocation15], 1 }
 0x98f   :  { %4951 = vsyncpa [#allocation18], 1 }
 0x990   :  { %4952 = vsyncpa [#allocation4], 1 }

</bundles_post_ra>
